<compile_context>
chip_gen: v5e
topology: v5e:2x2
jax: 0.10.0
libtpu: 0.0.40
codegen_flags: <defaults>
</compile_context>

<pallas_src>
import functools

import jax
import jax.numpy as jnp
import numpy as np
from jax.experimental import pallas as pl
from jax.experimental.pallas import tpu as pltpu

BN_EPS = 1e-5
VMEM_TILE_BUDGET = 20 * 1024 * 1024   # per-step VMEM target, incl. double buffers


# ---------------------------------------------------------------------------
# Kernel: one halo'd row-group tile of a 3x3 conv + BN partial statistics
# ---------------------------------------------------------------------------
def _conv3x3_stats_kernel(x_ref, w_ref, conv_ref, stats_ref, *, rg, W, Wp2):
    """x_ref:    ((rg+2)*Wp2 + 8, Cin) bf16  flattened (padded-row, padded-col) tile
       w_ref:    (9, Cin, Cout)        bf16  tap-major weights
       conv_ref: (rg*Wp2, Cout)        bf16  raw conv (cols >= W of each row = garbage)
       stats_ref:(2, Cout)             f32   row0 = sum, row1 = sumsq over valid cols
    """
    lout = rg * Wp2
    acc = None
    for t in range(9):                      # statically unrolled 3x3 taps
        dy, dx = divmod(t, 3)
        off = dy * Wp2 + dx
        patch = x_ref[off:off + lout, :]    # static contiguous slice (no reshape)
        part = jnp.dot(patch, w_ref[t], preferred_element_type=jnp.float32)
        acc = part if acc is None else acc + part

    conv_ref[...] = acc.astype(conv_ref.dtype)

    # BN partial stats from the f32 accumulator; mask the wrap-around columns.
    col = jax.lax.broadcasted_iota(jnp.int32, (lout, 1), 0) % Wp2
    vacc = jnp.where(col < W, acc, 0.0)
    stats_ref[...] = jnp.concatenate(
        [jnp.sum(vacc, axis=0, keepdims=True),
         jnp.sum(vacc * vacc, axis=0, keepdims=True)], axis=0)


# ---------------------------------------------------------------------------
# Tiling helpers
# ---------------------------------------------------------------------------
def _vmem_bytes_estimate(rg, W, cin, cout):
    wp2 = W + 2
    lin = (rg + 2) * wp2 + 8
    lout = rg * wp2
    inp = 2 * lin * cin * 2            # double-buffered bf16 input tile
    wgt = 2 * 9 * cin * cout * 2       # weights (conservatively double-buffered)
    out = 2 * lout * cout * 2          # double-buffered bf16 conv output tile
    sts = 2 * 2 * cout * 4
    work = lout * cout * 4 + lout * cin * 2   # f32 accumulator + staged tap
    return inp + wgt + out + sts + work


def _pick_rows_per_group(N, H, W, cin, cout, budget=VMEM_TILE_BUDGET):
    divisors = [d for d in range(H, 0, -1) if H % d == 0]
    fitting = [d for d in divisors
               if _vmem_bytes_estimate(d, W, cin, cout) <= budget]
    if not fitting:
        # TODO(synk): add width tiling for the (rare) case where even a single
        # padded row (rg=1) exceeds the VMEM budget.
        return 1
    for d in fitting:                  # prefer >= 2 grid steps (v7x megacore)
        if N * (H // d) >= 2:
            return d
    return fitting[0]


def _group_rows_with_halo_flat(xp_bf16, rg):
    """(N, H+2, W+2, C) -> (N*G, (rg+2)*(W+2)+8, C) overlapping 2-row halos."""
    N, Hp2, Wp2, C = xp_bf16.shape
    H = Hp2 - 2
    G = H // rg
    if G == 1:
        xg = xp_bf16.reshape(N, Hp2 * Wp2, C)            # pure reshape, no copy
    else:
        groups = [xp_bf16[:, g * rg:g * rg + rg + 2] for g in range(G)]
        xg = jnp.stack(groups, axis=1).reshape(N * G, (rg + 2) * Wp2, C)
    # +8 slack rows so every tap slice in the kernel stays in bounds.
    return jnp.pad(xg, ((0, 0), (0, 8), (0, 0)))


# ---------------------------------------------------------------------------
# 3x3 conv (pad=1, bias-free) + training-mode BatchNorm statistics
# ---------------------------------------------------------------------------
def conv3x3_bn_batchstats(x_nhwc, w_oihw, gamma, beta):
    """Returns (raw conv NHWC bf16, per-channel scale, per-channel shift) with
    relu(conv * scale + shift) == relu(batchnorm(conv, batch statistics))."""
    N, H, W, Cin = x_nhwc.shape
    Cout = w_oihw.shape[0]
    Wp2 = W + 2
    rg = _pick_rows_per_group(N, H, W, Cin, Cout)
    G = H // rg
    NG = N * G
    Lin = (rg + 2) * Wp2 + 8
    Lout = rg * Wp2

    xb = x_nhwc.astype(jnp.bfloat16)
    xp = jnp.pad(xb, ((0, 0), (1, 1), (1, 1), (0, 0)))
    xg = _group_rows_with_halo_flat(xp, rg)                        # (NG, Lin, Cin)

    # PyTorch weight (Cout, Cin, 3, 3) -> (3, 3, Cin, Cout) -> (9, Cin, Cout)
    w_taps = jnp.transpose(w_oihw, (2, 3, 1, 0)).reshape(9, Cin, Cout)
    w_taps = w_taps.astype(jnp.bfloat16)

    est = _vmem_bytes_estimate(rg, W, Cin, Cout)
    vmem_limit = int(min(max(2 * est, 32 * 1024 * 1024), 64 * 1024 * 1024))

    kernel = functools.partial(_conv3x3_stats_kernel, rg=rg, W=W, Wp2=Wp2)
    conv_flat, stats = pl.pallas_call(
        kernel,
        out_shape=(jax.ShapeDtypeStruct((NG, Lout, Cout), jnp.bfloat16),
                   jax.ShapeDtypeStruct((NG, 2, Cout), jnp.float32)),
        grid=(NG,),
        in_specs=[
            pl.BlockSpec((None, Lin, Cin), lambda i: (i, 0, 0)),
            # TODO(synk): pipeline_mode=pl.Buffered(1) would avoid double-
            # buffering this grid-constant weight block (small VMEM saving).
            pl.BlockSpec((9, Cin, Cout), lambda i: (0, 0, 0)),
        ],
        out_specs=(pl.BlockSpec((None, Lout, Cout), lambda i: (i, 0, 0)),
                   pl.BlockSpec((None, 2, Cout), lambda i: (i, 0, 0))),
        compiler_params=pltpu.CompilerParams(
            dimension_semantics=("parallel",),
            vmem_limit_bytes=vmem_limit),
    )(xg, w_taps)

    # Drop wrap-around columns; this slice fuses into the consumer of conv_nhwc.
    conv_nhwc = conv_flat.reshape(N, G, rg, Wp2, Cout)[:, :, :, :W, :]
    conv_nhwc = conv_nhwc.reshape(N, H, W, Cout)

    # Fold batch statistics into per-channel scale / shift (tiny XLA glue).
    m = float(N * H * W)
    total = jnp.sum(stats[:, 0, :], axis=0)
    total_sq = jnp.sum(stats[:, 1, :], axis=0)
    mean = total / m
    var = jnp.maximum(total_sq / m - mean * mean, 0.0)   # biased var (training BN)
    inv_std = jax.lax.rsqrt(var + BN_EPS)
    scale = gamma.astype(jnp.float32) * inv_std
    shift = beta.astype(jnp.float32) - mean * scale
    return conv_nhwc, scale, shift


# ---------------------------------------------------------------------------
# Bilinear x2 upsample, align_corners=True, as two dense interpolation matmuls
# ---------------------------------------------------------------------------
def _interp_matrix_align_corners(n_in, n_out):
    A = np.zeros((n_out, n_in), np.float32)
    if n_in == 1:
        A[:, 0] = 1.0
        return A
    pos = np.arange(n_out, dtype=np.float64) * (n_in - 1) / (n_out - 1)
    lo = np.clip(np.floor(pos).astype(np.int64), 0, n_in - 1)
    hi = np.minimum(lo + 1, n_in - 1)
    frac = (pos - lo).astype(np.float32)
    A[np.arange(n_out), lo] += 1.0 - frac
    A[np.arange(n_out), hi] += frac
    return A


def bilinear_upsample2_align_corners(x_nhwc):
    N, H, W, C = x_nhwc.shape
    Ay = jnp.asarray(_interp_matrix_align_corners(H, 2 * H))
    Ax = jnp.asarray(_interp_matrix_align_corners(W, 2 * W))
    t = jnp.einsum('oh,nhwc->nowc', Ay, x_nhwc)
    return jnp.einsum('pw,nowc->nopc', Ax, t)


# ---------------------------------------------------------------------------
# Up.forward (bilinear=True)
# ---------------------------------------------------------------------------
def up_forward(params, x1_nchw, x2_nchw):
    x1 = jnp.transpose(x1_nchw, (0, 2, 3, 1)).astype(jnp.float32)
    x2 = jnp.transpose(x2_nchw, (0, 2, 3, 1)).astype(jnp.float32)

    # F.interpolate(x1, scale_factor=2, mode='bilinear', align_corners=True)
    x1 = bilinear_upsample2_align_corners(x1)

    # F.pad(x1, [diffX//2, diffX-diffX//2, diffY//2, diffY-diffY//2])
    diffY = x2.shape[1] - x1.shape[1]
    diffX = x2.shape[2] - x1.shape[2]
    x1 = jnp.pad(x1, ((0, 0),
                      (diffY // 2, diffY - diffY // 2),
                      (diffX // 2, diffX - diffX // 2),
                      (0, 0)))

    # torch.concat([x2, x1], dim=1)  (channels-last here)
    x = jnp.concatenate([x2, x1], axis=-1)

    # DoubleConv(in_channels, out_channels, mid_channels=in_channels//2).
    # NOTE: conv biases ("b1"/"b2") are exactly cancelled by training-mode
    # (batch-stat) BatchNorm, so they are dropped as dead work.
    c1, s1, t1 = conv3x3_bn_batchstats(x, params["w1"], params["g1"], params["be1"])
    # Layer-1 BN + ReLU: fused by XLA into the bf16 cast / pad / regroup pass
    # that feeds conv2 (no standalone normalize kernel, no extra HBM pass).
    # TODO(synk): a fully fused conv1+conv2 kernel (halo recompute) could drop
    # this intermediate entirely.
    h = jnp.maximum(c1.astype(jnp.float32) * s1 + t1, 0.0)

    c2, s2, t2 = conv3x3_bn_batchstats(h, params["w2"], params["g2"], params["be2"])
    # Final BN + ReLU fuses into the NHWC -> NCHW output transpose.
    y = jnp.maximum(c2.astype(jnp.float32) * s2 + t2, 0.0)
    return jnp.transpose(y, (0, 3, 1, 2))


def init_params(key, in_channels, out_channels):
    mid = in_channels // 2
    k1, k2, k3, k4 = jax.random.split(key, 4)
    return {
        "w1": jax.random.normal(k1, (mid, in_channels, 3, 3), jnp.float32) * 0.1,
        "b1": jax.random.normal(k2, (mid,), jnp.float32) * 0.1,   # unused (BN cancels it)
        "g1": jnp.ones((mid,), jnp.float32),
        "be1": jnp.zeros((mid,), jnp.float32),
        "w2": jax.random.normal(k3, (out_channels, mid, 3, 3), jnp.float32) * 0.1,
        "b2": jax.random.normal(k4, (out_channels,), jnp.float32) * 0.1,  # unused
        "g2": jnp.ones((out_channels,), jnp.float32),
        "be2": jnp.zeros((out_channels,), jnp.float32),
    }


# ---------------------------------------------------------------------------
# Pure-JAX (f32) reference of the same forward pass, for a sanity tolerance check
# ---------------------------------------------------------------------------
def _reference_up_forward(params, x1_nchw, x2_nchw):
    x1 = jnp.transpose(x1_nchw, (0, 2, 3, 1))
    x2 = jnp.transpose(x2_nchw, (0, 2, 3, 1))
    x1 = bilinear_upsample2_align_corners(x1)
    diffY = x2.shape[1] - x1.shape[1]
    diffX = x2.shape[2] - x1.shape[2]
    x1 = jnp.pad(x1, ((0, 0), (diffY // 2, diffY - diffY // 2),
                      (diffX // 2, diffX - diffX // 2), (0, 0)))
    x = jnp.concatenate([x2, x1], axis=-1)

    def conv_bn_relu(x, w, b, g, be):
        y = jax.lax.conv_general_dilated(
            x, jnp.transpose(w, (2, 3, 1, 0)), (1, 1), "SAME",
            dimension_numbers=("NHWC", "HWIO", "NHWC")) + b
        mean = jnp.mean(y, axis=(0, 1, 2))
        var = jnp.mean((y - mean) ** 2, axis=(0, 1, 2))
        return jnp.maximum(g * (y - mean) * jax.lax.rsqrt(var + BN_EPS) + be, 0.0)

    h = conv_bn_relu(x, params["w1"], params["b1"], params["g1"], params["be1"])
    y = conv_bn_relu(h, params["w2"], params["b2"], params["g2"], params["be2"])
    return jnp.transpose(y, (0, 3, 1, 2))


if __name__ == "__main__":
    in_channels, out_channels = 8, 4
    N, H, W = 2, 8, 8   # x1 is the low-res feature; x2 is the 2x-larger skip

    key = jax.random.PRNGKey(0)
    kp, kx1, kx2 = jax.random.split(key, 3)
    params = init_params(kp, in_channels, out_channels)

    x1 = jax.random.normal(kx1, (N, in_channels // 2, H, W), jnp.float32)          # [2, 4, 8, 8]
    x2 = jax.random.normal(kx2, (N, in_channels // 2, 2 * H, 2 * W), jnp.float32)  # [2, 4, 16, 16]

    out = jax.jit(up_forward)(params, x1, x2)
    out = jax.block_until_ready(out)
    assert out.shape == (N, out_channels, 2 * H, 2 * W), out.shape
    assert bool(jnp.all(jnp.isfinite(out)))

    ref = _reference_up_forward(params, x1, x2)
    err = float(jnp.max(jnp.abs(out - ref)))
    assert err < 1e-1, f"max abs error vs f32 reference: {err}"
    print("KERNEL_OK")
</pallas_src>

<mosaic_0001>
module attributes {stable_mosaic.version = 11 : i64} {
  func.func @_conv3x3_stats_kernel(%arg0: i32, %arg1: memref<1x332x8xbf16, #tpu.memory_space<vmem>>, %arg2: memref<9x8x4xbf16, #tpu.memory_space<vmem>>, %arg3: memref<1x288x4xbf16, #tpu.memory_space<vmem>>, %arg4: memref<1x2x4xf32, #tpu.memory_space<vmem>>) attributes {dimension_semantics = [#tpu.dimension_semantics<parallel>], iteration_bounds = array<i64: 2>, scalar_prefetch = 0 : i64, scratch_operands = 0 : i64, tpu.core_type = #tpu.core_type<tc>, window_params = [{transform_indices = @transform_0, window_bounds = array<i64: 1, 332, 8>}, {pipeline_mode = #tpu.pipeline_mode<synchronous>, transform_indices = @transform_1, window_bounds = array<i64: 9, 8, 4>}, {transform_indices = @transform_2, window_bounds = array<i64: 1, 288, 4>}, {transform_indices = @transform_3, window_bounds = array<i64: 1, 2, 4>}]} {
    %c0 = arith.constant 0 : index
    %c0_0 = arith.constant 0 : index
    %c0_1 = arith.constant 0 : index
    %0 = vector.load %arg1[%c0, %c0_0, %c0_1] : memref<1x332x8xbf16, #tpu.memory_space<vmem>>, vector<1x288x8xbf16>
    %1 = vector.shape_cast %0 : vector<1x288x8xbf16> to vector<288x8xbf16>
    %c0_2 = arith.constant 0 : index
    %c0_3 = arith.constant 0 : index
    %c0_4 = arith.constant 0 : index
    %2 = vector.load %arg2[%c0_2, %c0_3, %c0_4] : memref<9x8x4xbf16, #tpu.memory_space<vmem>>, vector<1x8x4xbf16>
    %3 = vector.shape_cast %2 : vector<1x8x4xbf16> to vector<8x4xbf16>
    %cst = arith.constant dense<0.000000e+00> : vector<288x4xf32>
    %4 = tpu.matmul %1, %3, %cst {dimension_numbers = #tpu.dot_dimension_numbers<[1], [0], [0], [1], [0, 0, 1, 1], [], []>} : vector<288x8xbf16>, vector<8x4xbf16>, vector<288x4xf32> -> vector<288x4xf32>
    %c0_5 = arith.constant 0 : index
    %c1 = arith.constant 1 : index
    %c0_6 = arith.constant 0 : index
    %5 = vector.load %arg1[%c0_5, %c1, %c0_6] : memref<1x332x8xbf16, #tpu.memory_space<vmem>>, vector<1x288x8xbf16>
    %6 = vector.shape_cast %5 : vector<1x288x8xbf16> to vector<288x8xbf16>
    %c1_7 = arith.constant 1 : index
    %c0_8 = arith.constant 0 : index
    %c0_9 = arith.constant 0 : index
    %7 = vector.load %arg2[%c1_7, %c0_8, %c0_9] : memref<9x8x4xbf16, #tpu.memory_space<vmem>>, vector<1x8x4xbf16>
    %8 = vector.shape_cast %7 : vector<1x8x4xbf16> to vector<8x4xbf16>
    %cst_10 = arith.constant dense<0.000000e+00> : vector<288x4xf32>
    %9 = tpu.matmul %6, %8, %cst_10 {dimension_numbers = #tpu.dot_dimension_numbers<[1], [0], [0], [1], [0, 0, 1, 1], [], []>} : vector<288x8xbf16>, vector<8x4xbf16>, vector<288x4xf32> -> vector<288x4xf32>
    %10 = arith.addf %4, %9 : vector<288x4xf32>
    %c0_11 = arith.constant 0 : index
    %c2 = arith.constant 2 : index
    %c0_12 = arith.constant 0 : index
    %11 = vector.load %arg1[%c0_11, %c2, %c0_12] : memref<1x332x8xbf16, #tpu.memory_space<vmem>>, vector<1x288x8xbf16>
    %12 = vector.shape_cast %11 : vector<1x288x8xbf16> to vector<288x8xbf16>
    %c2_13 = arith.constant 2 : index
    %c0_14 = arith.constant 0 : index
    %c0_15 = arith.constant 0 : index
    %13 = vector.load %arg2[%c2_13, %c0_14, %c0_15] : memref<9x8x4xbf16, #tpu.memory_space<vmem>>, vector<1x8x4xbf16>
    %14 = vector.shape_cast %13 : vector<1x8x4xbf16> to vector<8x4xbf16>
    %cst_16 = arith.constant dense<0.000000e+00> : vector<288x4xf32>
    %15 = tpu.matmul %12, %14, %cst_16 {dimension_numbers = #tpu.dot_dimension_numbers<[1], [0], [0], [1], [0, 0, 1, 1], [], []>} : vector<288x8xbf16>, vector<8x4xbf16>, vector<288x4xf32> -> vector<288x4xf32>
    %16 = arith.addf %10, %15 : vector<288x4xf32>
    %c0_17 = arith.constant 0 : index
    %c18 = arith.constant 18 : index
    %c0_18 = arith.constant 0 : index
    %17 = vector.load %arg1[%c0_17, %c18, %c0_18] : memref<1x332x8xbf16, #tpu.memory_space<vmem>>, vector<1x288x8xbf16>
    %18 = vector.shape_cast %17 : vector<1x288x8xbf16> to vector<288x8xbf16>
    %c3 = arith.constant 3 : index
    %c0_19 = arith.constant 0 : index
    %c0_20 = arith.constant 0 : index
    %19 = vector.load %arg2[%c3, %c0_19, %c0_20] : memref<9x8x4xbf16, #tpu.memory_space<vmem>>, vector<1x8x4xbf16>
    %20 = vector.shape_cast %19 : vector<1x8x4xbf16> to vector<8x4xbf16>
    %cst_21 = arith.constant dense<0.000000e+00> : vector<288x4xf32>
    %21 = tpu.matmul %18, %20, %cst_21 {dimension_numbers = #tpu.dot_dimension_numbers<[1], [0], [0], [1], [0, 0, 1, 1], [], []>} : vector<288x8xbf16>, vector<8x4xbf16>, vector<288x4xf32> -> vector<288x4xf32>
    %22 = arith.addf %16, %21 : vector<288x4xf32>
    %c0_22 = arith.constant 0 : index
    %c19 = arith.constant 19 : index
    %c0_23 = arith.constant 0 : index
    %23 = vector.load %arg1[%c0_22, %c19, %c0_23] : memref<1x332x8xbf16, #tpu.memory_space<vmem>>, vector<1x288x8xbf16>
    %24 = vector.shape_cast %23 : vector<1x288x8xbf16> to vector<288x8xbf16>
    %c4 = arith.constant 4 : index
    %c0_24 = arith.constant 0 : index
    %c0_25 = arith.constant 0 : index
    %25 = vector.load %arg2[%c4, %c0_24, %c0_25] : memref<9x8x4xbf16, #tpu.memory_space<vmem>>, vector<1x8x4xbf16>
    %26 = vector.shape_cast %25 : vector<1x8x4xbf16> to vector<8x4xbf16>
    %cst_26 = arith.constant dense<0.000000e+00> : vector<288x4xf32>
    %27 = tpu.matmul %24, %26, %cst_26 {dimension_numbers = #tpu.dot_dimension_numbers<[1], [0], [0], [1], [0, 0, 1, 1], [], []>} : vector<288x8xbf16>, vector<8x4xbf16>, vector<288x4xf32> -> vector<288x4xf32>
    %28 = arith.addf %22, %27 : vector<288x4xf32>
    %c0_27 = arith.constant 0 : index
    %c20 = arith.constant 20 : index
    %c0_28 = arith.constant 0 : index
    %29 = vector.load %arg1[%c0_27, %c20, %c0_28] : memref<1x332x8xbf16, #tpu.memory_space<vmem>>, vector<1x288x8xbf16>
    %30 = vector.shape_cast %29 : vector<1x288x8xbf16> to vector<288x8xbf16>
    %c5 = arith.constant 5 : index
    %c0_29 = arith.constant 0 : index
    %c0_30 = arith.constant 0 : index
    %31 = vector.load %arg2[%c5, %c0_29, %c0_30] : memref<9x8x4xbf16, #tpu.memory_space<vmem>>, vector<1x8x4xbf16>
    %32 = vector.shape_cast %31 : vector<1x8x4xbf16> to vector<8x4xbf16>
    %cst_31 = arith.constant dense<0.000000e+00> : vector<288x4xf32>
    %33 = tpu.matmul %30, %32, %cst_31 {dimension_numbers = #tpu.dot_dimension_numbers<[1], [0], [0], [1], [0, 0, 1, 1], [], []>} : vector<288x8xbf16>, vector<8x4xbf16>, vector<288x4xf32> -> vector<288x4xf32>
    %34 = arith.addf %28, %33 : vector<288x4xf32>
    %c0_32 = arith.constant 0 : index
    %c36 = arith.constant 36 : index
    %c0_33 = arith.constant 0 : index
    %35 = vector.load %arg1[%c0_32, %c36, %c0_33] : memref<1x332x8xbf16, #tpu.memory_space<vmem>>, vector<1x288x8xbf16>
    %36 = vector.shape_cast %35 : vector<1x288x8xbf16> to vector<288x8xbf16>
    %c6 = arith.constant 6 : index
    %c0_34 = arith.constant 0 : index
    %c0_35 = arith.constant 0 : index
    %37 = vector.load %arg2[%c6, %c0_34, %c0_35] : memref<9x8x4xbf16, #tpu.memory_space<vmem>>, vector<1x8x4xbf16>
    %38 = vector.shape_cast %37 : vector<1x8x4xbf16> to vector<8x4xbf16>
    %cst_36 = arith.constant dense<0.000000e+00> : vector<288x4xf32>
    %39 = tpu.matmul %36, %38, %cst_36 {dimension_numbers = #tpu.dot_dimension_numbers<[1], [0], [0], [1], [0, 0, 1, 1], [], []>} : vector<288x8xbf16>, vector<8x4xbf16>, vector<288x4xf32> -> vector<288x4xf32>
    %40 = arith.addf %34, %39 : vector<288x4xf32>
    %c0_37 = arith.constant 0 : index
    %c37 = arith.constant 37 : index
    %c0_38 = arith.constant 0 : index
    %41 = vector.load %arg1[%c0_37, %c37, %c0_38] : memref<1x332x8xbf16, #tpu.memory_space<vmem>>, vector<1x288x8xbf16>
    %42 = vector.shape_cast %41 : vector<1x288x8xbf16> to vector<288x8xbf16>
    %c7 = arith.constant 7 : index
    %c0_39 = arith.constant 0 : index
    %c0_40 = arith.constant 0 : index
    %43 = vector.load %arg2[%c7, %c0_39, %c0_40] : memref<9x8x4xbf16, #tpu.memory_space<vmem>>, vector<1x8x4xbf16>
    %44 = vector.shape_cast %43 : vector<1x8x4xbf16> to vector<8x4xbf16>
    %cst_41 = arith.constant dense<0.000000e+00> : vector<288x4xf32>
    %45 = tpu.matmul %42, %44, %cst_41 {dimension_numbers = #tpu.dot_dimension_numbers<[1], [0], [0], [1], [0, 0, 1, 1], [], []>} : vector<288x8xbf16>, vector<8x4xbf16>, vector<288x4xf32> -> vector<288x4xf32>
    %46 = arith.addf %40, %45 : vector<288x4xf32>
    %c0_42 = arith.constant 0 : index
    %c38 = arith.constant 38 : index
    %c0_43 = arith.constant 0 : index
    %47 = vector.load %arg1[%c0_42, %c38, %c0_43] : memref<1x332x8xbf16, #tpu.memory_space<vmem>>, vector<1x288x8xbf16>
    %48 = vector.shape_cast %47 : vector<1x288x8xbf16> to vector<288x8xbf16>
    %c8 = arith.constant 8 : index
    %c0_44 = arith.constant 0 : index
    %c0_45 = arith.constant 0 : index
    %49 = vector.load %arg2[%c8, %c0_44, %c0_45] : memref<9x8x4xbf16, #tpu.memory_space<vmem>>, vector<1x8x4xbf16>
    %50 = vector.shape_cast %49 : vector<1x8x4xbf16> to vector<8x4xbf16>
    %cst_46 = arith.constant dense<0.000000e+00> : vector<288x4xf32>
    %51 = tpu.matmul %48, %50, %cst_46 {dimension_numbers = #tpu.dot_dimension_numbers<[1], [0], [0], [1], [0, 0, 1, 1], [], []>} : vector<288x8xbf16>, vector<8x4xbf16>, vector<288x4xf32> -> vector<288x4xf32>
    %52 = arith.addf %46, %51 : vector<288x4xf32>
    %53 = arith.truncf %52 : vector<288x4xf32> to vector<288x4xbf16>
    %c0_47 = arith.constant 0 : index
    %c0_48 = arith.constant 0 : index
    %c0_49 = arith.constant 0 : index
    %54 = vector.load %arg3[%c0_47, %c0_48, %c0_49] : memref<1x288x4xbf16, #tpu.memory_space<vmem>>, vector<1x288x4xbf16>
    %55 = vector.shape_cast %54 : vector<1x288x4xbf16> to vector<288x4xbf16>
    %56 = vector.shape_cast %53 : vector<288x4xbf16> to vector<1x288x4xbf16>
    tpu.vector_store %arg3[%c0_47, %c0_48, %c0_49], %56 {strides = array<i32>} : memref<1x288x4xbf16, #tpu.memory_space<vmem>>, vector<1x288x4xbf16>,
    %57 = tpu.iota {dimensions = array<i32: 0>} : vector<288x1xi32>
    %c18_i32 = arith.constant 18 : i32
    %c0_i32 = arith.constant 0 : i32
    %58 = arith.cmpi eq, %c18_i32, %c0_i32 : i32
    %c1_i32 = arith.constant 1 : i32
    %59 = arith.select %58, %c1_i32, %c18_i32 : i32
    %60 = vector.broadcast %59 : i32 to vector<288x1xi32>
    %61 = arith.remsi %57, %60 : vector<288x1xi32>
    %c0_i32_50 = arith.constant 0 : i32
    %62 = vector.broadcast %c0_i32_50 : i32 to vector<288x1xi32>
    %63 = arith.cmpi ne, %61, %62 : vector<288x1xi32>
    %c0_i32_51 = arith.constant 0 : i32
    %64 = vector.broadcast %c0_i32_51 : i32 to vector<288x1xi32>
    %65 = arith.cmpi slt, %61, %64 : vector<288x1xi32>
    %c0_i32_52 = arith.constant 0 : i32
    %66 = arith.cmpi slt, %59, %c0_i32_52 : i32
    %67 = vector.broadcast %66 : i1 to vector<288x1xi1>
    %68 = vector.broadcast %67 : vector<288x1xi1> to vector<288x1xi1>
    %69 = arith.xori %65, %68 : vector<288x1xi1>
    %70 = arith.andi %69, %63 : vector<288x1xi1>
    %71 = vector.broadcast %59 : i32 to vector<288x1xi32>
    %72 = arith.addi %61, %71 : vector<288x1xi32>
    %73 = arith.select %70, %72, %61 : vector<288x1xi1>, vector<288x1xi32>
    %c16_i32 = arith.constant 16 : i32
    %74 = vector.broadcast %c16_i32 : i32 to vector<288x1xi32>
    %75 = arith.cmpi slt, %73, %74 : vector<288x1xi32>
    %cst_53 = arith.constant 0.000000e+00 : f32
    %76 = vector.shape_cast %75 : vector<288x1xi1> to vector<288x1xi1>
    %77 = vector.broadcast %76 : vector<288x1xi1> to vector<288x4xi1>
    %78 = vector.broadcast %cst_53 : f32 to vector<288x4xf32>
    %79 = arith.select %77, %52, %78 : vector<288x4xi1>, vector<288x4xf32>
    %cst_54 = arith.constant dense<0.000000e+00> : vector<4xf32>
    %80 = vector.multi_reduction <add>, %79, %cst_54 [0] : vector<288x4xf32> to vector<4xf32>
    %81 = vector.shape_cast %80 : vector<4xf32> to vector<1x4xf32>
    %82 = arith.mulf %79, %79 : vector<288x4xf32>
    %cst_55 = arith.constant dense<0.000000e+00> : vector<4xf32>
    %83 = vector.multi_reduction <add>, %82, %cst_55 [0] : vector<288x4xf32> to vector<4xf32>
    %84 = vector.shape_cast %83 : vector<4xf32> to vector<1x4xf32>
    %85 = tpu.concatenate %81, %84 in 0 : vector<1x4xf32>, vector<1x4xf32> -> vector<2x4xf32>
    %c0_56 = arith.constant 0 : index
    %c0_57 = arith.constant 0 : index
    %c0_58 = arith.constant 0 : index
    %86 = vector.load %arg4[%c0_56, %c0_57, %c0_58] : memref<1x2x4xf32, #tpu.memory_space<vmem>>, vector<1x2x4xf32>
    %87 = vector.shape_cast %86 : vector<1x2x4xf32> to vector<2x4xf32>
    %88 = vector.shape_cast %85 : vector<2x4xf32> to vector<1x2x4xf32>
    tpu.vector_store %arg4[%c0_56, %c0_57, %c0_58], %88 {strides = array<i32>} : memref<1x2x4xf32, #tpu.memory_space<vmem>>, vector<1x2x4xf32>,
    return
  }
  func.func @transform_0(%arg0: i32) -> (i32, i32, i32) {
    %c0_i32 = arith.constant 0 : i32
    %c0_i32_0 = arith.constant 0 : i32
    %c0_i32_1 = arith.constant 0 : i32
    return %arg0, %c0_i32, %c0_i32_0 : i32, i32, i32
  }
  func.func @transform_1(%arg0: i32) -> (i32, i32, i32) {
    %c0_i32 = arith.constant 0 : i32
    %c0_i32_0 = arith.constant 0 : i32
    %c0_i32_1 = arith.constant 0 : i32
    %c0_i32_2 = arith.constant 0 : i32
    return %c0_i32, %c0_i32_0, %c0_i32_1 : i32, i32, i32
  }
  func.func @transform_2(%arg0: i32) -> (i32, i32, i32) {
    %c0_i32 = arith.constant 0 : i32
    %c0_i32_0 = arith.constant 0 : i32
    %c0_i32_1 = arith.constant 0 : i32
    return %arg0, %c0_i32, %c0_i32_0 : i32, i32, i32
  }
  func.func @transform_3(%arg0: i32) -> (i32, i32, i32) {
    %c0_i32 = arith.constant 0 : i32
    %c0_i32_0 = arith.constant 0 : i32
    %c0_i32_1 = arith.constant 0 : i32
    return %arg0, %c0_i32, %c0_i32_0 : i32, i32, i32
  }
}

module attributes {stable_mosaic.version = 11 : i64} {
  func.func @_conv3x3_stats_kernel(%arg0: i32, %arg1: memref<1x332x4xbf16, #tpu.memory_space<vmem>>, %arg2: memref<9x4x4xbf16, #tpu.memory_space<vmem>>, %arg3: memref<1x288x4xbf16, #tpu.memory_space<vmem>>, %arg4: memref<1x2x4xf32, #tpu.memory_space<vmem>>) attributes {dimension_semantics = [#tpu.dimension_semantics<parallel>], iteration_bounds = array<i64: 2>, scalar_prefetch = 0 : i64, scratch_operands = 0 : i64, tpu.core_type = #tpu.core_type<tc>, window_params = [{transform_indices = @transform_0, window_bounds = array<i64: 1, 332, 4>}, {pipeline_mode = #tpu.pipeline_mode<synchronous>, transform_indices = @transform_1, window_bounds = array<i64: 9, 4, 4>}, {transform_indices = @transform_2, window_bounds = array<i64: 1, 288, 4>}, {transform_indices = @transform_3, window_bounds = array<i64: 1, 2, 4>}]} {
    %c0 = arith.constant 0 : index
    %c0_0 = arith.constant 0 : index
    %c0_1 = arith.constant 0 : index
    %0 = vector.load %arg1[%c0, %c0_0, %c0_1] : memref<1x332x4xbf16, #tpu.memory_space<vmem>>, vector<1x288x4xbf16>
    %1 = vector.shape_cast %0 : vector<1x288x4xbf16> to vector<288x4xbf16>
    %c0_2 = arith.constant 0 : index
    %c0_3 = arith.constant 0 : index
    %c0_4 = arith.constant 0 : index
    %2 = vector.load %arg2[%c0_2, %c0_3, %c0_4] : memref<9x4x4xbf16, #tpu.memory_space<vmem>>, vector<1x4x4xbf16>
    %3 = vector.shape_cast %2 : vector<1x4x4xbf16> to vector<4x4xbf16>
    %cst = arith.constant dense<0.000000e+00> : vector<288x4xf32>
    %4 = tpu.matmul %1, %3, %cst {dimension_numbers = #tpu.dot_dimension_numbers<[1], [0], [0], [1], [0, 0, 1, 1], [], []>} : vector<288x4xbf16>, vector<4x4xbf16>, vector<288x4xf32> -> vector<288x4xf32>
    %c0_5 = arith.constant 0 : index
    %c1 = arith.constant 1 : index
    %c0_6 = arith.constant 0 : index
    %5 = vector.load %arg1[%c0_5, %c1, %c0_6] : memref<1x332x4xbf16, #tpu.memory_space<vmem>>, vector<1x288x4xbf16>
    %6 = vector.shape_cast %5 : vector<1x288x4xbf16> to vector<288x4xbf16>
    %c1_7 = arith.constant 1 : index
    %c0_8 = arith.constant 0 : index
    %c0_9 = arith.constant 0 : index
    %7 = vector.load %arg2[%c1_7, %c0_8, %c0_9] : memref<9x4x4xbf16, #tpu.memory_space<vmem>>, vector<1x4x4xbf16>
    %8 = vector.shape_cast %7 : vector<1x4x4xbf16> to vector<4x4xbf16>
    %cst_10 = arith.constant dense<0.000000e+00> : vector<288x4xf32>
    %9 = tpu.matmul %6, %8, %cst_10 {dimension_numbers = #tpu.dot_dimension_numbers<[1], [0], [0], [1], [0, 0, 1, 1], [], []>} : vector<288x4xbf16>, vector<4x4xbf16>, vector<288x4xf32> -> vector<288x4xf32>
    %10 = arith.addf %4, %9 : vector<288x4xf32>
    %c0_11 = arith.constant 0 : index
    %c2 = arith.constant 2 : index
    %c0_12 = arith.constant 0 : index
    %11 = vector.load %arg1[%c0_11, %c2, %c0_12] : memref<1x332x4xbf16, #tpu.memory_space<vmem>>, vector<1x288x4xbf16>
    %12 = vector.shape_cast %11 : vector<1x288x4xbf16> to vector<288x4xbf16>
    %c2_13 = arith.constant 2 : index
    %c0_14 = arith.constant 0 : index
    %c0_15 = arith.constant 0 : index
    %13 = vector.load %arg2[%c2_13, %c0_14, %c0_15] : memref<9x4x4xbf16, #tpu.memory_space<vmem>>, vector<1x4x4xbf16>
    %14 = vector.shape_cast %13 : vector<1x4x4xbf16> to vector<4x4xbf16>
    %cst_16 = arith.constant dense<0.000000e+00> : vector<288x4xf32>
    %15 = tpu.matmul %12, %14, %cst_16 {dimension_numbers = #tpu.dot_dimension_numbers<[1], [0], [0], [1], [0, 0, 1, 1], [], []>} : vector<288x4xbf16>, vector<4x4xbf16>, vector<288x4xf32> -> vector<288x4xf32>
    %16 = arith.addf %10, %15 : vector<288x4xf32>
    %c0_17 = arith.constant 0 : index
    %c18 = arith.constant 18 : index
    %c0_18 = arith.constant 0 : index
    %17 = vector.load %arg1[%c0_17, %c18, %c0_18] : memref<1x332x4xbf16, #tpu.memory_space<vmem>>, vector<1x288x4xbf16>
    %18 = vector.shape_cast %17 : vector<1x288x4xbf16> to vector<288x4xbf16>
    %c3 = arith.constant 3 : index
    %c0_19 = arith.constant 0 : index
    %c0_20 = arith.constant 0 : index
    %19 = vector.load %arg2[%c3, %c0_19, %c0_20] : memref<9x4x4xbf16, #tpu.memory_space<vmem>>, vector<1x4x4xbf16>
    %20 = vector.shape_cast %19 : vector<1x4x4xbf16> to vector<4x4xbf16>
    %cst_21 = arith.constant dense<0.000000e+00> : vector<288x4xf32>
    %21 = tpu.matmul %18, %20, %cst_21 {dimension_numbers = #tpu.dot_dimension_numbers<[1], [0], [0], [1], [0, 0, 1, 1], [], []>} : vector<288x4xbf16>, vector<4x4xbf16>, vector<288x4xf32> -> vector<288x4xf32>
    %22 = arith.addf %16, %21 : vector<288x4xf32>
    %c0_22 = arith.constant 0 : index
    %c19 = arith.constant 19 : index
    %c0_23 = arith.constant 0 : index
    %23 = vector.load %arg1[%c0_22, %c19, %c0_23] : memref<1x332x4xbf16, #tpu.memory_space<vmem>>, vector<1x288x4xbf16>
    %24 = vector.shape_cast %23 : vector<1x288x4xbf16> to vector<288x4xbf16>
    %c4 = arith.constant 4 : index
    %c0_24 = arith.constant 0 : index
    %c0_25 = arith.constant 0 : index
    %25 = vector.load %arg2[%c4, %c0_24, %c0_25] : memref<9x4x4xbf16, #tpu.memory_space<vmem>>, vector<1x4x4xbf16>
    %26 = vector.shape_cast %25 : vector<1x4x4xbf16> to vector<4x4xbf16>
    %cst_26 = arith.constant dense<0.000000e+00> : vector<288x4xf32>
    %27 = tpu.matmul %24, %26, %cst_26 {dimension_numbers = #tpu.dot_dimension_numbers<[1], [0], [0], [1], [0, 0, 1, 1], [], []>} : vector<288x4xbf16>, vector<4x4xbf16>, vector<288x4xf32> -> vector<288x4xf32>
    %28 = arith.addf %22, %27 : vector<288x4xf32>
    %c0_27 = arith.constant 0 : index
    %c20 = arith.constant 20 : index
    %c0_28 = arith.constant 0 : index
    %29 = vector.load %arg1[%c0_27, %c20, %c0_28] : memref<1x332x4xbf16, #tpu.memory_space<vmem>>, vector<1x288x4xbf16>
    %30 = vector.shape_cast %29 : vector<1x288x4xbf16> to vector<288x4xbf16>
    %c5 = arith.constant 5 : index
    %c0_29 = arith.constant 0 : index
    %c0_30 = arith.constant 0 : index
    %31 = vector.load %arg2[%c5, %c0_29, %c0_30] : memref<9x4x4xbf16, #tpu.memory_space<vmem>>, vector<1x4x4xbf16>
    %32 = vector.shape_cast %31 : vector<1x4x4xbf16> to vector<4x4xbf16>
    %cst_31 = arith.constant dense<0.000000e+00> : vector<288x4xf32>
    %33 = tpu.matmul %30, %32, %cst_31 {dimension_numbers = #tpu.dot_dimension_numbers<[1], [0], [0], [1], [0, 0, 1, 1], [], []>} : vector<288x4xbf16>, vector<4x4xbf16>, vector<288x4xf32> -> vector<288x4xf32>
    %34 = arith.addf %28, %33 : vector<288x4xf32>
    %c0_32 = arith.constant 0 : index
    %c36 = arith.constant 36 : index
    %c0_33 = arith.constant 0 : index
    %35 = vector.load %arg1[%c0_32, %c36, %c0_33] : memref<1x332x4xbf16, #tpu.memory_space<vmem>>, vector<1x288x4xbf16>
    %36 = vector.shape_cast %35 : vector<1x288x4xbf16> to vector<288x4xbf16>
    %c6 = arith.constant 6 : index
    %c0_34 = arith.constant 0 : index
    %c0_35 = arith.constant 0 : index
    %37 = vector.load %arg2[%c6, %c0_34, %c0_35] : memref<9x4x4xbf16, #tpu.memory_space<vmem>>, vector<1x4x4xbf16>
    %38 = vector.shape_cast %37 : vector<1x4x4xbf16> to vector<4x4xbf16>
    %cst_36 = arith.constant dense<0.000000e+00> : vector<288x4xf32>
    %39 = tpu.matmul %36, %38, %cst_36 {dimension_numbers = #tpu.dot_dimension_numbers<[1], [0], [0], [1], [0, 0, 1, 1], [], []>} : vector<288x4xbf16>, vector<4x4xbf16>, vector<288x4xf32> -> vector<288x4xf32>
    %40 = arith.addf %34, %39 : vector<288x4xf32>
    %c0_37 = arith.constant 0 : index
    %c37 = arith.constant 37 : index
    %c0_38 = arith.constant 0 : index
    %41 = vector.load %arg1[%c0_37, %c37, %c0_38] : memref<1x332x4xbf16, #tpu.memory_space<vmem>>, vector<1x288x4xbf16>
    %42 = vector.shape_cast %41 : vector<1x288x4xbf16> to vector<288x4xbf16>
    %c7 = arith.constant 7 : index
    %c0_39 = arith.constant 0 : index
    %c0_40 = arith.constant 0 : index
    %43 = vector.load %arg2[%c7, %c0_39, %c0_40] : memref<9x4x4xbf16, #tpu.memory_space<vmem>>, vector<1x4x4xbf16>
    %44 = vector.shape_cast %43 : vector<1x4x4xbf16> to vector<4x4xbf16>
    %cst_41 = arith.constant dense<0.000000e+00> : vector<288x4xf32>
    %45 = tpu.matmul %42, %44, %cst_41 {dimension_numbers = #tpu.dot_dimension_numbers<[1], [0], [0], [1], [0, 0, 1, 1], [], []>} : vector<288x4xbf16>, vector<4x4xbf16>, vector<288x4xf32> -> vector<288x4xf32>
    %46 = arith.addf %40, %45 : vector<288x4xf32>
    %c0_42 = arith.constant 0 : index
    %c38 = arith.constant 38 : index
    %c0_43 = arith.constant 0 : index
    %47 = vector.load %arg1[%c0_42, %c38, %c0_43] : memref<1x332x4xbf16, #tpu.memory_space<vmem>>, vector<1x288x4xbf16>
    %48 = vector.shape_cast %47 : vector<1x288x4xbf16> to vector<288x4xbf16>
    %c8 = arith.constant 8 : index
    %c0_44 = arith.constant 0 : index
    %c0_45 = arith.constant 0 : index
    %49 = vector.load %arg2[%c8, %c0_44, %c0_45] : memref<9x4x4xbf16, #tpu.memory_space<vmem>>, vector<1x4x4xbf16>
    %50 = vector.shape_cast %49 : vector<1x4x4xbf16> to vector<4x4xbf16>
    %cst_46 = arith.constant dense<0.000000e+00> : vector<288x4xf32>
    %51 = tpu.matmul %48, %50, %cst_46 {dimension_numbers = #tpu.dot_dimension_numbers<[1], [0], [0], [1], [0, 0, 1, 1], [], []>} : vector<288x4xbf16>, vector<4x4xbf16>, vector<288x4xf32> -> vector<288x4xf32>
    %52 = arith.addf %46, %51 : vector<288x4xf32>
    %53 = arith.truncf %52 : vector<288x4xf32> to vector<288x4xbf16>
    %c0_47 = arith.constant 0 : index
    %c0_48 = arith.constant 0 : index
    %c0_49 = arith.constant 0 : index
    %54 = vector.load %arg3[%c0_47, %c0_48, %c0_49] : memref<1x288x4xbf16, #tpu.memory_space<vmem>>, vector<1x288x4xbf16>
    %55 = vector.shape_cast %54 : vector<1x288x4xbf16> to vector<288x4xbf16>
    %56 = vector.shape_cast %53 : vector<288x4xbf16> to vector<1x288x4xbf16>
    tpu.vector_store %arg3[%c0_47, %c0_48, %c0_49], %56 {strides = array<i32>} : memref<1x288x4xbf16, #tpu.memory_space<vmem>>, vector<1x288x4xbf16>,
    %57 = tpu.iota {dimensions = array<i32: 0>} : vector<288x1xi32>
    %c18_i32 = arith.constant 18 : i32
    %c0_i32 = arith.constant 0 : i32
    %58 = arith.cmpi eq, %c18_i32, %c0_i32 : i32
    %c1_i32 = arith.constant 1 : i32
    %59 = arith.select %58, %c1_i32, %c18_i32 : i32
    %60 = vector.broadcast %59 : i32 to vector<288x1xi32>
    %61 = arith.remsi %57, %60 : vector<288x1xi32>
    %c0_i32_50 = arith.constant 0 : i32
    %62 = vector.broadcast %c0_i32_50 : i32 to vector<288x1xi32>
    %63 = arith.cmpi ne, %61, %62 : vector<288x1xi32>
    %c0_i32_51 = arith.constant 0 : i32
    %64 = vector.broadcast %c0_i32_51 : i32 to vector<288x1xi32>
    %65 = arith.cmpi slt, %61, %64 : vector<288x1xi32>
    %c0_i32_52 = arith.constant 0 : i32
    %66 = arith.cmpi slt, %59, %c0_i32_52 : i32
    %67 = vector.broadcast %66 : i1 to vector<288x1xi1>
    %68 = vector.broadcast %67 : vector<288x1xi1> to vector<288x1xi1>
    %69 = arith.xori %65, %68 : vector<288x1xi1>
    %70 = arith.andi %69, %63 : vector<288x1xi1>
    %71 = vector.broadcast %59 : i32 to vector<288x1xi32>
    %72 = arith.addi %61, %71 : vector<288x1xi32>
    %73 = arith.select %70, %72, %61 : vector<288x1xi1>, vector<288x1xi32>
    %c16_i32 = arith.constant 16 : i32
    %74 = vector.broadcast %c16_i32 : i32 to vector<288x1xi32>
    %75 = arith.cmpi slt, %73, %74 : vector<288x1xi32>
    %cst_53 = arith.constant 0.000000e+00 : f32
    %76 = vector.shape_cast %75 : vector<288x1xi1> to vector<288x1xi1>
    %77 = vector.broadcast %76 : vector<288x1xi1> to vector<288x4xi1>
    %78 = vector.broadcast %cst_53 : f32 to vector<288x4xf32>
    %79 = arith.select %77, %52, %78 : vector<288x4xi1>, vector<288x4xf32>
    %cst_54 = arith.constant dense<0.000000e+00> : vector<4xf32>
    %80 = vector.multi_reduction <add>, %79, %cst_54 [0] : vector<288x4xf32> to vector<4xf32>
    %81 = vector.shape_cast %80 : vector<4xf32> to vector<1x4xf32>
    %82 = arith.mulf %79, %79 : vector<288x4xf32>
    %cst_55 = arith.constant dense<0.000000e+00> : vector<4xf32>
    %83 = vector.multi_reduction <add>, %82, %cst_55 [0] : vector<288x4xf32> to vector<4xf32>
    %84 = vector.shape_cast %83 : vector<4xf32> to vector<1x4xf32>
    %85 = tpu.concatenate %81, %84 in 0 : vector<1x4xf32>, vector<1x4xf32> -> vector<2x4xf32>
    %c0_56 = arith.constant 0 : index
    %c0_57 = arith.constant 0 : index
    %c0_58 = arith.constant 0 : index
    %86 = vector.load %arg4[%c0_56, %c0_57, %c0_58] : memref<1x2x4xf32, #tpu.memory_space<vmem>>, vector<1x2x4xf32>
    %87 = vector.shape_cast %86 : vector<1x2x4xf32> to vector<2x4xf32>
    %88 = vector.shape_cast %85 : vector<2x4xf32> to vector<1x2x4xf32>
    tpu.vector_store %arg4[%c0_56, %c0_57, %c0_58], %88 {strides = array<i32>} : memref<1x2x4xf32, #tpu.memory_space<vmem>>, vector<1x2x4xf32>,
    return
  }
  func.func @transform_0(%arg0: i32) -> (i32, i32, i32) {
    %c0_i32 = arith.constant 0 : i32
    %c0_i32_0 = arith.constant 0 : i32
    %c0_i32_1 = arith.constant 0 : i32
    return %arg0, %c0_i32, %c0_i32_0 : i32, i32, i32
  }
  func.func @transform_1(%arg0: i32) -> (i32, i32, i32) {
    %c0_i32 = arith.constant 0 : i32
    %c0_i32_0 = arith.constant 0 : i32
    %c0_i32_1 = arith.constant 0 : i32
    %c0_i32_2 = arith.constant 0 : i32
    return %c0_i32, %c0_i32_0, %c0_i32_1 : i32, i32, i32
  }
  func.func @transform_2(%arg0: i32) -> (i32, i32, i32) {
    %c0_i32 = arith.constant 0 : i32
    %c0_i32_0 = arith.constant 0 : i32
    %c0_i32_1 = arith.constant 0 : i32
    return %arg0, %c0_i32, %c0_i32_0 : i32, i32, i32
  }
  func.func @transform_3(%arg0: i32) -> (i32, i32, i32) {
    %c0_i32 = arith.constant 0 : i32
    %c0_i32_0 = arith.constant 0 : i32
    %c0_i32_1 = arith.constant 0 : i32
    return %arg0, %c0_i32, %c0_i32_0 : i32, i32, i32
  }
}

</mosaic_0001>

<bundles_post_ra>
// kernel: up_forward.2
= control target key start
LH: loop header
LB: loop body
LE: loop exit
PB: predicated region body
PF: predicated region fallthrough
CT: control target
= control target key end

     0   :  { %s5193_s12 = smov 0   ;;  %s7254_s0 = inlined_call_operand.vmem [shape: bf16[2,332,8], index: 0, kind: input, shape index: {}]   ;;  %s7255_s1 = inlined_call_operand.vmem [shape: bf16[9,8,4], index: 1, kind: input, shape index: {}]   ;;  %s7256_s2 = inlined_call_operand.vmem [shape: bf16[2,288,4], index: 2, kind: output, shape index: {0}]   ;;  %s7257_s3 = inlined_call_operand.vmem [shape: f32[2,2,4], index: 3, kind: output, shape index: {1}]  }
   0x1 LB: > { %s4688_s13 = sadd.s32 4294967295, %s5170_s12   ;;  %p4692_p0 = scmp.ge.s32.totalorder %s5170_s12, 1  ;;  %s5170_s12 = sphi %s5193_s12, %s14_s12  }
   0x2   : > { %p140_p1 = scmp.lt.s32.totalorder %s5170_s12, 3 }
   0x4   : > { %p141_p2 = pnand %p4692_p0, %p140_p1 }
   0x6   : > { %144 = sbr.rel (%p141_p2) target bundleno = 900 (0x384), region = 28 }
   0xb   : > { %v4696_v0 = vld [vmem:[%s7255_s1 + $0x4] sm:$0xf]  ;;  %vm520_vm0 = vcmask 1043456   ;;  %p168_p3 = scmp.lt.s32.totalorder %s4688_s13, 1  ;;  %v4801_v2 = vld [vmem:[%s7255_s1 + $0x8] sm:$0xf] }
   0xc   : > { %v522_v1 = vsel %vm520_vm0, %v4696_v0, 0  ;;  %v219_v3 = vld [vmem:[%s7255_s1] sm:$0xf]  ;;  %v860_v4 = vsel %vm520_vm0, %v4801_v2, 0  ;;  %v4907_v6 = vld [vmem:[%s7255_s1 + $0x10] sm:$0xf] }
   0xd   : > { %5130 = vmatpush.bf16.msra.mxu1 %v522_v1  ;;  %5131 = vmatpush.bf16.msra.mxu2 %v522_v1  ;;  %s7393_s13 = smov (!%p168_p3, %s4688_s13), 1  ;;  %v660_v5 = vsel %vm520_vm0, %v219_v3, 0  ;;  %v1590_v7 = vsel %vm520_vm0, %v4907_v6, 0  ;;  %vm316_vm1 = vsmask.f32 7424  ;;  %vm465_vm2 = vcmask 64512  }
   0xe   : > { %531 = vmatpush.bf16.msra.mxu0 %v522_v1  ;;  %s5133_s22 = smul.u32 168, %s7393_s13  ;;  %5132 = vmatpush.bf16.msra.mxu3 %v522_v1  ;;  %v4820_v45 = vld [vmem:[%s7255_s1 + $0xc] sm:$0xf]  ;;  %vm767_vm3 = vcmask 1046528   ;;  %vm1364_vm4 = vsmask.f32 6400 }
   0xf   : > { %v1221_v53 = vsel %vm520_vm0, %v4820_v45, 0  ;;  %vm2330_vm5 = vsmask.f32 5376  ;;  %vm1733_vm6 = vcmask 1045504   ;;  %vm2699_vm7 = vcmask 1044480   ;;  %s5134_s9 = smul.u32 144, %s7393_s13 }
  0x10   : > { %s5223_s25 = scalar_lea.vmem %s7254_s0, %s5133_s22  ;;  %s4695_s15 = sshll.u32 %s7393_s13, 1 }
  0x11   : > { %869 = vmatpush.bf16.msrb.mxu2 %v860_v4  ;;  %669 = vmatpush.bf16.msrb.mxu1 %v660_v5  ;;  %v5226_v8 = vld [vmem:[%s5223_s25 + $0x28] sm:$0xff]  ;;  %v5229_v9 = vld [vmem:[%s5223_s25 + $0x30] sm:$0xff]  ;;  %v5235_v11 = vld [vmem:[%s5223_s25 + $0x58] sm:$0xff]  ;;  %s6258_s14 = scalar_lea.vmem %s7256_s2, %s5134_s9  ;;  %s181_s18 = scalar_lea.vmem %s7257_s3, %s4695_s15 }
  0x12   : > { %1599 = vmatpush.bf16.msrb.mxu0 %v1590_v7  ;;  %v5232_v10 = vld [vmem:[%s5223_s25 + $0x50] sm:$0xff]  ;;  %v5238_v12 = vld [vmem:[%s5223_s25] sm:$0xff]   ;;  %v5241_v13 = vld [vmem:[%s5223_s25 + $0x8] sm:$0xff]  ;;  %v357_v14 = vshll.u32 %v5226_v8, 16  ;;  %v361_v15 = vshrl.u32 %v5226_v8, 16  ;;  %v365_v16 = vshll.u32 %v5229_v9, 16  ;;  %1230 = vmatpush.bf16.msrb.mxu3 %v1221_v53 }
  0x13   : > { %v397_v17 = vshll.u32 %v5232_v10, 16  ;;  %v401_v18 = vshrl.u32 %v5232_v10, 16  ;;  %v405_v19 = vshll.u32 %v5235_v11, 16  ;;  %v318_v20 = vshrl.u32 %v5238_v12, 16  ;;  %v5259_v31 = vld [vmem:[%s5223_s25 + $0x78] sm:$0xff]  ;;  %v5087_v32 = vld [vmem:[%s5223_s25 + $0x80] sm:$0xff] }
  0x14   : > { %v320_v21 = vshll.u32 %v5238_v12, 16  ;;  %v5251_v22 = vrot.slane %v357_v14, 1  ;;  %v367_v23 = vrot.slane %v365_v16, 1  ;;  %v325_v25 = vshll.u32 %v5241_v13, 16  ;;  %v5268_v37 = vld [vmem:[%s5223_s25 + $0x38] sm:$0xff]  ;;  %v5272_v38 = vld [vmem:[%s5223_s25 + $0x60] sm:$0xff] }
  0x15   : > { %v5253_v24 = vrot.slane %v397_v17, 1  ;;  %v407_v26 = vrot.slane %v405_v19, 1  ;;  %v437_v39 = vshll.u32 %v5259_v31, 16  ;;  %v441_v40 = vshrl.u32 %v5259_v31, 16  ;;  %v5277_v42 = vld [vmem:[%s5223_s25 + $0x10] sm:$0xff]  ;;  %v5088_v59 = vld [vmem:[%s5223_s25 + $0x88] sm:$0xff] }
  0x16   : > { %v322_v27 = vrot.slane %v320_v21, 1  ;;  %v363_v28 = vor.u32 %v361_v15, %v5251_v22  ;;  %v327_v30 = vrot.slane %v325_v25, 1  ;;  %v445_v41 = vshll.u32 %v5087_v32, 16  ;;  %v5296_v60 = vld [vmem:[%s5223_s25 + $0x48] sm:$0xff]  ;;  %v5305_v5 = vld [vmem:[%s5223_s25 + $0x40] sm:$0xff]  ;;  %v5313_v17 = vld [vmem:[%s5223_s25 + $0x18] sm:$0xff] }
  0x17   : > { %v403_v29 = vor.u32 %v401_v18, %v5253_v24  ;;  %v5279_v43 = vrot.slane %v437_v39, 1  ;;  %v369_v46 = vshrl.u32 %v5229_v9, 16  ;;  %v373_v47 = vshll.u32 %v5268_v37, 16  ;;  %v5308_v6 = vld [vmem:[%s5223_s25 + $0x68] sm:$0xff]  ;;  %v220_v18 = vld [vmem:[%s5223_s25 + $0x90] sm:$0x1] }
  0x18   : > { %v323_v33 = vor.u32 %v322_v27, %v318_v20  ;;  %v368_v34 = vsel %vm316_vm1, %v363_v28, %v367_v23  ;;  %v447_v44 = vrot.slane %v445_v41, 1  ;;  %v409_v48 = vshrl.u32 %v5235_v11, 16  ;;  %v5322_v27 = vld [vmem:[%s5223_s25 + $0x20] sm:$0xff] }
  0x19   : > { %v408_v35 = vsel %vm316_vm1, %v403_v29, %v407_v26  ;;  %4770 = vmatmul.msk.bf16.vlgmr.msra.gmra.mxu1 %vm465_vm2, %v368_v34  ;;  %v413_v49 = vshll.u32 %v5272_v38, 16  ;;  %v443_v50 = vor.u32 %v441_v40, %v5279_v43  ;;  %v329_v51 = vshrl.u32 %v5241_v13, 16 }
  0x1a   : > { %4775 = vmatmul.msk.bf16.vlgmr.msra.gmra.mxu2 %vm465_vm2, %v408_v35  ;;  %v328_v36 = vsel %vm316_vm1, %v323_v33, %v327_v30  ;;  %v333_v52 = vshll.u32 %v5277_v42, 16  ;;  %v371_v55 = vor.u32 %v369_v46, %v367_v23  ;;  %v375_v56 = vrot.slane %v373_v47, 1 }
  0x1b   : > { %4765 = vmatmul.msk.bf16.vlgmr.msra.gmra.mxu0 %vm465_vm2, %v328_v36  ;;  %v448_v54 = vsel %vm316_vm1, %v443_v50, %v447_v44  ;;  %v411_v57 = vor.u32 %v409_v48, %v407_v26  ;;  %v415_v58 = vrot.slane %v413_v49, 1  ;;  %v331_v61 = vor.u32 %v329_v51, %v327_v30 }
  0x1c   : > { %4780 = vmatmul.msk.bf16.vlgmr.msra.gmra.mxu3 %vm465_vm2, %v448_v54  ;;  %v335_v62 = vrot.slane %v333_v52, 1  ;;  %v376_v63 = vsel %vm316_vm1, %v371_v55, %v375_v56  ;;  %v449_v1 = vshrl.u32 %v5087_v32, 16  ;;  %v453_v2 = vshll.u32 %v5088_v59, 16  ;;  %v5343_v52 = vld [vmem:[%s5223_s25 + $0x70] sm:$0xff] }
  0x1d   : > { %v416_v0 = vsel %vm316_vm1, %v411_v57, %v415_v58  ;;  %v389_v3 = vshll.u32 %v5296_v60, 16  ;;  %v393_v16 = vshrl.u32 %v5296_v60, 16  ;;  %v377_v20 = vshrl.u32 %v5268_v37, 16 }
  0x1e   : > { %v336_v4 = vsel %vm316_vm1, %v331_v61, %v335_v62  ;;  %v451_v7 = vor.u32 %v449_v1, %v447_v44  ;;  %v455_v14 = vrot.slane %v453_v2, 1  ;;  %v381_v21 = vshll.u32 %v5305_v5, 16 }
  0x1f   : > { %v391_v15 = vrot.slane %v389_v3, 1  ;;  %v417_v23 = vshrl.u32 %v5272_v38, 16  ;;  %v421_v25 = vshll.u32 %v5308_v6, 16  ;;  %v296_v28 = vunpack.c.l.b16 %v220_v18 }
  0x20   : > { %v456_v26 = vsel %vm316_vm1, %v451_v7, %v455_v14  ;;  %v337_v30 = vshrl.u32 %v5277_v42, 16  ;;  %v341_v32 = vshll.u32 %v5313_v17, 16  ;;  %v379_v33 = vor.u32 %v377_v20, %v375_v56  ;;  %v5089_v7 = vld [vmem:[%s5223_s25 + $0x10] sm:$0xff] }
  0x21   : > { %v395_v19 = vor.u32 %v393_v16, %v391_v15  ;;  %v383_v34 = vrot.slane %v381_v21, 1  ;;  %v419_v35 = vor.u32 %v417_v23, %v415_v58  ;;  %v423_v36 = vrot.slane %v421_v25, 1  ;;  %v4945_v21 = vld [vmem:[%s7255_s1 + $0x18] sm:$0xf]  ;;  %v5032_v25 = vld [vmem:[%s7255_s1 + $0x1c] sm:$0xf] }
  0x22   : > { %v349_v39 = vshll.u32 %v5322_v27, 16  ;;  %v5332_v40 = vpack.c.b16 %v296_v28, %v296_v28  ;;  %v339_v41 = vor.u32 %v337_v30, %v335_v62  ;;  %v343_v44 = vrot.slane %v341_v32, 1  ;;  %v997_v62 = vld [vmem:[%s5223_s25 + $0x8] sm:$0xe]  ;;  %v5051_v32 = vld [vmem:[%s7255_s1 + $0x20] sm:$0xf] }
  0x23   : > { %v5326_v29 = vsel %vm316_vm1, %v395_v19, %v5253_v24  ;;  %v384_v24 = vsel %vm316_vm1, %v379_v33, %v383_v34  ;;  %v424_v45 = vsel %vm316_vm1, %v419_v35, %v423_v36  ;;  %v457_v47 = vshrl.u32 %v5088_v59, 16 }
  0x24   : > { %v351_v46 = vrot.slane %v349_v39, 1  ;;  %v461_v48 = vshll.u32 %v5332_v40, 16  ;;  %v353_v49 = vshrl.u32 %v5322_v27, 16  ;;  %v344_v50 = vsel %vm316_vm1, %v339_v41, %v343_v44  ;;  %v5090_v41 = vld [vmem:[%s5223_s25 + $0x18] sm:$0xff] }
  0x25   : > { %v459_v53 = vor.u32 %v457_v47, %v455_v14  ;;  %v385_v56 = vshrl.u32 %v5305_v5, 16  ;;  %v425_v57 = vshrl.u32 %v5308_v6, 16  ;;  %v429_v58 = vshll.u32 %v5343_v52, 16 }
  0x26   : > { %v355_v51 = vor.u32 %v353_v49, %v351_v46  ;;  %v463_v54 = vrot.slane %v461_v48, 1  ;;  %v345_v61 = vshrl.u32 %v5313_v17, 16  ;;  %v1073_v3 = vunpack.c.l.b16 %v997_v62 }
  0x27   : > { %v427_v1 = vor.u32 %v425_v57, %v423_v36  ;;  %v431_v2 = vrot.slane %v429_v58, 1  ;;  %v1130_v20 = vrot.slane %v5089_v7, 1  ;;  %v2556_v28 = vsel %vm520_vm0, %v5032_v25, 0 }
  0x28   : > { %v360_v55 = vsel %vm316_vm1, %v355_v51, %v5251_v22  ;;  %v464_v59 = vsel %vm316_vm1, %v459_v53, %v463_v54  ;;  %2565 = vmatpush.bf16.msra.mxu3 %v2556_v28  ;;  %v2792_v33 = vsel %vm520_vm0, %v5051_v32, 0  ;;  %v1374_v48 = vshrl.u32 %v5089_v7, 16 }
  0x29   : > { %4771 = vmatmul.msk.bf16.gmra.mxu1 %vm465_vm2, %v376_v63  ;;  %v5354_v63 = vld [vmem:[%s5223_s25 + $0xc] sm:$0xf]  ;;  %v432_v16 = vsel %vm316_vm1, %v427_v1, %v431_v2  ;;  %2801 = vmatpush.bf16.msra.mxu0 %v2792_v33  ;;  %v1377_v49 = vshll.u32 %v5089_v7, 16  ;;  %v1383_v1 = vshrl.u32 %v5090_v41, 16  ;;  %v773_v28 = vrot.slane %v5313_v17, 1  ;;  %v5093_v33 = vld [vmem:[%s5223_s25 + $0x30] sm:$0xff] }
  0x2a   : > { %4776 = vmatmul.msk.bf16.gmra.mxu2 %vm465_vm2, %v416_v0  ;;  %v387_v0 = vor.u32 %v385_v56, %v383_v34  ;;  %v7258_v22 = vunpack.c.l.b16 %v5354_v63  ;;  %v433_v34 = vshrl.u32 %v5343_v52, 16  ;;  %v1376_v54 = vrot.slane %v1374_v48, 1 }
  0x2b   : > { %4766 = vmatmul.msk.bf16.gmra.mxu0 %vm465_vm2, %v336_v4  ;;  %v347_v4 = vor.u32 %v345_v61, %v343_v44  ;;  %v5127_v44 = vld [vmem:[%s5223_s25] sm:$0xf0]  ;;  %v1379_v56 = vrot.slane %v1377_v49, 2 }
  0x2c   : > { %4781 = vmatmul.msk.bf16.gmra.mxu3 %vm465_vm2, %v456_v26  ;;  %v392_v14 = vsel %vm316_vm1, %v387_v0, %v391_v15  ;;  %v1110_v18 = vpack.c.b16 %v7258_v22, %v1073_v3  ;;  %v2187_v15 = vsel %vm520_vm0, %v4945_v21, 0  ;;  %v4926_v26 = vld [vmem:[%s7255_s1 + $0x14] sm:$0xf]  ;;  %v435_v36 = vor.u32 %v433_v34, %v431_v2  ;;  %v5091_v61 = vld [vmem:[%s5223_s25 + $0x20] sm:$0xff] }
  0x2d   : > { %v352_v19 = vsel %vm316_vm1, %v347_v4, %v351_v46  ;;  %2196 = vmatpush.bf16.msra.mxu2 %v2187_v15  ;;  %v1826_v30 = vsel %vm520_vm0, %v4926_v26, 0  ;;  %v1380_v58 = vor.u32 %v1379_v56, %v1376_v54  ;;  %v1134_v0 = vrot.slane %v5091_v61, 1  ;;  %v5099_v22 = vld [vmem:[%s5223_s25 + $0x60] sm:$0xff] }
  0x2e   : > { %v1129_v23 = vrot.slane %v1110_v18, 1  ;;  %1835 = vmatpush.bf16.msra.mxu1 %v1826_v30  ;;  %v440_v39 = vsel %vm316_vm1, %v435_v36, %v5279_v43  ;;  %v1366_v46 = vshrl.u32 %v1110_v18, 16  ;;  %v1369_v47 = vshll.u32 %v1110_v18, 16 }
  0x2f   : > { %v1386_v2 = vshll.u32 %v5090_v41, 16  ;;  %v1385_v4 = vrot.slane %v1383_v1, 1  ;;  %v1392_v21 = vshrl.u32 %v5091_v61, 16  ;;  %v1138_v34 = vrot.slane %v5093_v33, 1  ;;  %v5095_v1 = vld [vmem:[%s5223_s25 + $0x40] sm:$0xff] }
  0x30   : > { %v1131_v35 = vsel %vm767_vm3, %v1129_v23, %v1130_v20  ;;  %v1368_v43 = vrot.slane %v1366_v46, 1  ;;  %v1371_v53 = vrot.slane %v1369_v47, 2  ;;  %v1395_v23 = vshll.u32 %v5091_v61, 16  ;;  %v5094_v47 = vld [vmem:[%s5223_s25 + $0x38] sm:$0xff] }
  0x31   : > { %v1388_v7 = vrot.slane %v1386_v2, 2  ;;  %v1394_v25 = vrot.slane %v1392_v21, 1 }
  0x32   : > { %v1372_v57 = vor.u32 %v1371_v53, %v1368_v43  ;;  %v1397_v26 = vrot.slane %v1395_v23, 2  ;;  %v1413_v43 = vshll.u32 %v5093_v33, 16  ;;  %v779_v23 = vrot.slane %v5229_v9, 1 }
  0x34   : > { %v1381_v62 = vsel %vm1364_vm4, %v1372_v57, %v1380_v58  ;;  %v1398_v30 = vor.u32 %v1397_v26, %v1394_v25  ;;  %v1415_v57 = vrot.slane %v1413_v43, 2 }
  0x39   : > { %4772 = vmatmul.msk.bf16.gmra.mxu1 %vm465_vm2, %v384_v24  ;;  %v1132_v24 = vrot.slane %v5090_v41, 1 }
  0x3a   : > { %4777 = vmatmul.msk.bf16.gmra.mxu2 %vm465_vm2, %v424_v45  ;;  %v5128_v45 = vld [vmem:[%s5223_s25] sm:$0xe] }
  0x3b   : > { %4767 = vmatmul.msk.bf16.gmra.mxu0 %vm465_vm2, %v344_v50  ;;  %v5129_v50 = vor.u32 %v5128_v45, %v5127_v44  ;;  %v1133_v51 = vsel %vm767_vm3, %v1130_v20, %v1132_v24  ;;  %v1135_v3 = vsel %vm767_vm3, %v1132_v24, %v1134_v0  ;;  %v775_v24 = vrot.slane %v5322_v27, 1 }
  0x3c   : > { %4782 = vmatmul.msk.bf16.gmra.mxu3 %vm465_vm2, %v464_v59 }
  0x49   : > { %4773 = vmatmul.msk.bf16.gmra.mxu1 %vm465_vm2, %v392_v14  ;;  %v771_v14 = vrot.slane %v5277_v42, 1 }
  0x4a   : > { %4778 = vmatmul.msk.bf16.gmra.mxu2 %vm465_vm2, %v432_v16  ;;  %v1389_v16 = vor.u32 %v1388_v7, %v1385_v4  ;;  %v1142_v4 = vrot.slane %v5095_v1, 1  ;;  %v1419_v7 = vshrl.u32 %v5094_v47, 16 }
  0x4b   : > { %4768 = vmatmul.msk.bf16.gmra.mxu0 %vm465_vm2, %v352_v19  ;;  %v774_v32 = vsel %vm767_vm3, %v771_v14, %v773_v28 }
  0x4c   : > { %4889 = vmatmul.msk.bf16.vlgmr.msrb.gmra.mxu3 %vm465_vm2, %v1131_v35  ;;  %v1390_v19 = vsel %vm1364_vm4, %v1380_v58, %v1389_v16  ;;  %v1421_v21 = vrot.slane %v1419_v7, 1 }
  0x59   : > { %4774 = vmatmul.msk.bf16.gmra.mxu1 %vm465_vm2, %v5326_v29  ;;  %v768_v29 = vrot.slane %v5129_v50, 1  ;;  %v1140_v50 = vrot.slane %v5094_v47, 1 }
  0x5a   : > { %4779 = vmatmul.msk.bf16.gmra.mxu2 %vm465_vm2, %v440_v39 }
  0x5b   : > { %4769 = vmatmul.msk.bf16.gmra.mxu0 %vm465_vm2, %v360_v55  ;;  %v769_v55 = vrot.slane %v5241_v13, 1  ;;  %v1141_v56 = vsel %vm767_vm3, %v1138_v34, %v1140_v50 }
  0x5c   : > { %4890 = vmatmul.msk.bf16.gmra.mxu3 %vm465_vm2, %v1133_v51  ;;  %v1410_v51 = vshrl.u32 %v5093_v33, 16 }
  0x5d   : > { %v770_v59 = vsel %vm767_vm3, %v768_v29, %v769_v55  ;;  %v772_v18 = vsel %vm767_vm3, %v769_v55, %v771_v14  ;;  %v1422_v14 = vshll.u32 %v5094_v47, 16  ;;  %v781_v47 = vrot.slane %v5268_v37, 1 }
  0x5e   : > { %v1412_v55 = vrot.slane %v1410_v51, 1 }
  0x60   : > { %v1416_v58 = vor.u32 %v1415_v57, %v1412_v55  ;;  %v5097_v55 = vld [vmem:[%s5223_s25 + $0x50] sm:$0xff] }
  0x69   : > { %4783 = vmatmul.msk.bf16.vlgmr.msrb.gmra.mxu1 %vm465_vm2, %v5238_v12  ;;  %v5092_v12 = vld [vmem:[%s5223_s25 + $0x28] sm:$0xff] }
  0x6a   : > { %4802 = vmatmul.msk.bf16.vlgmr.msrb.gmra.mxu2 %vm465_vm2, %v770_v59  ;;  %v1136_v20 = vrot.slane %v5092_v12, 1  ;;  %v1401_v35 = vshrl.u32 %v5092_v12, 16  ;;  %v1404_v36 = vshll.u32 %v5092_v12, 16 }
  0x6b   : > { %4908 = vmatmul.msk.bf16.vlgmr.msrb.gmra.mxu0 %vm465_vm2, %v1381_v62 }
  0x6c   : > { %4891 = vmatmul.msk.bf16.gmra.mxu3 %vm465_vm2, %v1135_v3  ;;  %v1137_v15 = vsel %vm767_vm3, %v1134_v0, %v1136_v20  ;;  %v1139_v39 = vsel %vm767_vm3, %v1136_v20, %v1138_v34  ;;  %v1403_v41 = vrot.slane %v1401_v35, 1  ;;  %v1406_v44 = vrot.slane %v1404_v36, 2 }
  0x6d   : > { %v1428_v35 = vshrl.u32 %v5095_v1, 16  ;;  %v1431_v36 = vshll.u32 %v5095_v1, 16 }
  0x6e   : > { %v1407_v45 = vor.u32 %v1406_v44, %v1403_v41 }
  0x70   : > { %v1408_v49 = vsel %vm1364_vm4, %v1398_v30, %v1407_v45  ;;  %v1417_v3 = vsel %vm1364_vm4, %v1407_v45, %v1416_v58 }
  0x79   : > { %4784 = vmatmul.msk.bf16.gmra.mxu1 %vm465_vm2, %v5241_v13  ;;  %v1399_v13 = vsel %vm1364_vm4, %v1389_v16, %v1398_v30 }
  0x7a   : > { %4803 = vmatmul.msk.bf16.gmra.mxu2 %vm465_vm2, %v772_v18 }
  0x7b   : > { %4909 = vmatmul.msk.bf16.gmra.mxu0 %vm465_vm2, %v1390_v19  ;;  %v1143_v19 = vsel %vm767_vm3, %v1140_v50, %v1142_v4 }
  0x7c   : > { %4892 = vmatmul.msk.bf16.gmra.mxu3 %vm465_vm2, %v1137_v15 }
  0x89   : > { %4785 = vmatmul.msk.bf16.gmra.mxu1 %vm465_vm2, %v5277_v42  ;;  %v776_v42 = vsel %vm767_vm3, %v773_v28, %v775_v24 }
  0x8a   : > { %4804 = vmatmul.msk.bf16.gmra.mxu2 %vm465_vm2, %v774_v32  ;;  %v5096_v32 = vld [vmem:[%s5223_s25 + $0x48] sm:$0xff] }
  0x8b   : > { %4910 = vmatmul.msk.bf16.gmra.mxu0 %vm465_vm2, %v1399_v13  ;;  %v1144_v34 = vrot.slane %v5096_v32, 1  ;;  %v1440_v1 = vshll.u32 %v5096_v32, 16 }
  0x8c   : > { %4893 = vmatmul.msk.bf16.gmra.mxu3 %vm465_vm2, %v1139_v39 }
  0x96   : > { %v5428_v46 = vpop.f32.mrf.mxu1 }
  0x98   : > { %v5432_v48 = vpop.f32.mrf.mxu0 }
  0x99   : > { %4786 = vmatmul.msk.bf16.gmra.mxu1 %vm465_vm2, %v5313_v17  ;;  %v777_v17 = vrot.slane %v5226_v8, 1 }
  0x9a   : > { %4805 = vmatmul.msk.bf16.gmra.mxu2 %vm465_vm2, %v776_v42  ;;  %v1430_v42 = vrot.slane %v1428_v35, 1  ;;  %v5098_v35 = vld [vmem:[%s5223_s25 + $0x58] sm:$0xff] }
  0x9b   : > { %4911 = vmatmul.msk.bf16.gmra.mxu0 %vm465_vm2, %v1408_v49  ;;  %v778_v0 = vsel %vm767_vm3, %v775_v24, %v777_v17  ;;  %v780_v30 = vsel %vm767_vm3, %v777_v17, %v779_v23  ;;  %v1145_v24 = vsel %vm767_vm3, %v1142_v4, %v1144_v34 }
  0x9c   : > { %4894 = vmatmul.msk.bf16.gmra.mxu3 %vm465_vm2, %v1141_v56  ;;  %v782_v56 = vsel %vm767_vm3, %v779_v23, %v781_v47 }
  0x9d   : > { %v5439_v53 = vpop.f32.mrf.mxu2 }
  0x9e   : > { %v5441_v54 = vpop.f32.mrf.mxu1 }
  0x9f   : > { %v5450_v61 = vpop.f32.mrf.mxu3 }
  0xa0   : > { %v5444_v29 = vpop.f32.mrf.mxu0  ;;  %7267 = vst [vmem:[#allocation2_spill] sm:$0xff] %v5450_v61 }
  0xa5   : > { %v5448_v59 = vpop.f32.mrf.mxu2 }
  0xa6   : > { %v5452_v62 = vpop.f32.mrf.mxu1 }
  0xa7   : > { %v5465_v18 = vpop.f32.mrf.mxu3 }
  0xa8   : > { %v5456_v2 = vpop.f32.mrf.mxu0  ;;  %7268 = vst [vmem:[#allocation3_spill] sm:$0xff] %v5465_v18 }
  0xa9   : > { %4787 = vmatmul.msk.bf16.gmra.mxu1 %vm465_vm2, %v5322_v27  ;;  %v1424_v27 = vrot.slane %v1422_v14, 2 }
  0xaa   : > { %4806 = vmatmul.msk.bf16.gmra.mxu2 %vm465_vm2, %v778_v0  ;;  %v1437_v0 = vshrl.u32 %v5096_v32, 16 }
  0xab   : > { %4912 = vmatmul.msk.bf16.gmra.mxu0 %vm465_vm2, %v1417_v3  ;;  %v1425_v15 = vor.u32 %v1424_v27, %v1421_v21  ;;  %v783_v27 = vrot.slane %v5305_v5, 1 }
  0xac   : > { %4895 = vmatmul.msk.bf16.gmra.mxu3 %vm465_vm2, %v1143_v19  ;;  %v1439_v21 = vrot.slane %v1437_v0, 1 }
  0xad   : > { %v5463_v16 = vpop.f32.mrf.mxu2  ;;  %v1426_v13 = vsel %vm1364_vm4, %v1416_v58, %v1425_v15  ;;  %v1146_v58 = vrot.slane %v5097_v55, 1 }
  0xae   : > { %v5467_v12 = vpop.f32.mrf.mxu1 }
  0xaf   : > { %v5476_v26 = vpop.f32.mrf.mxu3  ;;  %v1147_v14 = vsel %vm767_vm3, %v1144_v34, %v1146_v58 }
  0xb0   : > { %v5470_v20 = vpop.f32.mrf.mxu0  ;;  %7269 = vst [vmem:[#allocation4_spill] sm:$0xff] %v5476_v26 }
  0xb5   : > { %v5474_v25 = vpop.f32.mrf.mxu2 }
  0xb6   : > { %v5478_v28 = vpop.f32.mrf.mxu1 }
  0xb7   : > { %v5491_v41 = vpop.f32.mrf.mxu3 }
  0xb8   : > { %v5482_v33 = vpop.f32.mrf.mxu0  ;;  %7270 = vst [vmem:[#allocation5_spill] sm:$0xff] %v5491_v41 }
  0xb9   : > { %4788 = vmatmul.msk.bf16.gmra.mxu1 %vm465_vm2, %v5226_v8  ;;  %v1433_v8 = vrot.slane %v1431_v36, 2 }
  0xba   : > { %4807 = vmatmul.msk.bf16.gmra.mxu2 %vm465_vm2, %v780_v30 }
  0xbb   : > { %4913 = vmatmul.msk.bf16.gmra.mxu0 %vm465_vm2, %v1426_v13  ;;  %v1434_v49 = vor.u32 %v1433_v8, %v1430_v42  ;;  %v784_v13 = vsel %vm767_vm3, %v781_v47, %v783_v27  ;;  %v1446_v42 = vshrl.u32 %v5097_v55, 16  ;;  %v1449_v8 = vshll.u32 %v5097_v55, 16 }
  0xbc   : > { %4896 = vmatmul.msk.bf16.gmra.mxu3 %vm465_vm2, %v1145_v24  ;;  %v1148_v24 = vrot.slane %v5098_v35, 1 }
  0xbd   : > { %v5489_v39 = vpop.f32.mrf.mxu2  ;;  %v1435_v17 = vsel %vm1364_vm4, %v1425_v15, %v1434_v49 }
  0xbe   : > { %v5493_v44 = vpop.f32.mrf.mxu1  ;;  %v1149_v0 = vsel %vm767_vm3, %v1146_v58, %v1148_v24  ;;  %v1150_v58 = vrot.slane %v5099_v22, 1 }
  0xbf   : > { %v5502_v51 = vpop.f32.mrf.mxu3 }
  0xc0   : > { %v5496_v45 = vpop.f32.mrf.mxu0  ;;  %7271 = vst [vmem:[#allocation6_spill] sm:$0xff] %v5502_v51  ;;  %v1151_v26 = vsel %vm767_vm3, %v1148_v24, %v1150_v58  ;;  %v5100_v24 = vld [vmem:[%s5223_s25 + $0x68] sm:$0xff] }
  0xc5   : > { %v5500_v50 = vpop.f32.mrf.mxu2 }
  0xc6   : > { %v5504_v43 = vpop.f32.mrf.mxu1 }
  0xc7   : > { %v5517_v4 = vpop.f32.mrf.mxu3 }
  0xc8   : > { %v5508_v57 = vpop.f32.mrf.mxu0  ;;  %7272 = vst [vmem:[#allocation7_spill] sm:$0xff] %v5517_v4 }
  0xc9   : > { %4789 = vmatmul.msk.bf16.gmra.mxu1 %vm465_vm2, %v5229_v9  ;;  %v1442_v9 = vrot.slane %v1440_v1, 2 }
  0xca   : > { %4808 = vmatmul.msk.bf16.gmra.mxu2 %vm465_vm2, %v782_v56 }
  0xcb   : > { %4914 = vmatmul.msk.bf16.gmra.mxu0 %vm465_vm2, %v1435_v17  ;;  %v1443_v23 = vor.u32 %v1442_v9, %v1439_v21 }
  0xcc   : > { %4897 = vmatmul.msk.bf16.gmra.mxu3 %vm465_vm2, %v1147_v14  ;;  %v1451_v14 = vrot.slane %v1449_v8, 2  ;;  %v1455_v8 = vshrl.u32 %v5098_v35, 16 }
  0xcd   : > { %v5515_v3 = vpop.f32.mrf.mxu2  ;;  %v1444_v34 = vsel %vm1364_vm4, %v1434_v49, %v1443_v23  ;;  %v1448_v49 = vrot.slane %v1446_v42, 1 }
  0xce   : > { %v5519_v7 = vpop.f32.mrf.mxu1  ;;  %v1457_v61 = vrot.slane %v1455_v8, 1 }
  0xcf   : > { %v1232_v30 = vpop.f32.mrf.mxu3  ;;  %v1452_v21 = vor.u32 %v1451_v14, %v1448_v49 }
  0xd0   : > { %v5522_v19 = vpop.f32.mrf.mxu0 }
  0xd1   : > { %v1453_v51 = vsel %vm1364_vm4, %v1443_v23, %v1452_v21 }
  0xd5   : > { %v5526_v15 = vpop.f32.mrf.mxu2 }
  0xd6   : > { %v5528_v32 = vpop.f32.mrf.mxu1 }
  0xd7   : > { %v1234_v17 = vpop.f32.mrf.mxu3 }
  0xd8   : > { %v5532_v36 = vpop.f32.mrf.mxu0 }
  0xd9   : > { %4790 = vmatmul.msk.bf16.gmra.mxu1 %vm465_vm2, %v5268_v37  ;;  %v785_v37 = vrot.slane %v5296_v60, 1 }
  0xda   : > { %4809 = vmatmul.msk.bf16.gmra.mxu2 %vm465_vm2, %v784_v13 }
  0xdb   : > { %4915 = vmatmul.msk.bf16.gmra.mxu0 %vm465_vm2, %v1444_v34  ;;  %v786_v34 = vsel %vm767_vm3, %v783_v27, %v785_v37 }
  0xdc   : > { %4898 = vmatmul.msk.bf16.gmra.mxu3 %vm465_vm2, %v1149_v0  ;;  %v1458_v0 = vshll.u32 %v5098_v35, 16 }
  0xdd   : > { %v5539_v56 = vpop.f32.mrf.mxu2 }
  0xde   : > { %7273 = vst [vmem:[#allocation8_spill] sm:$0xff] %v5539_v56  ;;  %v5541_v47 = vpop.f32.mrf.mxu1 }
  0xdf   : > { %v1237_v13 = vpop.f32.mrf.mxu3 }
  0xe0   : > { %v5544_v1 = vpop.f32.mrf.mxu0 }
  0xe5   : > { %v5548_v9 = vpop.f32.mrf.mxu2 }
  0xe6   : > { %7274 = vst [vmem:[#allocation9_spill] sm:$0xff] %v5548_v9  ;;  %v671_v55 = vpop.f32.mrf.mxu1 }
  0xe7   : > { %v672_v42 = vadd.f32 %v671_v55, %v5432_v48  ;;  %v1239_v14 = vpop.f32.mrf.mxu3 }
  0xe8   : > { %v1601_v4 = vpop.f32.mrf.mxu0 }
  0xe9   : > { %4791 = vmatmul.msk.bf16.gmra.mxu1 %vm465_vm2, %v5305_v5  ;;  %v1460_v5 = vrot.slane %v1458_v0, 2  ;;  %v1467_v0 = vshll.u32 %v5099_v22, 16 }
  0xea   : > { %4810 = vmatmul.msk.bf16.gmra.mxu2 %vm465_vm2, %v786_v34 }
  0xeb   : > { %4916 = vmatmul.msk.bf16.gmra.mxu0 %vm465_vm2, %v1453_v51  ;;  %v787_v51 = vrot.slane %v5232_v10, 1  ;;  %v1461_v35 = vor.u32 %v1460_v5, %v1457_v61 }
  0xec   : > { %4899 = vmatmul.msk.bf16.gmra.mxu3 %vm465_vm2, %v1151_v26 }
  0xed   : > { %v871_v49 = vpop.f32.mrf.mxu2  ;;  %v788_v56 = vsel %vm767_vm3, %v785_v37, %v787_v51  ;;  %v1462_v8 = vsel %vm1364_vm4, %v1452_v21, %v1461_v35 }
  0xee   : > { %v961_v41 = vadd.f32 %v871_v49, %v672_v42  ;;  %v673_v27 = vpop.f32.mrf.mxu1 }
  0xef   : > { %v674_v48 = vadd.f32 %v673_v27, %v5444_v29  ;;  %v1242_v9 = vpop.f32.mrf.mxu3  ;;  %v1152_v29 = vrot.slane %v5100_v24, 1 }
  0xf0   : > { %v1322_v23 = vadd.f32 %v1232_v30, %v961_v41  ;;  %v1603_v18 = vpop.f32.mrf.mxu0 }
  0xf1   : > { %v1153_v21 = vsel %vm767_vm3, %v1150_v58, %v1152_v29  ;;  %v5101_v58 = vld [vmem:[%s5223_s25 + $0x70] sm:$0xff] }
  0xf2   : > { %v5560_v34 = vadd.f32 %v1601_v4, %v1322_v23  ;;  %v1464_v4 = vshrl.u32 %v5099_v22, 16 }
  0xf5   : > { %v873_v55 = vpop.f32.mrf.mxu2 }
  0xf6   : > { %v962_v42 = vadd.f32 %v873_v55, %v674_v48  ;;  %v676_v49 = vpop.f32.mrf.mxu1  ;;  %v1466_v48 = vrot.slane %v1464_v4, 1  ;;  %v789_v55 = vrot.slane %v5235_v11, 1 }
  0xf7   : > { %v677_v61 = vadd.f32 %v676_v49, %v5456_v2  ;;  %v1244_v27 = vpop.f32.mrf.mxu3 }
  0xf8   : > { %v1323_v41 = vadd.f32 %v1234_v17, %v962_v42  ;;  %v1606_v30 = vpop.f32.mrf.mxu0 }
  0xf9   : > { %4792 = vmatmul.msk.bf16.gmra.mxu1 %vm465_vm2, %v5296_v60 }
  0xfa   : > { %4811 = vmatmul.msk.bf16.gmra.mxu2 %vm465_vm2, %v788_v56  ;;  %v5570_v26 = vadd.f32 %v1603_v18, %v1323_v41  ;;  %v1469_v56 = vrot.slane %v1467_v0, 2 }
  0xfb   : > { %4917 = vmatmul.msk.bf16.gmra.mxu0 %vm465_vm2, %v1462_v8 }
  0xfc   : > { %4900 = vmatmul.msk.bf16.gmra.mxu3 %vm465_vm2, %v1153_v21  ;;  %v1470_v22 = vor.u32 %v1469_v56, %v1466_v48 }
  0xfd   : > { %v876_v37 = vpop.f32.mrf.mxu2 }
  0xfe   : > { %v963_v17 = vadd.f32 %v876_v37, %v677_v61  ;;  %v678_v23 = vpop.f32.mrf.mxu1  ;;  %v790_v61 = vsel %vm767_vm3, %v787_v51, %v789_v55  ;;  %v1471_v4 = vsel %vm1364_vm4, %v1461_v35, %v1470_v22 }
  0xff   : > { %v679_v2 = vadd.f32 %v678_v23, %v5470_v20  ;;  %v1247_v49 = vpop.f32.mrf.mxu3  ;;  %v1154_v20 = vrot.slane %v5101_v58, 1  ;;  %v1476_v23 = vshll.u32 %v5100_v24, 16 }
 0x100   : > { %v1324_v5 = vadd.f32 %v1237_v13, %v963_v17  ;;  %v1608_v60 = vpop.f32.mrf.mxu0  ;;  %v1473_v17 = vshrl.u32 %v5100_v24, 16 }
 0x101   : > { %v1155_v35 = vsel %vm767_vm3, %v1152_v29, %v1154_v20  ;;  %v5102_v29 = vld [vmem:[%s5223_s25 + $0x78] sm:$0xff] }
 0x102   : > { %v5576_v18 = vadd.f32 %v1606_v30, %v1324_v5  ;;  %v1475_v56 = vrot.slane %v1473_v17, 1 }
 0x105   : > { %v878_v42 = vpop.f32.mrf.mxu2 }
 0x106   : > { %v964_v41 = vadd.f32 %v878_v42, %v679_v2  ;;  %v681_v8 = vpop.f32.mrf.mxu1  ;;  %v1478_v2 = vrot.slane %v1476_v23, 2  ;;  %v791_v42 = vrot.slane %v5272_v38, 1 }
 0x107   : > { %v682_v0 = vadd.f32 %v681_v8, %v5482_v33  ;;  %v1249_v21 = vpop.f32.mrf.mxu3 }
 0x108   : > { %v1325_v13 = vadd.f32 %v1239_v14, %v964_v41  ;;  %v1611_v37 = vpop.f32.mrf.mxu0  ;;  %v1479_v24 = vor.u32 %v1478_v2, %v1475_v56 }
 0x109   : > { %4793 = vmatmul.msk.bf16.gmra.mxu1 %vm465_vm2, %v5232_v10 }
 0x10a   : > { %4812 = vmatmul.msk.bf16.gmra.mxu2 %vm465_vm2, %v790_v61  ;;  %v5586_v30 = vadd.f32 %v1608_v60, %v1325_v13  ;;  %v1480_v17 = vsel %vm1364_vm4, %v1470_v22, %v1479_v24 }
 0x10b   : > { %4918 = vmatmul.msk.bf16.gmra.mxu0 %vm465_vm2, %v1471_v4  ;;  %v792_v4 = vsel %vm767_vm3, %v789_v55, %v791_v42 }
 0x10c   : > { %4901 = vmatmul.msk.bf16.gmra.mxu3 %vm465_vm2, %v1155_v35 }
 0x10d   : > { %v881_v51 = vpop.f32.mrf.mxu2 }
 0x10e   : > { %v965_v14 = vadd.f32 %v881_v51, %v682_v0  ;;  %v683_v5 = vpop.f32.mrf.mxu1  ;;  %v1482_v51 = vshrl.u32 %v5101_v58, 16 }
 0x10f   : > { %v684_v33 = vadd.f32 %v683_v5, %v5496_v45  ;;  %v1252_v8 = vpop.f32.mrf.mxu3  ;;  %v1156_v45 = vrot.slane %v5102_v29, 1 }
 0x110   : > { %v1326_v48 = vadd.f32 %v1242_v9, %v965_v14  ;;  %v1613_v10 = vpop.f32.mrf.mxu0  ;;  %v1485_v14 = vshll.u32 %v5101_v58, 16  ;;  %v1484_v56 = vrot.slane %v1482_v51, 1 }
 0x111   : > { %v1157_v22 = vsel %vm767_vm3, %v1154_v20, %v1156_v45  ;;  %v5103_v20 = vld [vmem:[%s5223_s25 + $0x80] sm:$0xff] }
 0x112   : > { %v5592_v60 = vadd.f32 %v1611_v37, %v1326_v48  ;;  %v1487_v2 = vrot.slane %v1485_v14, 2  ;;  %v1491_v14 = vshrl.u32 %v5102_v29, 16 }
 0x114   : > { %v1488_v58 = vor.u32 %v1487_v2, %v1484_v56  ;;  %v795_v2 = vrot.slane %v5343_v52, 1 }
 0x115   : > { %v883_v41 = vpop.f32.mrf.mxu2 }
 0x116   : > { %v966_v61 = vadd.f32 %v883_v41, %v684_v33  ;;  %v686_v13 = vpop.f32.mrf.mxu1  ;;  %v793_v33 = vrot.slane %v5308_v6, 1 }
 0x117   : > { %v687_v23 = vadd.f32 %v686_v13, %v5508_v57  ;;  %v1254_v5 = vpop.f32.mrf.mxu3 }
 0x118   : > { %v1327_v9 = vadd.f32 %v1244_v27, %v966_v61  ;;  %v1616_v0 = vpop.f32.mrf.mxu0 }
 0x119   : > { %4794 = vmatmul.msk.bf16.gmra.mxu1 %vm465_vm2, %v5235_v11 }
 0x11a   : > { %4813 = vmatmul.msk.bf16.gmra.mxu2 %vm465_vm2, %v792_v4  ;;  %v5602_v37 = vadd.f32 %v1613_v10, %v1327_v9  ;;  %v794_v9 = vsel %vm767_vm3, %v791_v42, %v793_v33 }
 0x11b   : > { %4919 = vmatmul.msk.bf16.gmra.mxu0 %vm465_vm2, %v1480_v17 }
 0x11c   : > { %4902 = vmatmul.msk.bf16.gmra.mxu3 %vm465_vm2, %v1157_v22 }
 0x11d   : > { %v886_v55 = vpop.f32.mrf.mxu2 }
 0x11e   : > { %v967_v27 = vadd.f32 %v886_v55, %v687_v23  ;;  %v688_v35 = vpop.f32.mrf.mxu1  ;;  %v1489_v23 = vsel %vm1364_vm4, %v1479_v24, %v1488_v58  ;;  %v1494_v55 = vshll.u32 %v5102_v29, 16 }
 0x11f   : > { %v689_v57 = vadd.f32 %v688_v35, %v5522_v19  ;;  %v1257_v61 = vpop.f32.mrf.mxu3  ;;  %v1158_v19 = vrot.slane %v5103_v20, 1 }
 0x120   : > { %v1328_v48 = vadd.f32 %v1247_v49, %v967_v27  ;;  %v1618_v11 = vpop.f32.mrf.mxu0  ;;  %v1496_v56 = vrot.slane %v1494_v55, 2  ;;  %v1503_v55 = vshll.u32 %v5103_v20, 16 }
 0x121   : > { %v1159_v24 = vsel %vm767_vm3, %v1156_v45, %v1158_v19  ;;  %v5104_v45 = vld [vmem:[%s5223_s25 + $0x88] sm:$0xff] }
 0x122   : > { %v5608_v10 = vadd.f32 %v1616_v0, %v1328_v48  ;;  %v1493_v48 = vrot.slane %v1491_v14, 1  ;;  %v1500_v14 = vshrl.u32 %v5103_v20, 16 }
 0x124   : > { %v1497_v29 = vor.u32 %v1496_v56, %v1493_v48  ;;  %v797_v48 = vrot.slane %v5259_v31, 1 }
 0x125   : > { %v888_v41 = vpop.f32.mrf.mxu2 }
 0x126   : > { %v968_v13 = vadd.f32 %v888_v41, %v689_v57  ;;  %v691_v4 = vpop.f32.mrf.mxu1 }
 0x127   : > { %v692_v51 = vadd.f32 %v691_v4, %v5532_v36  ;;  %v1259_v27 = vpop.f32.mrf.mxu3 }
 0x128   : > { %v1329_v49 = vadd.f32 %v1249_v21, %v968_v13  ;;  %v1621_v17 = vpop.f32.mrf.mxu0 }
 0x129   : > { %4795 = vmatmul.msk.bf16.gmra.mxu1 %vm465_vm2, %v5272_v38 }
 0x12a   : > { %4814 = vmatmul.msk.bf16.gmra.mxu2 %vm465_vm2, %v794_v9  ;;  %v5618_v0 = vadd.f32 %v1618_v11, %v1329_v49  ;;  %v796_v9 = vsel %vm767_vm3, %v793_v33, %v795_v2 }
 0x12b   : > { %4920 = vmatmul.msk.bf16.gmra.mxu0 %vm465_vm2, %v1489_v23  ;;  %v1498_v23 = vsel %vm1364_vm4, %v1488_v58, %v1497_v29 }
 0x12c   : > { %4903 = vmatmul.msk.bf16.gmra.mxu3 %vm465_vm2, %v1159_v24  ;;  %v1502_v24 = vrot.slane %v1500_v14, 1 }
 0x12d   : > { %v891_v42 = vpop.f32.mrf.mxu2 }
 0x12e   : > { %v969_v21 = vadd.f32 %v891_v42, %v692_v51  ;;  %v693_v35 = vpop.f32.mrf.mxu1 }
 0x12f   : > { %v694_v36 = vadd.f32 %v693_v35, %v5544_v1  ;;  %v1262_v41 = vpop.f32.mrf.mxu3  ;;  %v1160_v1 = vrot.slane %v5104_v45, 1 }
 0x130   : > { %v1330_v22 = vadd.f32 %v1252_v8, %v969_v21  ;;  %v1623_v38 = vpop.f32.mrf.mxu0 }
 0x131   : > { %v1161_v58 = vsel %vm767_vm3, %v1158_v19, %v1160_v1  ;;  %v5105_v19 = vld [vmem:[%s5223_s25 + $0x90] sm:$0xff] }
 0x132   : > { %v5624_v11 = vadd.f32 %v1621_v17, %v1330_v22  ;;  %v1505_v22 = vrot.slane %v1503_v55, 2 }
 0x134   : > { %v1506_v20 = vor.u32 %v1505_v22, %v1502_v24 }
 0x135   : > { %v893_v57 = vpop.f32.mrf.mxu2 }
 0x136   : > { %v970_v13 = vadd.f32 %v893_v57, %v694_v36  ;;  %v696_v4 = vpop.f32.mrf.mxu1 }
 0x137   : > { %v697_v51 = vadd.f32 %v696_v4, %v5428_v46  ;;  %v1264_v42 = vpop.f32.mrf.mxu3  ;;  %v798_v4 = vsel %vm767_vm3, %v795_v2, %v797_v48  ;;  %v1509_v2 = vshrl.u32 %v5104_v45, 16 }
 0x138   : > { %v1331_v8 = vadd.f32 %v1254_v5, %v970_v13  ;;  %v1626_v49 = vpop.f32.mrf.mxu0 }
 0x139   : > { %4796 = vmatmul.msk.bf16.gmra.mxu1 %vm465_vm2, %v5308_v6 }
 0x13a   : > { %4815 = vmatmul.msk.bf16.gmra.mxu2 %vm465_vm2, %v796_v9  ;;  %v5634_v17 = vadd.f32 %v1623_v38, %v1331_v8  ;;  %v1507_v8 = vsel %vm1364_vm4, %v1497_v29, %v1506_v20 }
 0x13b   : > { %4921 = vmatmul.msk.bf16.gmra.mxu0 %vm465_vm2, %v1498_v23  ;;  %v1512_v23 = vshll.u32 %v5104_v45, 16 }
 0x13c   : > { %4904 = vmatmul.msk.bf16.gmra.mxu3 %vm465_vm2, %v1161_v58  ;;  %v1033_v58 = vld [vmem:[%s5223_s25 + $0x98] sm:$0x1] }
 0x13d   : > { %v896_v33 = vpop.f32.mrf.mxu2 }
 0x13e   : > { %v971_v5 = vadd.f32 %v896_v33, %v697_v51  ;;  %v698_v21 = vpop.f32.mrf.mxu1 }
 0x13f   : > { %v699_v46 = vadd.f32 %v698_v21, %v5441_v54  ;;  %v1267_v36 = vpop.f32.mrf.mxu3  ;;  %v1162_v54 = vrot.slane %v5105_v19, 1  ;;  %v1514_v21 = vrot.slane %v1512_v23, 2 }
 0x140   : > { %v1332_v35 = vadd.f32 %v1257_v61, %v971_v5  ;;  %v1628_v6 = vpop.f32.mrf.mxu0  ;;  %v1511_v5 = vrot.slane %v1509_v2, 1  ;;  %v5145_v2 = vld [vmem:[%s5223_s25 + $0x78] sm:$0xff] }
 0x142   : > { %v5640_v38 = vadd.f32 %v1626_v49, %v1332_v35 }
 0x145   : > { %v898_v56 = vpop.f32.mrf.mxu2 }
 0x146   : > { %v972_v57 = vadd.f32 %v898_v56, %v699_v46  ;;  %v701_v13 = vpop.f32.mrf.mxu1 }
 0x147   : > { %v702_v49 = vadd.f32 %v701_v13, %v5452_v62  ;;  %v5654_v51 = vpop.f32.mrf.mxu3  ;;  %v5662_v62 = vld [vmem:[%s5223_s25 + $0x80] sm:$0xff] }
 0x148   : > { %v1333_v61 = vadd.f32 %v1259_v27, %v972_v57  ;;  %v1631_v9 = vpop.f32.mrf.mxu0  ;;  %v799_v45 = vrot.slane %v5662_v62, 1 }
 0x149   : > { %4797 = vmatmul.msk.bf16.gmra.mxu1 %vm465_vm2, %v5343_v52  ;;  %v1163_v52 = vsel %vm767_vm3, %v1160_v1, %v1162_v54  ;;  %v1515_v1 = vor.u32 %v1514_v21, %v1511_v5  ;;  %v5686_v21 = vld [vmem:[%s5223_s25 + $0x18] sm:$0xff] }
 0x14a   : > { %4816 = vmatmul.msk.bf16.gmra.mxu2 %vm465_vm2, %v798_v4  ;;  %v5650_v31 = vadd.f32 %v1628_v6, %v1333_v61  ;;  %v1109_v6 = vunpack.c.l.b16 %v1033_v58  ;;  %v800_v57 = vsel %vm767_vm3, %v797_v48, %v799_v45 }
 0x14b   : > { %4922 = vmatmul.msk.bf16.gmra.mxu0 %vm465_vm2, %v1507_v8  ;;  %v1963_v8 = vld [vmem:[%s5223_s25 + $0x10] sm:$0xc] }
 0x14c   : > { %4905 = vmatmul.msk.bf16.gmra.mxu3 %vm465_vm2, %v1163_v52  ;;  %v1128_v13 = vpack.c.b16 %v1109_v6, %v1109_v6  ;;  %v2039_v48 = vunpack.c.l.b16 %v1963_v8 }
 0x14d   : > { %v901_v27 = vpop.f32.mrf.mxu2 }
 0x14e   : > { %v973_v29 = vadd.f32 %v901_v27, %v702_v49  ;;  %v703_v14 = vpop.f32.mrf.mxu1  ;;  %v5672_v49 = vld [vmem:[%s5223_s25 + $0x14] sm:$0xf]  ;;  %v1164_v23 = vrot.slane %v1128_v13, 1  ;;  %v1518_v27 = vshrl.u32 %v5105_v19, 16 }
 0x14f   : > { %v704_v24 = vadd.f32 %v703_v14, %v5467_v12  ;;  %v5666_v22 = vpop.f32.mrf.mxu3 }
 0x150   : > { %v1334_v55 = vadd.f32 %v1262_v41, %v973_v29  ;;  %v1633_v33 = vpop.f32.mrf.mxu0  ;;  %v1521_v29 = vshll.u32 %v5105_v19, 16 }
 0x152   : > { %v5659_v35 = vadd.f32 %v1631_v9, %v1334_v55  ;;  %v1516_v9 = vsel %vm1364_vm4, %v1506_v20, %v1515_v1 }
 0x155   : > { %v903_v41 = vpop.f32.mrf.mxu2 }
 0x156   : > { %v974_v46 = vadd.f32 %v903_v41, %v704_v24  ;;  %v706_v56 = vpop.f32.mrf.mxu1  ;;  %v1520_v41 = vrot.slane %v1518_v27, 1 }
 0x157   : > { %v707_v20 = vadd.f32 %v706_v56, %v5478_v28  ;;  %v5682_v52 = vpop.f32.mrf.mxu3  ;;  %v1358_v28 = vld [vmem:[%s5223_s25 + $0x98] sm:$0x3]  ;;  %v5694_v56 = vld [vmem:[%s5223_s25 + $0x88] sm:$0xff] }
 0x158   : > { %v1335_v4 = vadd.f32 %v1264_v42, %v974_v46  ;;  %v1636_v61 = vpop.f32.mrf.mxu0  ;;  %v7259_v42 = vunpack.c.l.b16 %v5672_v49  ;;  %v1523_v46 = vrot.slane %v1521_v29, 2  ;;  %v801_v19 = vrot.slane %v5694_v56, 1 }
 0x159   : > { %4798 = vmatmul.msk.bf16.gmra.mxu1 %vm465_vm2, %v5145_v2  ;;  %v1362_v2 = vunpack.c.l.b16 %v1358_v28 }
 0x15a   : > { %4817 = vmatmul.msk.bf16.gmra.mxu2 %vm465_vm2, %v800_v57  ;;  %v5677_v12 = vadd.f32 %v1633_v33, %v1335_v4  ;;  %v1165_v33 = vsel %vm767_vm3, %v1162_v54, %v1164_v23  ;;  %v5690_v58 = vpack.c.b16 %v7259_v42, %v2039_v48  ;;  %v2340_v4 = vshrl.u32 %v5686_v21, 16 }
 0x15b   : > { %4923 = vmatmul.msk.bf16.gmra.mxu0 %vm465_vm2, %v1516_v9  ;;  %v1524_v8 = vor.u32 %v1523_v46, %v1520_v41  ;;  %v802_v27 = vsel %vm767_vm3, %v799_v45, %v801_v19 }
 0x15c   : > { %7275 = vst [vmem:[#allocation10_spill] sm:$0xff] %v5677_v12  ;;  %4906 = vmatmul.msk.bf16.gmra.mxu3 %vm465_vm2, %v1165_v33  ;;  %v2332_v54 = vshrl.u32 %v5690_v58, 16  ;;  %v2335_v13 = vshll.u32 %v5690_v58, 16  ;;  %v5710_v12 = vpack.c.b16 %v1362_v2, %v1362_v2  ;;  %v803_v2 = vrot.slane %v5332_v40, 1 }
 0x15d   : > { %v906_v14 = vpop.f32.mrf.mxu2 }
 0x15e   : > { %v975_v55 = vadd.f32 %v906_v14, %v707_v20  ;;  %v708_v5 = vpop.f32.mrf.mxu1  ;;  %v2334_v29 = vrot.slane %v2332_v54, 2  ;;  %v2337_v14 = vrot.slane %v2335_v13, 3  ;;  %7277 = vst [vmem:[#allocation12_spill] sm:$0xff] %v5710_v12 }
 0x15f   : > { %v709_v9 = vadd.f32 %v708_v5, %v5493_v44  ;;  %v5705_v48 = vpop.f32.mrf.mxu3 }
 0x160   : > { %v1336_v6 = vadd.f32 %v1267_v36, %v975_v55  ;;  %v1638_v24 = vpop.f32.mrf.mxu0  ;;  %v2343_v36 = vshll.u32 %v5686_v21, 16  ;;  %v2342_v55 = vrot.slane %v2340_v4, 2  ;;  %v2338_v45 = vor.u32 %v2337_v14, %v2334_v29 }
 0x162   : > { %v5698_v57 = vadd.f32 %v1636_v61, %v1336_v6  ;;  %v2345_v33 = vrot.slane %v2343_v36, 3 }
 0x164   : > { %7276 = vst [vmem:[#allocation11_spill] sm:$0xff] %v5698_v57  ;;  %v1525_v57 = vsel %vm1364_vm4, %v1515_v1, %v1524_v8  ;;  %v2346_v5 = vor.u32 %v2345_v33, %v2342_v55  ;;  %v1530_v1 = vshll.u32 %v5710_v12, 16  ;;  %v804_v33 = vsel %vm767_vm3, %v801_v19, %v803_v2  ;;  %v5755_v2 = vld [vmem:[%s5223_s25 + $0x28] sm:$0xff] }
 0x165   : > { %v908_v23 = vpop.f32.mrf.mxu2 }
 0x166   : > { %v976_v20 = vadd.f32 %v908_v23, %v709_v9  ;;  %v711_v61 = vpop.f32.mrf.mxu1  ;;  %v2347_v13 = vsel %vm2330_vm5, %v2338_v45, %v2346_v5 }
 0x167   : > { %v712_v41 = vadd.f32 %v711_v61, %v5504_v43  ;;  %v5721_v28 = vpop.f32.mrf.mxu3  ;;  %v1532_v43 = vrot.slane %v1530_v1, 2  ;;  %v2693_v1 = vld [vmem:[%s5223_s25 + $0x10] sm:$0x8] }
 0x168   : > { %v1337_v6 = vadd.f32 %v5654_v51, %v976_v20  ;;  %v1641_v42 = vpop.f32.mrf.mxu0  ;;  %v1527_v51 = vshrl.u32 %v5710_v12, 16 }
 0x169   : > { %4799 = vmatmul.msk.bf16.gmra.mxu1 %vm465_vm2, %v5662_v62 }
 0x16a   : > { %4818 = vmatmul.msk.bf16.gmra.mxu2 %vm465_vm2, %v802_v27  ;;  %v5715_v44 = vadd.f32 %v1638_v24, %v1337_v6  ;;  %v5725_v24 = vld [vmem:[%s5223_s25 + $0x20] sm:$0xff]  ;;  %v1529_v36 = vrot.slane %v1527_v51, 1  ;;  %v1727_v6 = vld [vmem:[%s5223_s25 + $0x8] sm:$0xc] }
 0x16b   : > { %4924 = vmatmul.msk.bf16.gmra.mxu0 %vm465_vm2, %v1525_v57  ;;  %v2349_v23 = vshrl.u32 %v5725_v24, 16  ;;  %v2352_v20 = vshll.u32 %v5725_v24, 16 }
 0x16c   : > { %5033 = vmatmul.msk.bf16.vlgmr.msra.gmra.mxu3 %vm465_vm2, %v2347_v13  ;;  %v1533_v61 = vor.u32 %v1532_v43, %v1529_v36 }
 0x16d   : > { %v911_v46 = vpop.f32.mrf.mxu2  ;;  %v2354_v45 = vrot.slane %v2352_v20, 3  ;;  %v7279_v20 = vunpack.c.l.b16 %v5672_v49 }
 0x16e   : > { %v977_v54 = vadd.f32 %v911_v46, %v712_v41  ;;  %v713_v62 = vpop.f32.mrf.mxu1  ;;  %v1534_v51 = vsel %vm1364_vm4, %v1524_v8, %v1533_v61  ;;  %v5147_v61 = vld [vmem:[%s5223_s25 + $0x10] sm:$0xff] }
 0x16f   : > { %v714_v27 = vadd.f32 %v713_v62, %v5519_v7  ;;  %v1731_v7 = vunpack.c.l.b16 %v1727_v6  ;;  %v2701_v6 = vrot.slane %v5686_v21, 3 }
 0x170   : > { %v1338_v57 = vadd.f32 %v5666_v22, %v977_v54  ;;  %v1643_v4 = vpop.f32.mrf.mxu0  ;;  %v5735_v22 = vpop.f32.mrf.mxu3 }
 0x172   : > { %v5729_v9 = vadd.f32 %v1641_v42, %v1338_v57  ;;  %v2351_v42 = vrot.slane %v2349_v23, 2  ;;  %v7278_v57 = vunpack.c.l.b16 %v5354_v63  ;;  %v2095_v63 = vrot.slane %v5690_v58, 2 }
 0x174   : > { %v2355_v19 = vor.u32 %v2354_v45, %v2351_v42  ;;  %v1732_v36 = vpack.c.b16 %v7278_v57, %v1731_v7 }
 0x175   : > { %v913_v29 = vpop.f32.mrf.mxu2 }
 0x176   : > { %v978_v14 = vadd.f32 %v913_v29, %v714_v27  ;;  %v716_v55 = vpop.f32.mrf.mxu1  ;;  %v2356_v43 = vsel %vm2330_vm5, %v2346_v5, %v2355_v19  ;;  %v1735_v29 = vrot.slane %v5147_v61, 2  ;;  %v2358_v5 = vshrl.u32 %v5755_v2, 16 }
 0x177   : > { %v717_v54 = vadd.f32 %v716_v55, %v5528_v32  ;;  %v1734_v32 = vrot.slane %v1732_v36, 2  ;;  %v2096_v55 = vrot.slane %v5686_v21, 2 }
 0x178   : > { %v1339_v40 = vadd.f32 %v5682_v52, %v978_v14  ;;  %v1646_v41 = vpop.f32.mrf.mxu0  ;;  %v2697_v52 = vunpack.c.l.b16 %v2693_v1  ;;  %v5749_v13 = vpop.f32.mrf.mxu3  ;;  %v2360_v1 = vrot.slane %v2358_v5, 2 }
 0x179   : > { %4800 = vmatmul.msk.bf16.gmra.mxu1 %vm465_vm2, %v5694_v56  ;;  %v2097_v58 = vsel %vm1733_vm6, %v2095_v63, %v2096_v55  ;;  %v2098_v63 = vrot.slane %v5725_v24, 2 }
 0x17a   : > { %4819 = vmatmul.msk.bf16.gmra.mxu2 %vm465_vm2, %v804_v33  ;;  %v5745_v46 = vadd.f32 %v1643_v4, %v1339_v40  ;;  %v2698_v27 = vpack.c.b16 %v7279_v20, %v2697_v52  ;;  %v2361_v33 = vshll.u32 %v5755_v2, 16 }
 0x17b   : > { %4925 = vmatmul.msk.bf16.gmra.mxu0 %vm465_vm2, %v1534_v51  ;;  %v1736_v51 = vsel %vm1733_vm6, %v1734_v32, %v1735_v29  ;;  %v5148_v32 = vld [vmem:[%s5223_s25 + $0x18] sm:$0xff] }
 0x17c   : > { %5034 = vmatmul.msk.bf16.gmra.mxu3 %vm465_vm2, %v2356_v43  ;;  %v2700_v49 = vrot.slane %v2698_v27, 3  ;;  %v2363_v7 = vrot.slane %v2361_v33, 3  ;;  %v1737_v61 = vrot.slane %v5148_v32, 2  ;;  %v2703_v33 = vrot.slane %v5725_v24, 3 }
 0x17d   : > { %v916_v62 = vpop.f32.mrf.mxu2 }
 0x17e   : > { %v979_v8 = vadd.f32 %v916_v62, %v717_v54  ;;  %v718_v56 = vpop.f32.mrf.mxu1  ;;  %v2364_v21 = vor.u32 %v2363_v7, %v2360_v1 }
 0x180   : > { %v1340_v4 = vadd.f32 %v5705_v48, %v979_v8  ;;  %v1648_v23 = vpop.f32.mrf.mxu0  ;;  %v719_v48 = vadd.f32 %v718_v56, %v5541_v47  ;;  %v1287_v45 = vpop.f32.mrf.mxu3  ;;  %v2702_v47 = vsel %vm2699_vm7, %v2700_v49, %v2701_v6 }
 0x182   : > { %v5762_v14 = vadd.f32 %v1646_v41, %v1340_v4  ;;  %v5782_v4 = vld [vmem:[%s5223_s25 + $0x30] sm:$0xff] }
 0x183   : > { %v2370_v5 = vshll.u32 %v5782_v4, 16 }
 0x184   : > { %7280 = vst [vmem:[#allocation13_spill] sm:$0xff] %v5762_v14 }
 0x185   : > { %v918_v42 = vpop.f32.mrf.mxu2 }
 0x186   : > { %v980_v40 = vadd.f32 %v918_v42, %v719_v48  ;;  %v721_v41 = vpop.f32.mrf.mxu1 }
 0x187   : > { %v722_v62 = vadd.f32 %v721_v41, %v5439_v53  ;;  %v2367_v53 = vshrl.u32 %v5782_v4, 16  ;;  %v2099_v41 = vsel %vm1733_vm6, %v2096_v55, %v2098_v63 }
 0x188   : > { %v1341_v54 = vadd.f32 %v5721_v28, %v980_v40  ;;  %v1651_v52 = vpop.f32.mrf.mxu0  ;;  %v1289_v57 = vpop.f32.mrf.mxu3  ;;  %v2365_v28 = vsel %vm2330_vm5, %v2355_v19, %v2364_v21  ;;  %v1738_v40 = vsel %vm1733_vm6, %v1735_v29, %v1737_v61 }
 0x189   : > { %4927 = vmatmul.msk.bf16.vlgmr.msra.gmra.mxu1 %vm465_vm2, %v1736_v51  ;;  %v2369_v51 = vrot.slane %v2367_v53, 2 }
 0x18a   : > { %5014 = vmatmul.msk.bf16.vlgmr.msra.gmra.mxu2 %vm465_vm2, %v2097_v58  ;;  %v5778_v56 = vadd.f32 %v1648_v23, %v1341_v54  ;;  %v2372_v58 = vrot.slane %v2370_v5, 3 }
 0x18b   : > { %5052 = vmatmul.msk.bf16.vlgmr.msra.gmra.mxu0 %vm465_vm2, %v2702_v47 }
 0x18c   : > { %7281 = vst [vmem:[#allocation14_spill] sm:$0xff] %v5778_v56  ;;  %5035 = vmatmul.msk.bf16.gmra.mxu3 %vm465_vm2, %v2365_v28  ;;  %v2373_v24 = vor.u32 %v2372_v58, %v2369_v51  ;;  %v7323_v56 = vld [vmem:[#allocation7_spill] sm:$0xff] }
 0x18d   : > { %v921_v8 = vpop.f32.mrf.mxu2 }
 0x18e   : > { %v981_v36 = vadd.f32 %v921_v8, %v722_v62  ;;  %v723_v43 = vpop.f32.mrf.mxu1  ;;  %v2374_v62 = vsel %vm2330_vm5, %v2364_v21, %v2373_v24  ;;  %v2705_v21 = vrot.slane %v5755_v2, 3 }
 0x18f   : > { %v724_v23 = vadd.f32 %v723_v43, %v5448_v59  ;;  %v2704_v59 = vsel %vm2699_vm7, %v2701_v6, %v2703_v33  ;;  %v5149_v43 = vld [vmem:[%s5223_s25 + $0x20] sm:$0xff] }
 0x190   : > { %v1342_v20 = vadd.f32 %v5735_v22, %v981_v36  ;;  %v1653_v27 = vpop.f32.mrf.mxu0  ;;  %v1292_v48 = vpop.f32.mrf.mxu3  ;;  %v1739_v28 = vrot.slane %v5149_v43, 2  ;;  %v2706_v58 = vsel %vm2699_vm7, %v2703_v33, %v2705_v21 }
 0x192   : > { %v5792_v42 = vadd.f32 %v1651_v52, %v1342_v20  ;;  %v2100_v20 = vrot.slane %v5755_v2, 2 }
 0x194   : > { %7282 = vst [vmem:[#allocation15_spill] sm:$0xff] %v5792_v42 }
 0x195   : > { %v923_v19 = vpop.f32.mrf.mxu2 }
 0x196   : > { %v982_v49 = vadd.f32 %v923_v19, %v724_v23  ;;  %v726_v22 = vpop.f32.mrf.mxu1 }
 0x197   : > { %v727_v29 = vadd.f32 %v726_v22, %v5463_v16 }
 0x198   : > { %v1343_v1 = vadd.f32 %v5749_v13, %v982_v49  ;;  %v1656_v7 = vpop.f32.mrf.mxu0  ;;  %v1294_v55 = vpop.f32.mrf.mxu3  ;;  %v5804_v13 = vld [vmem:[%s5223_s25 + $0x38] sm:$0xff]  ;;  %v2101_v49 = vsel %vm1733_vm6, %v2098_v63, %v2100_v20 }
 0x199   : > { %4928 = vmatmul.msk.bf16.gmra.mxu1 %vm465_vm2, %v1738_v40  ;;  %v2376_v16 = vshrl.u32 %v5804_v13, 16  ;;  %v2379_v32 = vshll.u32 %v5804_v13, 16 }
 0x19a   : > { %5015 = vmatmul.msk.bf16.gmra.mxu2 %vm465_vm2, %v2099_v41  ;;  %v5806_v36 = vadd.f32 %v1653_v27, %v1343_v1  ;;  %v1740_v27 = vsel %vm1733_vm6, %v1737_v61, %v1739_v28 }
 0x19b   : > { %5053 = vmatmul.msk.bf16.gmra.mxu0 %vm465_vm2, %v2704_v59  ;;  %v2378_v22 = vrot.slane %v2376_v16, 2  ;;  %v2381_v40 = vrot.slane %v2379_v32, 3  ;;  %v2707_v16 = vrot.slane %v5782_v4, 3 }
 0x19c   : > { %7283 = vst [vmem:[#allocation16_spill] sm:$0xff] %v5806_v36  ;;  %5036 = vmatmul.msk.bf16.gmra.mxu3 %vm465_vm2, %v2374_v62  ;;  %v2102_v62 = vrot.slane %v5782_v4, 2 }
 0x19d   : > { %v926_v54 = vpop.f32.mrf.mxu2 }
 0x19e   : > { %v983_v52 = vadd.f32 %v926_v54, %v727_v29  ;;  %v728_v47 = vpop.f32.mrf.mxu1  ;;  %v5826_v54 = vld [vmem:[%s5223_s25 + $0x40] sm:$0xff] }
 0x19f   : > { %v729_v53 = vadd.f32 %v728_v47, %v5474_v25  ;;  %v2382_v25 = vor.u32 %v2381_v40, %v2378_v22 }
 0x1a0   : > { %v1344_v8 = vadd.f32 %v1287_v45, %v983_v52  ;;  %v1658_v6 = vpop.f32.mrf.mxu0  ;;  %v1297_v23 = vpop.f32.mrf.mxu3  ;;  %v5150_v52 = vld [vmem:[%s5223_s25 + $0x28] sm:$0xff] }
 0x1a1   : > { %v1741_v47 = vrot.slane %v5150_v52, 2  ;;  %v2104_v52 = vrot.slane %v5804_v13, 2 }
 0x1a2   : > { %v5818_v1 = vadd.f32 %v1656_v7, %v1344_v8  ;;  %v2385_v8 = vshrl.u32 %v5826_v54, 16 }
 0x1a4   : > { %7284 = vst [vmem:[#allocation17_spill] sm:$0xff] %v5818_v1 }
 0x1a5   : > { %v928_v5 = vpop.f32.mrf.mxu2 }
 0x1a6   : > { %v984_v45 = vadd.f32 %v928_v5, %v729_v53  ;;  %v731_v19 = vpop.f32.mrf.mxu1 }
 0x1a7   : > { %v732_v2 = vadd.f32 %v731_v19, %v5489_v39  ;;  %v2388_v39 = vshll.u32 %v5826_v54, 16  ;;  %v2103_v19 = vsel %vm1733_vm6, %v2100_v20, %v2102_v62 }
 0x1a8   : > { %v1345_v41 = vadd.f32 %v1289_v57, %v984_v45  ;;  %v1661_v51 = vpop.f32.mrf.mxu0  ;;  %v1299_v63 = vpop.f32.mrf.mxu3  ;;  %v2383_v57 = vsel %vm2330_vm5, %v2373_v24, %v2382_v25  ;;  %v1742_v45 = vsel %vm1733_vm6, %v1739_v28, %v1741_v47 }
 0x1a9   : > { %4929 = vmatmul.msk.bf16.gmra.mxu1 %vm465_vm2, %v1740_v27  ;;  %v2387_v27 = vrot.slane %v2385_v8, 2 }
 0x1aa   : > { %5016 = vmatmul.msk.bf16.gmra.mxu2 %vm465_vm2, %v2101_v49  ;;  %v5835_v5 = vadd.f32 %v1658_v6, %v1345_v41  ;;  %v2390_v49 = vrot.slane %v2388_v39, 3 }
 0x1ab   : > { %5054 = vmatmul.msk.bf16.gmra.mxu0 %vm465_vm2, %v2706_v58  ;;  %v2708_v58 = vsel %vm2699_vm7, %v2705_v21, %v2707_v16 }
 0x1ac   : > { %5037 = vmatmul.msk.bf16.gmra.mxu3 %vm465_vm2, %v2383_v57  ;;  %7285 = vst [vmem:[#allocation18_spill] sm:$0xff] %v5835_v5 }
 0x1ad   : > { %v931_v61 = vpop.f32.mrf.mxu2 }
 0x1ae   : > { %v985_v59 = vadd.f32 %v931_v61, %v732_v2  ;;  %v733_v29 = vpop.f32.mrf.mxu1  ;;  %v5848_v61 = vld [vmem:[%s5223_s25 + $0x48] sm:$0xff] }
 0x1af   : > { %v734_v43 = vadd.f32 %v733_v29, %v5500_v50  ;;  %v2391_v50 = vor.u32 %v2390_v49, %v2387_v27  ;;  %v5151_v29 = vld [vmem:[%s5223_s25 + $0x30] sm:$0xff]  ;;  %v2397_v8 = vshll.u32 %v5848_v61, 16 }
 0x1b0   : > { %v1346_v33 = vadd.f32 %v1292_v48, %v985_v59  ;;  %v1663_v7 = vpop.f32.mrf.mxu0  ;;  %v1302_v24 = vpop.f32.mrf.mxu3  ;;  %v1743_v57 = vrot.slane %v5151_v29, 2 }
 0x1b2   : > { %v5844_v41 = vadd.f32 %v1661_v51, %v1346_v33  ;;  %v2709_v33 = vrot.slane %v5804_v13, 3 }
 0x1b4   : > { %7286 = vst [vmem:[#allocation19_spill] sm:$0xff] %v5844_v41  ;;  %v5945_v41 = vld [vmem:[%s5223_s25 + $0x48] sm:$0xff] }
 0x1b5   : > { %v933_v32 = vpop.f32.mrf.mxu2 }
 0x1b6   : > { %v986_v53 = vadd.f32 %v933_v32, %v734_v43  ;;  %v736_v48 = vpop.f32.mrf.mxu1 }
 0x1b7   : > { %v737_v4 = vadd.f32 %v736_v48, %v5515_v3  ;;  %v2394_v3 = vshrl.u32 %v5848_v61, 16  ;;  %v2105_v48 = vsel %vm1733_vm6, %v2102_v62, %v2104_v52 }
 0x1b8   : > { %v1347_v22 = vadd.f32 %v1294_v55, %v986_v53  ;;  %v1666_v40 = vpop.f32.mrf.mxu0  ;;  %v1304_v28 = vpop.f32.mrf.mxu3  ;;  %v2392_v55 = vsel %vm2330_vm5, %v2382_v25, %v2391_v50  ;;  %v1744_v53 = vsel %vm1733_vm6, %v1741_v47, %v1743_v57 }
 0x1b9   : > { %4930 = vmatmul.msk.bf16.gmra.mxu1 %vm465_vm2, %v1742_v45  ;;  %v2396_v45 = vrot.slane %v2394_v3, 2  ;;  %v2106_v3 = vrot.slane %v5826_v54, 2 }
 0x1ba   : > { %5017 = vmatmul.msk.bf16.gmra.mxu2 %vm465_vm2, %v2103_v19  ;;  %v2399_v19 = vrot.slane %v2397_v8, 3 }
 0x1bb   : > { %5055 = vmatmul.msk.bf16.gmra.mxu0 %vm465_vm2, %v2708_v58 }
 0x1bc   : > { %5038 = vmatmul.msk.bf16.gmra.mxu3 %vm465_vm2, %v2392_v55  ;;  %v2400_v13 = vor.u32 %v2399_v19, %v2396_v45  ;;  %v5152_v55 = vld [vmem:[%s5223_s25 + $0x38] sm:$0xff]  ;;  %v2107_v45 = vsel %vm1733_vm6, %v2104_v52, %v2106_v3 }
 0x1bd   : > { %v936_v6 = vpop.f32.mrf.mxu2  ;;  %v1745_v29 = vrot.slane %v5152_v55, 2 }
 0x1be   : > { %v987_v20 = vadd.f32 %v936_v6, %v737_v4  ;;  %v738_v2 = vpop.f32.mrf.mxu1  ;;  %v5874_v6 = vld [vmem:[%s5223_s25 + $0x50] sm:$0xff] }
 0x1bf   : > { %v739_v51 = vadd.f32 %v738_v2, %v5526_v15  ;;  %v2710_v15 = vsel %vm2699_vm7, %v2707_v16, %v2709_v33  ;;  %v2403_v8 = vshrl.u32 %v5874_v6, 16 }
 0x1c0   : > { %v1348_v21 = vadd.f32 %v1297_v23, %v987_v20  ;;  %v1668_v59 = vpop.f32.mrf.mxu0  ;;  %v5857_v25 = vpop.f32.mrf.mxu3  ;;  %v5859_v23 = vadd.f32 %v1663_v7, %v1347_v22  ;;  %v7288_v7 = vld [vmem:[#allocation8_spill] sm:$0xff] }
 0x1c1   : > { %v2405_v19 = vrot.slane %v2403_v8, 2 }
 0x1c2   : > { %7287 = vst [vmem:[#allocation20_spill] sm:$0xff] %v5859_v23  ;;  %v5876_v16 = vadd.f32 %v1666_v40, %v1348_v21 }
 0x1c4   : > { %7289 = vst [vmem:[#allocation8_spill] sm:$0xff] %v5876_v16 }
 0x1c5   : > { %v938_v39 = vpop.f32.mrf.mxu2 }
 0x1c6   : > { %v988_v43 = vadd.f32 %v938_v39, %v739_v51  ;;  %v741_v32 = vpop.f32.mrf.mxu1  ;;  %v2406_v51 = vshll.u32 %v5874_v6, 16  ;;  %v7290_v39 = vld [vmem:[#allocation9_spill] sm:$0xff] }
 0x1c7   : > { %v742_v47 = vadd.f32 %v741_v32, %v7288_v7  ;;  %v3002_v32 = vlaneseq }
 0x1c8   : > { %v1349_v27 = vadd.f32 %v1299_v63, %v988_v43  ;;  %v5863_v49 = vpop.f32.mrf.mxu0  ;;  %v5870_v62 = vpop.f32.mrf.mxu3  ;;  %v2401_v63 = vsel %vm2330_vm5, %v2391_v50, %v2400_v13  ;;  %v7260_v43 = vrot.slane %v5826_v54, 3 }
 0x1c9   : > { %4931 = vmatmul.msk.bf16.gmra.mxu1 %vm465_vm2, %v1744_v53 }
 0x1ca   : > { %5018 = vmatmul.msk.bf16.gmra.mxu2 %vm465_vm2, %v2105_v48  ;;  %v1746_v48 = vsel %vm1733_vm6, %v1743_v57, %v1745_v29  ;;  %v5905_v52 = vadd.f32 %v1668_v59, %v1349_v27 }
 0x1cb   : > { %5056 = vmatmul.msk.bf16.gmra.mxu0 %vm465_vm2, %v2710_v15  ;;  %v2408_v15 = vrot.slane %v2406_v51, 3  ;;  %v5153_v51 = vld [vmem:[%s5223_s25 + $0x40] sm:$0xff] }
 0x1cc   : > { %5039 = vmatmul.msk.bf16.gmra.mxu3 %vm465_vm2, %v2401_v63  ;;  %7291 = vst [vmem:[#allocation9_spill] sm:$0xff] %v5905_v52  ;;  %v7295_v52 = vrot.slane %v5848_v61, 2 }
 0x1cd   : > { %v941_v22 = vpop.f32.mrf.mxu2 }
 0x1ce   : > { %v989_v58 = vadd.f32 %v941_v22, %v742_v47  ;;  %v743_v4 = vpop.f32.mrf.mxu1  ;;  %v2712_v22 = vsel %vm2699_vm7, %v2709_v33, %v7260_v43  ;;  %v7294_v43 = vld [vmem:[#allocation3_spill] sm:$0xff]  ;;  %v2109_v16 = vsel %vm1733_vm6, %v2106_v3, %v7295_v52 }
 0x1cf   : > { %v744_v50 = vadd.f32 %v743_v4, %v7290_v39  ;;  %v7292_v4 = vld [vmem:[#allocation2_spill] sm:$0xff]  ;;  %v1747_v39 = vrot.slane %v5153_v51, 2  ;;  %v7261_v51 = vmov 0  }
 0x1d0   : > { %v5878_v20 = vadd.f32 %v1302_v24, %v989_v58  ;;  %v5880_v2 = vpop.f32.mrf.mxu0  ;;  %v5889_v21 = vpop.f32.mrf.mxu3  ;;  %v5900_v58 = vshrl.u32 %v3002_v32, 7 }
 0x1d2   : > { %v3042_v57 = vand.u32 65535, %v5900_v58  ;;  %v3043_v55 = vshrl.u32 %v5900_v58, 16 }
 0x1d4   : > { %v3046_v33 = vmul.u32 58254, %v3042_v57  ;;  %v3045_v32 = vmul.u32 14564, %v3042_v57  ;;  %v3047_v59 = vmul.u32 14564, %v3043_v55 }
 0x1d5   : > { %v943_v40 = vpop.f32.mrf.mxu2 }
 0x1d6   : > { %v990_v24 = vadd.f32 %v943_v40, %v744_v50  ;;  %v746_v53 = vpop.f32.mrf.mxu1  ;;  %v3049_v27 = vshll.u32 %v3046_v33, 16 }
 0x1d7   : > { %v747_v63 = vadd.f32 %v746_v53, %v7292_v4  ;;  %v3051_v4 = vshll.u32 %v3047_v59, 16 }
 0x1d8   : > { %v5893_v7 = vadd.f32 %v1304_v28, %v990_v24  ;;  %v5895_v47 = vpop.f32.mrf.mxu0  ;;  %v5908_v28 = vor.u32 %v2408_v15, %v2405_v19  ;;  %v5913_v50 = vpop.f32.mrf.mxu3  ;;  %v5916_v24 = vld [vmem:[%s5223_s25 + $0x58] sm:$0xff]  ;;  %vm3053_vm8 = vc.u32 %v3045_v32, %v3049_v27 }
 0x1d9   : > { %4932 = vmatmul.msk.bf16.gmra.mxu1 %vm465_vm2, %v1746_v48  ;;  %v2415_v15 = vshll.u32 %v5916_v24, 16 }
 0x1da   : > { %5019 = vmatmul.msk.bf16.gmra.mxu2 %vm465_vm2, %v2107_v45  ;;  %v2410_v45 = vsel %vm2330_vm5, %v2400_v13, %v5908_v28  ;;  %v2412_v13 = vshrl.u32 %v5916_v24, 16 }
 0x1db   : > { %5057 = vmatmul.msk.bf16.gmra.mxu0 %vm465_vm2, %v2712_v22  ;;  %v3048_v22 = vmul.u32 58254, %v3043_v55  ;;  %v2417_v1 = vrot.slane %v2415_v15, 3  ;;  %v7264_v15 = vrot.slane %v5874_v6, 2 }
 0x1dc   : > { %5040 = vmatmul.msk.bf16.gmra.mxu3 %vm465_vm2, %v2410_v45  ;;  %v2414_v5 = vrot.slane %v2412_v13, 2 }
 0x1dd   : > { %v946_v8 = vpop.f32.mrf.mxu2 }
 0x1de   : > { %v991_v40 = vadd.f32 %v946_v8, %v747_v63  ;;  %v748_v48 = vpop.f32.mrf.mxu1  ;;  %v1748_v63 = vsel %vm1733_vm6, %v1745_v29, %v1747_v39  ;;  %v3055_v8 = vadd.s32 %v3049_v27, %v3045_v32  ;;  %v3050_v32 = vshrl.u32 %v3046_v33, 16 }
 0x1df   : > { %v749_v55 = vadd.f32 %v748_v48, %v7294_v43  ;;  %v7263_v43 = vrot.slane %v5945_v41, 2  ;;  %v5950_v33 = vadd.f32 %v5863_v49, %v5878_v20 }
 0x1e0   : > { %v5921_v53 = vadd.f32 %v5857_v25, %v991_v40  ;;  %v5923_v19 = vpop.f32.mrf.mxu0  ;;  %v3054_v25 = vsel %vm3053_vm8, 1, %v7261_v51  ;;  %v5932_v40 = vadd.s32 8, %v5900_v58  ;;  %vm3057_vm9 = vc.u32 %v3055_v8, %v3051_v4  ;;  %v5942_v23 = vpop.f32.mrf.mxu3 }
 0x1e1   : > { %7293 = vst [vmem:[#allocation2_spill] sm:$0xff] %v5923_v19  ;;  %v3056_v29 = vadd.s32 %v3054_v25, %v3048_v22  ;;  %v3058_v27 = vsel %vm3057_vm9, 1, %v7261_v51  ;;  %v3052_v4 = vshrl.u32 %v3047_v59, 16 }
 0x1e2   : > { %v3071_v45 = vand.u32 65535, %v5932_v40  ;;  %v3072_v57 = vshrl.u32 %v5932_v40, 16  ;;  %7296 = vst [vmem:[#allocation3_spill] sm:$0xff] %v5950_v33 }
 0x1e3   : > { %v3060_v48 = vadd.s32 %v3058_v27, %v3056_v29  ;;  %v7299_v29 = vrot.slane %v5848_v61, 3  ;;  %v7300_v27 = vrot.slane %v5826_v54, 3 }
 0x1e4   : > { %v3074_v8 = vmul.u32 14564, %v3071_v45  ;;  %v3075_v25 = vmul.u32 58254, %v3071_v45  ;;  %v3076_v3 = vmul.u32 14564, %v3072_v57  ;;  %v3077_v20 = vmul.u32 58254, %v3072_v57 }
 0x1e5   : > { %v948_v19 = vpop.f32.mrf.mxu2  ;;  %v3061_v36 = vadd.s32 %v3060_v48, %v3050_v32  ;;  %v2714_v49 = vsel %vm2699_vm7, %v7300_v27, %v7299_v29  ;;  %v5972_v57 = vadd.s32 16, %v5900_v58  ;;  %v7301_v32 = vld [vmem:[#allocation4_spill] sm:$0xff] }
 0x1e6   : > { %v992_v22 = vadd.f32 %v948_v19, %v749_v55  ;;  %v751_v51 = vpop.f32.mrf.mxu1  ;;  %v3078_v59 = vshll.u32 %v3075_v25, 16  ;;  %v5965_v19 = vsel %vm1733_vm6, %v1747_v39, %v7263_v43  ;;  %v3080_v54 = vshll.u32 %v3076_v3, 16 }
 0x1e7   : > { %v3062_v13 = vadd.s32 %v3061_v36, %v3052_v4  ;;  %v752_v45 = vadd.f32 %v751_v51, %v7301_v32  ;;  %v5976_v39 = vor.u32 %v2417_v1, %v2414_v5  ;;  %v7302_v36 = vmov 0  }
 0x1e8   : > { %v5953_v52 = vadd.f32 %v5870_v62, %v992_v22  ;;  %v5955_v42 = vpop.f32.mrf.mxu0  ;;  %v7265_v62 = vrot.slane %v5874_v6, 3  ;;  %vm3082_vm10 = vc.u32 %v3074_v8, %v3078_v59  ;;  %v3084_v55 = vadd.s32 %v3078_v59, %v3074_v8  ;;  %v5979_v22 = vld [vmem:[%s5223_s25 + $0x60] sm:$0xff]  ;;  %v5983_v27 = vpop.f32.mrf.mxu3 }
 0x1e9   : > { %7298 = vst [vmem:[#allocation22_spill] sm:$0xff] %v5955_v42  ;;  %4933 = vmatmul.msk.bf16.gmra.mxu1 %vm465_vm2, %v1748_v63  ;;  %v3063_v48 = vshrl.u32 %v3062_v13, 4  ;;  %v3083_v4 = vsel %vm3082_vm10, 1, %v7302_v36  ;;  %v3079_v63 = vshrl.u32 %v3075_v25, 16  ;;  %v2421_v51 = vshrl.u32 %v5979_v22, 16  ;;  %v5155_v42 = vld [vmem:[%s5223_s25 + $0x50] sm:$0xff] }
 0x1ea   : > { %7297 = vst [vmem:[#allocation21_spill] sm:$0xff] %v5953_v52  ;;  %5020 = vmatmul.msk.bf16.gmra.mxu2 %vm465_vm2, %v2109_v16  ;;  %v3085_v29 = vadd.s32 %v3083_v4, %v3077_v20  ;;  %vm3086_vm11 = vc.u32 %v3084_v55, %v3080_v54  ;;  %v3100_v16 = vand.u32 65535, %v5972_v57  ;;  %v3081_v13 = vshrl.u32 %v3076_v3, 16 }
 0x1eb   : > { %5058 = vmatmul.msk.bf16.gmra.mxu0 %vm465_vm2, %v2714_v49  ;;  %v3064_v59 = vmul.u32 18, %v3063_v48  ;;  %v2424_v49 = vshll.u32 %v5979_v22, 16  ;;  %v3087_v1 = vsel %vm3086_vm11, 1, %v7302_v36  ;;  %v3101_v25 = vshrl.u32 %v5972_v57, 16 }
 0x1ec   : > { %v3089_v32 = vadd.s32 %v3087_v1, %v3085_v29  ;;  %v7303_v54 = vrot.slane %v5848_v61, 2  ;;  %v2419_v48 = vsel %vm2330_vm5, %v5908_v28, %v5976_v39  ;;  %v2423_v43 = vrot.slane %v2421_v51, 2 }
 0x1ed   : > { %v951_v8 = vpop.f32.mrf.mxu2  ;;  %v5998_v4 = vsub.s32 %v5900_v58, %v3064_v59  ;;  %v2426_v29 = vrot.slane %v2424_v49, 3  ;;  %v3104_v1 = vmul.u32 58254, %v3100_v16  ;;  %v1751_v28 = vrot.slane %v5155_v42, 2  ;;  %5041 = vmatmul.msk.bf16.gmra.mxu3 %vm465_vm2, %v2419_v48 }
 0x1ee   : > { %v993_v5 = vadd.f32 %v951_v8, %v752_v45  ;;  %v753_v20 = vpop.f32.mrf.mxu1  ;;  %v2111_v55 = vsel %vm1733_vm6, %v7303_v54, %v7264_v15  ;;  %v3090_v8 = vadd.s32 %v3089_v32, %v3079_v63  ;;  %v7306_v54 = vrot.slane %v5848_v61, 3  ;;  %v7307_v63 = vld [vmem:[#allocation5_spill] sm:$0xff] }
 0x1ef   : > { %v2112_v59 = vrot.slane %v5916_v24, 2  ;;  %v3103_v52 = vmul.u32 14564, %v3100_v16  ;;  %v3107_v49 = vshll.u32 %v3104_v1, 16  ;;  %v754_v32 = vadd.f32 %v753_v20, %v7307_v63 }
 0x1f0   : > { %v6001_v3 = vadd.f32 %v5889_v21, %v993_v5  ;;  %v6003_v45 = vpop.f32.mrf.mxu0  ;;  %v2716_v15 = vsel %vm2699_vm7, %v7306_v54, %v7265_v62  ;;  %v3091_v51 = vadd.s32 %v3090_v8, %v3081_v13  ;;  %v3105_v5 = vmul.u32 14564, %v3101_v25  ;;  %v6026_v8 = vpop.f32.mrf.mxu3 }
 0x1f1   : > { %7305 = vst [vmem:[#allocation23_spill] sm:$0xff] %v6003_v45  ;;  %vm4083_vm12 = vcmp.ne.s32.totalorder %v5998_v4, 0  ;;  %v3106_v45 = vmul.u32 58254, %v3101_v25  ;;  %v6018_v61 = vadd.f32 %v5880_v2, %v5893_v7  ;;  %vm4119_vm13 = vcmp.lt.s32.totalorder %v5998_v4, 0 }
 0x1f2   : > { %7304 = vst [vmem:[#allocation4_spill] sm:$0xff] %v6001_v3  ;;  %v6022_v42 = vadd.s32 18, %v5998_v4  ;;  %v6024_v16 = vor.u32 %v2426_v29, %v2423_v43  ;;  %v3092_v13 = vshrl.u32 %v3091_v51, 4  ;;  %v3109_v20 = vshll.u32 %v3105_v5, 16  ;;  %vm6036_vm15 = vmand %vm4119_vm13, %vm4083_vm12  ;;  %v6041_v29 = vld [vmem:[%s5223_s25 + $0x58] sm:$0xff] }
 0x1f3   : > { %7308 = vst [vmem:[#allocation5_spill] sm:$0xff] %v6018_v61  ;;  %vm3111_vm14 = vc.u32 %v3103_v52, %v3107_v49  ;;  %v3113_v54 = vadd.s32 %v3107_v49, %v3103_v52  ;;  %v6029_v25 = vadd.s32 24, %v5900_v58  ;;  %v3108_v63 = vshrl.u32 %v3104_v1, 16 }
 0x1f4   : > { %v3093_v7 = vmul.u32 18, %v3092_v13  ;;  %v3112_v62 = vsel %vm3111_vm14, 1, %v7302_v36  ;;  %v7313_v13 = vrot.slane %v5945_v41, 2  ;;  %v7314_v51 = vrot.slane %v5874_v6, 2 }
 0x1f5   : > { %v953_v48 = vpop.f32.mrf.mxu2  ;;  %v3114_v49 = vadd.s32 %v3112_v62, %v3106_v45  ;;  %vm3115_vm0 = vc.u32 %v3113_v54, %v3109_v20  ;;  %v7316_v45 = vrot.slane %v5874_v6, 3  ;;  %v3110_v20 = vshrl.u32 %v3105_v5, 16 }
 0x1f6   : > { %v994_v2 = vadd.f32 %v953_v48, %v754_v32  ;;  %v756_v21 = vpop.f32.mrf.mxu1  ;;  %v6053_v48 = vsel %vm1733_vm6, %v7313_v13, %v1751_v28  ;;  %v6056_v3 = vsub.s32 %v5932_v40, %v3093_v7  ;;  %v3116_v52 = vsel %vm3115_vm0, 1, %v7302_v36 }
 0x1f7   : > { %v6062_v62 = vsel %vm1733_vm6, %v7314_v51, %v2112_v59  ;;  %v3118_v54 = vadd.s32 %v3116_v52, %v3114_v49  ;;  %v2428_v6 = vsel %vm2330_vm5, %v5976_v39, %v6024_v16  ;;  %v3129_v51 = vand.u32 65535, %v6029_v25  ;;  %v6095_v49 = vld [vmem:[%s5223_s25 + $0x68] sm:$0xff] }
 0x1f8   : > { %v6046_v1 = vadd.f32 %v5913_v50, %v994_v2  ;;  %v6048_v32 = vpop.f32.mrf.mxu0  ;;  %v7315_v50 = vrot.slane %v5916_v24, 3  ;;  %v7317_v2 = vld [vmem:[#allocation6_spill] sm:$0xff]  ;;  %v3130_v13 = vshrl.u32 %v6029_v25, 16  ;;  %vm4084_vm1 = vcmp.ne.s32.totalorder %v6056_v3, 0 }
 0x1f9   : > { %7312 = vst [vmem:[#allocation25_spill] sm:$0xff] %v6048_v32  ;;  %v757_v40 = vadd.f32 %v756_v21, %v7317_v2  ;;  %4934 = vmatmul.msk.bf16.gmra.mxu1 %vm465_vm2, %v5965_v19  ;;  %v7318_v21 = vrot.slane %v6041_v29, 2  ;;  %v7319_v19 = vrot.slane %v5979_v22, 2  ;;  %v3119_v52 = vadd.s32 %v3118_v54, %v3108_v63 }
 0x1fa   : > { %7311 = vst [vmem:[#allocation24_spill] sm:$0xff] %v6046_v1  ;;  %v6069_v41 = vsel %vm2699_vm7, %v7316_v45, %v7315_v50  ;;  %5021 = vmatmul.msk.bf16.gmra.mxu2 %vm465_vm2, %v2111_v55  ;;  %v6102_v50 = vadd.f32 %v5895_v47, %v5921_v53  ;;  %v6104_v45 = vpop.f32.mrf.mxu3  ;;  %v2433_v63 = vshll.u32 %v6095_v49, 16  ;;  %v3132_v54 = vmul.u32 14564, %v3129_v51 }
 0x1fb   : > { %5059 = vmatmul.msk.bf16.gmra.mxu0 %vm465_vm2, %v2716_v15  ;;  %v6087_v5 = vsel %vm1733_vm6, %v1751_v28, %v7318_v21  ;;  %v6092_v55 = vsel %vm1733_vm6, %v2112_v59, %v7319_v19  ;;  %v3133_v15 = vmul.u32 58254, %v3129_v51  ;;  %v3120_v2 = vadd.s32 %v3119_v52, %v3110_v20 }
 0x1fc   : > { %7320 = vst [vmem:[#allocation6_spill] sm:$0xff] %v6102_v50  ;;  %v2430_v59 = vshrl.u32 %v6095_v49, 16  ;;  %v3134_v19 = vmul.u32 14564, %v3130_v13  ;;  %v6109_v32 = vadd.s32 32, %v5900_v58  ;;  %v2435_v47 = vrot.slane %v2433_v63, 3 }
 0x1fd   : > { %v956_v28 = vpop.f32.mrf.mxu2  ;;  %v3136_v7 = vshll.u32 %v3133_v15, 16  ;;  %v3121_v1 = vshrl.u32 %v3120_v2, 4  ;;  %v3135_v53 = vmul.u32 58254, %v3130_v13  ;;  %vm4120_vm3 = vcmp.lt.s32.totalorder %v6056_v3, 0  ;;  %5042 = vmatmul.msk.bf16.gmra.mxu3 %vm465_vm2, %v2428_v6 }
 0x1fe   : > { %v995_v21 = vadd.f32 %v956_v28, %v757_v40  ;;  %v758_v39 = vpop.f32.mrf.mxu1  ;;  %v2432_v61 = vrot.slane %v2430_v59, 2  ;;  %v6118_v51 = vadd.s32 18, %v6056_v3  ;;  %v3138_v40 = vshll.u32 %v3134_v19, 16  ;;  %vm6134_vm9 = vmand %vm4120_vm3, %vm4084_vm1 }
 0x1ff   : > { %v3122_v52 = vmul.u32 18, %v3121_v1  ;;  %v3137_v28 = vshrl.u32 %v3133_v15, 16  ;;  %vm3140_vm4 = vc.u32 %v3132_v54, %v3136_v7  ;;  %v3142_v33 = vadd.s32 %v3136_v7, %v3132_v54 }
 0x200   : > { %v6112_v50 = vadd.f32 %v5942_v23, %v995_v21  ;;  %v6114_v20 = vpop.f32.mrf.mxu0  ;;  %v759_v2 = vadd.f32 %v758_v39, %v7323_v56  ;;  %v3141_v13 = vsel %vm3140_vm4, 1, %v7302_v36  ;;  %v3158_v23 = vand.u32 65535, %v6109_v32 }
 0x201   : > { %7322 = vst [vmem:[#allocation27_spill] sm:$0xff] %v6114_v20  ;;  %v3159_v59 = vshrl.u32 %v6109_v32, 16  ;;  %v6126_v63 = vsub.s32 %v5972_v57, %v3122_v52  ;;  %v6128_v21 = vor.u32 %v2435_v47, %v2432_v61  ;;  %v3143_v20 = vadd.s32 %v3141_v13, %v3135_v53 }
 0x202   : > { %7321 = vst [vmem:[#allocation26_spill] sm:$0xff] %v6112_v50  ;;  %vm3144_vm8 = vc.u32 %v3142_v33, %v3138_v40  ;;  %v3139_v1 = vshrl.u32 %v3134_v19, 16  ;;  %v6139_v6 = vmul.u32 58254, %v3158_v23  ;;  %v6143_v61 = vpop.f32.mrf.mxu3  ;;  %v3161_v47 = vmul.u32 14564, %v3158_v23 }
 0x203   : > { %v3145_v7 = vsel %vm3144_vm8, 1, %v7302_v36  ;;  %v6141_v39 = vmul.u32 14564, %v3159_v59  ;;  %vm4085_vm10 = vcmp.ne.s32.totalorder %v6126_v63, 0  ;;  %vm4121_vm11 = vcmp.lt.s32.totalorder %v6126_v63, 0 }
 0x204   : > { %v6148_v33 = vadd.s32 18, %v6126_v63  ;;  %v3147_v15 = vadd.s32 %v3145_v7, %v3143_v20  ;;  %vm6150_vm12 = vmand %vm4121_vm11, %vm4085_vm10  ;;  %v3165_v53 = vshll.u32 %v6139_v6, 16  ;;  %v6156_v40 = vadd.s32 40, %v5900_v58 }
 0x205   : > { %v958_v57 = vpop.f32.mrf.mxu2  ;;  %v4228_v13 = vsel %vm6134_vm9, %v6118_v51, %v6056_v3  ;;  %v7328_v20 = vrot.slane %v5979_v22, 3  ;;  %v2437_v23 = vsel %vm2330_vm5, %v6024_v16, %v6128_v21  ;;  %v3164_v14 = vmul.u32 58254, %v3159_v59 }
 0x206   : > { %v996_v54 = vadd.f32 %v958_v57, %v759_v2  ;;  %v1837_v52 = vpop.f32.mrf.mxu1  ;;  %v7329_v2 = vrot.slane %v5916_v24, 3  ;;  %v3148_v57 = vadd.s32 %v3147_v15, %v3137_v28  ;;  %v3166_v56 = vshrl.u32 %v6139_v6, 16  ;;  %v6191_v28 = vld [vmem:[%s5223_s25 + $0x60] sm:$0xff] }
 0x207   : > { %v3167_v3 = vshll.u32 %v6141_v39, 16  ;;  %v7331_v24 = vsel %vm6036_vm15, %v6022_v42, %v5998_v4  ;;  %v1927_v6 = vadd.f32 %v1837_v52, %v5560_v34  ;;  %vm3169_vm14 = vc.u32 %v3161_v47, %v3165_v53  ;;  %v6206_v34 = vld [vmem:[%s5223_s25 + $0x70] sm:$0xff] }
 0x208   : > { %v6167_v7 = vsel %vm2699_vm7, %v7329_v2, %v7328_v20  ;;  %v6173_v50 = vadd.f32 %v5983_v27, %v996_v54  ;;  %v2803_v12 = vpop.f32.mrf.mxu0  ;;  %vm6182_vm13 = vcmp.lt.s32.totalorder %v7331_v24, 16  ;;  %v3149_v16 = vadd.s32 %v3148_v57, %v3139_v1 }
 0x209   : > { %4935 = vmatmul.msk.bf16.gmra.mxu1 %vm465_vm2, %v6053_v48  ;;  %v3171_v4 = vadd.s32 %v3165_v53, %v3161_v47  ;;  %v3187_v42 = vand.u32 65535, %v6156_v40  ;;  %vm2965_vm15 = vcmask 27648   ;;  %v3170_v54 = vsel %vm3169_vm14, 1, %v7302_v36 }
 0x20a   : > { %7330 = vst [vmem:[#allocation7_spill] sm:$0xff] %v6173_v50  ;;  %5022 = vmatmul.msk.bf16.gmra.mxu2 %vm465_vm2, %v6062_v62  ;;  %v3150_v1 = vshrl.u32 %v3149_v16, 4  ;;  %v3188_v48 = vshrl.u32 %v6156_v40, 16  ;;  %v3168_v62 = vshrl.u32 %v6141_v39, 16  ;;  %v3172_v52 = vadd.s32 %v3170_v54, %v3164_v14 }
 0x20b   : > { %5060 = vmatmul.msk.bf16.gmra.mxu0 %vm465_vm2, %v6069_v41  ;;  %vm3173_vm0 = vc.u32 %v3171_v4, %v3167_v3  ;;  %v6210_v47 = vmul.u32 58254, %v3187_v42  ;;  %vm4407_vm1 = vcmask 31744   ;;  %v6212_v41 = vpop.f32.mrf.mxu3  ;;  %v2439_v57 = vshrl.u32 %v6206_v34, 16 }
 0x20c   : > { %v3151_v20 = vmul.u32 18, %v3150_v1  ;;  %v3174_v2 = vsel %vm3173_vm0, 1, %v7302_v36  ;;  %v2442_v24 = vshll.u32 %v6206_v34, 16  ;;  %v3190_v15 = vmul.u32 14564, %v3187_v42 }
 0x20d   : > { %v2198_v53 = vpop.f32.mrf.mxu2  ;;  %v3176_v27 = vadd.s32 %v3174_v2, %v3172_v52  ;;  %v6217_v43 = vmul.u32 14564, %v3188_v48  ;;  %v2441_v3 = vrot.slane %v2439_v57, 2  ;;  %v3194_v1 = vshll.u32 %v6210_v47, 16  ;;  %5043 = vmatmul.msk.bf16.gmra.mxu3 %vm465_vm2, %v2437_v23 }
 0x20e   : > { %v2288_v16 = vadd.f32 %v2198_v53, %v1927_v6  ;;  %v1839_v14 = vpop.f32.mrf.mxu1  ;;  %v6221_v39 = vsub.s32 %v6029_v25, %v3151_v20  ;;  %v2444_v4 = vrot.slane %v2442_v24, 3  ;;  %v7334_v50 = vrot.slane %v6191_v28, 2 }
 0x20f   : > { %v7335_v6 = vrot.slane %v6041_v29, 2  ;;  %v7336_v52 = vrot.slane %v6095_v49, 2  ;;  %v7337_v53 = vrot.slane %v5979_v22, 2  ;;  %v3177_v20 = vadd.s32 %v3176_v27, %v3166_v56 }
 0x210   : > { %v2657_v54 = vadd.f32 %v6026_v8, %v2288_v16  ;;  %v2805_v59 = vpop.f32.mrf.mxu0  ;;  %vm6239_vm3 = vcmp.lt.s32.totalorder %v4228_v13, 16  ;;  %vm4086_vm4 = vcmp.ne.s32.totalorder %v6221_v39, 0  ;;  %vm4122_vm8 = vcmp.lt.s32.totalorder %v6221_v39, 0 }
 0x211   : > { %v6230_v42 = vsel %vm1733_vm6, %v7335_v6, %v7334_v50  ;;  %v6237_v25 = vsel %vm1733_vm6, %v7337_v53, %v7336_v52  ;;  %v7340_v8 = vrot.slane %v6095_v49, 3  ;;  %v7341_v29 = vrot.slane %v5979_v22, 3  ;;  %vm6271_vm10 = vmand %vm4122_vm8, %vm4086_vm4 }
 0x212   : > { %v3193_v57 = vmul.u32 58254, %v3188_v48  ;;  %v2893_v24 = vadd.f32 %v2803_v12, %v2657_v54  ;;  %v1928_v16 = vadd.f32 %v1839_v14, %v5570_v26  ;;  %v3178_v13 = vadd.s32 %v3177_v20, %v3168_v62 }
 0x213   : > { %v6250_v50 = vsel %vm2699_vm7, %v7341_v29, %v7340_v8  ;;  %v3196_v56 = vshll.u32 %v6217_v43, 16  ;;  %v6261_v22 = vadd.s32 18, %v6221_v39  ;;  %v6263_v27 = vor.u32 %v2444_v4, %v2441_v3  ;;  %v6285_v20 = vpop.f32.mrf.mxu3  ;;  %v6291_v8 = vld [vmem:[%s5223_s25 + $0x68] sm:$0xff] }
 0x214   : > { %vm3198_vm9 = vc.u32 %v3190_v15, %v3194_v1  ;;  %v3200_v12 = vadd.s32 %v3194_v1, %v3190_v15  ;;  %v2929_v48 = vpack.c.bf16 %v2893_v24, %v2893_v24  ;;  %v4371_v26 = vsel %vm6182_vm13, %v2893_v24, 0.0 }
 0x215   : > { %v3179_v62 = vshrl.u32 %v3178_v13, 4  ;;  %v3195_v14 = vshrl.u32 %v6210_v47, 16  ;;  %v4485_v3 = vmul.f32 %v4371_v26, %v4371_v26  ;;  %v2200_v4 = vpop.f32.mrf.mxu2  ;;  %v3197_v15 = vshrl.u32 %v6217_v43, 16 }
 0x216   : > { %v3199_v1 = vsel %vm3198_vm9, 1, %v7302_v36  ;;  %vm3202_vm11 = vc.u32 %v3200_v12, %v3196_v56  ;;  %2966 = vst.msk [vmem:[%s6258_s14] sm:$0xf] %vm2965_vm15, %v2929_v48  ;;  %v2289_v51 = vadd.f32 %v2200_v4, %v1928_v16  ;;  %v1842_v53 = vpop.f32.mrf.mxu1  ;;  %v4230_v47 = vsel %vm6271_vm10, %v6261_v22, %v6221_v39 }
 0x217   : > { %v3180_v54 = vmul.u32 18, %v3179_v62  ;;  %v3201_v6 = vadd.s32 %v3199_v1, %v3193_v57  ;;  %v3203_v52 = vsel %vm3202_vm11, 1, %v7302_v36  ;;  %v2446_v43 = vsel %vm2330_vm5, %v6128_v21, %v6263_v27 }
 0x218   : > { %v1757_v29 = vrot.slane %v6291_v8, 2  ;;  %v6295_v57 = vadd.s32 48, %v5900_v58  ;;  %v4408_v24 = vsel %vm4407_vm1, %v4371_v26, 0.0  ;;  %v2658_v16 = vadd.f32 %v6104_v45, %v2289_v51  ;;  %v2808_v13 = vpop.f32.mrf.mxu0 }
 0x219   : > { %v6300_v39 = vsub.s32 %v6109_v32, %v3180_v54  ;;  %v3205_v56 = vadd.s32 %v3203_v52, %v3201_v6  ;;  %v4521_v22 = vsel %vm4407_vm1, %v4485_v3, 0.0  ;;  %v1929_v21 = vadd.f32 %v1842_v53, %v5576_v18  ;;  %4936 = vmatmul.msk.bf16.gmra.mxu1 %vm465_vm2, %v6087_v5  ;;  %v6353_v53 = vld [vmem:[%s5223_s25 + $0x78] sm:$0xff] }
 0x21a   : > { %v7344_v12 = vsel %vm6150_vm12, %v6148_v33, %v6126_v63  ;;  %v2118_v45 = vrot.slane %v6206_v34, 2  ;;  %v3216_v26 = vand.u32 65535, %v6295_v57  ;;  %v2894_v32 = vadd.f32 %v2805_v59, %v2658_v16  ;;  %5023 = vmatmul.msk.bf16.gmra.mxu2 %vm465_vm2, %v6092_v55 }
 0x21b   : > { %vm6309_vm13 = vcmp.lt.s32.totalorder %v7344_v12, 16  ;;  %vm4087_vm14 = vcmp.ne.s32.totalorder %v6300_v39, 0  ;;  %vm4123_vm0 = vcmp.lt.s32.totalorder %v6300_v39, 0  ;;  %v6322_v18 = vadd.s32 18, %v6300_v39  ;;  %5061 = vmatmul.msk.bf16.gmra.mxu0 %vm465_vm2, %v6167_v7 }
 0x21c   : > { %vm6326_vm12 = vmand %vm4123_vm0, %vm4087_vm14  ;;  %v3206_v33 = vadd.s32 %v3205_v56, %v3195_v14  ;;  %v7349_v5 = vrot.slane %v6191_v28, 2  ;;  %v2723_v19 = vrot.slane %v6206_v34, 3  ;;  %v3217_v59 = vshrl.u32 %v6295_v57, 16 }
 0x21d   : > { %v2930_v23 = vpack.c.bf16 %v2894_v32, %v2894_v32  ;;  %v4372_v7 = vsel %vm6239_vm3, %v2894_v32, 0.0  ;;  %v3219_v62 = vmul.u32 14564, %v3216_v26  ;;  %v6341_v3 = vmul.u32 58254, %v3216_v26  ;;  %v2203_v1 = vpop.f32.mrf.mxu2  ;;  %5044 = vmatmul.msk.bf16.gmra.mxu3 %vm465_vm2, %v2446_v43 }
 0x21e   : > { %v6335_v55 = vsel %vm1733_vm6, %v7349_v5, %v1757_v29  ;;  %v4409_v14 = vsel %vm4407_vm1, %v4372_v7, 0.0  ;;  %v4486_v4 = vmul.f32 %v4372_v7, %v4372_v7  ;;  %v4231_v28 = vsel %vm6326_vm12, %v6322_v18, %v6300_v39  ;;  %v1844_v56 = vpop.f32.mrf.mxu1 }
 0x21f   : > { %v3207_v51 = vadd.s32 %v3206_v33, %v3197_v15  ;;  %2967 = vst.msk [vmem:[%s6258_s14 + $0x4] sm:$0xf] %vm2965_vm15, %v2930_v23  ;;  %v4410_v54 = vadd.f32 %v4409_v14, %v4408_v24  ;;  %v2290_v6 = vadd.f32 %v2203_v1, %v1929_v21  ;;  %v6350_v52 = vmul.u32 14564, %v3217_v59  ;;  %v6365_v33 = vpop.f32.mrf.mxu3 }
 0x220   : > { %v3222_v2 = vmul.u32 58254, %v3217_v59  ;;  %v4522_v16 = vsel %vm4407_vm1, %v4486_v4, 0.0  ;;  %v3223_v26 = vshll.u32 %v6341_v3, 16  ;;  %v3224_v32 = vshrl.u32 %v6341_v3, 16  ;;  %v2810_v24 = vpop.f32.mrf.mxu0 }
 0x221   : > { %v3208_v12 = vshrl.u32 %v3207_v51, 4  ;;  %v4523_v63 = vadd.f32 %v4522_v16, %v4521_v22  ;;  %v2659_v15 = vadd.f32 %v6143_v61, %v2290_v6  ;;  %v1930_v39 = vadd.f32 %v1844_v56, %v5586_v30 }
 0x222   : > { %v3225_v21 = vshll.u32 %v6350_v52, 16  ;;  %vm6361_vm3 = vcmp.lt.s32.totalorder %v4230_v47, 16  ;;  %v3226_v59 = vshrl.u32 %v6350_v52, 16  ;;  %vm3227_vm4 = vc.u32 %v3219_v62, %v3223_v26 }
 0x223   : > { %v3209_v5 = vmul.u32 18, %v3208_v12  ;;  %v3229_v23 = vadd.s32 %v3223_v26, %v3219_v62  ;;  %v2895_v7 = vadd.f32 %v2808_v13, %v2659_v15  ;;  %v3228_v61 = vsel %vm3227_vm4, 1, %v7302_v36 }
 0x224   : > { %v2448_v30 = vshrl.u32 %v6353_v53, 16  ;;  %v2451_v47 = vshll.u32 %v6353_v53, 16  ;;  %v3230_v3 = vadd.s32 %v3228_v61, %v3222_v2  ;;  %v6376_v14 = vadd.s32 56, %v5900_v58 }
 0x225   : > { %v6373_v22 = vsub.s32 %v6156_v40, %v3209_v5  ;;  %vm3231_vm8 = vc.u32 %v3229_v23, %v3225_v21  ;;  %v2931_v4 = vpack.c.bf16 %v2895_v7, %v2895_v7  ;;  %v4373_v13 = vsel %vm6309_vm13, %v2895_v7, 0.0  ;;  %v2205_v6 = vpop.f32.mrf.mxu2 }
 0x226   : > { %v3232_v43 = vsel %vm3231_vm8, 1, %v7302_v36  ;;  %v2450_v62 = vrot.slane %v2448_v30, 2  ;;  %v4411_v1 = vsel %vm4407_vm1, %v4373_v13, 0.0  ;;  %v4487_v51 = vmul.f32 %v4373_v13, %v4373_v13  ;;  %v1847_v12 = vpop.f32.mrf.mxu1 }
 0x227   : > { %vm4088_vm9 = vcmp.ne.s32.totalorder %v6373_v22, 0  ;;  %vm4124_vm10 = vcmp.lt.s32.totalorder %v6373_v22, 0  ;;  %2968 = vst.msk [vmem:[%s6258_s14 + $0x8] sm:$0xf] %vm2965_vm15, %v2931_v4  ;;  %v4412_v40 = vadd.f32 %v4411_v1, %v4410_v54  ;;  %v2291_v52 = vadd.f32 %v2205_v6, %v1930_v39 }
 0x228   : > { %vm6386_vm11 = vmand %vm4124_vm10, %vm4088_vm9  ;;  %v4196_v48 = vadd.s32 18, %v6373_v22  ;;  %v3234_v16 = vadd.s32 %v3232_v43, %v3230_v3  ;;  %v4524_v56 = vsel %vm4407_vm1, %v4487_v51, 0.0  ;;  %v2453_v26 = vrot.slane %v2451_v47, 3  ;;  %v2813_v54 = vpop.f32.mrf.mxu0  ;;  %v6427_v43 = vpop.f32.mrf.mxu3 }
 0x229   : > { %v3245_v15 = vand.u32 65535, %v6376_v14  ;;  %v3246_v21 = vshrl.u32 %v6376_v14, 16  ;;  %v4525_v5 = vadd.f32 %v4524_v56, %v4523_v63  ;;  %v2660_v23 = vadd.f32 %v6212_v41, %v2291_v52  ;;  %4937 = vmatmul.msk.bf16.gmra.mxu1 %vm465_vm2, %v6230_v42  ;;  %v6433_v42 = vld [vmem:[%s5223_s25 + $0x70] sm:$0xff] }
 0x22a   : > { %v7354_v39 = vrot.slane %v6095_v49, 2  ;;  %v7355_v61 = vrot.slane %v6095_v49, 3  ;;  %v1931_v47 = vadd.f32 %v1847_v12, %v5592_v60  ;;  %vm6410_vm13 = vcmp.lt.s32.totalorder %v4231_v28, 16  ;;  %5024 = vmatmul.msk.bf16.gmra.mxu2 %vm465_vm2, %v6237_v25 }
 0x22b   : > { %v4232_v63 = vsel %vm6386_vm11, %v4196_v48, %v6373_v22  ;;  %v3235_v3 = vadd.s32 %v3234_v16, %v3224_v32  ;;  %v6417_v4 = vor.u32 %v2453_v26, %v2450_v62  ;;  %v2896_v13 = vadd.f32 %v2810_v24, %v2660_v23  ;;  %5062 = vmatmul.msk.bf16.gmra.mxu0 %vm465_vm2, %v6250_v50 }
 0x22c   : > { %v6400_v7 = vsel %vm1733_vm6, %v7354_v39, %v2118_v45  ;;  %v6407_v30 = vsel %vm2699_vm7, %v7355_v61, %v2723_v19  ;;  %v3248_v60 = vmul.u32 14564, %v3245_v15  ;;  %v3249_v49 = vmul.u32 58254, %v3245_v15 }
 0x22d   : > { %v6423_v28 = vmul.u32 14564, %v3246_v21  ;;  %v3236_v32 = vadd.s32 %v3235_v3, %v3226_v59  ;;  %v2455_v24 = vsel %vm2330_vm5, %v6263_v27, %v6417_v4  ;;  %v3251_v22 = vmul.u32 58254, %v3246_v21  ;;  %v2208_v59 = vpop.f32.mrf.mxu2 }
 0x22e   : > { %v1759_v25 = vrot.slane %v6433_v42, 2  ;;  %v2932_v62 = vpack.c.bf16 %v2896_v13, %v2896_v13  ;;  %v4374_v1 = vsel %vm6361_vm3, %v2896_v13, 0.0  ;;  %v3252_v51 = vshll.u32 %v3249_v49, 16  ;;  %v1849_v18 = vpop.f32.mrf.mxu1  ;;  %5045 = vmatmul.msk.bf16.gmra.mxu3 %vm465_vm2, %v2455_v24 }
 0x22f   : > { %v2120_v50 = vrot.slane %v6353_v53, 2  ;;  %v4413_v6 = vsel %vm4407_vm1, %v4374_v1, 0.0  ;;  %v4488_v52 = vmul.f32 %v4374_v1, %v4374_v1  ;;  %v3237_v2 = vshrl.u32 %v3236_v32, 4 }
 0x230   : > { %v3254_v48 = vshll.u32 %v6423_v28, 16  ;;  %2969 = vst.msk [vmem:[%s6258_s14 + $0xc] sm:$0xf] %vm2965_vm15, %v2932_v62  ;;  %v4414_v27 = vadd.f32 %v4413_v6, %v4412_v40  ;;  %v2292_v16 = vadd.f32 %v2208_v59, %v1931_v47  ;;  %v3253_v56 = vshrl.u32 %v3249_v49, 16  ;;  %v2815_v61 = vpop.f32.mrf.mxu0  ;;  %v6481_v41 = vpop.f32.mrf.mxu3 }
 0x231   : > { %vm3256_vm14 = vc.u32 %v3248_v60, %v3252_v51  ;;  %v4526_v12 = vsel %vm4407_vm1, %v4488_v52, 0.0  ;;  %v3238_v26 = vmul.u32 18, %v3237_v2  ;;  %v3258_v21 = vadd.s32 %v3252_v51, %v3248_v60 }
 0x232   : > { %v3257_v15 = vsel %vm3256_vm14, 1, %v7302_v36  ;;  %v4527_v23 = vadd.f32 %v4526_v12, %v4525_v5  ;;  %v2661_v39 = vadd.f32 %v6285_v20, %v2292_v16  ;;  %v3255_v3 = vshrl.u32 %v6423_v28, 16 }
 0x233   : > { %v3259_v13 = vadd.s32 %v3257_v15, %v3251_v22  ;;  %v1932_v32 = vadd.f32 %v1849_v18, %v5602_v37  ;;  %vm6448_vm0 = vcmp.lt.s32.totalorder %v4232_v63, 16  ;;  %v3239_v47 = vsub.s32 %v6295_v57, %v3238_v26 }
 0x234   : > { %vm3260_vm12 = vc.u32 %v3258_v21, %v3254_v48  ;;  %v6458_v5 = vsel %vm1733_vm6, %v1757_v29, %v1759_v25  ;;  %v2897_v20 = vadd.f32 %v2813_v54, %v2661_v39  ;;  %v2725_v37 = vrot.slane %v6353_v53, 3  ;;  %v6496_v48 = vld [vmem:[%s5223_s25 + $0x80] sm:$0xff] }
 0x235   : > { %v3261_v60 = vsel %vm3260_vm12, 1, %v7302_v36  ;;  %v6464_v63 = vadd.s32 64, %v5900_v58  ;;  %vm4089_vm3 = vcmp.ne.s32.totalorder %v3239_v47, 0  ;;  %vm4125_vm4 = vcmp.lt.s32.totalorder %v3239_v47, 0  ;;  %v2210_v1 = vpop.f32.mrf.mxu2 }
 0x236   : > { %v4197_v57 = vadd.s32 18, %v3239_v47  ;;  %v3263_v49 = vadd.s32 %v3261_v60, %v3259_v13  ;;  %v2933_v28 = vpack.c.bf16 %v2897_v20, %v2897_v20  ;;  %v4375_v8 = vsel %vm6410_vm13, %v2897_v20, 0.0  ;;  %vm6468_vm8 = vmand %vm4125_vm4, %vm4089_vm3 }
 0x237   : > { %v6477_v54 = vsel %vm1733_vm6, %v2118_v45, %v2120_v50  ;;  %v3274_v24 = vand.u32 65535, %v6464_v63  ;;  %v4415_v22 = vsel %vm4407_vm1, %v4375_v8, 0.0  ;;  %v4489_v62 = vmul.f32 %v4375_v8, %v4375_v8 }
 0x238   : > { %v3264_v51 = vadd.s32 %v3263_v49, %v3253_v56  ;;  %v6488_v6 = vsel %vm2699_vm7, %v2723_v19, %v2725_v37  ;;  %2970 = vst.msk [vmem:[%s6258_s14 + $0x10] sm:$0xf] %vm2965_vm15, %v2933_v28  ;;  %v4416_v45 = vadd.f32 %v4415_v22, %v4414_v27  ;;  %v2293_v52 = vadd.f32 %v2210_v1, %v1932_v32  ;;  %v1852_v56 = vpop.f32.mrf.mxu1  ;;  %v2818_v27 = vpop.f32.mrf.mxu0 }
 0x239   : > { %v4233_v59 = vsel %vm6468_vm8, %v4197_v57, %v3239_v47  ;;  %v3275_v2 = vshrl.u32 %v6464_v63, 16  ;;  %v4528_v16 = vsel %vm4407_vm1, %v4489_v62, 0.0  ;;  %v3277_v18 = vmul.u32 14564, %v3274_v24  ;;  %4938 = vmatmul.msk.bf16.gmra.mxu1 %vm465_vm2, %v6335_v55 }
 0x23a   : > { %v3265_v12 = vadd.s32 %v3264_v51, %v3255_v3  ;;  %v3278_v34 = vmul.u32 58254, %v3274_v24  ;;  %v4529_v26 = vadd.f32 %v4528_v16, %v4527_v23  ;;  %v2662_v19 = vadd.f32 %v6365_v33, %v2293_v52  ;;  %5025 = vmatmul.msk.bf16.gmra.mxu2 %vm465_vm2, %v6400_v7 }
 0x23b   : > { %v1933_v15 = vadd.f32 %v1852_v56, %v5608_v10  ;;  %v6501_v21 = vmul.u32 14564, %v3275_v2  ;;  %vm6503_vm9 = vcmp.lt.s32.totalorder %v4233_v59, 16  ;;  %v3280_v32 = vmul.u32 58254, %v3275_v2  ;;  %5063 = vmatmul.msk.bf16.gmra.mxu0 %vm465_vm2, %v6407_v30  ;;  %v6525_v2 = vpop.f32.mrf.mxu3 }
 0x23c   : > { %v3266_v13 = vshrl.u32 %v3265_v12, 4  ;;  %v3281_v47 = vshll.u32 %v3278_v34, 16  ;;  %v3282_v20 = vshrl.u32 %v3278_v34, 16  ;;  %v2898_v60 = vadd.f32 %v2815_v61, %v2662_v19 }
 0x23d   : > { %v3283_v10 = vshll.u32 %v6501_v21, 16  ;;  %v3284_v33 = vshrl.u32 %v6501_v21, 16  ;;  %v2457_v23 = vshrl.u32 %v6496_v48, 16  ;;  %v2460_v61 = vshll.u32 %v6496_v48, 16  ;;  %v2213_v24 = vpop.f32.mrf.mxu2 }
 0x23e   : > { %v3267_v3 = vmul.u32 18, %v3266_v13  ;;  %vm3285_vm10 = vc.u32 %v3277_v18, %v3281_v47  ;;  %v3287_v57 = vadd.s32 %v3281_v47, %v3277_v18  ;;  %v2934_v49 = vpack.c.bf16 %v2898_v60, %v2898_v60 }
 0x23f   : > { %v4376_v55 = vsel %vm6448_vm0, %v2898_v60, 0.0  ;;  %v3286_v7 = vsel %vm3285_vm10, 1, %v7302_v36  ;;  %v2459_v28 = vrot.slane %v2457_v23, 2  ;;  %v2294_v1 = vadd.f32 %v2213_v24, %v1933_v15 }
 0x240   : > { %v4417_v8 = vsel %vm4407_vm1, %v4376_v55, 0.0  ;;  %v4490_v29 = vmul.f32 %v4376_v55, %v4376_v55  ;;  %v3268_v22 = vsub.s32 %v6376_v14, %v3267_v3  ;;  %v3288_v62 = vadd.s32 %v3286_v7, %v3280_v32  ;;  %2971 = vst.msk [vmem:[%s6258_s14 + $0x14] sm:$0xf] %vm2965_vm15, %v2934_v49  ;;  %v1854_v40 = vpop.f32.mrf.mxu1  ;;  %v2820_v12 = vpop.f32.mrf.mxu0 }
 0x241   : > { %v4418_v30 = vadd.f32 %v4417_v8, %v4416_v45  ;;  %vm3289_vm11 = vc.u32 %v3287_v57, %v3283_v10  ;;  %v2462_v51 = vrot.slane %v2460_v61, 3  ;;  %v2663_v56 = vadd.f32 %v6427_v43, %v2294_v1 }
 0x242   : > { %v4530_v52 = vsel %vm4407_vm1, %v4490_v29, 0.0  ;;  %vm4090_vm13 = vcmp.ne.s32.totalorder %v3268_v22, 0  ;;  %vm4126_vm14 = vcmp.lt.s32.totalorder %v3268_v22, 0  ;;  %v4198_v59 = vadd.s32 18, %v3268_v22 }
 0x243   : > { %v4531_v16 = vadd.f32 %v4530_v52, %v4529_v26  ;;  %v1934_v14 = vadd.f32 %v1854_v40, %v5618_v0  ;;  %vm4162_vm0 = vmand %vm4126_vm14, %vm4090_vm13  ;;  %v3290_v45 = vsel %vm3289_vm11, 1, %v7302_v36  ;;  %v6530_v19 = vor.u32 %v2462_v51, %v2459_v28  ;;  %v6540_v26 = vld [vmem:[%s5223_s25 + $0x78] sm:$0xff]  ;;  %v6576_v40 = vpop.f32.mrf.mxu3 }
 0x244   : > { %v4234_v18 = vsel %vm4162_vm0, %v4198_v59, %v3268_v22  ;;  %v3292_v34 = vadd.s32 %v3290_v45, %v3288_v62  ;;  %v6533_v15 = vadd.s32 72, %v5900_v58  ;;  %v2899_v21 = vadd.f32 %v2818_v27, %v2663_v56  ;;  %v6572_v22 = vld [vmem:[%s5223_s25 + $0x88] sm:$0xff] }
 0x245   : > { %vm6535_vm12 = vcmp.lt.s32.totalorder %v4234_v18, 16  ;;  %v1761_v0 = vrot.slane %v6540_v26, 2  ;;  %v2122_v43 = vrot.slane %v6496_v48, 2  ;;  %v2464_v47 = vsel %vm2330_vm5, %v6417_v4, %v6530_v19  ;;  %v2215_v57 = vpop.f32.mrf.mxu2 }
 0x246   : > { %v3293_v32 = vadd.s32 %v3292_v34, %v3282_v20  ;;  %v3303_v60 = vand.u32 65535, %v6533_v15  ;;  %v3304_v27 = vshrl.u32 %v6533_v15, 16  ;;  %v2935_v10 = vpack.c.bf16 %v2899_v21, %v2899_v21  ;;  %5046 = vmatmul.msk.bf16.gmra.mxu3 %vm465_vm2, %v2464_v47 }
 0x247   : > { %v4377_v23 = vsel %vm6503_vm9, %v2899_v21, 0.0  ;;  %v6557_v20 = vsel %vm1733_vm6, %v1759_v25, %v1761_v0  ;;  %v6564_v4 = vsel %vm1733_vm6, %v2120_v50, %v2122_v43  ;;  %v2295_v55 = vadd.f32 %v2215_v57, %v1934_v14 }
 0x248   : > { %v4419_v39 = vsel %vm4407_vm1, %v4377_v23, 0.0  ;;  %v4491_v3 = vmul.f32 %v4377_v23, %v4377_v23  ;;  %v3294_v61 = vadd.s32 %v3293_v32, %v3284_v33  ;;  %v3306_v49 = vmul.u32 14564, %v3303_v60  ;;  %2972 = vst.msk [vmem:[%s6258_s14 + $0x18] sm:$0xf] %vm2965_vm15, %v2935_v10  ;;  %v1857_v8 = vpop.f32.mrf.mxu1  ;;  %v2823_v51 = vpop.f32.mrf.mxu0 }
 0x249   : > { %v4420_v42 = vadd.f32 %v4419_v39, %v4418_v30  ;;  %v3307_v25 = vmul.u32 58254, %v3303_v60  ;;  %v3308_v7 = vmul.u32 14564, %v3304_v27  ;;  %v3309_v24 = vmul.u32 58254, %v3304_v27  ;;  %4939 = vmatmul.msk.bf16.gmra.mxu1 %vm465_vm2, %v6458_v5 }
 0x24a   : > { %v4532_v28 = vsel %vm4407_vm1, %v4491_v3, 0.0  ;;  %v3295_v29 = vshrl.u32 %v3294_v61, 4  ;;  %v2727_v50 = vrot.slane %v6496_v48, 3  ;;  %v2664_v1 = vadd.f32 %v6481_v41, %v2295_v55  ;;  %5026 = vmatmul.msk.bf16.gmra.mxu2 %vm465_vm2, %v6477_v54 }
 0x24b   : > { %v4533_v62 = vadd.f32 %v4532_v28, %v4531_v16  ;;  %v1935_v33 = vadd.f32 %v1857_v8, %v5624_v11  ;;  %v3310_v52 = vshll.u32 %v3307_v25, 16  ;;  %v3311_v59 = vshrl.u32 %v3307_v25, 16  ;;  %5064 = vmatmul.msk.bf16.gmra.mxu0 %vm465_vm2, %v6488_v6 }
 0x24c   : > { %v3296_v30 = vmul.u32 18, %v3295_v29  ;;  %v3312_v56 = vshll.u32 %v3308_v7, 16  ;;  %v3313_v14 = vshrl.u32 %v3308_v7, 16  ;;  %v2900_v45 = vadd.f32 %v2820_v12, %v2664_v1 }
 0x24d   : > { %vm3314_vm3 = vc.u32 %v3306_v49, %v3310_v52  ;;  %v3316_v16 = vadd.s32 %v3310_v52, %v3306_v49  ;;  %v6583_v11 = vadd.s32 80, %v5900_v58  ;;  %v6594_v5 = vsel %vm2699_vm7, %v2725_v37, %v2727_v50  ;;  %v2218_v32 = vpop.f32.mrf.mxu2 }
 0x24e   : > { %v3297_v41 = vsub.s32 %v6464_v63, %v3296_v30  ;;  %v3315_v18 = vsel %vm3314_vm3, 1, %v7302_v36  ;;  %v2466_v54 = vshrl.u32 %v6572_v22, 16  ;;  %v2936_v12 = vpack.c.bf16 %v2900_v45, %v2900_v45 }
 0x24f   : > { %v4378_v34 = vsel %vm6535_vm12, %v2900_v45, 0.0  ;;  %v3317_v21 = vadd.s32 %v3315_v18, %v3309_v24  ;;  %vm3318_vm4 = vc.u32 %v3316_v16, %v3312_v56  ;;  %v2296_v47 = vadd.f32 %v2218_v32, %v1935_v33  ;;  %v6610_v33 = vpop.f32.mrf.mxu3 }
 0x250   : > { %v4421_v6 = vsel %vm4407_vm1, %v4378_v34, 0.0  ;;  %v4492_v63 = vmul.f32 %v4378_v34, %v4378_v34  ;;  %vm4091_vm8 = vcmp.ne.s32.totalorder %v3297_v41, 0  ;;  %vm4127_vm9 = vcmp.lt.s32.totalorder %v3297_v41, 0  ;;  %2973 = vst.msk [vmem:[%s6258_s14 + $0x1c] sm:$0xf] %vm2965_vm15, %v2936_v12  ;;  %v1859_v13 = vpop.f32.mrf.mxu1 }
 0x251   : > { %v4422_v53 = vadd.f32 %v4421_v6, %v4420_v42  ;;  %vm4163_vm10 = vmand %vm4127_vm9, %vm4091_vm8  ;;  %v4199_v37 = vadd.s32 18, %v3297_v41  ;;  %v3319_v60 = vsel %vm3318_vm4, 1, %v7302_v36  ;;  %v3332_v23 = vand.u32 65535, %v6583_v11  ;;  %v2825_v42 = vpop.f32.mrf.mxu0 }
 0x252   : > { %v4534_v27 = vsel %vm4407_vm1, %v4492_v63, 0.0  ;;  %v3321_v10 = vadd.s32 %v3319_v60, %v3317_v21  ;;  %v3333_v39 = vshrl.u32 %v6583_v11, 16  ;;  %v2665_v57 = vadd.f32 %v6525_v2, %v2296_v47 }
 0x253   : > { %v4535_v3 = vadd.f32 %v4534_v27, %v4533_v62  ;;  %v4235_v61 = vsel %vm4163_vm10, %v4199_v37, %v3297_v41  ;;  %v1936_v49 = vadd.f32 %v1859_v13, %v5634_v17  ;;  %v3335_v25 = vmul.u32 14564, %v3332_v23 }
 0x254   : > { %vm4271_vm11 = vcmp.lt.s32.totalorder %v4235_v61, 16  ;;  %v3322_v55 = vadd.s32 %v3321_v10, %v3311_v59  ;;  %v3336_v7 = vmul.u32 58254, %v3332_v23  ;;  %v2901_v28 = vadd.f32 %v2823_v51, %v2665_v57 }
 0x255   : > { %v6608_v8 = vmul.u32 14564, %v3333_v39  ;;  %v3338_v29 = vmul.u32 58254, %v3333_v39  ;;  %v2468_v24 = vrot.slane %v2466_v54, 2  ;;  %v2469_v2 = vshll.u32 %v6572_v22, 16  ;;  %v2220_v16 = vpop.f32.mrf.mxu2 }
 0x256   : > { %v3323_v1 = vadd.s32 %v3322_v55, %v3313_v14  ;;  %v3339_v62 = vshll.u32 %v3336_v7, 16  ;;  %v3340_v52 = vshrl.u32 %v3336_v7, 16  ;;  %v2937_v30 = vpack.c.bf16 %v2901_v28, %v2901_v28 }
 0x257   : > { %v4379_v17 = vsel %vm4271_vm11, %v2901_v28, 0.0  ;;  %v3341_v56 = vshll.u32 %v6608_v8, 16  ;;  %v3342_v59 = vshrl.u32 %v6608_v8, 16  ;;  %v2297_v18 = vadd.f32 %v2220_v16, %v1936_v49  ;;  %v2594_v7 = vpop.f32.mrf.mxu3 }
 0x258   : > { %v4423_v51 = vsel %vm4407_vm1, %v4379_v17, 0.0  ;;  %v4493_v45 = vmul.f32 %v4379_v17, %v4379_v17  ;;  %v3324_v41 = vshrl.u32 %v3323_v1, 4  ;;  %vm3343_vm13 = vc.u32 %v3335_v25, %v3339_v62  ;;  %2974 = vst.msk [vmem:[%s6258_s14 + $0x20] sm:$0xf] %vm2965_vm15, %v2937_v30  ;;  %v1862_v6 = vpop.f32.mrf.mxu1 }
 0x259   : > { %v4424_v14 = vadd.f32 %v4423_v51, %v4422_v53  ;;  %v3344_v54 = vsel %vm3343_vm13, 1, %v7302_v36  ;;  %v3345_v12 = vadd.s32 %v3339_v62, %v3335_v25  ;;  %v2471_v32 = vrot.slane %v2469_v2, 3  ;;  %v2828_v27 = vpop.f32.mrf.mxu0  ;;  %4940 = vmatmul.msk.bf16.gmra.mxu1 %vm465_vm2, %v6557_v20 }
 0x25a   : > { %v4536_v34 = vsel %vm4407_vm1, %v4493_v45, 0.0  ;;  %v3325_v21 = vmul.u32 18, %v3324_v41  ;;  %v3346_v63 = vadd.s32 %v3344_v54, %v3338_v29  ;;  %v2666_v37 = vadd.f32 %v6576_v40, %v2297_v18  ;;  %5027 = vmatmul.msk.bf16.gmra.mxu2 %vm465_vm2, %v6564_v4  ;;  %v6669_v41 = vld [vmem:[%s5223_s25 + $0x90] sm:$0xff] }
 0x25b   : > { %v4537_v47 = vadd.f32 %v4536_v34, %v4535_v3  ;;  %v1937_v60 = vadd.f32 %v1862_v6, %v5640_v38  ;;  %vm3347_vm14 = vc.u32 %v3345_v12, %v3341_v56  ;;  %v6624_v10 = vor.u32 %v2471_v32, %v2468_v24  ;;  %v6634_v38 = vld [vmem:[%s5223_s25 + $0x80] sm:$0xff]  ;;  %5065 = vmatmul.msk.bf16.gmra.mxu0 %vm465_vm2, %v6594_v5 }
 0x25c   : > { %v3326_v53 = vsub.s32 %v6533_v15, %v3325_v21  ;;  %v3348_v13 = vsel %vm3347_vm14, 1, %v7302_v36  ;;  %v6627_v23 = vadd.s32 88, %v5900_v58  ;;  %v2902_v39 = vadd.f32 %v2825_v42, %v2666_v37 }
 0x25d   : > { %v3350_v40 = vadd.s32 %v3348_v13, %v3346_v63  ;;  %v1763_v3 = vrot.slane %v6634_v38, 2  ;;  %v2124_v15 = vrot.slane %v6572_v22, 2  ;;  %v2473_v20 = vsel %vm2330_vm5, %v6530_v19, %v6624_v10  ;;  %v2223_v25 = vpop.f32.mrf.mxu2 }
 0x25e   : > { %vm4092_vm0 = vcmp.ne.s32.totalorder %v3326_v53, 0  ;;  %vm4128_vm12 = vcmp.lt.s32.totalorder %v3326_v53, 0  ;;  %v4200_v57 = vadd.s32 18, %v3326_v53  ;;  %v2938_v61 = vpack.c.bf16 %v2902_v39, %v2902_v39  ;;  %5047 = vmatmul.msk.bf16.gmra.mxu3 %vm465_vm2, %v2473_v20 }
 0x25f   : > { %vm4164_vm3 = vmand %vm4128_vm12, %vm4092_vm0  ;;  %v3351_v4 = vadd.s32 %v3350_v40, %v3340_v52  ;;  %v3361_v49 = vand.u32 65535, %v6627_v23  ;;  %v3362_v42 = vshrl.u32 %v6627_v23, 16  ;;  %v6651_v5 = vsel %vm1733_vm6, %v1761_v0, %v1763_v3 }
 0x260   : > { %v4236_v55 = vsel %vm4164_vm3, %v4200_v57, %v3326_v53  ;;  %v6658_v19 = vsel %vm1733_vm6, %v2122_v43, %v2124_v15  ;;  %v2729_v28 = vrot.slane %v6572_v22, 3  ;;  %2975 = vst.msk [vmem:[%s6258_s14 + $0x24] sm:$0xf] %vm2965_vm15, %v2938_v61  ;;  %v2298_v8 = vadd.f32 %v2223_v25, %v1937_v60  ;;  %v1864_v1 = vpop.f32.mrf.mxu1 }
 0x261   : > { %vm4272_vm4 = vcmp.lt.s32.totalorder %v4236_v55, 16  ;;  %v3352_v29 = vadd.s32 %v3351_v4, %v3342_v59  ;;  %v3364_v24 = vmul.u32 14564, %v3361_v49  ;;  %v3365_v0 = vmul.u32 58254, %v3361_v49  ;;  %v2830_v56 = vpop.f32.mrf.mxu0 }
 0x262   : > { %v4380_v26 = vsel %vm4272_vm4, %v2902_v39, 0.0  ;;  %v6663_v62 = vmul.u32 14564, %v3362_v42  ;;  %v3367_v52 = vmul.u32 58254, %v3362_v42  ;;  %v2667_v43 = vadd.f32 %v6610_v33, %v2298_v8  ;;  %v2597_v39 = vpop.f32.mrf.mxu3 }
 0x263   : > { %v4425_v2 = vsel %vm4407_vm1, %v4380_v26, 0.0  ;;  %v4494_v30 = vmul.f32 %v4380_v26, %v4380_v26  ;;  %v3353_v17 = vshrl.u32 %v3352_v29, 4  ;;  %v1938_v45 = vadd.f32 %v1864_v1, %v5650_v31 }
 0x264   : > { %v4426_v51 = vadd.f32 %v4425_v2, %v4424_v14  ;;  %v3368_v16 = vshll.u32 %v3365_v0, 16  ;;  %v3369_v59 = vshrl.u32 %v3365_v0, 16  ;;  %v2903_v54 = vadd.f32 %v2828_v27, %v2667_v43 }
 0x265   : > { %v4538_v18 = vsel %vm4407_vm1, %v4494_v30, 0.0  ;;  %v3354_v12 = vmul.u32 18, %v3353_v17  ;;  %v3370_v34 = vshll.u32 %v6663_v62, 16  ;;  %v3371_v6 = vshrl.u32 %v6663_v62, 16  ;;  %v2225_v37 = vpop.f32.mrf.mxu2 }
 0x266   : > { %v4539_v21 = vadd.f32 %v4538_v18, %v4537_v47  ;;  %vm3372_vm8 = vc.u32 %v3364_v24, %v3368_v16  ;;  %v3374_v33 = vadd.s32 %v3368_v16, %v3364_v24  ;;  %v2939_v63 = vpack.c.bf16 %v2903_v54, %v2903_v54 }
 0x267   : > { %v3355_v14 = vsub.s32 %v6583_v11, %v3354_v12  ;;  %v3373_v31 = vsel %vm3372_vm8, 1, %v7302_v36  ;;  %v2730_v32 = vsel %vm2699_vm7, %v2727_v50, %v2729_v28  ;;  %v6682_v47 = vadd.s32 96, %v5900_v58 }
 0x268   : > { %v3375_v60 = vadd.s32 %v3373_v31, %v3367_v52  ;;  %vm3376_vm9 = vc.u32 %v3374_v33, %v3370_v34  ;;  %v2475_v27 = vshrl.u32 %v6669_v41, 16  ;;  %2976 = vst.msk [vmem:[%s6258_s14 + $0x28] sm:$0xf] %vm2965_vm15, %v2939_v63  ;;  %v2299_v53 = vadd.f32 %v2225_v37, %v1938_v45  ;;  %v1867_v48 = vpop.f32.mrf.mxu1  ;;  %v7366_v63 = vld [vmem:[#allocation10_spill] sm:$0xff] }
 0x269   : > { %vm4093_vm10 = vcmp.ne.s32.totalorder %v3355_v14, 0  ;;  %vm4129_vm11 = vcmp.lt.s32.totalorder %v3355_v14, 0  ;;  %v4201_v11 = vadd.s32 18, %v3355_v14  ;;  %v3377_v13 = vsel %vm3376_vm9, 1, %v7302_v36  ;;  %v2833_v42 = vpop.f32.mrf.mxu0  ;;  %4941 = vmatmul.msk.bf16.gmra.mxu1 %vm465_vm2, %v6651_v5 }
 0x26a   : > { %vm4165_vm13 = vmand %vm4129_vm11, %vm4093_vm10  ;;  %v3390_v50 = vand.u32 65535, %v6682_v47  ;;  %v3391_v40 = vshrl.u32 %v6682_v47, 16  ;;  %v2477_v57 = vrot.slane %v2475_v27, 2  ;;  %v2668_v61 = vadd.f32 %v2594_v7, %v2299_v53  ;;  %5028 = vmatmul.msk.bf16.gmra.mxu2 %vm465_vm2, %v6658_v19 }
 0x26b   : > { %v4237_v20 = vsel %vm4165_vm13, %v4201_v11, %v3355_v14  ;;  %v3379_v4 = vadd.s32 %v3377_v13, %v3375_v60  ;;  %v1939_v49 = vadd.f32 %v1867_v48, %v5659_v35  ;;  %5066 = vmatmul.msk.bf16.gmra.mxu0 %vm465_vm2, %v2730_v32  ;;  %v2478_v12 = vshll.u32 %v6669_v41, 16  ;;  %v2599_v32 = vpop.f32.mrf.mxu3  ;;  %v6721_v13 = vld [vmem:[%s5223_s25 + $0x88] sm:$0xff] }
 0x26c   : > { %vm4273_vm14 = vcmp.lt.s32.totalorder %v4237_v20, 16  ;;  %v3393_v55 = vmul.u32 14564, %v3390_v50  ;;  %v3394_v25 = vmul.u32 58254, %v3390_v50  ;;  %v3395_v8 = vmul.u32 14564, %v3391_v40 }
 0x26d   : > { %v4381_v29 = vsel %vm4273_vm14, %v2903_v54, 0.0  ;;  %v6691_v24 = vadd.f32 %v2830_v56, %v2668_v61  ;;  %v3380_v26 = vadd.s32 %v3379_v4, %v3369_v59  ;;  %v3396_v1 = vmul.u32 58254, %v3391_v40  ;;  %v2228_v17 = vpop.f32.mrf.mxu2 }
 0x26e   : > { %v4427_v7 = vsel %vm4407_vm1, %v4381_v29, 0.0  ;;  %v4495_v35 = vmul.f32 %v4381_v29, %v4381_v29  ;;  %v3397_v0 = vshll.u32 %v3394_v25, 16  ;;  %v3398_v62 = vshrl.u32 %v3394_v25, 16 }
 0x26f   : > { %v6699_v52 = vadd.f32 %v4427_v7, %v4426_v51  ;;  %v2940_v2 = vpack.c.bf16 %v6691_v24, %v6691_v24  ;;  %v3381_v30 = vadd.s32 %v3380_v26, %v3371_v6  ;;  %v3399_v43 = vshll.u32 %v3395_v8, 16 }
 0x270   : > { %v4540_v5 = vsel %vm4407_vm1, %v4495_v35, 0.0  ;;  %v3400_v19 = vshrl.u32 %v3395_v8, 16  ;;  %vm3401_vm0 = vc.u32 %v3393_v55, %v3397_v0  ;;  %v3403_v56 = vadd.s32 %v3397_v0, %v3393_v55  ;;  %v1869_v54 = vpop.f32.mrf.mxu1 }
 0x271   : > { %v6704_v45 = vadd.f32 %v4540_v5, %v4539_v21  ;;  %2977 = vst.msk [vmem:[%s6258_s14 + $0x2c] sm:$0xf] %vm2965_vm15, %v2940_v2  ;;  %v3382_v16 = vshrl.u32 %v3381_v30, 4  ;;  %v2300_v59 = vadd.f32 %v2228_v17, %v1939_v49  ;;  %v3402_v51 = vsel %vm3401_vm0, 1, %v7302_v36  ;;  %v2835_v40 = vpop.f32.mrf.mxu0 }
 0x272   : > { %v3404_v18 = vadd.s32 %v3402_v51, %v3396_v1  ;;  %vm3405_vm12 = vc.u32 %v3403_v56, %v3399_v43  ;;  %v6711_v34 = vadd.s32 104, %v5900_v58  ;;  %v1940_v14 = vadd.f32 %v1869_v54, %v7366_v63 }
 0x273   : > { %v3383_v6 = vmul.u32 18, %v3382_v16  ;;  %v2669_v33 = vadd.f32 %v2597_v39, %v2300_v59  ;;  %v3406_v21 = vsel %vm3405_vm12, 1, %v7302_v36  ;;  %v2480_v37 = vrot.slane %v2478_v12, 3  ;;  %v7367_v12 = vld [vmem:[#allocation11_spill] sm:$0xff] }
 0x274   : > { %v3408_v31 = vadd.s32 %v3406_v21, %v3404_v18  ;;  %v3419_v60 = vand.u32 65535, %v6711_v34  ;;  %v3420_v27 = vshrl.u32 %v6711_v34, 16  ;;  %v1765_v48 = vrot.slane %v6721_v13, 2  ;;  %v6746_v21 = vld [vmem:[%s5223_s25 + $0x98] sm:$0xff] }
 0x275   : > { %v3384_v11 = vsub.s32 %v6627_v23, %v3383_v6  ;;  %v6718_v53 = vadd.f32 %v2833_v42, %v2669_v33  ;;  %v2126_v39 = vrot.slane %v6669_v41, 2  ;;  %v6725_v20 = vor.u32 %v2480_v37, %v2477_v57  ;;  %v2230_v25 = vpop.f32.mrf.mxu2  ;;  %v2602_v33 = vpop.f32.mrf.mxu3 }
 0x276   : > { %v3409_v50 = vadd.s32 %v3408_v31, %v3398_v62  ;;  %v3422_v61 = vmul.u32 14564, %v3419_v60  ;;  %v3423_v4 = vmul.u32 58254, %v3419_v60  ;;  %v3424_v8 = vmul.u32 14564, %v3420_v27 }
 0x277   : > { %vm4094_vm3 = vcmp.ne.s32.totalorder %v3384_v11, 0  ;;  %vm4130_vm4 = vcmp.lt.s32.totalorder %v3384_v11, 0  ;;  %v4202_v49 = vadd.s32 18, %v3384_v11  ;;  %v2941_v23 = vpack.c.bf16 %v6718_v53, %v6718_v53 }
 0x278   : > { %vm4166_vm8 = vmand %vm4130_vm4, %vm4094_vm3  ;;  %v3410_v42 = vadd.s32 %v3409_v50, %v3400_v19  ;;  %v2482_v55 = vsel %vm2330_vm5, %v6624_v10, %v6725_v20  ;;  %v3425_v29 = vmul.u32 58254, %v3420_v27  ;;  %v2301_v57 = vadd.f32 %v2230_v25, %v1940_v14  ;;  %v1872_v2 = vpop.f32.mrf.mxu1 }
 0x279   : > { %v4238_v26 = vsel %vm4166_vm8, %v4202_v49, %v3384_v11  ;;  %2978 = vst.msk [vmem:[%s6258_s14 + $0x30] sm:$0xf] %vm2965_vm15, %v2941_v23  ;;  %5048 = vmatmul.msk.bf16.gmra.mxu3 %vm465_vm2, %v2482_v55  ;;  %v3426_v1 = vshll.u32 %v3423_v4, 16  ;;  %v3427_v7 = vshrl.u32 %v3423_v4, 16  ;;  %v3428_v0 = vshll.u32 %v3424_v8, 16 }
 0x27a   : > { %vm4274_vm9 = vcmp.lt.s32.totalorder %v4238_v26, 16  ;;  %v3411_v35 = vshrl.u32 %v3410_v42, 4  ;;  %v3429_v62 = vshrl.u32 %v3424_v8, 16  ;;  %v2670_v43 = vadd.f32 %v2599_v32, %v2301_v57  ;;  %v2838_v32 = vpop.f32.mrf.mxu0 }
 0x27b   : > { %v4382_v30 = vsel %vm4274_vm9, %v6691_v24, 0.0  ;;  %vm3430_vm10 = vc.u32 %v3422_v61, %v3426_v1  ;;  %v3432_v10 = vadd.s32 %v3426_v1, %v3422_v61  ;;  %v1941_v6 = vadd.f32 %v1872_v2, %v7367_v12 }
 0x27c   : > { %v4429_v5 = vsel %vm4407_vm1, %v4382_v30, 0.0  ;;  %v4496_v17 = vmul.f32 %v4382_v30, %v4382_v30  ;;  %v3412_v19 = vmul.u32 18, %v3411_v35  ;;  %v3431_v56 = vsel %vm3430_vm10, 1, %v7302_v36 }
 0x27d   : > { %v4430_v16 = vadd.f32 %v4429_v5, %v6699_v52  ;;  %v6739_v59 = vadd.f32 %v2835_v40, %v2670_v43  ;;  %v3433_v51 = vadd.s32 %v3431_v56, %v3425_v29  ;;  %vm3434_vm11 = vc.u32 %v3432_v10, %v3428_v0  ;;  %v2233_v37 = vpop.f32.mrf.mxu2  ;;  %v2604_v5 = vpop.f32.mrf.mxu3 }
 0x27e   : > { %v4542_v18 = vsel %vm4407_vm1, %v4496_v17, 0.0  ;;  %v3413_v24 = vsub.s32 %v6682_v47, %v3412_v19  ;;  %v3435_v54 = vsel %vm3434_vm11, 1, %v7302_v36  ;;  %v1766_v47 = vsel %vm1733_vm6, %v1763_v3, %v1765_v48 }
 0x27f   : > { %v4543_v63 = vadd.f32 %v4542_v18, %v6704_v45  ;;  %v2942_v52 = vpack.c.bf16 %v6739_v59, %v6739_v59  ;;  %v3437_v14 = vadd.s32 %v3435_v54, %v3433_v51  ;;  %4942 = vmatmul.msk.bf16.gmra.mxu1 %vm465_vm2, %v1766_v47  ;;  %v2127_v45 = vsel %vm1733_vm6, %v2124_v15, %v2126_v39 }
 0x280   : > { %vm4095_vm13 = vcmp.ne.s32.totalorder %v3413_v24, 0  ;;  %vm4131_vm14 = vcmp.lt.s32.totalorder %v3413_v24, 0  ;;  %v4203_v31 = vadd.s32 18, %v3413_v24  ;;  %5029 = vmatmul.msk.bf16.gmra.mxu2 %vm465_vm2, %v2127_v45  ;;  %v2731_v38 = vrot.slane %v6669_v41, 3  ;;  %v1874_v50 = vpop.f32.mrf.mxu1 }
 0x281   : > { %vm4167_vm0 = vmand %vm4131_vm14, %vm4095_vm13  ;;  %2979 = vst.msk [vmem:[%s6258_s14 + $0x34] sm:$0xf] %vm2965_vm15, %v2942_v52  ;;  %v3438_v60 = vadd.s32 %v3437_v14, %v3427_v7  ;;  %v2302_v3 = vadd.f32 %v2233_v37, %v1941_v6  ;;  %v6767_v27 = vadd.s32 112, %v5900_v58  ;;  %v2484_v40 = vshrl.u32 %v6746_v21, 16 }
 0x282   : > { %v4239_v11 = vsel %vm4167_vm0, %v4203_v31, %v3413_v24  ;;  %v2487_v61 = vshll.u32 %v6746_v21, 16  ;;  %v6772_v15 = vadd.s32 120, %v5900_v58  ;;  %v2732_v49 = vsel %vm2699_vm7, %v2729_v28, %v2731_v38  ;;  %v2840_v24 = vpop.f32.mrf.mxu0 }
 0x283   : > { %vm4275_vm12 = vcmp.lt.s32.totalorder %v4239_v11, 16  ;;  %v3439_v4 = vadd.s32 %v3438_v60, %v3429_v62  ;;  %v2671_v23 = vadd.f32 %v2602_v33, %v2302_v3  ;;  %5067 = vmatmul.msk.bf16.gmra.mxu0 %vm465_vm2, %v2732_v49  ;;  %v3448_v55 = vand.u32 65535, %v6767_v27 }
 0x284   : > { %v4383_v42 = vsel %vm4275_vm12, %v6718_v53, 0.0  ;;  %v3449_v25 = vshrl.u32 %v6767_v27, 16  ;;  %v1942_v8 = vadd.f32 %v1874_v50, %v5715_v44  ;;  %v2489_v51 = vrot.slane %v2487_v61, 3 }
 0x285   : > { %v4431_v29 = vsel %vm4407_vm1, %v4383_v42, 0.0  ;;  %v4497_v26 = vmul.f32 %v4383_v42, %v4383_v42  ;;  %v3440_v57 = vshrl.u32 %v3439_v4, 4  ;;  %v6785_v1 = vadd.f32 %v2838_v32, %v2671_v23  ;;  %v2235_v17 = vpop.f32.mrf.mxu2 }
 0x286   : > { %v4432_v22 = vadd.f32 %v4431_v29, %v4430_v16  ;;  %v3451_v28 = vmul.u32 14564, %v3448_v55  ;;  %v3452_v7 = vmul.u32 58254, %v3448_v55  ;;  %v3453_v35 = vmul.u32 14564, %v3449_v25 }
 0x287   : > { %v4544_v53 = vsel %vm4407_vm1, %v4497_v26, 0.0  ;;  %v3441_v0 = vmul.u32 18, %v3440_v57  ;;  %v2943_v62 = vpack.c.bf16 %v6785_v1, %v6785_v1  ;;  %v3454_v2 = vmul.u32 58254, %v3449_v25 }
 0x288   : > { %v4545_v30 = vadd.f32 %v4544_v53, %v4543_v63  ;;  %v3455_v44 = vshll.u32 %v3452_v7, 16  ;;  %v3456_v43 = vshrl.u32 %v3452_v7, 16  ;;  %v3457_v10 = vshll.u32 %v3453_v35, 16  ;;  %v1877_v6 = vpop.f32.mrf.mxu1  ;;  %v2607_v7 = vpop.f32.mrf.mxu3 }
 0x289   : > { %v3442_v19 = vsub.s32 %v6711_v34, %v3441_v0  ;;  %2980 = vst.msk [vmem:[%s6258_s14 + $0x38] sm:$0xf] %vm2965_vm15, %v2943_v62  ;;  %v3458_v56 = vshrl.u32 %v3453_v35, 16  ;;  %v2486_v16 = vrot.slane %v2484_v40, 2  ;;  %v2303_v54 = vadd.f32 %v2235_v17, %v1942_v8  ;;  %v6818_v0 = vld [vmem:[%s5223_s25 + $0x90] sm:$0xff] }
 0x28a   : > { %vm3459_vm3 = vc.u32 %v3451_v28, %v3455_v44  ;;  %v3461_v18 = vadd.s32 %v3455_v44, %v3451_v28  ;;  %v3477_v12 = vand.u32 65535, %v6772_v15  ;;  %v3478_v32 = vshrl.u32 %v6772_v15, 16 }
 0x28b   : > { %vm4096_vm4 = vcmp.ne.s32.totalorder %v3442_v19, 0  ;;  %vm4132_vm8 = vcmp.lt.s32.totalorder %v3442_v19, 0  ;;  %v4204_v33 = vadd.s32 18, %v3442_v19  ;;  %v3460_v63 = vsel %vm3459_vm3, 1, %v7302_v36 }
 0x28c   : > { %vm4168_vm9 = vmand %vm4132_vm8, %vm4096_vm4  ;;  %v3462_v52 = vadd.s32 %v3460_v63, %v3454_v2  ;;  %vm3463_vm10 = vc.u32 %v3461_v18, %v3457_v10  ;;  %v6795_v34 = vor.u32 %v2489_v51, %v2486_v16  ;;  %v2672_v14 = vadd.f32 %v2604_v5, %v2303_v54 }
 0x28d   : > { %v4240_v47 = vsel %vm4168_vm9, %v4204_v33, %v3442_v19  ;;  %v3464_v31 = vsel %vm3463_vm10, 1, %v7302_v36  ;;  %v3480_v45 = vmul.u32 14564, %v3477_v12  ;;  %v3481_v50 = vmul.u32 58254, %v3477_v12  ;;  %v2238_v55 = vpop.f32.mrf.mxu2  ;;  %v2324_v19 = vld [vmem:[%s5223_s25 + $0xa0] sm:$0x7] }
 0x28e   : > { %vm4276_vm11 = vcmp.lt.s32.totalorder %v4240_v47, 16  ;;  %v3466_v37 = vadd.s32 %v3464_v31, %v3462_v52  ;;  %v2491_v60 = vsel %vm2330_vm5, %v6725_v20, %v6795_v34  ;;  %v6802_v3 = vadd.f32 %v2840_v24, %v2672_v14 }
 0x28f   : > { %v4384_v11 = vsel %vm4276_vm11, %v6739_v59, 0.0  ;;  %5049 = vmatmul.msk.bf16.gmra.mxu3 %vm465_vm2, %v2491_v60  ;;  %v3482_v40 = vmul.u32 14564, %v3478_v32  ;;  %v3483_v61 = vmul.u32 58254, %v3478_v32  ;;  %v3484_v25 = vshll.u32 %v3481_v50, 16 }
 0x290   : > { %v4433_v4 = vsel %vm4407_vm1, %v4384_v11, 0.0  ;;  %v4498_v49 = vmul.f32 %v4384_v11, %v4384_v11  ;;  %v3467_v23 = vadd.s32 %v3466_v37, %v3456_v43  ;;  %v2944_v42 = vpack.c.bf16 %v6802_v3, %v6802_v3  ;;  %v1879_v35 = vpop.f32.mrf.mxu1  ;;  %v2843_v43 = vpop.f32.mrf.mxu0 }
 0x291   : > { %v6809_v20 = vadd.f32 %v4433_v4, %v4432_v22  ;;  %v3485_v8 = vshrl.u32 %v3481_v50, 16  ;;  %v3486_v59 = vshll.u32 %v3482_v40, 16  ;;  %v3487_v57 = vshrl.u32 %v3482_v40, 16  ;;  %v2609_v40 = vpop.f32.mrf.mxu3 }
 0x292   : > { %v4546_v29 = vsel %vm4407_vm1, %v4498_v49, 0.0  ;;  %v3468_v26 = vadd.s32 %v3467_v23, %v3458_v56  ;;  %2981 = vst.msk [vmem:[%s6258_s14 + $0x3c] sm:$0xf] %vm2965_vm15, %v2944_v42  ;;  %v1943_v28 = vadd.f32 %v1877_v6, %v5729_v9  ;;  %vm3488_vm13 = vc.u32 %v3480_v45, %v3484_v25  ;;  %v6831_v56 = vld [vmem:[%s5223_s25 + $0xa0] sm:$0x3] }
 0x293   : > { %v6815_v53 = vadd.f32 %v4546_v29, %v4545_v30  ;;  %v3490_v22 = vadd.s32 %v3484_v25, %v3480_v45  ;;  %v1767_v62 = vrot.slane %v6818_v0, 2  ;;  %v3489_v44 = vsel %vm3488_vm13, 1, %v7302_v36 }
 0x294   : > { %v3469_v2 = vshrl.u32 %v3468_v26, 4  ;;  %v2128_v10 = vrot.slane %v6746_v21, 2  ;;  %v2733_v9 = vrot.slane %v6746_v21, 3  ;;  %v3491_v5 = vadd.s32 %v3489_v44, %v3483_v61 }
 0x295   : > { %vm3492_vm14 = vc.u32 %v3490_v22, %v3486_v59  ;;  %v1768_v30 = vsel %vm1733_vm6, %v1765_v48, %v1767_v62  ;;  %v2304_v17 = vadd.f32 %v2238_v55, %v1943_v28  ;;  %v6848_v54 = vadd.s32 128, %v5900_v58  ;;  %v2240_v33 = vpop.f32.mrf.mxu2 }
 0x296   : > { %v3470_v16 = vmul.u32 18, %v3469_v2  ;;  %v3493_v51 = vsel %vm3492_vm14, 1, %v7302_v36  ;;  %4943 = vmatmul.msk.bf16.gmra.mxu1 %vm465_vm2, %v1768_v30  ;;  %v2129_v18 = vsel %vm1733_vm6, %v2126_v39, %v2128_v10  ;;  %v2734_v13 = vsel %vm2699_vm7, %v2731_v38, %v2733_v9 }
 0x297   : > { %v3495_v48 = vadd.s32 %v3493_v51, %v3491_v5  ;;  %5030 = vmatmul.msk.bf16.gmra.mxu2 %vm465_vm2, %v2129_v18  ;;  %5068 = vmatmul.msk.bf16.gmra.mxu0 %vm465_vm2, %v2734_v13  ;;  %v2673_v24 = vadd.f32 %v2607_v7, %v2304_v17  ;;  %v1944_v12 = vadd.f32 %v1879_v35, %v5745_v46  ;;  %v2328_v39 = vunpack.c.l.b16 %v2324_v19 }
 0x298   : > { %v3471_v6 = vsub.s32 %v6767_v27, %v3470_v16  ;;  %v6853_v63 = vadd.s32 136, %v5900_v58  ;;  %v2075_v41 = vunpack.c.l.b16 %v6831_v56  ;;  %v3506_v14 = vand.u32 65535, %v6848_v54  ;;  %v1882_v4 = vpop.f32.mrf.mxu1  ;;  %v2845_v59 = vpop.f32.mrf.mxu0 }
 0x299   : > { %v3496_v38 = vadd.s32 %v3495_v48, %v3485_v8  ;;  %v6856_v52 = vadd.f32 %v2843_v43, %v2673_v24  ;;  %v3507_v47 = vshrl.u32 %v6848_v54, 16  ;;  %v6860_v31 = vpack.c.b16 %v2328_v39, %v2328_v39 }
 0x29a   : > { %vm4097_vm0 = vcmp.ne.s32.totalorder %v3471_v6, 0  ;;  %vm4133_vm12 = vcmp.lt.s32.totalorder %v3471_v6, 0  ;;  %v4205_v46 = vadd.s32 18, %v3471_v6  ;;  %v3509_v45 = vmul.u32 14564, %v3506_v14 }
 0x29b   : > { %vm4169_vm3 = vmand %vm4133_vm12, %vm4097_vm0  ;;  %v3497_v27 = vadd.s32 %v3496_v38, %v3487_v57  ;;  %v2945_v32 = vpack.c.bf16 %v6856_v52, %v6856_v52  ;;  %v3510_v37 = vmul.u32 58254, %v3506_v14  ;;  %v3511_v11 = vmul.u32 14564, %v3507_v47 }
 0x29c   : > { %v4241_v60 = vsel %vm4169_vm3, %v4205_v46, %v3471_v6  ;;  %v3512_v50 = vmul.u32 58254, %v3507_v47  ;;  %v2493_v61 = vshrl.u32 %v6860_v31, 16  ;;  %v2496_v2 = vshll.u32 %v6860_v31, 16  ;;  %v2612_v47 = vpop.f32.mrf.mxu3 }
 0x29d   : > { %vm4277_vm4 = vcmp.lt.s32.totalorder %v4241_v60, 16  ;;  %v3498_v49 = vshrl.u32 %v3497_v27, 4  ;;  %2982 = vst.msk [vmem:[%s6258_s14 + $0x40] sm:$0xf] %vm2965_vm15, %v2945_v32  ;;  %v3513_v23 = vshll.u32 %v3510_v37, 16  ;;  %v3514_v42 = vshrl.u32 %v3510_v37, 16  ;;  %v2243_v16 = vpop.f32.mrf.mxu2 }
 0x29e   : > { %v4385_v55 = vsel %vm4277_vm4, %v6785_v1, 0.0  ;;  %v3515_v25 = vshll.u32 %v3511_v11, 16  ;;  %v3516_v8 = vshrl.u32 %v3511_v11, 16  ;;  %v2495_v29 = vrot.slane %v2493_v61, 2 }
 0x29f   : > { %v4435_v26 = vsel %vm4407_vm1, %v4385_v55, 0.0  ;;  %v4499_v57 = vmul.f32 %v4385_v55, %v4385_v55  ;;  %v3499_v28 = vmul.u32 18, %v3498_v49  ;;  %vm3517_vm8 = vc.u32 %v3509_v45, %v3513_v23 }
 0x2a0   : > { %v4436_v7 = vadd.f32 %v4435_v26, %v6809_v20  ;;  %v3518_v35 = vsel %vm3517_vm8, 1, %v7302_v36  ;;  %v3519_v22 = vadd.s32 %v3513_v23, %v3509_v45  ;;  %v2305_v5 = vadd.f32 %v2240_v33, %v1944_v12  ;;  %v1884_v46 = vpop.f32.mrf.mxu1 }
 0x2a1   : > { %v4548_v44 = vsel %vm4407_vm1, %v4499_v57, 0.0  ;;  %v3500_v1 = vsub.s32 %v6772_v15, %v3499_v28  ;;  %v3520_v43 = vadd.s32 %v3518_v35, %v3512_v50  ;;  %v2498_v17 = vrot.slane %v2496_v2, 3 }
 0x2a2   : > { %v4549_v30 = vadd.f32 %v4548_v44, %v6815_v53  ;;  %vm3521_vm9 = vc.u32 %v3519_v22, %v3515_v25  ;;  %v3535_v19 = vand.u32 65535, %v6853_v63  ;;  %v2674_v48 = vadd.f32 %v2609_v40, %v2305_v5  ;;  %v7368_v53 = vld [vmem:[#allocation13_spill] sm:$0xff] }
 0x2a3   : > { %vm4098_vm10 = vcmp.ne.s32.totalorder %v3500_v1, 0  ;;  %vm4134_vm11 = vcmp.lt.s32.totalorder %v3500_v1, 0  ;;  %v4206_v20 = vadd.s32 18, %v3500_v1  ;;  %v3522_v51 = vsel %vm3521_vm9, 1, %v7302_v36 }
 0x2a4   : > { %vm4170_vm13 = vmand %vm4134_vm11, %vm4098_vm10  ;;  %v3524_v18 = vadd.s32 %v3522_v51, %v3520_v43  ;;  %v2499_v13 = vor.u32 %v2498_v17, %v2495_v29  ;;  %v3536_v15 = vshrl.u32 %v6853_v63, 16  ;;  %v3538_v12 = vmul.u32 14564, %v3535_v19  ;;  %v7369_v29 = vld [vmem:[#allocation12_spill] sm:$0xff] }
 0x2a5   : > { %v4242_v24 = vsel %vm4170_vm13, %v4206_v20, %v3500_v1  ;;  %v3539_v6 = vmul.u32 58254, %v3535_v19  ;;  %v1945_v39 = vadd.f32 %v1882_v4, %v7368_v53  ;;  %v6881_v14 = vadd.f32 %v2845_v59, %v2674_v48  ;;  %v2245_v35 = vpop.f32.mrf.mxu2 }
 0x2a6   : > { %vm4278_vm14 = vcmp.lt.s32.totalorder %v4242_v24, 16  ;;  %v3525_v33 = vadd.s32 %v3524_v18, %v3514_v42  ;;  %v2500_v38 = vsel %vm2330_vm5, %v6795_v34, %v2499_v13  ;;  %v3540_v32 = vmul.u32 14564, %v3536_v15  ;;  %v2848_v34 = vpop.f32.mrf.mxu0 }
 0x2a7   : > { %v4386_v27 = vsel %vm4278_vm14, %v6802_v3, 0.0  ;;  %5050 = vmatmul.msk.bf16.gmra.mxu3 %vm465_vm2, %v2500_v38  ;;  %v3541_v45 = vmul.u32 58254, %v3536_v15  ;;  %v3542_v37 = vshll.u32 %v3539_v6, 16  ;;  %v2946_v40 = vpack.c.bf16 %v6881_v14, %v6881_v14 }
 0x2a8   : > { %v4437_v60 = vsel %vm4407_vm1, %v4386_v27, 0.0  ;;  %v4500_v11 = vmul.f32 %v4386_v27, %v4386_v27  ;;  %v3526_v50 = vadd.s32 %v3525_v33, %v3516_v8  ;;  %v3543_v4 = vshrl.u32 %v3539_v6, 16 }
 0x2a9   : > { %v4438_v61 = vadd.f32 %v4437_v60, %v4436_v7  ;;  %v3544_v49 = vshll.u32 %v3540_v32, 16  ;;  %v3545_v23 = vshrl.u32 %v3540_v32, 16  ;;  %2983 = vst.msk [vmem:[%s6258_s14 + $0x44] sm:$0xf] %vm2965_vm15, %v2946_v40  ;;  %vm3546_vm5 = vc.u32 %v3538_v12, %v3542_v37 }
 0x2aa   : > { %v4550_v3 = vsel %vm4407_vm1, %v4500_v11, 0.0  ;;  %v3527_v42 = vshrl.u32 %v3526_v50, 4  ;;  %v3548_v55 = vadd.s32 %v3542_v37, %v3538_v12  ;;  %v3547_v59 = vsel %vm3546_vm5, 1, %v7302_v36 }
 0x2ab   : > { %v4551_v25 = vadd.f32 %v4550_v3, %v4549_v30  ;;  %v1769_v8 = vrot.slane %v7369_v29, 2  ;;  %v2094_v26 = vpack.c.b16 %v2075_v41, %v2075_v41  ;;  %v3549_v28 = vadd.s32 %v3547_v59, %v3541_v45 }
 0x2ac   : > { %v3528_v57 = vmul.u32 18, %v3527_v42  ;;  %vm3550_vm0 = vc.u32 %v3548_v55, %v3544_v49  ;;  %v2735_v7 = vrot.slane %v6860_v31, 3  ;;  %v2306_v1 = vadd.f32 %v2243_v16, %v1945_v39  ;;  %v6909_v31 = vpop.f32.mrf.mxu1  ;;  %v2614_v16 = vpop.f32.mrf.mxu3 }
 0x2ad   : > { %v3551_v22 = vsel %vm3550_vm0, 1, %v7302_v36  ;;  %v1770_v2 = vsel %vm1733_vm6, %v1767_v62, %v1769_v8  ;;  %v2130_v44 = vrot.slane %v2094_v26, 2  ;;  %v6907_v41 = vadd.s32 144, %v5900_v58  ;;  %v2248_v40 = vpop.f32.mrf.mxu2 }
 0x2ae   : > { %v3529_v43 = vsub.s32 %v6848_v54, %v3528_v57  ;;  %v3553_v5 = vadd.s32 %v3551_v22, %v3549_v28  ;;  %4944 = vmatmul.msk.bf16.gmra.mxu1 %vm465_vm2, %v1770_v2  ;;  %v2736_v56 = vsel %vm2699_vm7, %v2733_v9, %v2735_v7  ;;  %v2675_v62 = vadd.f32 %v2612_v47, %v2306_v1  ;;  %v7370_v54 = vld [vmem:[#allocation14_spill] sm:$0xff]  ;;  %v2850_v48 = vpop.f32.mrf.mxu0 }
 0x2af   : > { %v2131_v0 = vsel %vm1733_vm6, %v2128_v10, %v2130_v44  ;;  %5069 = vmatmul.msk.bf16.gmra.mxu0 %vm465_vm2, %v2736_v56  ;;  %v1946_v30 = vadd.f32 %v1884_v46, %v7370_v54  ;;  %v6917_v17 = vadd.s32 152, %v5900_v58  ;;  %v3564_v21 = vand.u32 65535, %v6907_v41  ;;  %v7371_v44 = vld [vmem:[#allocation15_spill] sm:$0xff] }
 0x2b0   : > { %vm4099_vm12 = vcmp.ne.s32.totalorder %v3529_v43, 0  ;;  %vm4135_vm3 = vcmp.lt.s32.totalorder %v3529_v43, 0  ;;  %v4207_v9 = vadd.s32 18, %v3529_v43  ;;  %v3554_v19 = vadd.s32 %v3553_v5, %v3543_v4  ;;  %5031 = vmatmul.msk.bf16.gmra.mxu2 %vm465_vm2, %v2131_v0 }
 0x2b1   : > { %vm4171_vm7 = vmand %vm4135_vm3, %vm4099_vm12  ;;  %v6920_v20 = vadd.f32 %v2848_v34, %v2675_v62  ;;  %v3565_v10 = vshrl.u32 %v6907_v41, 16  ;;  %v2307_v51 = vadd.f32 %v2245_v35, %v1946_v30  ;;  %v3593_v15 = vand.u32 65535, %v6917_v17 }
 0x2b2   : > { %v4243_v18 = vsel %vm4171_vm7, %v4207_v9, %v3529_v43  ;;  %v3555_v13 = vadd.s32 %v3554_v19, %v3545_v23  ;;  %v3594_v24 = vshrl.u32 %v6917_v17, 16  ;;  %v3567_v6 = vmul.u32 14564, %v3564_v21 }
 0x2b3   : > { %vm4279_vm6 = vcmp.lt.s32.totalorder %v4243_v18, 16  ;;  %v2947_v12 = vpack.c.bf16 %v6920_v20, %v6920_v20  ;;  %v3568_v53 = vmul.u32 58254, %v3564_v21  ;;  %v3569_v38 = vmul.u32 14564, %v3565_v10 }
 0x2b4   : > { %v4387_v39 = vsel %vm4279_vm6, %v6856_v52, 0.0  ;;  %v3556_v33 = vshrl.u32 %v3555_v13, 4  ;;  %v3570_v47 = vmul.u32 58254, %v3565_v10  ;;  %v2676_v52 = vadd.f32 %v2614_v16, %v2307_v51  ;;  %v1889_v55 = vpop.f32.mrf.mxu1  ;;  %v2617_v57 = vpop.f32.mrf.mxu3 }
 0x2b5   : > { %v4439_v46 = vsel %vm4407_vm1, %v4387_v39, 0.0  ;;  %v4501_v27 = vmul.f32 %v4387_v39, %v4387_v39  ;;  %2984 = vst.msk [vmem:[%s6258_s14 + $0x48] sm:$0xf] %vm2965_vm15, %v2947_v12  ;;  %v3571_v32 = vshll.u32 %v3568_v53, 16  ;;  %v3572_v45 = vshrl.u32 %v3568_v53, 16  ;;  %v2250_v18 = vpop.f32.mrf.mxu2  ;;  %v7372_v39 = vld [vmem:[#allocation16_spill] sm:$0xff] }
 0x2b6   : > { %v4440_v37 = vadd.f32 %v4439_v46, %v4438_v61  ;;  %v3557_v60 = vmul.u32 18, %v3556_v33  ;;  %v3573_v11 = vshll.u32 %v3569_v38, 16  ;;  %v3574_v50 = vshrl.u32 %v3569_v38, 16  ;;  %v2853_v43 = vpop.f32.mrf.mxu0 }
 0x2b7   : > { %v4552_v34 = vsel %vm4407_vm1, %v4501_v27, 0.0  ;;  %vm3575_vm2 = vc.u32 %v3567_v6, %v3571_v32  ;;  %v3577_v4 = vadd.s32 %v3571_v32, %v3567_v6  ;;  %v3596_v42 = vmul.u32 14564, %v3593_v15 }
 0x2b8   : > { %v4553_v49 = vadd.f32 %v4552_v34, %v4551_v25  ;;  %v3558_v23 = vsub.s32 %v6853_v63, %v3557_v60  ;;  %v3576_v3 = vsel %vm3575_vm2, 1, %v7302_v36  ;;  %v6935_v29 = vadd.f32 %v2850_v48, %v2676_v52 }
 0x2b9   : > { %v3578_v59 = vadd.s32 %v3576_v3, %v3570_v47  ;;  %vm3579_vm4 = vc.u32 %v3577_v4, %v3573_v11  ;;  %v3597_v61 = vmul.u32 58254, %v3593_v15  ;;  %v3598_v28 = vmul.u32 14564, %v3594_v24  ;;  %v7373_v11 = vld [vmem:[#allocation17_spill] sm:$0xff] }
 0x2ba   : > { %vm4100_vm8 = vcmp.ne.s32.totalorder %v3558_v23, 0  ;;  %vm4136_vm9 = vcmp.lt.s32.totalorder %v3558_v23, 0  ;;  %v4208_v8 = vadd.s32 18, %v3558_v23  ;;  %v3580_v26 = vsel %vm3579_vm4, 1, %v7302_v36 }
 0x2bb   : > { %vm4172_vm10 = vmand %vm4136_vm9, %vm4100_vm8  ;;  %v3582_v25 = vadd.s32 %v3580_v26, %v3578_v59  ;;  %v2948_v63 = vpack.c.bf16 %v6935_v29, %v6935_v29  ;;  %v3599_v7 = vmul.u32 58254, %v3594_v24  ;;  %v3600_v22 = vshll.u32 %v3597_v61, 16 }
 0x2bc   : > { %v4244_v35 = vsel %vm4172_vm10, %v4208_v8, %v3558_v23  ;;  %v3601_v2 = vshrl.u32 %v3597_v61, 16  ;;  %v1947_v1 = vadd.f32 %v6909_v31, %v7371_v44  ;;  %v3602_v56 = vshll.u32 %v3598_v28, 16  ;;  %v1892_v24 = vpop.f32.mrf.mxu1 }
 0x2bd   : > { %vm4280_vm11 = vcmp.lt.s32.totalorder %v4244_v35, 16  ;;  %v3583_v5 = vadd.s32 %v3582_v25, %v3572_v45  ;;  %2985 = vst.msk [vmem:[%s6258_s14 + $0x4c] sm:$0xf] %vm2965_vm15, %v2948_v63  ;;  %v3603_v0 = vshrl.u32 %v3598_v28, 16  ;;  %vm3604_vm13 = vc.u32 %v3596_v42, %v3600_v22 }
 0x2be   : > { %v4388_v62 = vsel %vm4280_vm11, %v6881_v14, 0.0  ;;  %v3606_v54 = vadd.s32 %v3600_v22, %v3596_v42  ;;  %v2308_v30 = vadd.f32 %v2248_v40, %v1947_v1  ;;  %v3605_v21 = vsel %vm3604_vm13, 1, %v7302_v36  ;;  %v2855_v3 = vpop.f32.mrf.mxu0 }
 0x2bf   : > { %v4441_v9 = vsel %vm4407_vm1, %v4388_v62, 0.0  ;;  %v4502_v19 = vmul.f32 %v4388_v62, %v4388_v62  ;;  %v3584_v16 = vadd.s32 %v3583_v5, %v3574_v50  ;;  %v3607_v31 = vadd.s32 %v3605_v21, %v3599_v7 }
 0x2c0   : > { %v4442_v10 = vadd.f32 %v4441_v9, %v4440_v37  ;;  %vm3608_vm14 = vc.u32 %v3606_v54, %v3602_v56  ;;  %v2677_v51 = vadd.f32 %v2617_v57, %v2308_v30  ;;  %v6950_v14 = vadd.s32 160, %v5900_v58  ;;  %v2619_v37 = vpop.f32.mrf.mxu3 }
 0x2c1   : > { %v4554_v13 = vsel %vm4407_vm1, %v4502_v19, 0.0  ;;  %v3585_v48 = vshrl.u32 %v3584_v16, 4  ;;  %v3609_v15 = vsel %vm3608_vm14, 1, %v7302_v36  ;;  %v1948_v33 = vadd.f32 %v1889_v55, %v7372_v39 }
 0x2c2   : > { %v4555_v12 = vadd.f32 %v4554_v13, %v4553_v49  ;;  %v3611_v6 = vadd.s32 %v3609_v15, %v3607_v31  ;;  %v6952_v53 = vadd.f32 %v2853_v43, %v2677_v51  ;;  %v3622_v47 = vand.u32 65535, %v6950_v14 }
 0x2c3   : > { %v3586_v38 = vmul.u32 18, %v3585_v48  ;;  %v3623_v46 = vshrl.u32 %v6950_v14, 16  ;;  %v6958_v27 = vadd.s32 168, %v5900_v58  ;;  %v2309_v60 = vadd.f32 %v2250_v18, %v1948_v33 }
 0x2c4   : > { %v3612_v32 = vadd.s32 %v3611_v6, %v3601_v2  ;;  %v2949_v45 = vpack.c.bf16 %v6952_v53, %v6952_v53  ;;  %v1949_v50 = vadd.f32 %v1892_v24, %v7373_v11  ;;  %v3625_v34 = vmul.u32 14564, %v3622_v47  ;;  %v2253_v2 = vpop.f32.mrf.mxu2  ;;  %v1894_v31 = vpop.f32.mrf.mxu1 }
 0x2c5   : > { %v3587_v40 = vsub.s32 %v6907_v41, %v3586_v38  ;;  %v3626_v4 = vmul.u32 58254, %v3622_v47  ;;  %v3627_v52 = vmul.u32 14564, %v3623_v46  ;;  %v3628_v23 = vmul.u32 58254, %v3623_v46 }
 0x2c6   : > { %v3613_v49 = vadd.s32 %v3612_v32, %v3603_v0  ;;  %2986 = vst.msk [vmem:[%s6258_s14 + $0x50] sm:$0xf] %vm2965_vm15, %v2949_v45  ;;  %v2678_v42 = vadd.f32 %v2619_v37, %v2309_v60  ;;  %v3651_v55 = vand.u32 65535, %v6958_v27  ;;  %v3652_v22 = vshrl.u32 %v6958_v27, 16  ;;  %v2858_v24 = vpop.f32.mrf.mxu0 }
 0x2c7   : > { %vm4101_vm5 = vcmp.ne.s32.totalorder %v3587_v40, 0  ;;  %vm4137_vm0 = vcmp.lt.s32.totalorder %v3587_v40, 0  ;;  %v4209_v59 = vadd.s32 18, %v3587_v40  ;;  %v3629_v61 = vshll.u32 %v3626_v4, 16 }
 0x2c8   : > { %vm4173_vm12 = vmand %vm4137_vm0, %vm4101_vm5  ;;  %v3614_v8 = vshrl.u32 %v3613_v49, 4  ;;  %v3630_v26 = vshrl.u32 %v3626_v4, 16  ;;  %v3631_v57 = vshll.u32 %v3627_v52, 16  ;;  %v3632_v41 = vshrl.u32 %v3627_v52, 16  ;;  %v2622_v21 = vpop.f32.mrf.mxu3 }
 0x2c9   : > { %v4245_v25 = vsel %vm4173_vm12, %v4209_v59, %v3587_v40  ;;  %vm3633_vm3 = vc.u32 %v3625_v34, %v3629_v61  ;;  %v3635_v63 = vadd.s32 %v3629_v61, %v3625_v34  ;;  %v6967_v28 = vadd.f32 %v2855_v3, %v2678_v42 }
 0x2ca   : > { %vm4281_vm7 = vcmp.lt.s32.totalorder %v4245_v25, 16  ;;  %v3615_v7 = vmul.u32 18, %v3614_v8  ;;  %v3634_v35 = vsel %vm3633_vm3, 1, %v7302_v36  ;;  %v3654_v9 = vmul.u32 14564, %v3651_v55 }
 0x2cb   : > { %v4389_v44 = vsel %vm4281_vm7, %v6920_v20, 0.0  ;;  %v3636_v1 = vadd.s32 %v3634_v35, %v3628_v23  ;;  %vm3637_vm6 = vc.u32 %v3635_v63, %v3631_v57  ;;  %v2950_v43 = vpack.c.bf16 %v6967_v28, %v6967_v28  ;;  %v7375_v35 = vld [vmem:[#allocation19_spill] sm:$0xff] }
 0x2cc   : > { %v4443_v5 = vsel %vm4407_vm1, %v4389_v44, 0.0  ;;  %v4503_v56 = vmul.f32 %v4389_v44, %v4389_v44  ;;  %v3616_v0 = vsub.s32 %v6917_v17, %v3615_v7  ;;  %v3638_v62 = vsel %vm3637_vm6, 1, %v7302_v36  ;;  %v1897_v61 = vpop.f32.mrf.mxu1 }
 0x2cd   : > { %v4444_v54 = vadd.f32 %v4443_v5, %v4442_v10  ;;  %v3640_v30 = vadd.s32 %v3638_v62, %v3636_v1  ;;  %2987 = vst.msk [vmem:[%s6258_s14 + $0x54] sm:$0xf] %vm2965_vm15, %v2950_v43  ;;  %v3655_v19 = vmul.u32 58254, %v3651_v55  ;;  %v3656_v13 = vmul.u32 14564, %v3652_v22  ;;  %v7374_v55 = vld [vmem:[#allocation18_spill] sm:$0xff] }
 0x2ce   : > { %v4556_v20 = vsel %vm4407_vm1, %v4503_v56, 0.0  ;;  %vm4102_vm2 = vcmp.ne.s32.totalorder %v3616_v0, 0  ;;  %vm4138_vm4 = vcmp.lt.s32.totalorder %v3616_v0, 0  ;;  %v4210_v16 = vadd.s32 18, %v3616_v0 }
 0x2cf   : > { %v4557_v51 = vadd.f32 %v4556_v20, %v4555_v12  ;;  %vm4174_vm8 = vmand %vm4138_vm4, %vm4102_vm2  ;;  %v3641_v18 = vadd.s32 %v3640_v30, %v3630_v26  ;;  %v3657_v17 = vmul.u32 58254, %v3652_v22  ;;  %v3658_v15 = vshll.u32 %v3655_v19, 16 }
 0x2d0   : > { %v4246_v48 = vsel %vm4174_vm8, %v4210_v16, %v3616_v0  ;;  %v3659_v10 = vshrl.u32 %v3655_v19, 16  ;;  %v2310_v6 = vadd.f32 %v2253_v2, %v1949_v50  ;;  %v3660_v33 = vshll.u32 %v3656_v13, 16  ;;  %v2255_v50 = vpop.f32.mrf.mxu2  ;;  %v2624_v63 = vpop.f32.mrf.mxu3 }
 0x2d1   : > { %vm4282_vm9 = vcmp.lt.s32.totalorder %v4246_v48, 16  ;;  %v3642_v39 = vadd.s32 %v3641_v18, %v3632_v41  ;;  %v3661_v38 = vshrl.u32 %v3656_v13, 16  ;;  %vm3662_vm10 = vc.u32 %v3654_v9, %v3658_v15  ;;  %v2860_v0 = vpop.f32.mrf.mxu0 }
 0x2d2   : > { %v4390_v47 = vsel %vm4282_vm9, %v6935_v29, 0.0  ;;  %v3664_v46 = vadd.s32 %v3658_v15, %v3654_v9  ;;  %v2679_v32 = vadd.f32 %v2622_v21, %v2310_v6  ;;  %v3663_v60 = vsel %vm3662_vm10, 1, %v7302_v36 }
 0x2d3   : > { %v4445_v12 = vsel %vm4407_vm1, %v4390_v47, 0.0  ;;  %v4504_v45 = vmul.f32 %v4390_v47, %v4390_v47  ;;  %v3643_v37 = vshrl.u32 %v3642_v39, 4  ;;  %v3665_v40 = vadd.s32 %v3663_v60, %v3657_v17 }
 0x2d4   : > { %v4446_v11 = vadd.f32 %v4445_v12, %v4444_v54  ;;  %vm3666_vm11 = vc.u32 %v3664_v46, %v3660_v33  ;;  %v6983_v34 = vadd.f32 %v2858_v24, %v2679_v32  ;;  %v6988_v49 = vadd.s32 176, %v5900_v58  ;;  %v1899_v33 = vpop.f32.mrf.mxu1 }
 0x2d5   : > { %v4558_v4 = vsel %vm4407_vm1, %v4504_v45, 0.0  ;;  %v3644_v52 = vmul.u32 18, %v3643_v37  ;;  %v3667_v29 = vsel %vm3666_vm11, 1, %v7302_v36  ;;  %v1950_v59 = vadd.f32 %v1894_v31, %v7374_v55 }
 0x2d6   : > { %v4559_v23 = vadd.f32 %v4558_v4, %v4557_v51  ;;  %v3669_v3 = vadd.s32 %v3667_v29, %v3665_v40  ;;  %v2951_v42 = vpack.c.bf16 %v6983_v34, %v6983_v34  ;;  %v3680_v26 = vand.u32 65535, %v6988_v49 }
 0x2d7   : > { %v3645_v8 = vsub.s32 %v6950_v14, %v3644_v52  ;;  %v3681_v57 = vshrl.u32 %v6988_v49, 16  ;;  %v6997_v41 = vadd.s32 184, %v5900_v58  ;;  %v2311_v7 = vadd.f32 %v2255_v50, %v1950_v59 }
 0x2d8   : > { %v3670_v25 = vadd.s32 %v3669_v3, %v3659_v10  ;;  %2988 = vst.msk [vmem:[%s6258_s14 + $0x58] sm:$0xf] %vm2965_vm15, %v2951_v42  ;;  %v1951_v22 = vadd.f32 %v1897_v61, %v7375_v35  ;;  %v7003_v2 = vadd.s32 192, %v5900_v58  ;;  %v3683_v44 = vmul.u32 14564, %v3680_v26  ;;  %v2258_v13 = vpop.f32.mrf.mxu2 }
 0x2d9   : > { %vm4103_vm13 = vcmp.ne.s32.totalorder %v3645_v8, 0  ;;  %vm4139_vm14 = vcmp.lt.s32.totalorder %v3645_v8, 0  ;;  %v4211_v14 = vadd.s32 18, %v3645_v8  ;;  %v3684_v43 = vmul.u32 58254, %v3680_v26 }
 0x2da   : > { %vm4175_vm5 = vmand %vm4139_vm14, %vm4103_vm13  ;;  %v3671_v1 = vadd.s32 %v3670_v25, %v3661_v38  ;;  %v3685_v5 = vmul.u32 14564, %v3681_v57  ;;  %v3686_v56 = vmul.u32 58254, %v3681_v57  ;;  %v2680_v54 = vadd.f32 %v2624_v63, %v2311_v7 }
 0x2db   : > { %v4247_v62 = vsel %vm4175_vm5, %v4211_v14, %v3645_v8  ;;  %v3709_v30 = vand.u32 65535, %v6997_v41  ;;  %v3710_v9 = vshrl.u32 %v6997_v41, 16  ;;  %v3687_v20 = vshll.u32 %v3684_v43, 16 }
 0x2dc   : > { %vm4283_vm0 = vcmp.lt.s32.totalorder %v4247_v62, 16  ;;  %v3672_v19 = vshrl.u32 %v3671_v1, 4  ;;  %v3688_v16 = vshrl.u32 %v3684_v43, 16  ;;  %v3689_v31 = vshll.u32 %v3685_v5, 16 }
 0x2dd   : > { %v4391_v21 = vsel %vm4283_vm0, %v6952_v53, 0.0  ;;  %v3690_v51 = vshrl.u32 %v3685_v5, 16  ;;  %v7008_v18 = vadd.f32 %v2860_v0, %v2680_v54  ;;  %vm3691_vm12 = vc.u32 %v3683_v44, %v3687_v20  ;;  %v7028_v0 = vpop.f32.mrf.mxu1 }
 0x2de   : > { %v4447_v17 = vsel %vm4407_vm1, %v4391_v21, 0.0  ;;  %v4505_v48 = vmul.f32 %v4391_v21, %v4391_v21  ;;  %v3673_v15 = vmul.u32 18, %v3672_v19  ;;  %v3692_v24 = vsel %vm3691_vm12, 1, %v7302_v36  ;;  %v7376_v21 = vld [vmem:[#allocation20_spill] sm:$0xff] }
 0x2df   : > { %v4448_v10 = vadd.f32 %v4447_v17, %v4446_v11  ;;  %v3693_v6 = vadd.s32 %v3687_v20, %v3683_v44  ;;  %v2952_v39 = vpack.c.bf16 %v7008_v18, %v7008_v18  ;;  %v3694_v47 = vadd.s32 %v3692_v24, %v3686_v56  ;;  %v2627_v11 = vpop.f32.mrf.mxu3 }
 0x2e0   : > { %v4560_v53 = vsel %vm4407_vm1, %v4505_v48, 0.0  ;;  %v3674_v38 = vsub.s32 %v6958_v27, %v3673_v15  ;;  %v3712_v46 = vmul.u32 14564, %v3709_v30  ;;  %v3713_v12 = vmul.u32 58254, %v3709_v30  ;;  %v2260_v14 = vpop.f32.mrf.mxu2 }
 0x2e1   : > { %v4561_v32 = vadd.f32 %v4560_v53, %v4559_v23  ;;  %vm3695_vm3 = vc.u32 %v3693_v6, %v3689_v31  ;;  %2989 = vst.msk [vmem:[%s6258_s14 + $0x5c] sm:$0xf] %vm2965_vm15, %v2952_v39  ;;  %v3714_v45 = vmul.u32 14564, %v3710_v9  ;;  %v3715_v50 = vmul.u32 58254, %v3710_v9  ;;  %v2863_v23 = vpop.f32.mrf.mxu0 }
 0x2e2   : > { %vm4104_vm7 = vcmp.ne.s32.totalorder %v3674_v38, 0  ;;  %vm4140_vm6 = vcmp.lt.s32.totalorder %v3674_v38, 0  ;;  %v4212_v37 = vadd.s32 18, %v3674_v38  ;;  %v3696_v60 = vsel %vm3695_vm3, 1, %v7302_v36 }
 0x2e3   : > { %vm4176_vm2 = vmand %vm4140_vm6, %vm4104_vm7  ;;  %v3698_v40 = vadd.s32 %v3696_v60, %v3694_v47  ;;  %v3716_v4 = vshll.u32 %v3713_v12, 16  ;;  %v3717_v52 = vshrl.u32 %v3713_v12, 16  ;;  %v3718_v29 = vshll.u32 %v3714_v45, 16 }
 0x2e4   : > { %v4248_v27 = vsel %vm4176_vm2, %v4212_v37, %v3674_v38  ;;  %v3719_v3 = vshrl.u32 %v3714_v45, 16  ;;  %v2312_v42 = vadd.f32 %v2258_v13, %v1951_v22  ;;  %v3738_v57 = vand.u32 65535, %v7003_v2 }
 0x2e5   : > { %vm4284_vm4 = vcmp.lt.s32.totalorder %v4248_v27, 16  ;;  %v3699_v55 = vadd.s32 %v3698_v40, %v3688_v16  ;;  %vm3720_vm8 = vc.u32 %v3712_v46, %v3716_v4  ;;  %v3722_v59 = vadd.s32 %v3716_v4, %v3712_v46 }
 0x2e6   : > { %v4392_v61 = vsel %vm4284_vm4, %v6967_v28, 0.0  ;;  %v3721_v8 = vsel %vm3720_vm8, 1, %v7302_v36  ;;  %v2681_v26 = vadd.f32 %v2627_v11, %v2312_v42  ;;  %v3739_v1 = vshrl.u32 %v7003_v2, 16 }
 0x2e7   : > { %v4449_v25 = vsel %vm4407_vm1, %v4392_v61, 0.0  ;;  %v4506_v63 = vmul.f32 %v4392_v61, %v4392_v61  ;;  %v3700_v7 = vadd.s32 %v3699_v55, %v3690_v51  ;;  %v3723_v35 = vadd.s32 %v3721_v8, %v3715_v50  ;;  %v2629_v48 = vpop.f32.mrf.mxu3  ;;  %v1904_v55 = vpop.f32.mrf.mxu1 }
 0x2e8   : > { %v4450_v44 = vadd.f32 %v4449_v25, %v4448_v10  ;;  %vm3724_vm9 = vc.u32 %v3722_v59, %v3718_v29  ;;  %v7023_v22 = vadd.f32 %v2863_v23, %v2681_v26  ;;  %v3741_v56 = vmul.u32 14564, %v3738_v57  ;;  %v2263_v50 = vpop.f32.mrf.mxu2 }
 0x2e9   : > { %v4562_v28 = vsel %vm4407_vm1, %v4506_v63, 0.0  ;;  %v3701_v43 = vshrl.u32 %v3700_v7, 4  ;;  %v3725_v5 = vsel %vm3724_vm9, 1, %v7302_v36  ;;  %v3742_v9 = vmul.u32 58254, %v3738_v57  ;;  %v2865_v47 = vpop.f32.mrf.mxu0 }
 0x2ea   : > { %v4563_v62 = vadd.f32 %v4562_v28, %v4561_v32  ;;  %v3727_v54 = vadd.s32 %v3725_v5, %v3723_v35  ;;  %v2953_v30 = vpack.c.bf16 %v7023_v22, %v7023_v22  ;;  %v3743_v20 = vmul.u32 14564, %v3739_v1 }
 0x2eb   : > { %v3702_v19 = vmul.u32 18, %v3701_v43  ;;  %v3744_v16 = vmul.u32 58254, %v3739_v1  ;;  %v1952_v31 = vadd.f32 %v1899_v33, %v7376_v21  ;;  %v3745_v13 = vshll.u32 %v3742_v9, 16 }
 0x2ec   : > { %v3728_v51 = vadd.s32 %v3727_v54, %v3717_v52  ;;  %2990 = vst.msk [vmem:[%s6258_s14 + $0x60] sm:$0xf] %vm2965_vm15, %v2953_v30  ;;  %v3746_v17 = vshrl.u32 %v3742_v9, 16  ;;  %v7036_v15 = vadd.s32 200, %v5900_v58  ;;  %v3747_v24 = vshll.u32 %v3743_v20, 16 }
 0x2ed   : > { %v3703_v10 = vsub.s32 %v6988_v49, %v3702_v19  ;;  %v3748_v6 = vshrl.u32 %v3743_v20, 16  ;;  %v2313_v39 = vadd.f32 %v2260_v14, %v1952_v31  ;;  %vm3749_vm10 = vc.u32 %v3741_v56, %v3745_v13 }
 0x2ee   : > { %v3729_v53 = vadd.s32 %v3728_v51, %v3719_v3  ;;  %v3751_v38 = vadd.s32 %v3745_v13, %v3741_v56  ;;  %v3767_v33 = vand.u32 65535, %v7036_v15  ;;  %v3750_v32 = vsel %vm3749_vm10, 1, %v7302_v36  ;;  %v7377_v56 = vld [vmem:[#allocation8_spill] sm:$0xff] }
 0x2ef   : > { %vm4105_vm11 = vcmp.ne.s32.totalorder %v3703_v10, 0  ;;  %vm4141_vm13 = vcmp.lt.s32.totalorder %v3703_v10, 0  ;;  %v4213_v46 = vadd.s32 18, %v3703_v10  ;;  %v3752_v45 = vadd.s32 %v3750_v32, %v3744_v16  ;;  %v2632_v14 = vpop.f32.mrf.mxu3 }
 0x2f0   : > { %vm4177_vm14 = vmand %vm4141_vm13, %vm4105_vm11  ;;  %v3730_v12 = vshrl.u32 %v3729_v53, 4  ;;  %vm3753_vm5 = vc.u32 %v3751_v38, %v3747_v24  ;;  %v2682_v37 = vadd.f32 %v2629_v48, %v2313_v39  ;;  %v3768_v11 = vshrl.u32 %v7036_v15, 16  ;;  %v7378_v38 = vld [vmem:[#allocation9_spill] sm:$0xff] }
 0x2f1   : > { %v4249_v49 = vsel %vm4177_vm14, %v4213_v46, %v3703_v10  ;;  %v3754_v60 = vsel %vm3753_vm5, 1, %v7302_v36  ;;  %v3770_v40 = vmul.u32 14564, %v3767_v33  ;;  %v3771_v3 = vmul.u32 58254, %v3767_v33  ;;  %v2868_v30 = vpop.f32.mrf.mxu0  ;;  %v1907_v33 = vpop.f32.mrf.mxu1 }
 0x2f2   : > { %vm4285_vm0 = vcmp.lt.s32.totalorder %v4249_v49, 16  ;;  %v3731_v4 = vmul.u32 18, %v3730_v12  ;;  %v3756_v52 = vadd.s32 %v3754_v60, %v3752_v45  ;;  %v7043_v27 = vadd.f32 %v2865_v47, %v2682_v37 }
 0x2f3   : > { %v4393_v29 = vsel %vm4285_vm0, %v6983_v34, 0.0  ;;  %v3772_v23 = vmul.u32 14564, %v3768_v11  ;;  %v3773_v42 = vmul.u32 58254, %v3768_v11  ;;  %v3774_v63 = vshll.u32 %v3771_v3, 16 }
 0x2f4   : > { %v4451_v59 = vsel %vm4407_vm1, %v4393_v29, 0.0  ;;  %v4507_v61 = vmul.f32 %v4393_v29, %v4393_v29  ;;  %v3732_v8 = vsub.s32 %v6997_v41, %v3731_v4  ;;  %v3757_v26 = vadd.s32 %v3756_v52, %v3746_v17 }
 0x2f5   : > { %v4452_v57 = vadd.f32 %v4451_v59, %v4450_v44  ;;  %v2954_v25 = vpack.c.bf16 %v7043_v27, %v7043_v27  ;;  %v3775_v7 = vshrl.u32 %v3771_v3, 16  ;;  %v3776_v43 = vshll.u32 %v3772_v23, 16 }
 0x2f6   : > { %v4564_v35 = vsel %vm4407_vm1, %v4507_v61, 0.0  ;;  %vm4106_vm12 = vcmp.ne.s32.totalorder %v3732_v8, 0  ;;  %vm4142_vm3 = vcmp.lt.s32.totalorder %v3732_v8, 0  ;;  %v4214_v34 = vadd.s32 18, %v3732_v8 }
 0x2f7   : > { %v4565_v1 = vadd.f32 %v4564_v35, %v4563_v62  ;;  %vm4178_vm7 = vmand %vm4142_vm3, %vm4106_vm12  ;;  %v3758_v28 = vadd.s32 %v3757_v26, %v3748_v6  ;;  %2991 = vst.msk [vmem:[%s6258_s14 + $0x64] sm:$0xf] %vm2965_vm15, %v2954_v25  ;;  %v3777_v41 = vshrl.u32 %v3772_v23, 16  ;;  %vm3778_vm6 = vc.u32 %v3770_v40, %v3774_v63 }
 0x2f8   : > { %v4250_v5 = vsel %vm4178_vm7, %v4214_v34, %v3732_v8  ;;  %v3780_v44 = vadd.s32 %v3774_v63, %v3770_v40  ;;  %v1953_v54 = vadd.f32 %v7028_v0, %v7377_v56  ;;  %v3779_v19 = vsel %vm3778_vm6, 1, %v7302_v36  ;;  %v2265_v0 = vpop.f32.mrf.mxu2 }
 0x2f9   : > { %vm4286_vm2 = vcmp.lt.s32.totalorder %v4250_v5, 16  ;;  %v3759_v9 = vshrl.u32 %v3758_v28, 4  ;;  %v7057_v20 = vadd.s32 208, %v5900_v58  ;;  %v3781_v16 = vadd.s32 %v3779_v19, %v3773_v42  ;;  %v2870_v59 = vpop.f32.mrf.mxu0 }
 0x2fa   : > { %v4394_v62 = vsel %vm4286_vm2, %v7008_v18, 0.0  ;;  %vm3782_vm4 = vc.u32 %v3780_v44, %v3776_v43  ;;  %v2314_v21 = vadd.f32 %v2263_v50, %v1953_v54  ;;  %v1954_v47 = vadd.f32 %v1904_v55, %v7378_v38  ;;  %v2634_v50 = vpop.f32.mrf.mxu3  ;;  %v7379_v54 = vld [vmem:[#allocation3_spill] sm:$0xff] }
 0x2fb   : > { %v4453_v31 = vsel %vm4407_vm1, %v4394_v62, 0.0  ;;  %v4508_v51 = vmul.f32 %v4394_v62, %v4394_v62  ;;  %v3760_v13 = vmul.u32 18, %v3759_v9  ;;  %v3783_v17 = vsel %vm3782_vm4, 1, %v7302_v36  ;;  %v1909_v9 = vpop.f32.mrf.mxu1 }
 0x2fc   : > { %v4454_v48 = vadd.f32 %v4453_v31, %v4452_v57  ;;  %v3785_v10 = vadd.s32 %v3783_v17, %v3781_v16  ;;  %v2683_v24 = vadd.f32 %v2632_v14, %v2314_v21  ;;  %v3796_v6 = vand.u32 65535, %v7057_v20 }
 0x2fd   : > { %v4566_v39 = vsel %vm4407_vm1, %v4508_v51, 0.0  ;;  %v3761_v53 = vsub.s32 %v7003_v2, %v3760_v13  ;;  %v3797_v18 = vshrl.u32 %v7057_v20, 16  ;;  %v2315_v3 = vadd.f32 %v2265_v0, %v1954_v47 }
 0x2fe   : > { %v4567_v46 = vadd.f32 %v4566_v39, %v4565_v1  ;;  %v3786_v32 = vadd.s32 %v3785_v10, %v3775_v7  ;;  %v7067_v12 = vadd.f32 %v2868_v30, %v2683_v24  ;;  %v3799_v45 = vmul.u32 14564, %v3796_v6 }
 0x2ff   : > { %vm4107_vm8 = vcmp.ne.s32.totalorder %v3761_v53, 0  ;;  %vm4143_vm9 = vcmp.lt.s32.totalorder %v3761_v53, 0  ;;  %v4215_v37 = vadd.s32 18, %v3761_v53  ;;  %v3800_v49 = vmul.u32 58254, %v3796_v6 }
 0x300   : > { %vm4179_vm10 = vmand %vm4143_vm9, %vm4107_vm8  ;;  %v3787_v60 = vadd.s32 %v3786_v32, %v3777_v41  ;;  %v2955_v2 = vpack.c.bf16 %v7067_v12, %v7067_v12  ;;  %v3801_v11 = vmul.u32 14564, %v3797_v18  ;;  %v3802_v40 = vmul.u32 58254, %v3797_v18  ;;  %v2268_v1 = vpop.f32.mrf.mxu2 }
 0x301   : > { %v4251_v4 = vsel %vm4179_vm10, %v4215_v37, %v3761_v53  ;;  %v3803_v52 = vshll.u32 %v3800_v49, 16  ;;  %v3804_v29 = vshrl.u32 %v3800_v49, 16  ;;  %v2684_v26 = vadd.f32 %v2634_v50, %v2315_v3  ;;  %v2873_v47 = vpop.f32.mrf.mxu0 }
 0x302   : > { %vm4287_vm11 = vcmp.lt.s32.totalorder %v4251_v4, 16  ;;  %v3788_v23 = vshrl.u32 %v3787_v60, 4  ;;  %2992 = vst.msk [vmem:[%s6258_s14 + $0x68] sm:$0xf] %vm2965_vm15, %v2955_v2  ;;  %v3805_v42 = vshll.u32 %v3801_v11, 16  ;;  %v3806_v55 = vshrl.u32 %v3801_v11, 16  ;;  %v2637_v0 = vpop.f32.mrf.mxu3 }
 0x303   : > { %v4395_v61 = vsel %vm4287_vm11, %v7023_v22, 0.0  ;;  %vm3807_vm13 = vc.u32 %v3799_v45, %v3803_v52  ;;  %v3809_v8 = vadd.s32 %v3803_v52, %v3799_v45  ;;  %v7076_v14 = vadd.f32 %v2870_v59, %v2684_v26 }
 0x304   : > { %v4455_v57 = vsel %vm4407_vm1, %v4395_v61, 0.0  ;;  %v4509_v25 = vmul.f32 %v4395_v61, %v4395_v61  ;;  %v3789_v63 = vmul.u32 18, %v3788_v23  ;;  %v3808_v7 = vsel %vm3807_vm13, 1, %v7302_v36 }
 0x305   : > { %v4456_v35 = vadd.f32 %v4455_v57, %v4454_v48  ;;  %v3810_v34 = vadd.s32 %v3808_v7, %v3802_v40  ;;  %vm3811_vm14 = vc.u32 %v3809_v8, %v3805_v42  ;;  %v7082_v41 = vadd.s32 216, %v5900_v58  ;;  %v7380_v48 = vld [vmem:[#allocation5_spill] sm:$0xff] }
 0x306   : > { %v4568_v28 = vsel %vm4407_vm1, %v4509_v25, 0.0  ;;  %v3790_v22 = vsub.s32 %v7036_v15, %v3789_v63  ;;  %v3812_v43 = vsel %vm3811_vm14, 1, %v7302_v36  ;;  %v2956_v56 = vpack.c.bf16 %v7076_v14, %v7076_v14 }
 0x307   : > { %v4569_v5 = vadd.f32 %v4568_v28, %v4567_v46  ;;  %v3814_v44 = vadd.s32 %v3812_v43, %v3810_v34  ;;  %v1955_v30 = vadd.f32 %v1907_v33, %v7379_v54  ;;  %v3825_v62 = vand.u32 65535, %v7082_v41 }
 0x308   : > { %vm4108_vm5 = vcmp.ne.s32.totalorder %v3790_v22, 0  ;;  %vm4144_vm0 = vcmp.lt.s32.totalorder %v3790_v22, 0  ;;  %v4216_v19 = vadd.s32 18, %v3790_v22  ;;  %2993 = vst.msk [vmem:[%s6258_s14 + $0x6c] sm:$0xf] %vm2965_vm15, %v2956_v56  ;;  %v3826_v16 = vshrl.u32 %v7082_v41, 16 }
 0x309   : > { %vm4180_vm12 = vmand %vm4144_vm0, %vm4108_vm5  ;;  %v3815_v15 = vadd.s32 %v3814_v44, %v3804_v29  ;;  %v2316_v21 = vadd.f32 %v2268_v1, %v1955_v30  ;;  %v7092_v31 = vadd.s32 224, %v5900_v58  ;;  %v3828_v13 = vmul.u32 14564, %v3825_v62  ;;  %v2875_v54 = vpop.f32.mrf.mxu0 }
 0x30a   : > { %v4252_v51 = vsel %vm4180_vm12, %v4216_v19, %v3790_v22  ;;  %v3829_v17 = vmul.u32 58254, %v3825_v62  ;;  %v1956_v10 = vadd.f32 %v1909_v9, %v7380_v48  ;;  %v3830_v6 = vmul.u32 14564, %v3826_v16  ;;  %v2639_v1 = vpop.f32.mrf.mxu3 }
 0x30b   : > { %vm4288_vm3 = vcmp.lt.s32.totalorder %v4252_v51, 16  ;;  %v3816_v24 = vadd.s32 %v3815_v15, %v3806_v55  ;;  %v3831_v39 = vmul.u32 58254, %v3826_v16  ;;  %v2685_v33 = vadd.f32 %v2637_v0, %v2316_v21  ;;  %v1912_v0 = vpop.f32.mrf.mxu1 }
 0x30c   : > { %v4396_v53 = vsel %vm4288_vm3, %v7043_v27, 0.0  ;;  %v3832_v18 = vshll.u32 %v3829_v17, 16  ;;  %v3833_v38 = vshrl.u32 %v3829_v17, 16  ;;  %v3834_v37 = vshll.u32 %v3830_v6, 16  ;;  %v2270_v27 = vpop.f32.mrf.mxu2 }
 0x30d   : > { %v4457_v46 = vsel %vm4407_vm1, %v4396_v53, 0.0  ;;  %v4510_v32 = vmul.f32 %v4396_v53, %v4396_v53  ;;  %v3817_v45 = vshrl.u32 %v3816_v24, 4  ;;  %v3835_v60 = vshrl.u32 %v3830_v6, 16 }
 0x30e   : > { %v4458_v49 = vadd.f32 %v4457_v46, %v4456_v35  ;;  %vm3836_vm7 = vc.u32 %v3828_v13, %v3832_v18  ;;  %v3838_v2 = vadd.s32 %v3832_v18, %v3828_v13  ;;  %v7099_v4 = vadd.f32 %v2873_v47, %v2685_v33 }
 0x30f   : > { %v4570_v11 = vsel %vm4407_vm1, %v4510_v32, 0.0  ;;  %v3818_v40 = vmul.u32 18, %v3817_v45  ;;  %v3837_v50 = vsel %vm3836_vm7, 1, %v7302_v36  ;;  %v3854_v3 = vand.u32 65535, %v7092_v31  ;;  %v7381_v45 = vld [vmem:[#allocation6_spill] sm:$0xff] }
 0x310   : > { %v4571_v52 = vadd.f32 %v4570_v11, %v4569_v5  ;;  %v3839_v29 = vadd.s32 %v3837_v50, %v3831_v39  ;;  %vm3840_vm6 = vc.u32 %v3838_v2, %v3834_v37  ;;  %v2957_v55 = vpack.c.bf16 %v7099_v4, %v7099_v4 }
 0x311   : > { %v3819_v23 = vsub.s32 %v7057_v20, %v3818_v40  ;;  %v3841_v42 = vsel %vm3840_vm6, 1, %v7302_v36  ;;  %v3855_v59 = vshrl.u32 %v7092_v31, 16  ;;  %v3857_v8 = vmul.u32 14564, %v3854_v3 }
 0x312   : > { %v3843_v61 = vadd.s32 %v3841_v42, %v3839_v29  ;;  %v3858_v26 = vmul.u32 58254, %v3854_v3  ;;  %v2317_v57 = vadd.f32 %v2270_v27, %v1956_v10  ;;  %2994 = vst.msk [vmem:[%s6258_s14 + $0x70] sm:$0xf] %vm2965_vm15, %v2957_v55  ;;  %v7114_v62 = vadd.s32 232, %v5900_v58 }
 0x313   : > { %vm4109_vm2 = vcmp.ne.s32.totalorder %v3819_v23, 0  ;;  %vm4145_vm4 = vcmp.lt.s32.totalorder %v3819_v23, 0  ;;  %v4217_v25 = vadd.s32 18, %v3819_v23  ;;  %v3859_v63 = vmul.u32 14564, %v3855_v59 }
 0x314   : > { %vm4181_vm8 = vmand %vm4145_vm4, %vm4109_vm2  ;;  %v3844_v7 = vadd.s32 %v3843_v61, %v3833_v38  ;;  %v3860_v20 = vmul.u32 58254, %v3855_v59  ;;  %v3861_v35 = vshll.u32 %v3858_v26, 16  ;;  %v3862_v34 = vshrl.u32 %v3858_v26, 16  ;;  %v2273_v39 = vpop.f32.mrf.mxu2 }
 0x315   : > { %v4253_v28 = vsel %vm4181_vm8, %v4217_v25, %v3819_v23  ;;  %v3863_v22 = vshll.u32 %v3859_v63, 16  ;;  %v3864_v43 = vshrl.u32 %v3859_v63, 16  ;;  %v2686_v5 = vadd.f32 %v2639_v1, %v2317_v57  ;;  %v2642_v23 = vpop.f32.mrf.mxu3  ;;  %v2878_v57 = vpop.f32.mrf.mxu0 }
 0x316   : > { %vm4289_vm9 = vcmp.lt.s32.totalorder %v4253_v28, 16  ;;  %v3845_v44 = vadd.s32 %v3844_v7, %v3835_v60  ;;  %vm3865_vm10 = vc.u32 %v3857_v8, %v3861_v35  ;;  %v3867_v56 = vadd.s32 %v3861_v35, %v3857_v8  ;;  %v1914_v1 = vpop.f32.mrf.mxu1 }
 0x317   : > { %v4397_v30 = vsel %vm4289_vm9, %v7067_v12, 0.0  ;;  %v3866_v9 = vsel %vm3865_vm10, 1, %v7302_v36  ;;  %v7111_v19 = vadd.f32 %v2875_v54, %v2686_v5  ;;  %v3883_v12 = vand.u32 65535, %v7114_v62 }
 0x318   : > { %v4459_v15 = vsel %vm4407_vm1, %v4397_v30, 0.0  ;;  %v4511_v16 = vmul.f32 %v4397_v30, %v4397_v30  ;;  %v3846_v21 = vshrl.u32 %v3845_v44, 4  ;;  %v3868_v51 = vadd.s32 %v3866_v9, %v3860_v20 }
 0x319   : > { %v4460_v13 = vadd.f32 %v4459_v15, %v4458_v49  ;;  %vm3869_vm11 = vc.u32 %v3867_v56, %v3863_v22  ;;  %v2958_v17 = vpack.c.bf16 %v7111_v19, %v7111_v19  ;;  %v3884_v6 = vshrl.u32 %v7114_v62, 16 }
 0x31a   : > { %v4572_v48 = vsel %vm4407_vm1, %v4511_v16, 0.0  ;;  %v3847_v10 = vmul.u32 18, %v3846_v21  ;;  %v3870_v24 = vsel %vm3869_vm11, 1, %v7302_v36  ;;  %v3886_v38 = vmul.u32 14564, %v3883_v12 }
 0x31b   : > { %v4573_v53 = vadd.f32 %v4572_v48, %v4571_v52  ;;  %v3872_v18 = vadd.s32 %v3870_v24, %v3868_v51  ;;  %2995 = vst.msk [vmem:[%s6258_s14 + $0x74] sm:$0xf] %vm2965_vm15, %v2958_v17  ;;  %v3887_v47 = vmul.u32 58254, %v3883_v12  ;;  %v3888_v46 = vmul.u32 14564, %v3884_v6 }
 0x31c   : > { %v3848_v33 = vsub.s32 %v7082_v41, %v3847_v10  ;;  %v3889_v32 = vmul.u32 58254, %v3884_v6  ;;  %v1957_v37 = vadd.f32 %v1912_v0, %v7381_v45  ;;  %v7128_v11 = vadd.s32 240, %v5900_v58  ;;  %v2275_v44 = vpop.f32.mrf.mxu2  ;;  %v7385_v45 = vld [vmem:[#allocation22_spill] sm:$0xff] }
 0x31d   : > { %v3873_v49 = vadd.s32 %v3872_v18, %v3862_v34  ;;  %v3890_v60 = vshll.u32 %v3887_v47, 16  ;;  %v3891_v2 = vshrl.u32 %v3887_v47, 16  ;;  %v3892_v50 = vshll.u32 %v3888_v46, 16 }
 0x31e   : > { %vm4110_vm13 = vcmp.ne.s32.totalorder %v3848_v33, 0  ;;  %vm4146_vm14 = vcmp.lt.s32.totalorder %v3848_v33, 0  ;;  %v4218_v40 = vadd.s32 18, %v3848_v33  ;;  %v3893_v52 = vshrl.u32 %v3888_v46, 16 }
 0x31f   : > { %vm4182_vm5 = vmand %vm4146_vm14, %vm4110_vm13  ;;  %v3874_v27 = vadd.s32 %v3873_v49, %v3864_v43  ;;  %vm3894_vm0 = vc.u32 %v3886_v38, %v3890_v60  ;;  %v3896_v29 = vadd.s32 %v3890_v60, %v3886_v38  ;;  %v2318_v42 = vadd.f32 %v2273_v39, %v1957_v37  ;;  %v7382_v39 = vld [vmem:[#allocation21_spill] sm:$0xff]  ;;  %v2644_v38 = vpop.f32.mrf.mxu3 }
 0x320   : > { %v4254_v41 = vsel %vm4182_vm5, %v4218_v40, %v3848_v33  ;;  %v3895_v3 = vsel %vm3894_vm0, 1, %v7302_v36  ;;  %v3912_v55 = vand.u32 65535, %v7128_v11  ;;  %v3913_v63 = vshrl.u32 %v7128_v11, 16 }
 0x321   : > { %vm4290_vm12 = vcmp.lt.s32.totalorder %v4254_v41, 16  ;;  %v3875_v59 = vshrl.u32 %v3874_v27, 4  ;;  %v3897_v61 = vadd.s32 %v3895_v3, %v3889_v32  ;;  %vm3898_vm3 = vc.u32 %v3896_v29, %v3892_v50  ;;  %v7384_v32 = vld [vmem:[#allocation4_spill] sm:$0xff]  ;;  %v2880_v50 = vpop.f32.mrf.mxu0  ;;  %v1917_v3 = vpop.f32.mrf.mxu1 }
 0x322   : > { %v4398_v8 = vsel %vm4290_vm12, %v7076_v14, 0.0  ;;  %v3899_v26 = vsel %vm3898_vm3, 1, %v7302_v36  ;;  %v2687_v25 = vadd.f32 %v2642_v23, %v2318_v42  ;;  %v3915_v43 = vmul.u32 14564, %v3912_v55 }
 0x323   : > { %v4461_v7 = vsel %vm4407_vm1, %v4398_v8, 0.0  ;;  %v4512_v20 = vmul.f32 %v4398_v8, %v4398_v8  ;;  %v3876_v35 = vmul.u32 18, %v3875_v59  ;;  %v3901_v34 = vadd.s32 %v3899_v26, %v3897_v61 }
 0x324   : > { %v4462_v28 = vadd.f32 %v4461_v7, %v4460_v13  ;;  %v7136_v22 = vadd.f32 %v2878_v57, %v2687_v25  ;;  %v3916_v5 = vmul.u32 58254, %v3912_v55  ;;  %v3917_v30 = vmul.u32 14564, %v3913_v63  ;;  %v2278_v59 = vpop.f32.mrf.mxu2 }
 0x325   : > { %v4574_v14 = vsel %vm4407_vm1, %v4512_v20, 0.0  ;;  %v3877_v56 = vsub.s32 %v7092_v31, %v3876_v35  ;;  %v3902_v54 = vadd.s32 %v3901_v34, %v3891_v2  ;;  %v3918_v16 = vmul.u32 58254, %v3913_v63 }
 0x326   : > { %v4575_v9 = vadd.f32 %v4574_v14, %v4573_v53  ;;  %v2959_v15 = vpack.c.bf16 %v7136_v22, %v7136_v22  ;;  %v3919_v21 = vshll.u32 %v3916_v5, 16  ;;  %v3920_v17 = vshrl.u32 %v3916_v5, 16  ;;  %v7383_v53 = vld [vmem:[#allocation2_spill] sm:$0xff] }
 0x327   : > { %vm4111_vm7 = vcmp.ne.s32.totalorder %v3877_v56, 0  ;;  %vm4147_vm6 = vcmp.lt.s32.totalorder %v3877_v56, 0  ;;  %v4219_v51 = vadd.s32 18, %v3877_v56  ;;  %v3903_v13 = vadd.s32 %v3902_v54, %v3893_v52 }
 0x328   : > { %vm4183_vm2 = vmand %vm4147_vm6, %vm4111_vm7  ;;  %2996 = vst.msk [vmem:[%s6258_s14 + $0x78] sm:$0xf] %vm2965_vm15, %v2959_v15  ;;  %v3921_v12 = vshll.u32 %v3917_v30, 16  ;;  %v3922_v0 = vshrl.u32 %v3917_v30, 16  ;;  %vm3923_vm4 = vc.u32 %v3915_v43, %v3919_v21  ;;  %v3925_v24 = vadd.s32 %v3919_v21, %v3915_v43  ;;  %v2647_v15 = vpop.f32.mrf.mxu3 }
 0x329   : > { %v4255_v31 = vsel %vm4183_vm2, %v4219_v51, %v3877_v56  ;;  %v3904_v48 = vshrl.u32 %v3903_v13, 4  ;;  %v3924_v10 = vsel %vm3923_vm4, 1, %v7302_v36  ;;  %v1722_v18 = vadd.f32 %v7383_v53, %v7382_v39 }
 0x32a   : > { %vm4291_vm8 = vcmp.lt.s32.totalorder %v4255_v31, 16  ;;  %v3926_v6 = vadd.s32 %v3924_v10, %v3918_v16  ;;  %v7148_v47 = vadd.s32 248, %v5900_v58  ;;  %vm3927_vm9 = vc.u32 %v3925_v24, %v3921_v12  ;;  %v2883_v12 = vpop.f32.mrf.mxu0 }
 0x32b   : > { %v4399_v33 = vsel %vm4291_vm8, %v7099_v4, 0.0  ;;  %v3905_v46 = vmul.u32 18, %v3904_v48  ;;  %v1723_v37 = vadd.f32 %v7385_v45, %v7384_v32  ;;  %v3928_v2 = vsel %vm3927_vm9, 1, %v7302_v36  ;;  %v1919_v45 = vpop.f32.mrf.mxu1 }
 0x32c   : > { %v4463_v49 = vsel %vm4407_vm1, %v4399_v33, 0.0  ;;  %v4513_v60 = vmul.f32 %v4399_v33, %v4399_v33  ;;  %v1958_v40 = vadd.f32 %v1914_v1, %v1722_v18  ;;  %v3930_v29 = vadd.s32 %v3928_v2, %v3926_v6  ;;  %v7386_v33 = vld [vmem:[#allocation24_spill] sm:$0xff] }
 0x32d   : > { %v4464_v27 = vadd.f32 %v4463_v49, %v4462_v28  ;;  %v3906_v52 = vsub.s32 %v7114_v62, %v3905_v46  ;;  %v3941_v41 = vand.u32 65535, %v7148_v47  ;;  %v3942_v42 = vshrl.u32 %v7148_v47, 16  ;;  %v7387_v46 = vld [vmem:[#allocation23_spill] sm:$0xff] }
 0x32e   : > { %v4576_v4 = vsel %vm4407_vm1, %v4513_v60, 0.0  ;;  %v2319_v23 = vadd.f32 %v2275_v44, %v1958_v40  ;;  %v1959_v55 = vadd.f32 %v1917_v3, %v1723_v37  ;;  %v3931_v26 = vadd.s32 %v3930_v29, %v3920_v17 }
 0x32f   : > { %v4577_v61 = vadd.f32 %v4576_v4, %v4575_v9  ;;  %vm4112_vm10 = vcmp.ne.s32.totalorder %v3906_v52, 0  ;;  %vm4148_vm11 = vcmp.lt.s32.totalorder %v3906_v52, 0  ;;  %v4220_v8 = vadd.s32 18, %v3906_v52 }
 0x330   : > { %vm4184_vm13 = vmand %vm4148_vm11, %vm4112_vm10  ;;  %v2688_v57 = vadd.f32 %v2644_v38, %v2319_v23  ;;  %v3944_v25 = vmul.u32 14564, %v3941_v41  ;;  %v3945_v62 = vmul.u32 58254, %v3941_v41  ;;  %v3946_v7 = vmul.u32 14564, %v3942_v42 }
 0x331   : > { %v4256_v63 = vsel %vm4184_vm13, %v4220_v8, %v3906_v52  ;;  %v3947_v20 = vmul.u32 58254, %v3942_v42  ;;  %v2320_v35 = vadd.f32 %v2278_v59, %v1959_v55  ;;  %v3932_v34 = vadd.s32 %v3931_v26, %v3922_v0 }
 0x332   : > { %vm4292_vm14 = vcmp.lt.s32.totalorder %v4256_v63, 16  ;;  %v7159_v1 = vadd.f32 %v2880_v50, %v2688_v57  ;;  %v3948_v28 = vshll.u32 %v3945_v62, 16  ;;  %v3949_v5 = vshrl.u32 %v3945_v62, 16  ;;  %v2649_v62 = vpop.f32.mrf.mxu3 }
 0x333   : > { %v4400_v43 = vsel %vm4292_vm14, %v7111_v19, 0.0  ;;  %v3950_v44 = vshll.u32 %v3946_v7, 16  ;;  %v3951_v14 = vshrl.u32 %v3946_v7, 16  ;;  %v3933_v30 = vshrl.u32 %v3932_v34, 4 }
 0x334   : > { %v4465_v56 = vsel %vm4407_vm1, %v4400_v43, 0.0  ;;  %v4514_v54 = vmul.f32 %v4400_v43, %v4400_v43  ;;  %v2960_v9 = vpack.c.bf16 %v7159_v1, %v7159_v1  ;;  %vm3952_vm5 = vc.u32 %v3944_v25, %v3948_v28 }
 0x335   : > { %v4466_v16 = vadd.f32 %v4465_v56, %v4464_v27  ;;  %v3954_v21 = vadd.s32 %v3948_v28, %v3944_v25  ;;  %v2689_v51 = vadd.f32 %v2647_v15, %v2320_v35  ;;  %v3934_v17 = vmul.u32 18, %v3933_v30  ;;  %v2280_v27 = vpop.f32.mrf.mxu2 }
 0x336   : > { %v4578_v13 = vsel %vm4407_vm1, %v4514_v54, 0.0  ;;  %2997 = vst.msk [vmem:[%s6258_s14 + $0x7c] sm:$0xf] %vm2965_vm15, %v2960_v9  ;;  %v3953_v19 = vsel %vm3952_vm5, 1, %v7302_v36  ;;  %v7170_v0 = vadd.s32 256, %v5900_v58  ;;  %v1724_v32 = vadd.f32 %v7387_v46, %v7386_v33 }
 0x337   : > { %v4579_v31 = vadd.f32 %v4578_v13, %v4577_v61  ;;  %v3955_v48 = vadd.s32 %v3953_v19, %v3947_v20  ;;  %vm3956_vm0 = vc.u32 %v3954_v21, %v3950_v44  ;;  %v7172_v10 = vadd.f32 %v2883_v12, %v2689_v51 }
 0x338   : > { %v3935_v24 = vsub.s32 %v7128_v11, %v3934_v17  ;;  %v3957_v6 = vsel %vm3956_vm0, 1, %v7302_v36  ;;  %v3970_v39 = vand.u32 65535, %v7170_v0  ;;  %v3971_v53 = vshrl.u32 %v7170_v0, 16  ;;  %v1922_v17 = vpop.f32.mrf.mxu1 }
 0x339   : > { %v3959_v18 = vadd.s32 %v3957_v6, %v3955_v48  ;;  %v2961_v38 = vpack.c.bf16 %v7172_v10, %v7172_v10  ;;  %v7183_v37 = vadd.s32 264, %v5900_v58  ;;  %v1960_v29 = vadd.f32 %v1919_v45, %v1724_v32 }
 0x33a   : > { %vm4113_vm12 = vcmp.ne.s32.totalorder %v3935_v24, 0  ;;  %vm4149_vm3 = vcmp.lt.s32.totalorder %v3935_v24, 0  ;;  %v4221_v11 = vadd.s32 18, %v3935_v24  ;;  %v3973_v49 = vmul.u32 14564, %v3970_v39 }
 0x33b   : > { %vm4185_vm7 = vmand %vm4149_vm3, %vm4113_vm12  ;;  %v3960_v60 = vadd.s32 %v3959_v18, %v3949_v5  ;;  %2998 = vst.msk [vmem:[%s6258_s14 + $0x80] sm:$0xf] %vm2965_vm15, %v2961_v38  ;;  %v3974_v2 = vmul.u32 58254, %v3970_v39  ;;  %v3975_v40 = vmul.u32 14564, %v3971_v53  ;;  %v3976_v50 = vmul.u32 58254, %v3971_v53  ;;  %v2885_v5 = vpop.f32.mrf.mxu0  ;;  %v7388_v53 = vld [vmem:[#allocation26_spill] sm:$0xff] }
 0x33c   : > { %v4257_v52 = vsel %vm4185_vm7, %v4221_v11, %v3935_v24  ;;  %v3999_v41 = vand.u32 65535, %v7183_v37  ;;  %v4000_v3 = vshrl.u32 %v7183_v37, 16  ;;  %v2321_v8 = vadd.f32 %v2280_v27, %v1960_v29  ;;  %v7389_v18 = vld [vmem:[#allocation25_spill] sm:$0xff] }
 0x33d   : > { %vm4293_vm6 = vcmp.lt.s32.totalorder %v4257_v52, 16  ;;  %v3961_v4 = vadd.s32 %v3960_v60, %v3951_v14  ;;  %v3977_v23 = vshll.u32 %v3974_v2, 16  ;;  %v3978_v42 = vshrl.u32 %v3974_v2, 16  ;;  %v2283_v24 = vpop.f32.mrf.mxu2  ;;  %v2652_v52 = vpop.f32.mrf.mxu3 }
 0x33e   : > { %v4401_v55 = vsel %vm4293_vm6, %v7136_v22, 0.0  ;;  %v3979_v59 = vshll.u32 %v3975_v40, 16  ;;  %v3980_v61 = vshrl.u32 %v3975_v40, 16  ;;  %v2690_v35 = vadd.f32 %v2649_v62, %v2321_v8 }
 0x33f   : > { %v4467_v26 = vsel %vm4407_vm1, %v4401_v55, 0.0  ;;  %v4515_v57 = vmul.f32 %v4401_v55, %v4401_v55  ;;  %v3962_v25 = vshrl.u32 %v3961_v4, 4  ;;  %vm3981_vm2 = vc.u32 %v3973_v49, %v3977_v23 }
 0x340   : > { %v4468_v63 = vadd.f32 %v4467_v26, %v4466_v16  ;;  %v3982_v7 = vsel %vm3981_vm2, 1, %v7302_v36  ;;  %v3983_v20 = vadd.s32 %v3977_v23, %v3973_v49  ;;  %v4002_v22 = vmul.u32 14564, %v3999_v41 }
 0x341   : > { %v4580_v34 = vsel %vm4407_vm1, %v4515_v57, 0.0  ;;  %v3963_v28 = vmul.u32 18, %v3962_v25  ;;  %v3984_v43 = vadd.s32 %v3982_v7, %v3976_v50  ;;  %v7193_v14 = vadd.f32 %v2885_v5, %v2690_v35  ;;  %v7391_v5 = vld [vmem:[#allocation27_spill] sm:$0xff] }
 0x342   : > { %v4581_v44 = vadd.f32 %v4580_v34, %v4579_v31  ;;  %vm3985_vm4 = vc.u32 %v3983_v20, %v3979_v59  ;;  %v4003_v56 = vmul.u32 58254, %v3999_v41  ;;  %v4004_v9 = vmul.u32 14564, %v4000_v3 }
 0x343   : > { %v3964_v54 = vsub.s32 %v7148_v47, %v3963_v28  ;;  %v3986_v30 = vsel %vm3985_vm4, 1, %v7302_v36  ;;  %v4005_v15 = vmul.u32 58254, %v4000_v3  ;;  %v2962_v21 = vpack.c.bf16 %v7193_v14, %v7193_v14  ;;  %v2888_v55 = vpop.f32.mrf.mxu0 }
 0x344   : > { %v3988_v16 = vadd.s32 %v3986_v30, %v3984_v43  ;;  %v4006_v51 = vshll.u32 %v4003_v56, 16  ;;  %v4007_v13 = vshrl.u32 %v4003_v56, 16  ;;  %v4008_v12 = vshll.u32 %v4004_v9, 16  ;;  %v7390_v43 = vld [vmem:[#allocation7_spill] sm:$0xff] }
 0x345   : > { %vm4114_vm8 = vcmp.ne.s32.totalorder %v3964_v54, 0  ;;  %vm4150_vm9 = vcmp.lt.s32.totalorder %v3964_v54, 0  ;;  %v4222_v19 = vadd.s32 18, %v3964_v54  ;;  %2999 = vst.msk [vmem:[%s6258_s14 + $0x84] sm:$0xf] %vm2965_vm15, %v2962_v21  ;;  %v4009_v47 = vshrl.u32 %v4004_v9, 16 }
 0x346   : > { %vm4186_vm10 = vmand %vm4150_vm9, %vm4114_vm8  ;;  %v3989_v31 = vadd.s32 %v3988_v16, %v3978_v42  ;;  %vm4010_vm11 = vc.u32 %v4002_v22, %v4006_v51  ;;  %v4012_v48 = vadd.s32 %v4006_v51, %v4002_v22  ;;  %v1725_v38 = vadd.f32 %v7389_v18, %v7388_v53 }
 0x347   : > { %v4258_v6 = vsel %vm4186_vm10, %v4222_v19, %v3964_v54  ;;  %v4011_v39 = vsel %vm4010_vm11, 1, %v7302_v36  ;;  %v7205_v33 = vadd.s32 272, %v5900_v58  ;;  %v1726_v22 = vadd.f32 %v7391_v5, %v7390_v43  ;;  %v2285_v54 = vpop.f32.mrf.mxu2 }
 0x348   : > { %vm4294_vm13 = vcmp.lt.s32.totalorder %v4258_v6, 16  ;;  %v3990_v46 = vadd.s32 %v3989_v31, %v3980_v61  ;;  %v4013_v32 = vadd.s32 %v4011_v39, %v4005_v15  ;;  %vm4014_vm14 = vc.u32 %v4012_v48, %v4008_v12 }
 0x349   : > { %v4402_v45 = vsel %vm4294_vm13, %v7159_v1, 0.0  ;;  %v4015_v11 = vsel %vm4014_vm14, 1, %v7302_v36  ;;  %v1961_v49 = vadd.f32 %v1922_v17, %v1725_v38  ;;  %v4028_v60 = vand.u32 65535, %v7205_v33 }
 0x34a   : > { %v4469_v2 = vsel %vm4407_vm1, %v4402_v45, 0.0  ;;  %v4516_v40 = vmul.f32 %v4402_v45, %v4402_v45  ;;  %v3991_v50 = vshrl.u32 %v3990_v46, 4  ;;  %v4017_v27 = vadd.s32 %v4015_v11, %v4013_v32 }
 0x34b   : > { %v4470_v29 = vadd.f32 %v4469_v2, %v4468_v63  ;;  %v2322_v41 = vadd.f32 %v2283_v24, %v1961_v49  ;;  %v4029_v3 = vshrl.u32 %v7205_v33, 16  ;;  %v4031_v4 = vmul.u32 14564, %v4028_v60  ;;  %v1924_v63 = vpop.f32.mrf.mxu1  ;;  %v2890_v38 = vpop.f32.mrf.mxu0 }
 0x34c   : > { %v4582_v23 = vsel %vm4407_vm1, %v4516_v40, 0.0  ;;  %v3992_v42 = vmul.u32 18, %v3991_v50  ;;  %v4018_v1 = vadd.s32 %v4017_v27, %v4007_v13  ;;  %v4032_v59 = vmul.u32 58254, %v4028_v60 }
 0x34d   : > { %v4583_v61 = vadd.f32 %v4582_v23, %v4581_v44  ;;  %v2691_v8 = vadd.f32 %v2652_v52, %v2322_v41  ;;  %v4033_v26 = vmul.u32 14564, %v4029_v3  ;;  %v4034_v57 = vmul.u32 58254, %v4029_v3 }
 0x34e   : > { %v3993_v25 = vsub.s32 %v7170_v0, %v3992_v42  ;;  %v4019_v62 = vadd.s32 %v4018_v1, %v4009_v47  ;;  %v4035_v7 = vshll.u32 %v4032_v59, 16  ;;  %v4036_v20 = vshrl.u32 %v4032_v59, 16  ;;  %v2654_v47 = vpop.f32.mrf.mxu3 }
 0x34f   : > { %v7214_v35 = vadd.f32 %v2888_v55, %v2691_v8  ;;  %v4037_v34 = vshll.u32 %v4033_v26, 16  ;;  %v4038_v28 = vshrl.u32 %v4033_v26, 16  ;;  %v1962_v9 = vadd.f32 %v1924_v63, %v1726_v22 }
 0x350   : > { %vm4115_vm5 = vcmp.ne.s32.totalorder %v3993_v25, 0  ;;  %vm4151_vm0 = vcmp.lt.s32.totalorder %v3993_v25, 0  ;;  %v4223_v44 = vadd.s32 18, %v3993_v25  ;;  %v4020_v56 = vshrl.u32 %v4019_v62, 4 }
 0x351   : > { %vm4187_vm12 = vmand %vm4151_vm0, %vm4115_vm5  ;;  %v2963_v0 = vpack.c.bf16 %v7214_v35, %v7214_v35  ;;  %vm4039_vm3 = vc.u32 %v4031_v4, %v4035_v7  ;;  %v4041_v30 = vadd.s32 %v4035_v7, %v4031_v4  ;;  %v7222_v51 = vadd.s32 280, %v5900_v58 }
 0x352   : > { %v4259_v15 = vsel %vm4187_vm12, %v4223_v44, %v3993_v25  ;;  %v4021_v16 = vmul.u32 18, %v4020_v56  ;;  %v4040_v21 = vsel %vm4039_vm3, 1, %v7302_v36  ;;  %v2323_v17 = vadd.f32 %v2285_v54, %v1962_v9 }
 0x353   : > { %vm4295_vm7 = vcmp.lt.s32.totalorder %v4259_v15, 16  ;;  %3000 = vst.msk [vmem:[%s6258_s14 + $0x88] sm:$0xf] %vm2965_vm15, %v2963_v0  ;;  %v4042_v13 = vadd.s32 %v4040_v21, %v4034_v57  ;;  %vm4043_vm6 = vc.u32 %v4041_v30, %v4037_v34  ;;  %v4057_v48 = vand.u32 65535, %v7222_v51 }
 0x354   : > { %v4403_v19 = vsel %vm4295_vm7, %v7172_v10, 0.0  ;;  %v4022_v12 = vsub.s32 %v7183_v37, %v4021_v16  ;;  %v4044_v31 = vsel %vm4043_vm6, 1, %v7302_v36  ;;  %v2692_v39 = vadd.f32 %v2654_v47, %v2323_v17 }
 0x355   : > { %v4471_v24 = vsel %vm4407_vm1, %v4403_v19, 0.0  ;;  %v4517_v6 = vmul.f32 %v4403_v19, %v4403_v19  ;;  %v4046_v58 = vadd.s32 %v4044_v31, %v4042_v13  ;;  %v4058_v32 = vshrl.u32 %v7222_v51, 16 }
 0x356   : > { %v4472_v53 = vadd.f32 %v4471_v24, %v4470_v29  ;;  %vm4116_vm2 = vcmp.ne.s32.totalorder %v4022_v12, 0  ;;  %vm4152_vm4 = vcmp.lt.s32.totalorder %v4022_v12, 0  ;;  %v4224_v18 = vadd.s32 18, %v4022_v12 }
 0x357   : > { %v4584_v46 = vsel %vm4407_vm1, %v4517_v6, 0.0  ;;  %vm4188_vm8 = vmand %vm4152_vm4, %vm4116_vm2  ;;  %v4047_v10 = vadd.s32 %v4046_v58, %v4036_v20  ;;  %v2928_v37 = vadd.f32 %v2890_v38, %v2692_v39  ;;  %v4060_v49 = vmul.u32 14564, %v4057_v48 }
 0x358   : > { %v4585_v45 = vadd.f32 %v4584_v46, %v4583_v61  ;;  %v4260_v11 = vsel %vm4188_vm8, %v4224_v18, %v4022_v12  ;;  %v4061_v60 = vmul.u32 58254, %v4057_v48  ;;  %v4062_v50 = vmul.u32 14564, %v4058_v32 }
 0x359   : > { %vm4296_vm9 = vcmp.lt.s32.totalorder %v4260_v11, 16  ;;  %v4048_v2 = vadd.s32 %v4047_v10, %v4038_v28  ;;  %v2964_v40 = vpack.c.bf16 %v2928_v37, %v2928_v37  ;;  %v4063_v52 = vmul.u32 58254, %v4058_v32 }
 0x35a   : > { %v4404_v27 = vsel %vm4296_vm9, %v7193_v14, 0.0  ;;  %v4064_v29 = vshll.u32 %v4061_v60, 16  ;;  %v4066_v23 = vshll.u32 %v4062_v50, 16  ;;  %v4065_v26 = vshrl.u32 %v4061_v60, 16 }
 0x35b   : > { %v4473_v41 = vsel %vm4407_vm1, %v4404_v27, 0.0  ;;  %v4518_v3 = vmul.f32 %v4404_v27, %v4404_v27  ;;  %v4049_v4 = vshrl.u32 %v4048_v2, 4  ;;  %3001 = vst.msk [vmem:[%s6258_s14 + $0x8c] sm:$0xf] %vm2965_vm15, %v2964_v40  ;;  %v4067_v62 = vshrl.u32 %v4062_v50, 16 }
 0x35c   : > { %v4474_v42 = vadd.f32 %v4473_v41, %v4472_v53  ;;  %vm4068_vm10 = vc.u32 %v4060_v49, %v4064_v29  ;;  %v4070_v1 = vadd.s32 %v4064_v29, %v4060_v49  ;;  %vm4598_vm6 = vcmask 1040384  }
 0x35d   : > { %v4586_v55 = vsel %vm4407_vm1, %v4518_v3, 0.0  ;;  %v4050_v59 = vmul.u32 18, %v4049_v4  ;;  %v4069_v61 = vsel %vm4068_vm10, 1, %v7302_v36 }
 0x35e   : > { %v4587_v8 = vadd.f32 %v4586_v55, %v4585_v45  ;;  %v4071_v14 = vadd.s32 %v4069_v61, %v4063_v52  ;;  %vm4072_vm11 = vc.u32 %v4070_v1, %v4066_v23 }
 0x35f   : > { %v4051_v57 = vsub.s32 %v7205_v33, %v4050_v59  ;;  %v4073_v25 = vsel %vm4072_vm11, 1, %v7302_v36 }
 0x360   : > { %v4075_v7 = vadd.s32 %v4073_v25, %v4071_v14 }
 0x361   : > { %vm4117_vm15 = vcmp.ne.s32.totalorder %v4051_v57, 0  ;;  %vm4153_vm13 = vcmp.lt.s32.totalorder %v4051_v57, 0  ;;  %v4225_v20 = vadd.s32 18, %v4051_v57 }
 0x362   : > { %vm4189_vm14 = vmand %vm4153_vm13, %vm4117_vm15  ;;  %v4076_v63 = vadd.s32 %v4075_v7, %v4065_v26 }
 0x363   : > { %v4261_v34 = vsel %vm4189_vm14, %v4225_v20, %v4051_v57 }
 0x364   : > { %vm4297_vm5 = vcmp.lt.s32.totalorder %v4261_v34, 16  ;;  %v4077_v28 = vadd.s32 %v4076_v63, %v4067_v62 }
 0x365   : > { %v4405_v43 = vsel %vm4297_vm5, %v7214_v35, 0.0 }
 0x366   : > { %v4475_v5 = vsel %vm4407_vm1, %v4405_v43, 0.0  ;;  %v4519_v22 = vmul.f32 %v4405_v43, %v4405_v43  ;;  %v4078_v44 = vshrl.u32 %v4077_v28, 4 }
 0x367   : > { %v4476_v56 = vadd.f32 %v4475_v5, %v4474_v42 }
 0x368   : > { %v4588_v33 = vsel %vm4407_vm1, %v4519_v22, 0.0  ;;  %v4079_v36 = vmul.u32 18, %v4078_v44 }
 0x369   : > { %v4589_v54 = vadd.f32 %v4588_v33, %v4587_v8 }
 0x36a   : > { %v4080_v0 = vsub.s32 %v7222_v51, %v4079_v36 }
 0x36c   : > { %vm4118_vm0 = vcmp.ne.s32.totalorder %v4080_v0, 0  ;;  %vm4154_vm12 = vcmp.lt.s32.totalorder %v4080_v0, 0  ;;  %v4226_v30 = vadd.s32 18, %v4080_v0 }
 0x36d   : > { %vm4190_vm3 = vmand %vm4154_vm12, %vm4118_vm0 }
 0x36e   : > { %v4262_v9 = vsel %vm4190_vm3, %v4226_v30, %v4080_v0 }
 0x36f   : > { %vm4298_vm7 = vcmp.lt.s32.totalorder %v4262_v9, 16 }
 0x370   : > { %v4406_v15 = vsel %vm4298_vm7, %v2928_v37, 0.0 }
 0x371   : > { %v4477_v35 = vsel %vm4407_vm1, %v4406_v15, 0.0  ;;  %v4520_v16 = vmul.f32 %v4406_v15, %v4406_v15 }
 0x372   : > { %v4478_v21 = vadd.f32 %v4477_v35, %v4476_v56 }
 0x373   : > { %v4590_v13 = vsel %vm4407_vm1, %v4520_v16, 0.0  ;;  %vm4600_vm1 = vcmask 25600  }
 0x374   : > { %v4479_v17 = vrot.slane %v4478_v21, 4  ;;  %v4591_v19 = vadd.f32 %v4590_v13, %v4589_v54 }
 0x376   : > { %v4480_v12 = vadd.f32 %v4479_v17, %v4478_v21  ;;  %v4592_v31 = vrot.slane %v4591_v19, 4 }
 0x378   : > { %v4481_v47 = vrot.slane %v4480_v12, 2  ;;  %v4593_v51 = vadd.f32 %v4592_v31, %v4591_v19 }
 0x37a   : > { %v4482_v48 = vadd.f32 %v4481_v47, %v4480_v12  ;;  %v4594_v24 = vrot.slane %v4593_v51, 2 }
 0x37c   : > { %v4483_v6 = vrot.slane %v4482_v48, 1  ;;  %v4595_v58 = vadd.f32 %v4594_v24, %v4593_v51 }
 0x37e   : > { %v4596_v39 = vrot.slane %v4595_v58, 1  ;;  %v4484_v53 = vadd.f32 %v4483_v6, %v4482_v48 }
 0x380   : > { %v4597_v18 = vadd.f32 %v4596_v39, %v4595_v58 }
 0x382   : > { %v4599_v38 = vsel %vm4598_vm6, %v4484_v53, %v4597_v18 }
 0x383   : > { %4601 = vst.msk [vmem:[%s181_s18] sm:$0x3] %vm4600_vm1, %v4599_v38 }
 0x384 PF: > { %s14_s12 = sadd.s32 1, %s5170_s12  }
 0x385   : > { %p11_p4 = scmp.ge.s32.totalorder %s14_s12, 4  }
 0x387   :  { %13 = sbr.rel (!%p11_p4) target bundleno = 1 (0x1), region = 78 }

// kernel: up_forward.3
= control target key start
LH: loop header
LB: loop body
LE: loop exit
PB: predicated region body
PF: predicated region fallthrough
CT: control target
= control target key end

     0   :  { %s5192_s12 = smov 0   ;;  %s7222_s0 = inlined_call_operand.vmem [shape: bf16[2,332,4], index: 0, kind: input, shape index: {}]   ;;  %s7223_s1 = inlined_call_operand.vmem [shape: bf16[9,4,4], index: 1, kind: input, shape index: {}]   ;;  %s7224_s2 = inlined_call_operand.vmem [shape: bf16[2,288,4], index: 2, kind: output, shape index: {0}]   ;;  %s7225_s3 = inlined_call_operand.vmem [shape: f32[2,2,4], index: 3, kind: output, shape index: {1}]  }
   0x1 LB: > { %s4687_s13 = sadd.s32 4294967295, %s5169_s12   ;;  %p4691_p0 = scmp.ge.s32.totalorder %s5169_s12, 1  ;;  %s5169_s12 = sphi %s5192_s12, %s14_s12  }
   0x2   : > { %p140_p1 = scmp.lt.s32.totalorder %s5169_s12, 3 }
   0x4   : > { %p141_p2 = pnand %p4691_p0, %p140_p1 }
   0x6   : > { %144 = sbr.rel (%p141_p2) target bundleno = 899 (0x383), region = 28 }
   0xb   : > { %v4695_v0 = vld [vmem:[%s7223_s1 + $0x2] sm:$0x3]  ;;  %vm520_vm0 = vcmask 1041408   ;;  %p168_p3 = scmp.lt.s32.totalorder %s4687_s13, 1  ;;  %v4800_v2 = vld [vmem:[%s7223_s1 + $0x4] sm:$0x3] }
   0xc   : > { %v522_v1 = vsel %vm520_vm0, %v4695_v0, 0  ;;  %v219_v3 = vld [vmem:[%s7223_s1] sm:$0x3]  ;;  %v860_v4 = vsel %vm520_vm0, %v4800_v2, 0  ;;  %v4906_v6 = vld [vmem:[%s7223_s1 + $0x8] sm:$0x3] }
   0xd   : > { %5129 = vmatpush.bf16.msra.mxu1 %v522_v1  ;;  %5130 = vmatpush.bf16.msra.mxu2 %v522_v1  ;;  %s7367_s13 = smov (!%p168_p3, %s4687_s13), 1  ;;  %v660_v5 = vsel %vm520_vm0, %v219_v3, 0  ;;  %v1590_v7 = vsel %vm520_vm0, %v4906_v6, 0  ;;  %vm316_vm1 = vsmask.f32 7424  ;;  %vm465_vm2 = vcmask 31744  }
   0xe   : > { %531 = vmatpush.bf16.msra.mxu0 %v522_v1  ;;  %s5132_s22 = smul.u32 168, %s7367_s13  ;;  %5131 = vmatpush.bf16.msra.mxu3 %v522_v1  ;;  %v4819_v45 = vld [vmem:[%s7223_s1 + $0x6] sm:$0x3]  ;;  %vm767_vm3 = vcmask 1046528   ;;  %vm1364_vm4 = vsmask.f32 6400 }
   0xf   : > { %v1221_v53 = vsel %vm520_vm0, %v4819_v45, 0  ;;  %vm2330_vm5 = vsmask.f32 5376  ;;  %vm1733_vm6 = vcmask 1045504   ;;  %vm2699_vm7 = vcmask 1044480   ;;  %s5133_s9 = smul.u32 144, %s7367_s13 }
  0x10   : > { %s5222_s25 = scalar_lea.vmem %s7222_s0, %s5132_s22  ;;  %s4694_s15 = sshll.u32 %s7367_s13, 1 }
  0x11   : > { %869 = vmatpush.bf16.msrb.mxu2 %v860_v4  ;;  %669 = vmatpush.bf16.msrb.mxu1 %v660_v5  ;;  %v5225_v8 = vld [vmem:[%s5222_s25 + $0x28] sm:$0xff]  ;;  %v5228_v9 = vld [vmem:[%s5222_s25 + $0x30] sm:$0xff]  ;;  %v5234_v11 = vld [vmem:[%s5222_s25 + $0x58] sm:$0xff]  ;;  %s6258_s14 = scalar_lea.vmem %s7224_s2, %s5133_s9  ;;  %s181_s18 = scalar_lea.vmem %s7225_s3, %s4694_s15 }
  0x12   : > { %1599 = vmatpush.bf16.msrb.mxu0 %v1590_v7  ;;  %v5231_v10 = vld [vmem:[%s5222_s25 + $0x50] sm:$0xff]  ;;  %v5237_v12 = vld [vmem:[%s5222_s25] sm:$0xff]   ;;  %v5240_v13 = vld [vmem:[%s5222_s25 + $0x8] sm:$0xff]  ;;  %v357_v14 = vshll.u32 %v5225_v8, 16  ;;  %v361_v15 = vshrl.u32 %v5225_v8, 16  ;;  %v365_v16 = vshll.u32 %v5228_v9, 16  ;;  %1230 = vmatpush.bf16.msrb.mxu3 %v1221_v53 }
  0x13   : > { %v397_v17 = vshll.u32 %v5231_v10, 16  ;;  %v401_v18 = vshrl.u32 %v5231_v10, 16  ;;  %v405_v19 = vshll.u32 %v5234_v11, 16  ;;  %v318_v20 = vshrl.u32 %v5237_v12, 16  ;;  %v5258_v31 = vld [vmem:[%s5222_s25 + $0x78] sm:$0xff]  ;;  %v5086_v32 = vld [vmem:[%s5222_s25 + $0x80] sm:$0xff] }
  0x14   : > { %v320_v21 = vshll.u32 %v5237_v12, 16  ;;  %v5250_v22 = vrot.slane %v357_v14, 1  ;;  %v367_v23 = vrot.slane %v365_v16, 1  ;;  %v325_v25 = vshll.u32 %v5240_v13, 16  ;;  %v5267_v37 = vld [vmem:[%s5222_s25 + $0x38] sm:$0xff]  ;;  %v5271_v38 = vld [vmem:[%s5222_s25 + $0x60] sm:$0xff] }
  0x15   : > { %v5252_v24 = vrot.slane %v397_v17, 1  ;;  %v407_v26 = vrot.slane %v405_v19, 1  ;;  %v437_v39 = vshll.u32 %v5258_v31, 16  ;;  %v441_v40 = vshrl.u32 %v5258_v31, 16  ;;  %v5276_v42 = vld [vmem:[%s5222_s25 + $0x10] sm:$0xff]  ;;  %v5087_v59 = vld [vmem:[%s5222_s25 + $0x88] sm:$0xff] }
  0x16   : > { %v322_v27 = vrot.slane %v320_v21, 1  ;;  %v363_v28 = vor.u32 %v361_v15, %v5250_v22  ;;  %v327_v30 = vrot.slane %v325_v25, 1  ;;  %v445_v41 = vshll.u32 %v5086_v32, 16  ;;  %v5295_v60 = vld [vmem:[%s5222_s25 + $0x48] sm:$0xff]  ;;  %v5304_v5 = vld [vmem:[%s5222_s25 + $0x40] sm:$0xff]  ;;  %v5312_v17 = vld [vmem:[%s5222_s25 + $0x18] sm:$0xff] }
  0x17   : > { %v403_v29 = vor.u32 %v401_v18, %v5252_v24  ;;  %v5278_v43 = vrot.slane %v437_v39, 1  ;;  %v369_v46 = vshrl.u32 %v5228_v9, 16  ;;  %v373_v47 = vshll.u32 %v5267_v37, 16  ;;  %v5307_v6 = vld [vmem:[%s5222_s25 + $0x68] sm:$0xff]  ;;  %v220_v18 = vld [vmem:[%s5222_s25 + $0x90] sm:$0x1] }
  0x18   : > { %v323_v33 = vor.u32 %v322_v27, %v318_v20  ;;  %v368_v34 = vsel %vm316_vm1, %v363_v28, %v367_v23  ;;  %v447_v44 = vrot.slane %v445_v41, 1  ;;  %v409_v48 = vshrl.u32 %v5234_v11, 16  ;;  %v5321_v27 = vld [vmem:[%s5222_s25 + $0x20] sm:$0xff] }
  0x19   : > { %v408_v35 = vsel %vm316_vm1, %v403_v29, %v407_v26  ;;  %4769 = vmatmul.msk.bf16.vlgmr.msra.gmra.mxu1 %vm465_vm2, %v368_v34  ;;  %v413_v49 = vshll.u32 %v5271_v38, 16  ;;  %v443_v50 = vor.u32 %v441_v40, %v5278_v43  ;;  %v329_v51 = vshrl.u32 %v5240_v13, 16 }
  0x1a   : > { %4774 = vmatmul.msk.bf16.vlgmr.msra.gmra.mxu2 %vm465_vm2, %v408_v35  ;;  %v328_v36 = vsel %vm316_vm1, %v323_v33, %v327_v30  ;;  %v333_v52 = vshll.u32 %v5276_v42, 16  ;;  %v371_v55 = vor.u32 %v369_v46, %v367_v23  ;;  %v375_v56 = vrot.slane %v373_v47, 1 }
  0x1b   : > { %4764 = vmatmul.msk.bf16.vlgmr.msra.gmra.mxu0 %vm465_vm2, %v328_v36  ;;  %v448_v54 = vsel %vm316_vm1, %v443_v50, %v447_v44  ;;  %v411_v57 = vor.u32 %v409_v48, %v407_v26  ;;  %v415_v58 = vrot.slane %v413_v49, 1  ;;  %v331_v61 = vor.u32 %v329_v51, %v327_v30 }
  0x1c   : > { %4779 = vmatmul.msk.bf16.vlgmr.msra.gmra.mxu3 %vm465_vm2, %v448_v54  ;;  %v335_v62 = vrot.slane %v333_v52, 1  ;;  %v376_v63 = vsel %vm316_vm1, %v371_v55, %v375_v56  ;;  %v449_v1 = vshrl.u32 %v5086_v32, 16  ;;  %v453_v2 = vshll.u32 %v5087_v59, 16  ;;  %v5342_v52 = vld [vmem:[%s5222_s25 + $0x70] sm:$0xff] }
  0x1d   : > { %v416_v0 = vsel %vm316_vm1, %v411_v57, %v415_v58  ;;  %v389_v3 = vshll.u32 %v5295_v60, 16  ;;  %v393_v16 = vshrl.u32 %v5295_v60, 16  ;;  %v377_v20 = vshrl.u32 %v5267_v37, 16 }
  0x1e   : > { %v336_v4 = vsel %vm316_vm1, %v331_v61, %v335_v62  ;;  %v451_v7 = vor.u32 %v449_v1, %v447_v44  ;;  %v455_v14 = vrot.slane %v453_v2, 1  ;;  %v381_v21 = vshll.u32 %v5304_v5, 16 }
  0x1f   : > { %v391_v15 = vrot.slane %v389_v3, 1  ;;  %v417_v23 = vshrl.u32 %v5271_v38, 16  ;;  %v421_v25 = vshll.u32 %v5307_v6, 16  ;;  %v296_v28 = vunpack.c.l.b16 %v220_v18 }
  0x20   : > { %v456_v26 = vsel %vm316_vm1, %v451_v7, %v455_v14  ;;  %v337_v30 = vshrl.u32 %v5276_v42, 16  ;;  %v341_v32 = vshll.u32 %v5312_v17, 16  ;;  %v379_v33 = vor.u32 %v377_v20, %v375_v56  ;;  %v5088_v7 = vld [vmem:[%s5222_s25 + $0x10] sm:$0xff] }
  0x21   : > { %v395_v19 = vor.u32 %v393_v16, %v391_v15  ;;  %v383_v34 = vrot.slane %v381_v21, 1  ;;  %v419_v35 = vor.u32 %v417_v23, %v415_v58  ;;  %v423_v36 = vrot.slane %v421_v25, 1  ;;  %v4944_v21 = vld [vmem:[%s7223_s1 + $0xc] sm:$0x3]  ;;  %v5031_v25 = vld [vmem:[%s7223_s1 + $0xe] sm:$0x3] }
  0x22   : > { %v349_v39 = vshll.u32 %v5321_v27, 16  ;;  %v5331_v40 = vpack.c.b16 %v296_v28, %v296_v28  ;;  %v339_v41 = vor.u32 %v337_v30, %v335_v62  ;;  %v343_v44 = vrot.slane %v341_v32, 1  ;;  %v997_v62 = vld [vmem:[%s5222_s25 + $0x8] sm:$0xe]  ;;  %v5050_v32 = vld [vmem:[%s7223_s1 + $0x10] sm:$0x3] }
  0x23   : > { %v5325_v29 = vsel %vm316_vm1, %v395_v19, %v5252_v24  ;;  %v384_v24 = vsel %vm316_vm1, %v379_v33, %v383_v34  ;;  %v424_v45 = vsel %vm316_vm1, %v419_v35, %v423_v36  ;;  %v457_v47 = vshrl.u32 %v5087_v59, 16 }
  0x24   : > { %v351_v46 = vrot.slane %v349_v39, 1  ;;  %v461_v48 = vshll.u32 %v5331_v40, 16  ;;  %v353_v49 = vshrl.u32 %v5321_v27, 16  ;;  %v344_v50 = vsel %vm316_vm1, %v339_v41, %v343_v44  ;;  %v5089_v41 = vld [vmem:[%s5222_s25 + $0x18] sm:$0xff] }
  0x25   : > { %v459_v53 = vor.u32 %v457_v47, %v455_v14  ;;  %v385_v56 = vshrl.u32 %v5304_v5, 16  ;;  %v425_v57 = vshrl.u32 %v5307_v6, 16  ;;  %v429_v58 = vshll.u32 %v5342_v52, 16 }
  0x26   : > { %v355_v51 = vor.u32 %v353_v49, %v351_v46  ;;  %v463_v54 = vrot.slane %v461_v48, 1  ;;  %v345_v61 = vshrl.u32 %v5312_v17, 16  ;;  %v1073_v3 = vunpack.c.l.b16 %v997_v62 }
  0x27   : > { %v427_v1 = vor.u32 %v425_v57, %v423_v36  ;;  %v431_v2 = vrot.slane %v429_v58, 1  ;;  %v1130_v20 = vrot.slane %v5088_v7, 1  ;;  %v2556_v28 = vsel %vm520_vm0, %v5031_v25, 0 }
  0x28   : > { %v360_v55 = vsel %vm316_vm1, %v355_v51, %v5250_v22  ;;  %v464_v59 = vsel %vm316_vm1, %v459_v53, %v463_v54  ;;  %2565 = vmatpush.bf16.msra.mxu3 %v2556_v28  ;;  %v2792_v33 = vsel %vm520_vm0, %v5050_v32, 0  ;;  %v1374_v48 = vshrl.u32 %v5088_v7, 16 }
  0x29   : > { %4770 = vmatmul.msk.bf16.gmra.mxu1 %vm465_vm2, %v376_v63  ;;  %v5353_v63 = vld [vmem:[%s5222_s25 + $0xc] sm:$0xf]  ;;  %v432_v16 = vsel %vm316_vm1, %v427_v1, %v431_v2  ;;  %2801 = vmatpush.bf16.msra.mxu0 %v2792_v33  ;;  %v1377_v49 = vshll.u32 %v5088_v7, 16  ;;  %v1383_v1 = vshrl.u32 %v5089_v41, 16  ;;  %v773_v28 = vrot.slane %v5312_v17, 1  ;;  %v5092_v33 = vld [vmem:[%s5222_s25 + $0x30] sm:$0xff] }
  0x2a   : > { %4775 = vmatmul.msk.bf16.gmra.mxu2 %vm465_vm2, %v416_v0  ;;  %v387_v0 = vor.u32 %v385_v56, %v383_v34  ;;  %v7226_v22 = vunpack.c.l.b16 %v5353_v63  ;;  %v433_v34 = vshrl.u32 %v5342_v52, 16  ;;  %v1376_v54 = vrot.slane %v1374_v48, 1 }
  0x2b   : > { %4765 = vmatmul.msk.bf16.gmra.mxu0 %vm465_vm2, %v336_v4  ;;  %v347_v4 = vor.u32 %v345_v61, %v343_v44  ;;  %v5126_v44 = vld [vmem:[%s5222_s25] sm:$0xf0]  ;;  %v1379_v56 = vrot.slane %v1377_v49, 2 }
  0x2c   : > { %4780 = vmatmul.msk.bf16.gmra.mxu3 %vm465_vm2, %v456_v26  ;;  %v392_v14 = vsel %vm316_vm1, %v387_v0, %v391_v15  ;;  %v1110_v18 = vpack.c.b16 %v7226_v22, %v1073_v3  ;;  %v2187_v15 = vsel %vm520_vm0, %v4944_v21, 0  ;;  %v4925_v26 = vld [vmem:[%s7223_s1 + $0xa] sm:$0x3]  ;;  %v435_v36 = vor.u32 %v433_v34, %v431_v2  ;;  %v5090_v61 = vld [vmem:[%s5222_s25 + $0x20] sm:$0xff] }
  0x2d   : > { %v352_v19 = vsel %vm316_vm1, %v347_v4, %v351_v46  ;;  %2196 = vmatpush.bf16.msra.mxu2 %v2187_v15  ;;  %v1826_v30 = vsel %vm520_vm0, %v4925_v26, 0  ;;  %v1380_v58 = vor.u32 %v1379_v56, %v1376_v54  ;;  %v1134_v0 = vrot.slane %v5090_v61, 1  ;;  %v5098_v22 = vld [vmem:[%s5222_s25 + $0x60] sm:$0xff] }
  0x2e   : > { %v1129_v23 = vrot.slane %v1110_v18, 1  ;;  %1835 = vmatpush.bf16.msra.mxu1 %v1826_v30  ;;  %v440_v39 = vsel %vm316_vm1, %v435_v36, %v5278_v43  ;;  %v1366_v46 = vshrl.u32 %v1110_v18, 16  ;;  %v1369_v47 = vshll.u32 %v1110_v18, 16 }
  0x2f   : > { %v1386_v2 = vshll.u32 %v5089_v41, 16  ;;  %v1385_v4 = vrot.slane %v1383_v1, 1  ;;  %v1392_v21 = vshrl.u32 %v5090_v61, 16  ;;  %v1138_v34 = vrot.slane %v5092_v33, 1  ;;  %v5094_v1 = vld [vmem:[%s5222_s25 + $0x40] sm:$0xff] }
  0x30   : > { %v1131_v35 = vsel %vm767_vm3, %v1129_v23, %v1130_v20  ;;  %v1368_v43 = vrot.slane %v1366_v46, 1  ;;  %v1371_v53 = vrot.slane %v1369_v47, 2  ;;  %v1395_v23 = vshll.u32 %v5090_v61, 16  ;;  %v5093_v47 = vld [vmem:[%s5222_s25 + $0x38] sm:$0xff] }
  0x31   : > { %v1388_v7 = vrot.slane %v1386_v2, 2  ;;  %v1394_v25 = vrot.slane %v1392_v21, 1 }
  0x32   : > { %v1372_v57 = vor.u32 %v1371_v53, %v1368_v43  ;;  %v1397_v26 = vrot.slane %v1395_v23, 2  ;;  %v1413_v43 = vshll.u32 %v5092_v33, 16  ;;  %v779_v23 = vrot.slane %v5228_v9, 1 }
  0x34   : > { %v1381_v62 = vsel %vm1364_vm4, %v1372_v57, %v1380_v58  ;;  %v1398_v30 = vor.u32 %v1397_v26, %v1394_v25  ;;  %v1415_v57 = vrot.slane %v1413_v43, 2 }
  0x39   : > { %4771 = vmatmul.msk.bf16.gmra.mxu1 %vm465_vm2, %v384_v24  ;;  %v1132_v24 = vrot.slane %v5089_v41, 1 }
  0x3a   : > { %4776 = vmatmul.msk.bf16.gmra.mxu2 %vm465_vm2, %v424_v45  ;;  %v5127_v45 = vld [vmem:[%s5222_s25] sm:$0xe] }
  0x3b   : > { %4766 = vmatmul.msk.bf16.gmra.mxu0 %vm465_vm2, %v344_v50  ;;  %v5128_v50 = vor.u32 %v5127_v45, %v5126_v44  ;;  %v1133_v51 = vsel %vm767_vm3, %v1130_v20, %v1132_v24  ;;  %v1135_v3 = vsel %vm767_vm3, %v1132_v24, %v1134_v0  ;;  %v775_v24 = vrot.slane %v5321_v27, 1 }
  0x3c   : > { %4781 = vmatmul.msk.bf16.gmra.mxu3 %vm465_vm2, %v464_v59 }
  0x49   : > { %4772 = vmatmul.msk.bf16.gmra.mxu1 %vm465_vm2, %v392_v14  ;;  %v771_v14 = vrot.slane %v5276_v42, 1 }
  0x4a   : > { %4777 = vmatmul.msk.bf16.gmra.mxu2 %vm465_vm2, %v432_v16  ;;  %v1389_v16 = vor.u32 %v1388_v7, %v1385_v4  ;;  %v1142_v4 = vrot.slane %v5094_v1, 1  ;;  %v1419_v7 = vshrl.u32 %v5093_v47, 16 }
  0x4b   : > { %4767 = vmatmul.msk.bf16.gmra.mxu0 %vm465_vm2, %v352_v19  ;;  %v774_v32 = vsel %vm767_vm3, %v771_v14, %v773_v28 }
  0x4c   : > { %4888 = vmatmul.msk.bf16.vlgmr.msrb.gmra.mxu3 %vm465_vm2, %v1131_v35  ;;  %v1390_v19 = vsel %vm1364_vm4, %v1380_v58, %v1389_v16  ;;  %v1421_v21 = vrot.slane %v1419_v7, 1 }
  0x59   : > { %4773 = vmatmul.msk.bf16.gmra.mxu1 %vm465_vm2, %v5325_v29  ;;  %v768_v29 = vrot.slane %v5128_v50, 1  ;;  %v1140_v50 = vrot.slane %v5093_v47, 1 }
  0x5a   : > { %4778 = vmatmul.msk.bf16.gmra.mxu2 %vm465_vm2, %v440_v39 }
  0x5b   : > { %4768 = vmatmul.msk.bf16.gmra.mxu0 %vm465_vm2, %v360_v55  ;;  %v769_v55 = vrot.slane %v5240_v13, 1  ;;  %v1141_v56 = vsel %vm767_vm3, %v1138_v34, %v1140_v50 }
  0x5c   : > { %4889 = vmatmul.msk.bf16.gmra.mxu3 %vm465_vm2, %v1133_v51  ;;  %v1410_v51 = vshrl.u32 %v5092_v33, 16 }
  0x5d   : > { %v770_v59 = vsel %vm767_vm3, %v768_v29, %v769_v55  ;;  %v772_v18 = vsel %vm767_vm3, %v769_v55, %v771_v14  ;;  %v1422_v14 = vshll.u32 %v5093_v47, 16  ;;  %v781_v47 = vrot.slane %v5267_v37, 1 }
  0x5e   : > { %v1412_v55 = vrot.slane %v1410_v51, 1 }
  0x60   : > { %v1416_v58 = vor.u32 %v1415_v57, %v1412_v55  ;;  %v5096_v55 = vld [vmem:[%s5222_s25 + $0x50] sm:$0xff] }
  0x69   : > { %4782 = vmatmul.msk.bf16.vlgmr.msrb.gmra.mxu1 %vm465_vm2, %v5237_v12  ;;  %v5091_v12 = vld [vmem:[%s5222_s25 + $0x28] sm:$0xff] }
  0x6a   : > { %4801 = vmatmul.msk.bf16.vlgmr.msrb.gmra.mxu2 %vm465_vm2, %v770_v59  ;;  %v1136_v20 = vrot.slane %v5091_v12, 1  ;;  %v1401_v35 = vshrl.u32 %v5091_v12, 16  ;;  %v1404_v36 = vshll.u32 %v5091_v12, 16 }
  0x6b   : > { %4907 = vmatmul.msk.bf16.vlgmr.msrb.gmra.mxu0 %vm465_vm2, %v1381_v62 }
  0x6c   : > { %4890 = vmatmul.msk.bf16.gmra.mxu3 %vm465_vm2, %v1135_v3  ;;  %v1137_v15 = vsel %vm767_vm3, %v1134_v0, %v1136_v20  ;;  %v1139_v39 = vsel %vm767_vm3, %v1136_v20, %v1138_v34  ;;  %v1403_v41 = vrot.slane %v1401_v35, 1  ;;  %v1406_v44 = vrot.slane %v1404_v36, 2 }
  0x6d   : > { %v1428_v35 = vshrl.u32 %v5094_v1, 16  ;;  %v1431_v36 = vshll.u32 %v5094_v1, 16 }
  0x6e   : > { %v1407_v45 = vor.u32 %v1406_v44, %v1403_v41 }
  0x70   : > { %v1408_v49 = vsel %vm1364_vm4, %v1398_v30, %v1407_v45  ;;  %v1417_v3 = vsel %vm1364_vm4, %v1407_v45, %v1416_v58 }
  0x79   : > { %4783 = vmatmul.msk.bf16.gmra.mxu1 %vm465_vm2, %v5240_v13  ;;  %v1399_v13 = vsel %vm1364_vm4, %v1389_v16, %v1398_v30 }
  0x7a   : > { %4802 = vmatmul.msk.bf16.gmra.mxu2 %vm465_vm2, %v772_v18 }
  0x7b   : > { %4908 = vmatmul.msk.bf16.gmra.mxu0 %vm465_vm2, %v1390_v19  ;;  %v1143_v19 = vsel %vm767_vm3, %v1140_v50, %v1142_v4 }
  0x7c   : > { %4891 = vmatmul.msk.bf16.gmra.mxu3 %vm465_vm2, %v1137_v15 }
  0x89   : > { %4784 = vmatmul.msk.bf16.gmra.mxu1 %vm465_vm2, %v5276_v42  ;;  %v776_v42 = vsel %vm767_vm3, %v773_v28, %v775_v24 }
  0x8a   : > { %4803 = vmatmul.msk.bf16.gmra.mxu2 %vm465_vm2, %v774_v32  ;;  %v5095_v32 = vld [vmem:[%s5222_s25 + $0x48] sm:$0xff] }
  0x8b   : > { %4909 = vmatmul.msk.bf16.gmra.mxu0 %vm465_vm2, %v1399_v13  ;;  %v1144_v34 = vrot.slane %v5095_v32, 1  ;;  %v1440_v1 = vshll.u32 %v5095_v32, 16 }
  0x8c   : > { %4892 = vmatmul.msk.bf16.gmra.mxu3 %vm465_vm2, %v1139_v39 }
  0x96   : > { %v5427_v46 = vpop.f32.mrf.mxu1 }
  0x98   : > { %v5431_v48 = vpop.f32.mrf.mxu0 }
  0x99   : > { %4785 = vmatmul.msk.bf16.gmra.mxu1 %vm465_vm2, %v5312_v17  ;;  %v777_v17 = vrot.slane %v5225_v8, 1 }
  0x9a   : > { %4804 = vmatmul.msk.bf16.gmra.mxu2 %vm465_vm2, %v776_v42  ;;  %v1430_v42 = vrot.slane %v1428_v35, 1  ;;  %v5097_v35 = vld [vmem:[%s5222_s25 + $0x58] sm:$0xff] }
  0x9b   : > { %4910 = vmatmul.msk.bf16.gmra.mxu0 %vm465_vm2, %v1408_v49  ;;  %v778_v0 = vsel %vm767_vm3, %v775_v24, %v777_v17  ;;  %v780_v30 = vsel %vm767_vm3, %v777_v17, %v779_v23  ;;  %v1145_v24 = vsel %vm767_vm3, %v1142_v4, %v1144_v34 }
  0x9c   : > { %4893 = vmatmul.msk.bf16.gmra.mxu3 %vm465_vm2, %v1141_v56  ;;  %v782_v56 = vsel %vm767_vm3, %v779_v23, %v781_v47 }
  0x9d   : > { %v5438_v53 = vpop.f32.mrf.mxu2 }
  0x9e   : > { %v5440_v54 = vpop.f32.mrf.mxu1 }
  0x9f   : > { %v5449_v61 = vpop.f32.mrf.mxu3 }
  0xa0   : > { %v5443_v29 = vpop.f32.mrf.mxu0  ;;  %7237 = vst [vmem:[#allocation2_spill] sm:$0xff] %v5449_v61 }
  0xa5   : > { %v5447_v59 = vpop.f32.mrf.mxu2 }
  0xa6   : > { %v5451_v62 = vpop.f32.mrf.mxu1 }
  0xa7   : > { %v5464_v18 = vpop.f32.mrf.mxu3 }
  0xa8   : > { %v5455_v2 = vpop.f32.mrf.mxu0  ;;  %7238 = vst [vmem:[#allocation3_spill] sm:$0xff] %v5464_v18 }
  0xa9   : > { %4786 = vmatmul.msk.bf16.gmra.mxu1 %vm465_vm2, %v5321_v27  ;;  %v1424_v27 = vrot.slane %v1422_v14, 2 }
  0xaa   : > { %4805 = vmatmul.msk.bf16.gmra.mxu2 %vm465_vm2, %v778_v0  ;;  %v1437_v0 = vshrl.u32 %v5095_v32, 16 }
  0xab   : > { %4911 = vmatmul.msk.bf16.gmra.mxu0 %vm465_vm2, %v1417_v3  ;;  %v1425_v15 = vor.u32 %v1424_v27, %v1421_v21  ;;  %v783_v27 = vrot.slane %v5304_v5, 1 }
  0xac   : > { %4894 = vmatmul.msk.bf16.gmra.mxu3 %vm465_vm2, %v1143_v19  ;;  %v1439_v21 = vrot.slane %v1437_v0, 1 }
  0xad   : > { %v5462_v16 = vpop.f32.mrf.mxu2  ;;  %v1426_v13 = vsel %vm1364_vm4, %v1416_v58, %v1425_v15  ;;  %v1146_v58 = vrot.slane %v5096_v55, 1 }
  0xae   : > { %v5466_v12 = vpop.f32.mrf.mxu1 }
  0xaf   : > { %v5475_v26 = vpop.f32.mrf.mxu3  ;;  %v1147_v14 = vsel %vm767_vm3, %v1144_v34, %v1146_v58 }
  0xb0   : > { %v5469_v20 = vpop.f32.mrf.mxu0  ;;  %7239 = vst [vmem:[#allocation4_spill] sm:$0xff] %v5475_v26 }
  0xb5   : > { %v5473_v25 = vpop.f32.mrf.mxu2 }
  0xb6   : > { %v5477_v28 = vpop.f32.mrf.mxu1 }
  0xb7   : > { %v5490_v41 = vpop.f32.mrf.mxu3 }
  0xb8   : > { %v5481_v33 = vpop.f32.mrf.mxu0  ;;  %7240 = vst [vmem:[#allocation5_spill] sm:$0xff] %v5490_v41 }
  0xb9   : > { %4787 = vmatmul.msk.bf16.gmra.mxu1 %vm465_vm2, %v5225_v8  ;;  %v1433_v8 = vrot.slane %v1431_v36, 2 }
  0xba   : > { %4806 = vmatmul.msk.bf16.gmra.mxu2 %vm465_vm2, %v780_v30 }
  0xbb   : > { %4912 = vmatmul.msk.bf16.gmra.mxu0 %vm465_vm2, %v1426_v13  ;;  %v1434_v49 = vor.u32 %v1433_v8, %v1430_v42  ;;  %v784_v13 = vsel %vm767_vm3, %v781_v47, %v783_v27  ;;  %v1446_v42 = vshrl.u32 %v5096_v55, 16  ;;  %v1449_v8 = vshll.u32 %v5096_v55, 16 }
  0xbc   : > { %4895 = vmatmul.msk.bf16.gmra.mxu3 %vm465_vm2, %v1145_v24  ;;  %v1148_v24 = vrot.slane %v5097_v35, 1 }
  0xbd   : > { %v5488_v39 = vpop.f32.mrf.mxu2  ;;  %v1435_v17 = vsel %vm1364_vm4, %v1425_v15, %v1434_v49 }
  0xbe   : > { %v5492_v44 = vpop.f32.mrf.mxu1  ;;  %v1149_v0 = vsel %vm767_vm3, %v1146_v58, %v1148_v24  ;;  %v1150_v58 = vrot.slane %v5098_v22, 1 }
  0xbf   : > { %v5501_v51 = vpop.f32.mrf.mxu3 }
  0xc0   : > { %v5495_v45 = vpop.f32.mrf.mxu0  ;;  %7241 = vst [vmem:[#allocation6_spill] sm:$0xff] %v5501_v51  ;;  %v1151_v26 = vsel %vm767_vm3, %v1148_v24, %v1150_v58  ;;  %v5099_v24 = vld [vmem:[%s5222_s25 + $0x68] sm:$0xff] }
  0xc5   : > { %v5499_v50 = vpop.f32.mrf.mxu2 }
  0xc6   : > { %v5503_v43 = vpop.f32.mrf.mxu1 }
  0xc7   : > { %v5516_v4 = vpop.f32.mrf.mxu3 }
  0xc8   : > { %v5507_v57 = vpop.f32.mrf.mxu0  ;;  %7242 = vst [vmem:[#allocation7_spill] sm:$0xff] %v5516_v4 }
  0xc9   : > { %4788 = vmatmul.msk.bf16.gmra.mxu1 %vm465_vm2, %v5228_v9  ;;  %v1442_v9 = vrot.slane %v1440_v1, 2 }
  0xca   : > { %4807 = vmatmul.msk.bf16.gmra.mxu2 %vm465_vm2, %v782_v56 }
  0xcb   : > { %4913 = vmatmul.msk.bf16.gmra.mxu0 %vm465_vm2, %v1435_v17  ;;  %v1443_v23 = vor.u32 %v1442_v9, %v1439_v21 }
  0xcc   : > { %4896 = vmatmul.msk.bf16.gmra.mxu3 %vm465_vm2, %v1147_v14  ;;  %v1451_v14 = vrot.slane %v1449_v8, 2  ;;  %v1455_v8 = vshrl.u32 %v5097_v35, 16 }
  0xcd   : > { %v5514_v3 = vpop.f32.mrf.mxu2  ;;  %v1444_v34 = vsel %vm1364_vm4, %v1434_v49, %v1443_v23  ;;  %v1448_v49 = vrot.slane %v1446_v42, 1 }
  0xce   : > { %v5518_v7 = vpop.f32.mrf.mxu1  ;;  %v1457_v61 = vrot.slane %v1455_v8, 1 }
  0xcf   : > { %v1232_v30 = vpop.f32.mrf.mxu3  ;;  %v1452_v21 = vor.u32 %v1451_v14, %v1448_v49 }
  0xd0   : > { %v5521_v19 = vpop.f32.mrf.mxu0 }
  0xd1   : > { %v1453_v51 = vsel %vm1364_vm4, %v1443_v23, %v1452_v21 }
  0xd5   : > { %v5525_v15 = vpop.f32.mrf.mxu2 }
  0xd6   : > { %v5527_v32 = vpop.f32.mrf.mxu1 }
  0xd7   : > { %v1234_v17 = vpop.f32.mrf.mxu3 }
  0xd8   : > { %v5531_v36 = vpop.f32.mrf.mxu0 }
  0xd9   : > { %4789 = vmatmul.msk.bf16.gmra.mxu1 %vm465_vm2, %v5267_v37  ;;  %v785_v37 = vrot.slane %v5295_v60, 1 }
  0xda   : > { %4808 = vmatmul.msk.bf16.gmra.mxu2 %vm465_vm2, %v784_v13 }
  0xdb   : > { %4914 = vmatmul.msk.bf16.gmra.mxu0 %vm465_vm2, %v1444_v34  ;;  %v786_v34 = vsel %vm767_vm3, %v783_v27, %v785_v37 }
  0xdc   : > { %4897 = vmatmul.msk.bf16.gmra.mxu3 %vm465_vm2, %v1149_v0  ;;  %v1458_v0 = vshll.u32 %v5097_v35, 16 }
  0xdd   : > { %v5538_v56 = vpop.f32.mrf.mxu2 }
  0xde   : > { %7243 = vst [vmem:[#allocation8_spill] sm:$0xff] %v5538_v56  ;;  %v5540_v47 = vpop.f32.mrf.mxu1 }
  0xdf   : > { %v1237_v13 = vpop.f32.mrf.mxu3 }
  0xe0   : > { %v5543_v1 = vpop.f32.mrf.mxu0 }
  0xe5   : > { %v5547_v9 = vpop.f32.mrf.mxu2 }
  0xe6   : > { %7244 = vst [vmem:[#allocation9_spill] sm:$0xff] %v5547_v9  ;;  %v671_v55 = vpop.f32.mrf.mxu1 }
  0xe7   : > { %v672_v42 = vadd.f32 %v671_v55, %v5431_v48  ;;  %v1239_v14 = vpop.f32.mrf.mxu3 }
  0xe8   : > { %v1601_v4 = vpop.f32.mrf.mxu0 }
  0xe9   : > { %4790 = vmatmul.msk.bf16.gmra.mxu1 %vm465_vm2, %v5304_v5  ;;  %v1460_v5 = vrot.slane %v1458_v0, 2  ;;  %v1467_v0 = vshll.u32 %v5098_v22, 16 }
  0xea   : > { %4809 = vmatmul.msk.bf16.gmra.mxu2 %vm465_vm2, %v786_v34 }
  0xeb   : > { %4915 = vmatmul.msk.bf16.gmra.mxu0 %vm465_vm2, %v1453_v51  ;;  %v787_v51 = vrot.slane %v5231_v10, 1  ;;  %v1461_v35 = vor.u32 %v1460_v5, %v1457_v61 }
  0xec   : > { %4898 = vmatmul.msk.bf16.gmra.mxu3 %vm465_vm2, %v1151_v26 }
  0xed   : > { %v871_v49 = vpop.f32.mrf.mxu2  ;;  %v788_v56 = vsel %vm767_vm3, %v785_v37, %v787_v51  ;;  %v1462_v8 = vsel %vm1364_vm4, %v1452_v21, %v1461_v35 }
  0xee   : > { %v961_v41 = vadd.f32 %v871_v49, %v672_v42  ;;  %v673_v27 = vpop.f32.mrf.mxu1 }
  0xef   : > { %v674_v48 = vadd.f32 %v673_v27, %v5443_v29  ;;  %v1242_v9 = vpop.f32.mrf.mxu3  ;;  %v1152_v29 = vrot.slane %v5099_v24, 1 }
  0xf0   : > { %v1322_v23 = vadd.f32 %v1232_v30, %v961_v41  ;;  %v1603_v18 = vpop.f32.mrf.mxu0 }
  0xf1   : > { %v1153_v21 = vsel %vm767_vm3, %v1150_v58, %v1152_v29  ;;  %v5100_v58 = vld [vmem:[%s5222_s25 + $0x70] sm:$0xff] }
  0xf2   : > { %v5559_v34 = vadd.f32 %v1601_v4, %v1322_v23  ;;  %v1464_v4 = vshrl.u32 %v5098_v22, 16 }
  0xf5   : > { %v873_v55 = vpop.f32.mrf.mxu2 }
  0xf6   : > { %v962_v42 = vadd.f32 %v873_v55, %v674_v48  ;;  %v676_v49 = vpop.f32.mrf.mxu1  ;;  %v1466_v48 = vrot.slane %v1464_v4, 1  ;;  %v789_v55 = vrot.slane %v5234_v11, 1 }
  0xf7   : > { %v677_v61 = vadd.f32 %v676_v49, %v5455_v2  ;;  %v1244_v27 = vpop.f32.mrf.mxu3 }
  0xf8   : > { %v1323_v41 = vadd.f32 %v1234_v17, %v962_v42  ;;  %v1606_v30 = vpop.f32.mrf.mxu0 }
  0xf9   : > { %4791 = vmatmul.msk.bf16.gmra.mxu1 %vm465_vm2, %v5295_v60 }
  0xfa   : > { %4810 = vmatmul.msk.bf16.gmra.mxu2 %vm465_vm2, %v788_v56  ;;  %v5569_v26 = vadd.f32 %v1603_v18, %v1323_v41  ;;  %v1469_v56 = vrot.slane %v1467_v0, 2 }
  0xfb   : > { %4916 = vmatmul.msk.bf16.gmra.mxu0 %vm465_vm2, %v1462_v8 }
  0xfc   : > { %4899 = vmatmul.msk.bf16.gmra.mxu3 %vm465_vm2, %v1153_v21  ;;  %v1470_v22 = vor.u32 %v1469_v56, %v1466_v48 }
  0xfd   : > { %v876_v37 = vpop.f32.mrf.mxu2 }
  0xfe   : > { %v963_v17 = vadd.f32 %v876_v37, %v677_v61  ;;  %v678_v23 = vpop.f32.mrf.mxu1  ;;  %v790_v61 = vsel %vm767_vm3, %v787_v51, %v789_v55  ;;  %v1471_v4 = vsel %vm1364_vm4, %v1461_v35, %v1470_v22 }
  0xff   : > { %v679_v2 = vadd.f32 %v678_v23, %v5469_v20  ;;  %v1247_v49 = vpop.f32.mrf.mxu3  ;;  %v1154_v20 = vrot.slane %v5100_v58, 1  ;;  %v1476_v23 = vshll.u32 %v5099_v24, 16 }
 0x100   : > { %v1324_v5 = vadd.f32 %v1237_v13, %v963_v17  ;;  %v1608_v60 = vpop.f32.mrf.mxu0  ;;  %v1473_v17 = vshrl.u32 %v5099_v24, 16 }
 0x101   : > { %v1155_v35 = vsel %vm767_vm3, %v1152_v29, %v1154_v20  ;;  %v5101_v29 = vld [vmem:[%s5222_s25 + $0x78] sm:$0xff] }
 0x102   : > { %v5575_v18 = vadd.f32 %v1606_v30, %v1324_v5  ;;  %v1475_v56 = vrot.slane %v1473_v17, 1 }
 0x105   : > { %v878_v42 = vpop.f32.mrf.mxu2 }
 0x106   : > { %v964_v41 = vadd.f32 %v878_v42, %v679_v2  ;;  %v681_v8 = vpop.f32.mrf.mxu1  ;;  %v1478_v2 = vrot.slane %v1476_v23, 2  ;;  %v791_v42 = vrot.slane %v5271_v38, 1 }
 0x107   : > { %v682_v0 = vadd.f32 %v681_v8, %v5481_v33  ;;  %v1249_v21 = vpop.f32.mrf.mxu3 }
 0x108   : > { %v1325_v13 = vadd.f32 %v1239_v14, %v964_v41  ;;  %v1611_v37 = vpop.f32.mrf.mxu0  ;;  %v1479_v24 = vor.u32 %v1478_v2, %v1475_v56 }
 0x109   : > { %4792 = vmatmul.msk.bf16.gmra.mxu1 %vm465_vm2, %v5231_v10 }
 0x10a   : > { %4811 = vmatmul.msk.bf16.gmra.mxu2 %vm465_vm2, %v790_v61  ;;  %v5585_v30 = vadd.f32 %v1608_v60, %v1325_v13  ;;  %v1480_v17 = vsel %vm1364_vm4, %v1470_v22, %v1479_v24 }
 0x10b   : > { %4917 = vmatmul.msk.bf16.gmra.mxu0 %vm465_vm2, %v1471_v4  ;;  %v792_v4 = vsel %vm767_vm3, %v789_v55, %v791_v42 }
 0x10c   : > { %4900 = vmatmul.msk.bf16.gmra.mxu3 %vm465_vm2, %v1155_v35 }
 0x10d   : > { %v881_v51 = vpop.f32.mrf.mxu2 }
 0x10e   : > { %v965_v14 = vadd.f32 %v881_v51, %v682_v0  ;;  %v683_v5 = vpop.f32.mrf.mxu1  ;;  %v1482_v51 = vshrl.u32 %v5100_v58, 16 }
 0x10f   : > { %v684_v33 = vadd.f32 %v683_v5, %v5495_v45  ;;  %v1252_v8 = vpop.f32.mrf.mxu3  ;;  %v1156_v45 = vrot.slane %v5101_v29, 1 }
 0x110   : > { %v1326_v48 = vadd.f32 %v1242_v9, %v965_v14  ;;  %v1613_v10 = vpop.f32.mrf.mxu0  ;;  %v1485_v14 = vshll.u32 %v5100_v58, 16  ;;  %v1484_v56 = vrot.slane %v1482_v51, 1 }
 0x111   : > { %v1157_v22 = vsel %vm767_vm3, %v1154_v20, %v1156_v45  ;;  %v5102_v20 = vld [vmem:[%s5222_s25 + $0x80] sm:$0xff] }
 0x112   : > { %v5591_v60 = vadd.f32 %v1611_v37, %v1326_v48  ;;  %v1487_v2 = vrot.slane %v1485_v14, 2  ;;  %v1491_v14 = vshrl.u32 %v5101_v29, 16 }
 0x114   : > { %v1488_v58 = vor.u32 %v1487_v2, %v1484_v56  ;;  %v795_v2 = vrot.slane %v5342_v52, 1 }
 0x115   : > { %v883_v41 = vpop.f32.mrf.mxu2 }
 0x116   : > { %v966_v61 = vadd.f32 %v883_v41, %v684_v33  ;;  %v686_v13 = vpop.f32.mrf.mxu1  ;;  %v793_v33 = vrot.slane %v5307_v6, 1 }
 0x117   : > { %v687_v23 = vadd.f32 %v686_v13, %v5507_v57  ;;  %v1254_v5 = vpop.f32.mrf.mxu3 }
 0x118   : > { %v1327_v9 = vadd.f32 %v1244_v27, %v966_v61  ;;  %v1616_v0 = vpop.f32.mrf.mxu0 }
 0x119   : > { %4793 = vmatmul.msk.bf16.gmra.mxu1 %vm465_vm2, %v5234_v11 }
 0x11a   : > { %4812 = vmatmul.msk.bf16.gmra.mxu2 %vm465_vm2, %v792_v4  ;;  %v5601_v37 = vadd.f32 %v1613_v10, %v1327_v9  ;;  %v794_v9 = vsel %vm767_vm3, %v791_v42, %v793_v33 }
 0x11b   : > { %4918 = vmatmul.msk.bf16.gmra.mxu0 %vm465_vm2, %v1480_v17 }
 0x11c   : > { %4901 = vmatmul.msk.bf16.gmra.mxu3 %vm465_vm2, %v1157_v22 }
 0x11d   : > { %v886_v55 = vpop.f32.mrf.mxu2 }
 0x11e   : > { %v967_v27 = vadd.f32 %v886_v55, %v687_v23  ;;  %v688_v35 = vpop.f32.mrf.mxu1  ;;  %v1489_v23 = vsel %vm1364_vm4, %v1479_v24, %v1488_v58  ;;  %v1494_v55 = vshll.u32 %v5101_v29, 16 }
 0x11f   : > { %v689_v57 = vadd.f32 %v688_v35, %v5521_v19  ;;  %v1257_v61 = vpop.f32.mrf.mxu3  ;;  %v1158_v19 = vrot.slane %v5102_v20, 1 }
 0x120   : > { %v1328_v48 = vadd.f32 %v1247_v49, %v967_v27  ;;  %v1618_v11 = vpop.f32.mrf.mxu0  ;;  %v1496_v56 = vrot.slane %v1494_v55, 2  ;;  %v1503_v55 = vshll.u32 %v5102_v20, 16 }
 0x121   : > { %v1159_v24 = vsel %vm767_vm3, %v1156_v45, %v1158_v19  ;;  %v5103_v45 = vld [vmem:[%s5222_s25 + $0x88] sm:$0xff] }
 0x122   : > { %v5607_v10 = vadd.f32 %v1616_v0, %v1328_v48  ;;  %v1493_v48 = vrot.slane %v1491_v14, 1  ;;  %v1500_v14 = vshrl.u32 %v5102_v20, 16 }
 0x124   : > { %v1497_v29 = vor.u32 %v1496_v56, %v1493_v48  ;;  %v797_v48 = vrot.slane %v5258_v31, 1 }
 0x125   : > { %v888_v41 = vpop.f32.mrf.mxu2 }
 0x126   : > { %v968_v13 = vadd.f32 %v888_v41, %v689_v57  ;;  %v691_v4 = vpop.f32.mrf.mxu1 }
 0x127   : > { %v692_v51 = vadd.f32 %v691_v4, %v5531_v36  ;;  %v1259_v27 = vpop.f32.mrf.mxu3 }
 0x128   : > { %v1329_v49 = vadd.f32 %v1249_v21, %v968_v13  ;;  %v1621_v17 = vpop.f32.mrf.mxu0 }
 0x129   : > { %4794 = vmatmul.msk.bf16.gmra.mxu1 %vm465_vm2, %v5271_v38 }
 0x12a   : > { %4813 = vmatmul.msk.bf16.gmra.mxu2 %vm465_vm2, %v794_v9  ;;  %v5617_v0 = vadd.f32 %v1618_v11, %v1329_v49  ;;  %v796_v9 = vsel %vm767_vm3, %v793_v33, %v795_v2 }
 0x12b   : > { %4919 = vmatmul.msk.bf16.gmra.mxu0 %vm465_vm2, %v1489_v23  ;;  %v1498_v23 = vsel %vm1364_vm4, %v1488_v58, %v1497_v29 }
 0x12c   : > { %4902 = vmatmul.msk.bf16.gmra.mxu3 %vm465_vm2, %v1159_v24  ;;  %v1502_v24 = vrot.slane %v1500_v14, 1 }
 0x12d   : > { %v891_v42 = vpop.f32.mrf.mxu2 }
 0x12e   : > { %v969_v21 = vadd.f32 %v891_v42, %v692_v51  ;;  %v693_v35 = vpop.f32.mrf.mxu1 }
 0x12f   : > { %v694_v36 = vadd.f32 %v693_v35, %v5543_v1  ;;  %v1262_v41 = vpop.f32.mrf.mxu3  ;;  %v1160_v1 = vrot.slane %v5103_v45, 1 }
 0x130   : > { %v1330_v22 = vadd.f32 %v1252_v8, %v969_v21  ;;  %v1623_v38 = vpop.f32.mrf.mxu0 }
 0x131   : > { %v1161_v58 = vsel %vm767_vm3, %v1158_v19, %v1160_v1  ;;  %v5104_v19 = vld [vmem:[%s5222_s25 + $0x90] sm:$0xff] }
 0x132   : > { %v5623_v11 = vadd.f32 %v1621_v17, %v1330_v22  ;;  %v1505_v22 = vrot.slane %v1503_v55, 2 }
 0x134   : > { %v1506_v20 = vor.u32 %v1505_v22, %v1502_v24 }
 0x135   : > { %v893_v57 = vpop.f32.mrf.mxu2 }
 0x136   : > { %v970_v13 = vadd.f32 %v893_v57, %v694_v36  ;;  %v696_v4 = vpop.f32.mrf.mxu1 }
 0x137   : > { %v697_v51 = vadd.f32 %v696_v4, %v5427_v46  ;;  %v1264_v42 = vpop.f32.mrf.mxu3  ;;  %v798_v4 = vsel %vm767_vm3, %v795_v2, %v797_v48  ;;  %v1509_v2 = vshrl.u32 %v5103_v45, 16 }
 0x138   : > { %v1331_v8 = vadd.f32 %v1254_v5, %v970_v13  ;;  %v1626_v49 = vpop.f32.mrf.mxu0 }
 0x139   : > { %4795 = vmatmul.msk.bf16.gmra.mxu1 %vm465_vm2, %v5307_v6 }
 0x13a   : > { %4814 = vmatmul.msk.bf16.gmra.mxu2 %vm465_vm2, %v796_v9  ;;  %v5633_v17 = vadd.f32 %v1623_v38, %v1331_v8  ;;  %v1507_v8 = vsel %vm1364_vm4, %v1497_v29, %v1506_v20 }
 0x13b   : > { %4920 = vmatmul.msk.bf16.gmra.mxu0 %vm465_vm2, %v1498_v23  ;;  %v1512_v23 = vshll.u32 %v5103_v45, 16 }
 0x13c   : > { %4903 = vmatmul.msk.bf16.gmra.mxu3 %vm465_vm2, %v1161_v58  ;;  %v1033_v58 = vld [vmem:[%s5222_s25 + $0x98] sm:$0x1] }
 0x13d   : > { %v896_v33 = vpop.f32.mrf.mxu2 }
 0x13e   : > { %v971_v5 = vadd.f32 %v896_v33, %v697_v51  ;;  %v698_v21 = vpop.f32.mrf.mxu1 }
 0x13f   : > { %v699_v46 = vadd.f32 %v698_v21, %v5440_v54  ;;  %v1267_v36 = vpop.f32.mrf.mxu3  ;;  %v1162_v54 = vrot.slane %v5104_v19, 1  ;;  %v1514_v21 = vrot.slane %v1512_v23, 2 }
 0x140   : > { %v1332_v35 = vadd.f32 %v1257_v61, %v971_v5  ;;  %v1628_v6 = vpop.f32.mrf.mxu0  ;;  %v1511_v5 = vrot.slane %v1509_v2, 1  ;;  %v5144_v2 = vld [vmem:[%s5222_s25 + $0x78] sm:$0xff] }
 0x142   : > { %v5639_v38 = vadd.f32 %v1626_v49, %v1332_v35 }
 0x145   : > { %v898_v56 = vpop.f32.mrf.mxu2 }
 0x146   : > { %v972_v57 = vadd.f32 %v898_v56, %v699_v46  ;;  %v701_v13 = vpop.f32.mrf.mxu1 }
 0x147   : > { %v702_v49 = vadd.f32 %v701_v13, %v5451_v62  ;;  %v5653_v51 = vpop.f32.mrf.mxu3  ;;  %v5661_v62 = vld [vmem:[%s5222_s25 + $0x80] sm:$0xff] }
 0x148   : > { %v1333_v61 = vadd.f32 %v1259_v27, %v972_v57  ;;  %v1631_v9 = vpop.f32.mrf.mxu0  ;;  %v799_v45 = vrot.slane %v5661_v62, 1 }
 0x149   : > { %4796 = vmatmul.msk.bf16.gmra.mxu1 %vm465_vm2, %v5342_v52  ;;  %v1163_v52 = vsel %vm767_vm3, %v1160_v1, %v1162_v54  ;;  %v1515_v1 = vor.u32 %v1514_v21, %v1511_v5  ;;  %v5685_v21 = vld [vmem:[%s5222_s25 + $0x18] sm:$0xff] }
 0x14a   : > { %4815 = vmatmul.msk.bf16.gmra.mxu2 %vm465_vm2, %v798_v4  ;;  %v5649_v31 = vadd.f32 %v1628_v6, %v1333_v61  ;;  %v1109_v6 = vunpack.c.l.b16 %v1033_v58  ;;  %v800_v57 = vsel %vm767_vm3, %v797_v48, %v799_v45 }
 0x14b   : > { %4921 = vmatmul.msk.bf16.gmra.mxu0 %vm465_vm2, %v1507_v8  ;;  %v1963_v8 = vld [vmem:[%s5222_s25 + $0x10] sm:$0xc] }
 0x14c   : > { %4904 = vmatmul.msk.bf16.gmra.mxu3 %vm465_vm2, %v1163_v52  ;;  %v1128_v13 = vpack.c.b16 %v1109_v6, %v1109_v6  ;;  %v2039_v48 = vunpack.c.l.b16 %v1963_v8 }
 0x14d   : > { %v901_v27 = vpop.f32.mrf.mxu2 }
 0x14e   : > { %v973_v29 = vadd.f32 %v901_v27, %v702_v49  ;;  %v703_v14 = vpop.f32.mrf.mxu1  ;;  %v5671_v49 = vld [vmem:[%s5222_s25 + $0x14] sm:$0xf]  ;;  %v1164_v23 = vrot.slane %v1128_v13, 1  ;;  %v1518_v27 = vshrl.u32 %v5104_v19, 16 }
 0x14f   : > { %v704_v24 = vadd.f32 %v703_v14, %v5466_v12  ;;  %v5665_v22 = vpop.f32.mrf.mxu3 }
 0x150   : > { %v1334_v55 = vadd.f32 %v1262_v41, %v973_v29  ;;  %v1633_v33 = vpop.f32.mrf.mxu0  ;;  %v1521_v29 = vshll.u32 %v5104_v19, 16 }
 0x152   : > { %v5658_v35 = vadd.f32 %v1631_v9, %v1334_v55  ;;  %v1516_v9 = vsel %vm1364_vm4, %v1506_v20, %v1515_v1 }
 0x155   : > { %v903_v41 = vpop.f32.mrf.mxu2 }
 0x156   : > { %v974_v46 = vadd.f32 %v903_v41, %v704_v24  ;;  %v706_v56 = vpop.f32.mrf.mxu1  ;;  %v1520_v41 = vrot.slane %v1518_v27, 1 }
 0x157   : > { %v707_v20 = vadd.f32 %v706_v56, %v5477_v28  ;;  %v5681_v52 = vpop.f32.mrf.mxu3  ;;  %v1358_v28 = vld [vmem:[%s5222_s25 + $0x98] sm:$0x3]  ;;  %v5693_v56 = vld [vmem:[%s5222_s25 + $0x88] sm:$0xff] }
 0x158   : > { %v1335_v4 = vadd.f32 %v1264_v42, %v974_v46  ;;  %v1636_v61 = vpop.f32.mrf.mxu0  ;;  %v7227_v42 = vunpack.c.l.b16 %v5671_v49  ;;  %v1523_v46 = vrot.slane %v1521_v29, 2  ;;  %v801_v19 = vrot.slane %v5693_v56, 1 }
 0x159   : > { %4797 = vmatmul.msk.bf16.gmra.mxu1 %vm465_vm2, %v5144_v2  ;;  %v1362_v2 = vunpack.c.l.b16 %v1358_v28 }
 0x15a   : > { %4816 = vmatmul.msk.bf16.gmra.mxu2 %vm465_vm2, %v800_v57  ;;  %v5676_v12 = vadd.f32 %v1633_v33, %v1335_v4  ;;  %v1165_v33 = vsel %vm767_vm3, %v1162_v54, %v1164_v23  ;;  %v5689_v58 = vpack.c.b16 %v7227_v42, %v2039_v48  ;;  %v2340_v4 = vshrl.u32 %v5685_v21, 16 }
 0x15b   : > { %4922 = vmatmul.msk.bf16.gmra.mxu0 %vm465_vm2, %v1516_v9  ;;  %v1524_v8 = vor.u32 %v1523_v46, %v1520_v41  ;;  %v802_v27 = vsel %vm767_vm3, %v799_v45, %v801_v19 }
 0x15c   : > { %7245 = vst [vmem:[#allocation10_spill] sm:$0xff] %v5676_v12  ;;  %4905 = vmatmul.msk.bf16.gmra.mxu3 %vm465_vm2, %v1165_v33  ;;  %v2332_v54 = vshrl.u32 %v5689_v58, 16  ;;  %v2335_v13 = vshll.u32 %v5689_v58, 16  ;;  %v5709_v12 = vpack.c.b16 %v1362_v2, %v1362_v2  ;;  %v803_v2 = vrot.slane %v5331_v40, 1 }
 0x15d   : > { %v906_v14 = vpop.f32.mrf.mxu2 }
 0x15e   : > { %v975_v55 = vadd.f32 %v906_v14, %v707_v20  ;;  %v708_v5 = vpop.f32.mrf.mxu1  ;;  %v2334_v29 = vrot.slane %v2332_v54, 2  ;;  %v2337_v14 = vrot.slane %v2335_v13, 3  ;;  %7247 = vst [vmem:[#allocation12_spill] sm:$0xff] %v5709_v12 }
 0x15f   : > { %v709_v9 = vadd.f32 %v708_v5, %v5492_v44  ;;  %v5704_v48 = vpop.f32.mrf.mxu3 }
 0x160   : > { %v1336_v6 = vadd.f32 %v1267_v36, %v975_v55  ;;  %v1638_v24 = vpop.f32.mrf.mxu0  ;;  %v2343_v36 = vshll.u32 %v5685_v21, 16  ;;  %v2342_v55 = vrot.slane %v2340_v4, 2  ;;  %v2338_v45 = vor.u32 %v2337_v14, %v2334_v29 }
 0x162   : > { %v5697_v57 = vadd.f32 %v1636_v61, %v1336_v6  ;;  %v2345_v33 = vrot.slane %v2343_v36, 3 }
 0x164   : > { %7246 = vst [vmem:[#allocation11_spill] sm:$0xff] %v5697_v57  ;;  %v1525_v57 = vsel %vm1364_vm4, %v1515_v1, %v1524_v8  ;;  %v2346_v5 = vor.u32 %v2345_v33, %v2342_v55  ;;  %v1530_v1 = vshll.u32 %v5709_v12, 16  ;;  %v804_v33 = vsel %vm767_vm3, %v801_v19, %v803_v2  ;;  %v5754_v2 = vld [vmem:[%s5222_s25 + $0x28] sm:$0xff] }
 0x165   : > { %v908_v23 = vpop.f32.mrf.mxu2 }
 0x166   : > { %v976_v20 = vadd.f32 %v908_v23, %v709_v9  ;;  %v711_v61 = vpop.f32.mrf.mxu1  ;;  %v2347_v13 = vsel %vm2330_vm5, %v2338_v45, %v2346_v5 }
 0x167   : > { %v712_v41 = vadd.f32 %v711_v61, %v5503_v43  ;;  %v5720_v28 = vpop.f32.mrf.mxu3  ;;  %v1532_v43 = vrot.slane %v1530_v1, 2  ;;  %v2693_v1 = vld [vmem:[%s5222_s25 + $0x10] sm:$0x8] }
 0x168   : > { %v1337_v6 = vadd.f32 %v5653_v51, %v976_v20  ;;  %v1641_v42 = vpop.f32.mrf.mxu0  ;;  %v1527_v51 = vshrl.u32 %v5709_v12, 16 }
 0x169   : > { %4798 = vmatmul.msk.bf16.gmra.mxu1 %vm465_vm2, %v5661_v62 }
 0x16a   : > { %4817 = vmatmul.msk.bf16.gmra.mxu2 %vm465_vm2, %v802_v27  ;;  %v5714_v44 = vadd.f32 %v1638_v24, %v1337_v6  ;;  %v5724_v24 = vld [vmem:[%s5222_s25 + $0x20] sm:$0xff]  ;;  %v1529_v36 = vrot.slane %v1527_v51, 1  ;;  %v1727_v6 = vld [vmem:[%s5222_s25 + $0x8] sm:$0xc] }
 0x16b   : > { %4923 = vmatmul.msk.bf16.gmra.mxu0 %vm465_vm2, %v1525_v57  ;;  %v2349_v23 = vshrl.u32 %v5724_v24, 16  ;;  %v2352_v20 = vshll.u32 %v5724_v24, 16 }
 0x16c   : > { %5032 = vmatmul.msk.bf16.vlgmr.msra.gmra.mxu3 %vm465_vm2, %v2347_v13  ;;  %v1533_v61 = vor.u32 %v1532_v43, %v1529_v36 }
 0x16d   : > { %v911_v46 = vpop.f32.mrf.mxu2  ;;  %v2354_v45 = vrot.slane %v2352_v20, 3  ;;  %v7250_v20 = vunpack.c.l.b16 %v5671_v49 }
 0x16e   : > { %v977_v54 = vadd.f32 %v911_v46, %v712_v41  ;;  %v713_v62 = vpop.f32.mrf.mxu1  ;;  %v1534_v51 = vsel %vm1364_vm4, %v1524_v8, %v1533_v61  ;;  %v5146_v61 = vld [vmem:[%s5222_s25 + $0x10] sm:$0xff] }
 0x16f   : > { %v714_v27 = vadd.f32 %v713_v62, %v5518_v7  ;;  %v1731_v7 = vunpack.c.l.b16 %v1727_v6  ;;  %v2701_v6 = vrot.slane %v5685_v21, 3 }
 0x170   : > { %v1338_v57 = vadd.f32 %v5665_v22, %v977_v54  ;;  %v1643_v4 = vpop.f32.mrf.mxu0  ;;  %v5734_v22 = vpop.f32.mrf.mxu3 }
 0x172   : > { %v5728_v9 = vadd.f32 %v1641_v42, %v1338_v57  ;;  %v2351_v42 = vrot.slane %v2349_v23, 2  ;;  %v7249_v57 = vunpack.c.l.b16 %v5353_v63  ;;  %v2095_v63 = vrot.slane %v5689_v58, 2 }
 0x174   : > { %v2355_v19 = vor.u32 %v2354_v45, %v2351_v42  ;;  %v1732_v36 = vpack.c.b16 %v7249_v57, %v1731_v7 }
 0x175   : > { %v913_v29 = vpop.f32.mrf.mxu2 }
 0x176   : > { %v978_v14 = vadd.f32 %v913_v29, %v714_v27  ;;  %v716_v55 = vpop.f32.mrf.mxu1  ;;  %v2356_v43 = vsel %vm2330_vm5, %v2346_v5, %v2355_v19  ;;  %v1735_v29 = vrot.slane %v5146_v61, 2  ;;  %v2358_v5 = vshrl.u32 %v5754_v2, 16 }
 0x177   : > { %v717_v54 = vadd.f32 %v716_v55, %v5527_v32  ;;  %v1734_v32 = vrot.slane %v1732_v36, 2  ;;  %v2096_v55 = vrot.slane %v5685_v21, 2 }
 0x178   : > { %v1339_v40 = vadd.f32 %v5681_v52, %v978_v14  ;;  %v1646_v41 = vpop.f32.mrf.mxu0  ;;  %v2697_v52 = vunpack.c.l.b16 %v2693_v1  ;;  %v5748_v13 = vpop.f32.mrf.mxu3  ;;  %v2360_v1 = vrot.slane %v2358_v5, 2 }
 0x179   : > { %4799 = vmatmul.msk.bf16.gmra.mxu1 %vm465_vm2, %v5693_v56  ;;  %v2097_v58 = vsel %vm1733_vm6, %v2095_v63, %v2096_v55  ;;  %v2098_v63 = vrot.slane %v5724_v24, 2 }
 0x17a   : > { %4818 = vmatmul.msk.bf16.gmra.mxu2 %vm465_vm2, %v804_v33  ;;  %v5744_v46 = vadd.f32 %v1643_v4, %v1339_v40  ;;  %v2698_v27 = vpack.c.b16 %v7250_v20, %v2697_v52  ;;  %v2361_v33 = vshll.u32 %v5754_v2, 16 }
 0x17b   : > { %4924 = vmatmul.msk.bf16.gmra.mxu0 %vm465_vm2, %v1534_v51  ;;  %v1736_v51 = vsel %vm1733_vm6, %v1734_v32, %v1735_v29  ;;  %v5147_v32 = vld [vmem:[%s5222_s25 + $0x18] sm:$0xff] }
 0x17c   : > { %7248 = vst [vmem:[#allocation13_spill] sm:$0xff] %v5744_v46  ;;  %5033 = vmatmul.msk.bf16.gmra.mxu3 %vm465_vm2, %v2356_v43  ;;  %v2700_v49 = vrot.slane %v2698_v27, 3  ;;  %v2363_v7 = vrot.slane %v2361_v33, 3  ;;  %v1737_v61 = vrot.slane %v5147_v32, 2  ;;  %v2703_v33 = vrot.slane %v5724_v24, 3 }
 0x17d   : > { %v916_v62 = vpop.f32.mrf.mxu2 }
 0x17e   : > { %v979_v8 = vadd.f32 %v916_v62, %v717_v54  ;;  %v718_v56 = vpop.f32.mrf.mxu1  ;;  %v2364_v21 = vor.u32 %v2363_v7, %v2360_v1 }
 0x180   : > { %v1340_v4 = vadd.f32 %v5704_v48, %v979_v8  ;;  %v1648_v23 = vpop.f32.mrf.mxu0  ;;  %v719_v48 = vadd.f32 %v718_v56, %v5540_v47  ;;  %v1287_v45 = vpop.f32.mrf.mxu3  ;;  %v2702_v47 = vsel %vm2699_vm7, %v2700_v49, %v2701_v6 }
 0x182   : > { %v5761_v14 = vadd.f32 %v1646_v41, %v1340_v4  ;;  %v5781_v4 = vld [vmem:[%s5222_s25 + $0x30] sm:$0xff] }
 0x184   : > { %7251 = vst [vmem:[#allocation14_spill] sm:$0xff] %v5761_v14 }
 0x185   : > { %v918_v42 = vpop.f32.mrf.mxu2 }
 0x186   : > { %v980_v40 = vadd.f32 %v918_v42, %v719_v48  ;;  %v721_v41 = vpop.f32.mrf.mxu1 }
 0x187   : > { %v722_v62 = vadd.f32 %v721_v41, %v5438_v53  ;;  %v2367_v53 = vshrl.u32 %v5781_v4, 16  ;;  %v2099_v41 = vsel %vm1733_vm6, %v2096_v55, %v2098_v63 }
 0x188   : > { %v1341_v54 = vadd.f32 %v5720_v28, %v980_v40  ;;  %v1651_v52 = vpop.f32.mrf.mxu0  ;;  %v1289_v57 = vpop.f32.mrf.mxu3  ;;  %v2365_v28 = vsel %vm2330_vm5, %v2355_v19, %v2364_v21  ;;  %v1738_v40 = vsel %vm1733_vm6, %v1735_v29, %v1737_v61 }
 0x189   : > { %4926 = vmatmul.msk.bf16.vlgmr.msra.gmra.mxu1 %vm465_vm2, %v1736_v51  ;;  %v2369_v51 = vrot.slane %v2367_v53, 2 }
 0x18a   : > { %5013 = vmatmul.msk.bf16.vlgmr.msra.gmra.mxu2 %vm465_vm2, %v2097_v58  ;;  %v5777_v36 = vadd.f32 %v1648_v23, %v1341_v54  ;;  %v2370_v23 = vshll.u32 %v5781_v4, 16 }
 0x18b   : > { %5051 = vmatmul.msk.bf16.vlgmr.msra.gmra.mxu0 %vm465_vm2, %v2702_v47 }
 0x18c   : > { %7252 = vst [vmem:[#allocation15_spill] sm:$0xff] %v5777_v36  ;;  %5034 = vmatmul.msk.bf16.gmra.mxu3 %vm465_vm2, %v2365_v28  ;;  %v2372_v58 = vrot.slane %v2370_v23, 3 }
 0x18d   : > { %v921_v8 = vpop.f32.mrf.mxu2 }
 0x18e   : > { %v981_v56 = vadd.f32 %v921_v8, %v722_v62  ;;  %v723_v43 = vpop.f32.mrf.mxu1  ;;  %v2373_v24 = vor.u32 %v2372_v58, %v2369_v51 }
 0x18f   : > { %v724_v5 = vadd.f32 %v723_v43, %v5447_v59  ;;  %v2704_v59 = vsel %vm2699_vm7, %v2701_v6, %v2703_v33  ;;  %v5148_v43 = vld [vmem:[%s5222_s25 + $0x20] sm:$0xff] }
 0x190   : > { %v1342_v20 = vadd.f32 %v5734_v22, %v981_v56  ;;  %v1653_v27 = vpop.f32.mrf.mxu0  ;;  %v1292_v48 = vpop.f32.mrf.mxu3  ;;  %v2374_v62 = vsel %vm2330_vm5, %v2364_v21, %v2373_v24  ;;  %v1739_v28 = vrot.slane %v5148_v43, 2  ;;  %v2705_v21 = vrot.slane %v5754_v2, 3 }
 0x192   : > { %v5791_v49 = vadd.f32 %v1651_v52, %v1342_v20  ;;  %v2100_v20 = vrot.slane %v5754_v2, 2  ;;  %v2706_v58 = vsel %vm2699_vm7, %v2703_v33, %v2705_v21 }
 0x194   : > { %7253 = vst [vmem:[#allocation16_spill] sm:$0xff] %v5791_v49 }
 0x195   : > { %v923_v19 = vpop.f32.mrf.mxu2 }
 0x196   : > { %v982_v22 = vadd.f32 %v923_v19, %v724_v5  ;;  %v726_v42 = vpop.f32.mrf.mxu1 }
 0x197   : > { %v727_v29 = vadd.f32 %v726_v42, %v5462_v16 }
 0x198   : > { %v1343_v1 = vadd.f32 %v5748_v13, %v982_v22  ;;  %v1656_v7 = vpop.f32.mrf.mxu0  ;;  %v1294_v55 = vpop.f32.mrf.mxu3  ;;  %v5803_v13 = vld [vmem:[%s5222_s25 + $0x38] sm:$0xff]  ;;  %v2101_v22 = vsel %vm1733_vm6, %v2098_v63, %v2100_v20 }
 0x199   : > { %4927 = vmatmul.msk.bf16.gmra.mxu1 %vm465_vm2, %v1738_v40  ;;  %v2376_v16 = vshrl.u32 %v5803_v13, 16  ;;  %v2379_v32 = vshll.u32 %v5803_v13, 16 }
 0x19a   : > { %5014 = vmatmul.msk.bf16.gmra.mxu2 %vm465_vm2, %v2099_v41  ;;  %v5805_v8 = vadd.f32 %v1653_v27, %v1343_v1 }
 0x19b   : > { %5052 = vmatmul.msk.bf16.gmra.mxu0 %vm465_vm2, %v2704_v59  ;;  %v2378_v42 = vrot.slane %v2376_v16, 2  ;;  %v2381_v40 = vrot.slane %v2379_v32, 3 }
 0x19c   : > { %7254 = vst [vmem:[#allocation17_spill] sm:$0xff] %v5805_v8  ;;  %5035 = vmatmul.msk.bf16.gmra.mxu3 %vm465_vm2, %v2374_v62 }
 0x19d   : > { %v926_v54 = vpop.f32.mrf.mxu2  ;;  %v2382_v2 = vor.u32 %v2381_v40, %v2378_v42 }
 0x19e   : > { %v983_v52 = vadd.f32 %v926_v54, %v727_v29  ;;  %v728_v47 = vpop.f32.mrf.mxu1  ;;  %v5825_v54 = vld [vmem:[%s5222_s25 + $0x40] sm:$0xff] }
 0x19f   : > { %v729_v53 = vadd.f32 %v728_v47, %v5473_v25  ;;  %v2388_v43 = vshll.u32 %v5825_v54, 16 }
 0x1a0   : > { %v1344_v6 = vadd.f32 %v1287_v45, %v983_v52  ;;  %v1658_v56 = vpop.f32.mrf.mxu0  ;;  %v1297_v5 = vpop.f32.mrf.mxu3  ;;  %v1740_v45 = vsel %vm1733_vm6, %v1737_v61, %v1739_v28 }
 0x1a2   : > { %v5819_v25 = vadd.f32 %v1656_v7, %v1344_v6  ;;  %v5149_v7 = vld [vmem:[%s5222_s25 + $0x28] sm:$0xff]  ;;  %v2102_v6 = vrot.slane %v5781_v4, 2 }
 0x1a3   : > { %v1741_v62 = vrot.slane %v5149_v7, 2  ;;  %v2104_v7 = vrot.slane %v5803_v13, 2 }
 0x1a4   : > { %7255 = vst [vmem:[#allocation18_spill] sm:$0xff] %v5819_v25 }
 0x1a5   : > { %v928_v23 = vpop.f32.mrf.mxu2 }
 0x1a6   : > { %v984_v27 = vadd.f32 %v928_v23, %v729_v53  ;;  %v731_v19 = vpop.f32.mrf.mxu1 }
 0x1a7   : > { %v732_v61 = vadd.f32 %v731_v19, %v5488_v39  ;;  %v2385_v39 = vshrl.u32 %v5825_v54, 16 }
 0x1a8   : > { %v1345_v41 = vadd.f32 %v1289_v57, %v984_v27  ;;  %v1661_v51 = vpop.f32.mrf.mxu0  ;;  %v1299_v1 = vpop.f32.mrf.mxu3  ;;  %v2383_v57 = vsel %vm2330_vm5, %v2373_v24, %v2382_v2  ;;  %v2707_v24 = vrot.slane %v5781_v4, 3  ;;  %v1742_v27 = vsel %vm1733_vm6, %v1739_v28, %v1741_v62 }
 0x1a9   : > { %4928 = vmatmul.msk.bf16.gmra.mxu1 %vm465_vm2, %v1740_v45  ;;  %v2387_v19 = vrot.slane %v2385_v39, 2  ;;  %v2390_v45 = vrot.slane %v2388_v43, 3  ;;  %v2709_v39 = vrot.slane %v5803_v13, 3 }
 0x1aa   : > { %5015 = vmatmul.msk.bf16.gmra.mxu2 %vm465_vm2, %v2101_v22  ;;  %v5828_v47 = vadd.f32 %v1658_v56, %v1345_v41  ;;  %v2103_v56 = vsel %vm1733_vm6, %v2100_v20, %v2102_v6  ;;  %v2708_v40 = vsel %vm2699_vm7, %v2705_v21, %v2707_v24 }
 0x1ab   : > { %5053 = vmatmul.msk.bf16.gmra.mxu0 %vm465_vm2, %v2706_v58 }
 0x1ac   : > { %5036 = vmatmul.msk.bf16.gmra.mxu3 %vm465_vm2, %v2383_v57  ;;  %7256 = vst [vmem:[#allocation19_spill] sm:$0xff] %v5828_v47 }
 0x1ad   : > { %v931_v63 = vpop.f32.mrf.mxu2 }
 0x1ae   : > { %v985_v59 = vadd.f32 %v931_v63, %v732_v61  ;;  %v733_v29 = vpop.f32.mrf.mxu1  ;;  %v5847_v63 = vld [vmem:[%s5222_s25 + $0x48] sm:$0xff] }
 0x1af   : > { %v734_v16 = vadd.f32 %v733_v29, %v5499_v50  ;;  %v2391_v50 = vor.u32 %v2390_v45, %v2387_v19  ;;  %v5150_v29 = vld [vmem:[%s5222_s25 + $0x30] sm:$0xff]  ;;  %v7272_v25 = vrot.slane %v5847_v63, 3 }
 0x1b0   : > { %v1346_v33 = vadd.f32 %v1292_v48, %v985_v59  ;;  %v1663_v52 = vpop.f32.mrf.mxu0  ;;  %v1302_v53 = vpop.f32.mrf.mxu3  ;;  %v1743_v57 = vrot.slane %v5150_v29, 2 }
 0x1b2   : > { %v5843_v28 = vadd.f32 %v1661_v51, %v1346_v33  ;;  %v2397_v51 = vshll.u32 %v5847_v63, 16 }
 0x1b4   : > { %7257 = vst [vmem:[#allocation20_spill] sm:$0xff] %v5843_v28 }
 0x1b5   : > { %v933_v32 = vpop.f32.mrf.mxu2 }
 0x1b6   : > { %v986_v48 = vadd.f32 %v933_v32, %v734_v16  ;;  %v736_v23 = vpop.f32.mrf.mxu1 }
 0x1b7   : > { %v737_v4 = vadd.f32 %v736_v23, %v5514_v3  ;;  %v2394_v3 = vshrl.u32 %v5847_v63, 16 }
 0x1b8   : > { %v1347_v22 = vadd.f32 %v1294_v55, %v986_v48  ;;  %v1666_v42 = vpop.f32.mrf.mxu0  ;;  %v1304_v41 = vpop.f32.mrf.mxu3  ;;  %v2392_v55 = vsel %vm2330_vm5, %v2382_v2, %v2391_v50  ;;  %v2105_v48 = vsel %vm1733_vm6, %v2102_v6, %v2104_v7 }
 0x1b9   : > { %4929 = vmatmul.msk.bf16.gmra.mxu1 %vm465_vm2, %v1742_v27  ;;  %v2396_v23 = vrot.slane %v2394_v3, 2  ;;  %v2399_v27 = vrot.slane %v2397_v51, 3  ;;  %v7229_v3 = vrot.slane %v5825_v54, 2 }
 0x1ba   : > { %5016 = vmatmul.msk.bf16.gmra.mxu2 %vm465_vm2, %v2103_v56  ;;  %v5860_v56 = vadd.f32 %v1663_v52, %v1347_v22 }
 0x1bb   : > { %5054 = vmatmul.msk.bf16.gmra.mxu0 %vm465_vm2, %v2708_v40  ;;  %v2400_v13 = vor.u32 %v2399_v27, %v2396_v23 }
 0x1bc   : > { %5037 = vmatmul.msk.bf16.gmra.mxu3 %vm465_vm2, %v2392_v55  ;;  %7258 = vst [vmem:[#allocation21_spill] sm:$0xff] %v5860_v56  ;;  %v5151_v55 = vld [vmem:[%s5222_s25 + $0x38] sm:$0xff] }
 0x1bd   : > { %v936_v20 = vpop.f32.mrf.mxu2  ;;  %v1745_v29 = vrot.slane %v5151_v55, 2  ;;  %v5152_v55 = vld [vmem:[%s5222_s25 + $0x40] sm:$0xff] }
 0x1be   : > { %v987_v58 = vadd.f32 %v936_v20, %v737_v4  ;;  %v738_v61 = vpop.f32.mrf.mxu1  ;;  %v5873_v20 = vld [vmem:[%s5222_s25 + $0x50] sm:$0xff] }
 0x1bf   : > { %v739_v33 = vadd.f32 %v738_v61, %v5525_v15  ;;  %v2710_v15 = vsel %vm2699_vm7, %v2707_v24, %v2709_v39  ;;  %v2403_v51 = vshrl.u32 %v5873_v20, 16 }
 0x1c0   : > { %v1348_v21 = vadd.f32 %v1297_v5, %v987_v58  ;;  %v1668_v59 = vpop.f32.mrf.mxu0  ;;  %v5856_v2 = vpop.f32.mrf.mxu3  ;;  %v1744_v5 = vsel %vm1733_vm6, %v1741_v62, %v1743_v57  ;;  %v7259_v62 = vld [vmem:[#allocation8_spill] sm:$0xff] }
 0x1c1   : > { %v2405_v27 = vrot.slane %v2403_v51, 2  ;;  %v1747_v51 = vrot.slane %v5152_v55, 2 }
 0x1c2   : > { %v5878_v61 = vadd.f32 %v1666_v42, %v1348_v21  ;;  %v1746_v42 = vsel %vm1733_vm6, %v1743_v57, %v1745_v29  ;;  %v2107_v21 = vsel %vm1733_vm6, %v2104_v7, %v7229_v3 }
 0x1c4   : > { %7260 = vst [vmem:[#allocation8_spill] sm:$0xff] %v5878_v61 }
 0x1c5   : > { %v938_v43 = vpop.f32.mrf.mxu2 }
 0x1c6   : > { %v988_v16 = vadd.f32 %v938_v43, %v739_v33  ;;  %v741_v32 = vpop.f32.mrf.mxu1  ;;  %v2406_v33 = vshll.u32 %v5873_v20, 16  ;;  %v7261_v43 = vld [vmem:[#allocation9_spill] sm:$0xff] }
 0x1c7   : > { %v742_v6 = vadd.f32 %v741_v32, %v7259_v62 }
 0x1c8   : > { %v1349_v19 = vadd.f32 %v1299_v1, %v988_v16  ;;  %v5862_v45 = vpop.f32.mrf.mxu0  ;;  %v5869_v4 = vpop.f32.mrf.mxu3  ;;  %v2401_v1 = vsel %vm2330_vm5, %v2391_v50, %v2400_v13  ;;  %v7228_v50 = vrot.slane %v5825_v54, 3 }
 0x1c9   : > { %4930 = vmatmul.msk.bf16.gmra.mxu1 %vm465_vm2, %v1744_v5 }
 0x1ca   : > { %5017 = vmatmul.msk.bf16.gmra.mxu2 %vm465_vm2, %v2105_v48  ;;  %v3002_v48 = vlaneseq  ;;  %v5904_v7 = vadd.f32 %v1668_v59, %v1349_v19 }
 0x1cb   : > { %5055 = vmatmul.msk.bf16.gmra.mxu0 %vm465_vm2, %v2710_v15  ;;  %v2408_v15 = vrot.slane %v2406_v33, 3 }
 0x1cc   : > { %5038 = vmatmul.msk.bf16.gmra.mxu3 %vm465_vm2, %v2401_v1  ;;  %7263 = vst [vmem:[#allocation22_spill] sm:$0xff] %v5904_v7 }
 0x1cd   : > { %v941_v40 = vpop.f32.mrf.mxu2 }
 0x1ce   : > { %v989_v52 = vadd.f32 %v941_v40, %v742_v6  ;;  %v743_v22 = vpop.f32.mrf.mxu1  ;;  %v2712_v40 = vsel %vm2699_vm7, %v2709_v39, %v7228_v50  ;;  %v7230_v50 = vmov 0  }
 0x1cf   : > { %v744_v16 = vadd.f32 %v743_v22, %v7261_v43  ;;  %v7264_v22 = vld [vmem:[#allocation2_spill] sm:$0xff] }
 0x1d0   : > { %v1350_v24 = vadd.f32 %v1302_v53, %v989_v52  ;;  %v5875_v58 = vpop.f32.mrf.mxu0  ;;  %v5886_v53 = vpop.f32.mrf.mxu3  ;;  %v5899_v52 = vshrl.u32 %v3002_v48, 7 }
 0x1d2   : > { %v3042_v57 = vand.u32 65535, %v5899_v52  ;;  %v3043_v39 = vshrl.u32 %v5899_v52, 16  ;;  %v5936_v55 = vadd.f32 %v5862_v45, %v1350_v24  ;;  %v7232_v45 = vrot.slane %v5873_v20, 2 }
 0x1d4   : > { %v3046_v33 = vmul.u32 58254, %v3042_v57  ;;  %v3045_v48 = vmul.u32 14564, %v3042_v57  ;;  %v3047_v59 = vmul.u32 14564, %v3043_v39 }
 0x1d5   : > { %v943_v5 = vpop.f32.mrf.mxu2 }
 0x1d6   : > { %v990_v32 = vadd.f32 %v943_v5, %v744_v16  ;;  %v746_v23 = vpop.f32.mrf.mxu1  ;;  %v3049_v19 = vshll.u32 %v3046_v33, 16 }
 0x1d7   : > { %v747_v1 = vadd.f32 %v746_v23, %v7264_v22  ;;  %v3048_v22 = vmul.u32 58254, %v3043_v39 }
 0x1d8   : > { %v5892_v62 = vadd.f32 %v1304_v41, %v990_v32  ;;  %v5894_v6 = vpop.f32.mrf.mxu0  ;;  %v5907_v41 = vor.u32 %v2408_v15, %v2405_v27  ;;  %v5912_v16 = vpop.f32.mrf.mxu3  ;;  %v5915_v32 = vld [vmem:[%s5222_s25 + $0x58] sm:$0xff]  ;;  %vm3053_vm8 = vc.u32 %v3045_v48, %v3049_v19  ;;  %v3055_v57 = vadd.s32 %v3049_v19, %v3045_v48 }
 0x1d9   : > { %7262 = vst [vmem:[#allocation9_spill] sm:$0xff] %v5894_v6  ;;  %4931 = vmatmul.msk.bf16.gmra.mxu1 %vm465_vm2, %v1746_v42  ;;  %v3050_v48 = vshrl.u32 %v3046_v33, 16 }
 0x1da   : > { %5018 = vmatmul.msk.bf16.gmra.mxu2 %vm465_vm2, %v2107_v21  ;;  %v2108_v21 = vrot.slane %v5847_v63, 2  ;;  %v2410_v23 = vsel %vm2330_vm5, %v2400_v13, %v5907_v41  ;;  %v2415_v13 = vshll.u32 %v5915_v32, 16 }
 0x1db   : > { %5056 = vmatmul.msk.bf16.gmra.mxu0 %vm465_vm2, %v2712_v40  ;;  %v1748_v40 = vsel %vm1733_vm6, %v1745_v29, %v1747_v51  ;;  %v7267_v29 = vld [vmem:[#allocation3_spill] sm:$0xff] }
 0x1dc   : > { %5039 = vmatmul.msk.bf16.gmra.mxu3 %vm465_vm2, %v2410_v23  ;;  %7268 = vst [vmem:[#allocation3_spill] sm:$0xff] %v5936_v55  ;;  %v2417_v55 = vrot.slane %v2415_v13, 3  ;;  %v7233_v13 = vrot.slane %v5873_v20, 3 }
 0x1dd   : > { %v946_v43 = vpop.f32.mrf.mxu2 }
 0x1de   : > { %v991_v5 = vadd.f32 %v946_v43, %v747_v1  ;;  %v748_v42 = vpop.f32.mrf.mxu1  ;;  %v3051_v1 = vshll.u32 %v3047_v59, 16  ;;  %v2412_v43 = vshrl.u32 %v5915_v32, 16 }
 0x1df   : > { %v749_v39 = vadd.f32 %v748_v42, %v7267_v29  ;;  %v5947_v42 = vld [vmem:[%s5222_s25 + $0x48] sm:$0xff] }
 0x1e0   : > { %v5921_v27 = vadd.f32 %v5856_v2, %v991_v5  ;;  %v5923_v15 = vpop.f32.mrf.mxu0  ;;  %v3054_v2 = vsel %vm3053_vm8, 1, %v7230_v50  ;;  %v5932_v5 = vadd.s32 8, %v5899_v52  ;;  %vm3057_vm9 = vc.u32 %v3055_v57, %v3051_v1  ;;  %v5944_v61 = vpop.f32.mrf.mxu3 }
 0x1e1   : > { %7266 = vst [vmem:[#allocation23_spill] sm:$0xff] %v5923_v15  ;;  %v3056_v3 = vadd.s32 %v3054_v2, %v3048_v22  ;;  %v3058_v19 = vsel %vm3057_vm9, 1, %v7230_v50  ;;  %v3052_v1 = vshrl.u32 %v3047_v59, 16  ;;  %v2414_v50 = vrot.slane %v2412_v43, 2 }
 0x1e2   : > { %7265 = vst [vmem:[#allocation2_spill] sm:$0xff] %v5921_v27  ;;  %v3071_v23 = vand.u32 65535, %v5932_v5  ;;  %v3072_v15 = vshrl.u32 %v5932_v5, 16  ;;  %v7269_v27 = vrot.slane %v5825_v54, 2  ;;  %v7273_v22 = vrot.slane %v5825_v54, 3 }
 0x1e3   : > { %v3060_v24 = vadd.s32 %v3058_v19, %v3056_v3 }
 0x1e4   : > { %v2109_v7 = vsel %vm1733_vm6, %v7269_v27, %v2108_v21  ;;  %v3074_v57 = vmul.u32 14564, %v3071_v23  ;;  %v3075_v2 = vmul.u32 58254, %v3071_v23  ;;  %v3076_v28 = vmul.u32 14564, %v3072_v15 }
 0x1e5   : > { %v948_v6 = vpop.f32.mrf.mxu2  ;;  %v3061_v56 = vadd.s32 %v3060_v24, %v3050_v48  ;;  %v2714_v3 = vsel %vm2699_vm7, %v7273_v22, %v7272_v25  ;;  %v5979_v23 = vor.u32 %v2417_v55, %v2414_v50  ;;  %v5982_v22 = vld [vmem:[%s5222_s25 + $0x60] sm:$0xff] }
 0x1e6   : > { %v992_v33 = vadd.f32 %v948_v6, %v749_v39  ;;  %v751_v29 = vpop.f32.mrf.mxu1  ;;  %v3077_v6 = vmul.u32 58254, %v3072_v15  ;;  %v3078_v59 = vshll.u32 %v3075_v2, 16  ;;  %v7274_v39 = vrot.slane %v5947_v42, 2 }
 0x1e7   : > { %v3062_v48 = vadd.s32 %v3061_v56, %v3052_v1  ;;  %v3080_v25 = vshll.u32 %v3076_v28, 16  ;;  %v5975_v15 = vadd.s32 16, %v5899_v52  ;;  %v7276_v56 = vmov 0  }
 0x1e8   : > { %v5952_v27 = vadd.f32 %v5869_v4, %v992_v33  ;;  %v5954_v47 = vpop.f32.mrf.mxu0  ;;  %v5964_v43 = vsel %vm1733_vm6, %v1747_v51, %v7274_v39  ;;  %v5969_v4 = vsel %vm1733_vm6, %v2108_v21, %v7232_v45  ;;  %vm3082_vm10 = vc.u32 %v3074_v57, %v3078_v59  ;;  %v7275_v51 = vld [vmem:[#allocation4_spill] sm:$0xff] }
 0x1e9   : > { %7271 = vst [vmem:[#allocation25_spill] sm:$0xff] %v5954_v47  ;;  %4932 = vmatmul.msk.bf16.gmra.mxu1 %vm465_vm2, %v1748_v40  ;;  %v3084_v54 = vadd.s32 %v3078_v59, %v3074_v57  ;;  %v752_v19 = vadd.f32 %v751_v29, %v7275_v51  ;;  %v3063_v21 = vshrl.u32 %v3062_v48, 4  ;;  %v3083_v24 = vsel %vm3082_vm10, 1, %v7276_v56  ;;  %v5986_v57 = vpop.f32.mrf.mxu3  ;;  %v5154_v45 = vld [vmem:[%s5222_s25 + $0x50] sm:$0xff] }
 0x1ea   : > { %7270 = vst [vmem:[#allocation24_spill] sm:$0xff] %v5952_v27  ;;  %5019 = vmatmul.msk.bf16.gmra.mxu2 %vm465_vm2, %v2109_v7  ;;  %v3079_v40 = vshrl.u32 %v3075_v2, 16  ;;  %v3085_v33 = vadd.s32 %v3083_v24, %v3077_v6  ;;  %v3100_v7 = vand.u32 65535, %v5975_v15  ;;  %v2421_v29 = vshrl.u32 %v5982_v22, 16 }
 0x1eb   : > { %5057 = vmatmul.msk.bf16.gmra.mxu0 %vm465_vm2, %v2714_v3  ;;  %vm3086_vm11 = vc.u32 %v3084_v54, %v3080_v25  ;;  %v3064_v59 = vmul.u32 18, %v3063_v21  ;;  %v2424_v3 = vshll.u32 %v5982_v22, 16  ;;  %v3081_v39 = vshrl.u32 %v3076_v28, 16 }
 0x1ec   : > { %v3087_v50 = vsel %vm3086_vm11, 1, %v7276_v56  ;;  %v3101_v2 = vshrl.u32 %v5975_v15, 16  ;;  %v7277_v25 = vrot.slane %v5847_v63, 3  ;;  %v2419_v51 = vsel %vm2330_vm5, %v5907_v41, %v5979_v23  ;;  %v7280_v41 = vld [vmem:[#allocation5_spill] sm:$0xff] }
 0x1ed   : > { %v951_v1 = vpop.f32.mrf.mxu2  ;;  %v3089_v48 = vadd.s32 %v3087_v50, %v3085_v33  ;;  %v6001_v21 = vsub.s32 %v5899_v52, %v3064_v59  ;;  %v2423_v24 = vrot.slane %v2421_v29, 2  ;;  %v2426_v33 = vrot.slane %v2424_v3, 3  ;;  %5040 = vmatmul.msk.bf16.gmra.mxu3 %vm465_vm2, %v2419_v51 }
 0x1ee   : > { %v993_v55 = vadd.f32 %v951_v1, %v752_v19  ;;  %v753_v6 = vpop.f32.mrf.mxu1  ;;  %v2716_v54 = vsel %vm2699_vm7, %v7277_v25, %v7233_v13  ;;  %v3104_v50 = vmul.u32 58254, %v3100_v7  ;;  %v1751_v63 = vrot.slane %v5154_v45, 2 }
 0x1ef   : > { %v3090_v1 = vadd.s32 %v3089_v48, %v3079_v40  ;;  %v2112_v25 = vrot.slane %v5915_v32, 2  ;;  %v3103_v47 = vmul.u32 14564, %v3100_v7  ;;  %v754_v27 = vadd.f32 %v753_v6, %v7280_v41 }
 0x1f0   : > { %v6004_v28 = vadd.f32 %v5886_v53, %v993_v55  ;;  %v6006_v19 = vpop.f32.mrf.mxu0  ;;  %v3105_v29 = vmul.u32 14564, %v3101_v2  ;;  %v3107_v53 = vshll.u32 %v3104_v50, 16  ;;  %vm4083_vm12 = vcmp.ne.s32.totalorder %v6001_v21, 0 }
 0x1f1   : > { %7279 = vst [vmem:[#allocation26_spill] sm:$0xff] %v6006_v19  ;;  %v3091_v59 = vadd.s32 %v3090_v1, %v3081_v39  ;;  %v3106_v55 = vmul.u32 58254, %v3101_v2  ;;  %v6015_v40 = vadd.s32 24, %v5899_v52  ;;  %v6019_v45 = vadd.f32 %v5875_v58, %v5892_v62  ;;  %v6027_v6 = vpop.f32.mrf.mxu3 }
 0x1f2   : > { %7278 = vst [vmem:[#allocation4_spill] sm:$0xff] %v6004_v28  ;;  %vm4119_vm13 = vcmp.lt.s32.totalorder %v6001_v21, 0  ;;  %v6023_v7 = vadd.s32 18, %v6001_v21  ;;  %v6025_v3 = vor.u32 %v2426_v33, %v2423_v24  ;;  %v3108_v2 = vshrl.u32 %v3104_v50, 16  ;;  %v6040_v33 = vld [vmem:[%s5222_s25 + $0x58] sm:$0xff] }
 0x1f3   : > { %7281 = vst [vmem:[#allocation5_spill] sm:$0xff] %v6019_v45  ;;  %v3092_v39 = vshrl.u32 %v3091_v59, 4  ;;  %v3109_v51 = vshll.u32 %v3105_v29, 16  ;;  %vm3111_vm14 = vc.u32 %v3103_v47, %v3107_v53  ;;  %v3113_v1 = vadd.s32 %v3107_v53, %v3103_v47  ;;  %vm6035_vm15 = vmand %vm4119_vm13, %vm4083_vm12 }
 0x1f4   : > { %v3112_v58 = vsel %vm3111_vm14, 1, %v7276_v56  ;;  %v3129_v62 = vand.u32 65535, %v6015_v40  ;;  %v7287_v47 = vrot.slane %v5873_v20, 2  ;;  %v7306_v24 = vrot.slane %v6040_v33, 2 }
 0x1f5   : > { %v953_v48 = vpop.f32.mrf.mxu2  ;;  %v3093_v13 = vmul.u32 18, %v3092_v39  ;;  %vm3115_vm0 = vc.u32 %v3113_v1, %v3109_v51  ;;  %v7286_v39 = vrot.slane %v5947_v42, 2  ;;  %v7289_v51 = vrot.slane %v5873_v20, 3 }
 0x1f6   : > { %v994_v41 = vadd.f32 %v953_v48, %v754_v27  ;;  %v756_v19 = vpop.f32.mrf.mxu1  ;;  %v3114_v27 = vadd.s32 %v3112_v58, %v3106_v55  ;;  %v3116_v50 = vsel %vm3115_vm0, 1, %v7276_v56  ;;  %v6061_v55 = vsel %vm1733_vm6, %v7287_v47, %v2112_v25  ;;  %v7290_v58 = vld [vmem:[#allocation6_spill] sm:$0xff] }
 0x1f7   : > { %v6052_v48 = vsel %vm1733_vm6, %v7286_v39, %v1751_v63  ;;  %v6055_v28 = vsub.s32 %v5932_v5, %v3093_v13  ;;  %v3110_v1 = vshrl.u32 %v3105_v29, 16  ;;  %v757_v5 = vadd.f32 %v756_v19, %v7290_v58 }
 0x1f8   : > { %v6045_v59 = vadd.f32 %v5912_v16, %v994_v41  ;;  %v6047_v53 = vpop.f32.mrf.mxu0  ;;  %v7288_v16 = vrot.slane %v5915_v32, 3  ;;  %v3118_v41 = vadd.s32 %v3116_v50, %v3114_v27  ;;  %v2428_v20 = vsel %vm2330_vm5, %v5979_v23, %v6025_v3  ;;  %v6095_v27 = vld [vmem:[%s5222_s25 + $0x68] sm:$0xff] }
 0x1f9   : > { %7285 = vst [vmem:[#allocation28_spill] sm:$0xff] %v6047_v53  ;;  %4933 = vmatmul.msk.bf16.gmra.mxu1 %vm465_vm2, %v5964_v43  ;;  %v3130_v29 = vshrl.u32 %v6015_v40, 16  ;;  %v7291_v19 = vrot.slane %v6040_v33, 2  ;;  %v3133_v39 = vmul.u32 58254, %v3129_v62  ;;  %vm4084_vm1 = vcmp.ne.s32.totalorder %v6055_v28, 0  ;;  %v6099_v58 = vpop.f32.mrf.mxu3 }
 0x1fa   : > { %7284 = vst [vmem:[#allocation27_spill] sm:$0xff] %v6045_v59  ;;  %v6068_v42 = vsel %vm2699_vm7, %v7289_v51, %v7288_v16  ;;  %5020 = vmatmul.msk.bf16.gmra.mxu2 %vm465_vm2, %v5969_v4  ;;  %v7292_v4 = vrot.slane %v5982_v22, 2  ;;  %v3119_v47 = vadd.s32 %v3118_v41, %v3108_v2  ;;  %v3132_v16 = vmul.u32 14564, %v3129_v62 }
 0x1fb   : > { %5058 = vmatmul.msk.bf16.gmra.mxu0 %vm465_vm2, %v2716_v54  ;;  %v6087_v43 = vsel %vm1733_vm6, %v1751_v63, %v7291_v19  ;;  %v3134_v54 = vmul.u32 14564, %v3130_v29  ;;  %v2430_v19 = vshrl.u32 %v6095_v27, 16  ;;  %v2433_v13 = vshll.u32 %v6095_v27, 16 }
 0x1fc   : > { %v6092_v50 = vsel %vm1733_vm6, %v2112_v25, %v7292_v4  ;;  %v3120_v63 = vadd.s32 %v3119_v47, %v3110_v1  ;;  %v6104_v25 = vadd.s32 32, %v5899_v52  ;;  %v3135_v41 = vmul.u32 58254, %v3130_v29 }
 0x1fd   : > { %v956_v51 = vpop.f32.mrf.mxu2  ;;  %v3136_v4 = vshll.u32 %v3133_v39, 16  ;;  %v3138_v53 = vshll.u32 %v3134_v54, 16  ;;  %vm4120_vm3 = vcmp.lt.s32.totalorder %v6055_v28, 0  ;;  %v2432_v23 = vrot.slane %v2430_v19, 2  ;;  %5041 = vmatmul.msk.bf16.gmra.mxu3 %vm465_vm2, %v2428_v20 }
 0x1fe   : > { %v995_v2 = vadd.f32 %v956_v51, %v757_v5  ;;  %v758_v59 = vpop.f32.mrf.mxu1  ;;  %v3121_v62 = vshrl.u32 %v3120_v63, 4  ;;  %v2435_v45 = vrot.slane %v2433_v13, 3  ;;  %v6113_v47 = vadd.s32 18, %v6055_v28  ;;  %vm6133_vm9 = vmand %vm4120_vm3, %vm4084_vm1 }
 0x1ff   : > { %vm3140_vm4 = vc.u32 %v3132_v16, %v3136_v4  ;;  %v3142_v49 = vadd.s32 %v3136_v4, %v3132_v16  ;;  %v3137_v29 = vshrl.u32 %v3133_v39, 16  ;;  %v3158_v36 = vand.u32 65535, %v6104_v25  ;;  %v7295_v4 = vld [vmem:[#allocation7_spill] sm:$0xff] }
 0x200   : > { %v6108_v8 = vadd.f32 %v5944_v61, %v995_v2  ;;  %v6110_v1 = vpop.f32.mrf.mxu0  ;;  %v3122_v5 = vmul.u32 18, %v3121_v62  ;;  %v3141_v51 = vsel %vm3140_vm4, 1, %v7276_v56  ;;  %v3139_v63 = vshrl.u32 %v3134_v54, 16 }
 0x201   : > { %7294 = vst [vmem:[#allocation29_spill] sm:$0xff] %v6110_v1  ;;  %v3143_v13 = vadd.s32 %v3141_v51, %v3135_v41  ;;  %vm3144_vm8 = vc.u32 %v3142_v49, %v3138_v53  ;;  %v3159_v61 = vshrl.u32 %v6104_v25, 16  ;;  %v6122_v2 = vor.u32 %v2435_v45, %v2432_v23  ;;  %v6141_v23 = vpop.f32.mrf.mxu3 }
 0x202   : > { %7293 = vst [vmem:[#allocation6_spill] sm:$0xff] %v6108_v8  ;;  %v6120_v19 = vsub.s32 %v5975_v15, %v3122_v5  ;;  %v3145_v16 = vsel %vm3144_vm8, 1, %v7276_v56  ;;  %v6126_v39 = vadd.s32 40, %v5899_v52  ;;  %v759_v62 = vadd.f32 %v758_v59, %v7295_v4  ;;  %v6168_v8 = vld [vmem:[%s5222_s25 + $0x60] sm:$0xff] }
 0x203   : > { %v3147_v53 = vadd.s32 %v3145_v16, %v3143_v13  ;;  %v6137_v15 = vmul.u32 58254, %v3158_v36  ;;  %v6139_v45 = vmul.u32 14564, %v3159_v61  ;;  %v7298_v54 = vrot.slane %v5982_v22, 3 }
 0x204   : > { %v7299_v59 = vrot.slane %v5915_v32, 3  ;;  %vm4085_vm10 = vcmp.ne.s32.totalorder %v6120_v19, 0  ;;  %vm4121_vm11 = vcmp.lt.s32.totalorder %v6120_v19, 0  ;;  %v6153_v5 = vadd.s32 18, %v6120_v19 }
 0x205   : > { %v958_v20 = vpop.f32.mrf.mxu2  ;;  %vm6155_vm12 = vmand %vm4121_vm11, %vm4085_vm10  ;;  %v3148_v16 = vadd.s32 %v3147_v53, %v3137_v29  ;;  %v3161_v4 = vmul.u32 14564, %v3158_v36  ;;  %v3165_v1 = vshll.u32 %v6137_v15, 16  ;;  %v3164_v12 = vmul.u32 58254, %v3159_v61 }
 0x206   : > { %v6148_v41 = vsel %vm2699_vm7, %v7299_v59, %v7298_v54  ;;  %v996_v51 = vadd.f32 %v958_v20, %v759_v62  ;;  %v1837_v32 = vpop.f32.mrf.mxu1  ;;  %v4228_v54 = vsel %vm6133_vm9, %v6113_v47, %v6055_v28  ;;  %v2437_v59 = vsel %vm2330_vm5, %v6025_v3, %v6122_v2 }
 0x207   : > { %v7235_v62 = vrot.slane %v6168_v8, 2  ;;  %v3187_v20 = vand.u32 65535, %v6126_v39  ;;  %v3149_v53 = vadd.s32 %v3148_v16, %v3139_v63  ;;  %v3167_v14 = vshll.u32 %v6139_v45, 16 }
 0x208   : > { %v6173_v36 = vadd.f32 %v5986_v57, %v996_v51  ;;  %v2803_v29 = vpop.f32.mrf.mxu0  ;;  %v1927_v28 = vadd.f32 %v1837_v32, %v5559_v34  ;;  %v7303_v3 = vsel %vm6035_vm15, %v6023_v7, %v6001_v21  ;;  %v7236_v63 = vrot.slane %v6095_v27, 2 }
 0x209   : > { %vm6182_vm13 = vcmp.lt.s32.totalorder %v7303_v3, 16  ;;  %v3166_v61 = vshrl.u32 %v6137_v15, 16  ;;  %4934 = vmatmul.msk.bf16.gmra.mxu1 %vm465_vm2, %v6052_v48  ;;  %v3150_v34 = vshrl.u32 %v3149_v53, 4  ;;  %vm3169_vm14 = vc.u32 %v3161_v4, %v3165_v1  ;;  %v6209_v15 = vld [vmem:[%s5222_s25 + $0x70] sm:$0xff]  ;;  %v6213_v32 = vpop.f32.mrf.mxu3 }
 0x20a   : > { %7302 = vst [vmem:[#allocation7_spill] sm:$0xff] %v6173_v36  ;;  %5021 = vmatmul.msk.bf16.gmra.mxu2 %vm465_vm2, %v6061_v55  ;;  %v3171_v21 = vadd.s32 %v3165_v1, %v3161_v4  ;;  %v3188_v7 = vshrl.u32 %v6126_v39, 16  ;;  %vm2965_vm15 = vcmask 27648   ;;  %v6204_v49 = vsel %vm1733_vm6, %v7306_v24, %v7235_v62 }
 0x20b   : > { %5059 = vmatmul.msk.bf16.gmra.mxu0 %vm465_vm2, %v6068_v42  ;;  %v3170_v55 = vsel %vm3169_vm14, 1, %v7276_v56  ;;  %v6211_v1 = vmul.u32 58254, %v3187_v20  ;;  %v3151_v51 = vmul.u32 18, %v3150_v34  ;;  %v3190_v42 = vmul.u32 14564, %v3187_v20 }
 0x20c   : > { %v3172_v16 = vadd.s32 %v3170_v55, %v3164_v12  ;;  %vm3173_vm0 = vc.u32 %v3171_v21, %v3167_v14  ;;  %v2439_v53 = vshrl.u32 %v6209_v15, 16  ;;  %v2442_v3 = vshll.u32 %v6209_v15, 16 }
 0x20d   : > { %v2198_v4 = vpop.f32.mrf.mxu2  ;;  %v3174_v33 = vsel %vm3173_vm0, 1, %v7276_v56  ;;  %v6218_v24 = vmul.u32 14564, %v3188_v7  ;;  %v6221_v57 = vsub.s32 %v6015_v40, %v3151_v51  ;;  %v3194_v12 = vshll.u32 %v6211_v1, 16  ;;  %5042 = vmatmul.msk.bf16.gmra.mxu3 %vm465_vm2, %v2437_v59 }
 0x20e   : > { %v2288_v62 = vadd.f32 %v2198_v4, %v1927_v28  ;;  %v3176_v48 = vadd.s32 %v3174_v33, %v3172_v16  ;;  %v1839_v14 = vpop.f32.mrf.mxu1  ;;  %v7307_v20 = vrot.slane %v5982_v22, 2  ;;  %v3168_v21 = vshrl.u32 %v6139_v45, 16 }
 0x20f   : > { %v2441_v55 = vrot.slane %v2439_v53, 2  ;;  %v2444_v36 = vrot.slane %v2442_v3, 3  ;;  %vm4086_vm1 = vcmp.ne.s32.totalorder %v6221_v57, 0  ;;  %vm4122_vm3 = vcmp.lt.s32.totalorder %v6221_v57, 0 }
 0x210   : > { %v6230_v34 = vsel %vm1733_vm6, %v7307_v20, %v7236_v63  ;;  %v2657_v28 = vadd.f32 %v6027_v6, %v2288_v62  ;;  %v2805_v40 = vpop.f32.mrf.mxu0  ;;  %v3193_v51 = vmul.u32 58254, %v3188_v7  ;;  %vm6236_vm4 = vcmp.lt.s32.totalorder %v4228_v54, 16  ;;  %vm6260_vm9 = vmand %vm4122_vm3, %vm4086_vm1 }
 0x211   : > { %v6241_v4 = vadd.s32 18, %v6221_v57  ;;  %v7310_v33 = vrot.slane %v6095_v27, 3  ;;  %v7311_v45 = vrot.slane %v5982_v22, 3  ;;  %v3177_v6 = vadd.s32 %v3176_v48, %v3166_v61 }
 0x212   : > { %v3196_v62 = vshll.u32 %v6218_v24, 16  ;;  %v2893_v3 = vadd.f32 %v2803_v29, %v2657_v28  ;;  %vm3198_vm8 = vc.u32 %v3190_v42, %v3194_v12  ;;  %v3200_v54 = vadd.s32 %v3194_v12, %v3190_v42 }
 0x213   : > { %v6248_v53 = vsel %vm2699_vm7, %v7311_v45, %v7310_v33  ;;  %v6253_v7 = vadd.s32 48, %v5899_v52  ;;  %v3178_v61 = vadd.s32 %v3177_v6, %v3168_v21  ;;  %v6264_v48 = vor.u32 %v2444_v36, %v2441_v55  ;;  %v6281_v55 = vpop.f32.mrf.mxu3 }
 0x214   : > { %v3195_v59 = vshrl.u32 %v6211_v1, 16  ;;  %v3199_v29 = vsel %vm3198_vm8, 1, %v7276_v56  ;;  %v2929_v42 = vpack.c.bf16 %v2893_v3, %v2893_v3  ;;  %v4371_v12 = vsel %vm6182_vm13, %v2893_v3, 0.0 }
 0x215   : > { %v1928_v20 = vadd.f32 %v1839_v14, %v5569_v26  ;;  %v3201_v28 = vadd.s32 %v3199_v29, %v3193_v51  ;;  %v4484_v33 = vmul.f32 %v4371_v12, %v4371_v12  ;;  %v2200_v45 = vpop.f32.mrf.mxu2  ;;  %v3179_v63 = vshrl.u32 %v3178_v61, 4 }
 0x216   : > { %v3197_v46 = vshrl.u32 %v6218_v24, 16  ;;  %vm3202_vm10 = vc.u32 %v3200_v54, %v3196_v62  ;;  %2966 = vst.msk [vmem:[%s6258_s14] sm:$0xf] %vm2965_vm15, %v2929_v42  ;;  %v4230_v1 = vsel %vm6260_vm9, %v6241_v4, %v6221_v57  ;;  %v3216_v26 = vand.u32 65535, %v6253_v7  ;;  %v1842_v21 = vpop.f32.mrf.mxu1  ;;  %v6289_v4 = vld [vmem:[%s5222_s25 + $0x68] sm:$0xff] }
 0x217   : > { %v2289_v36 = vadd.f32 %v2200_v45, %v1928_v20  ;;  %v3203_v47 = vsel %vm3202_vm10, 1, %v7276_v56  ;;  %v4407_v14 = vsel %vm465_vm2, %v4371_v12, 0.0  ;;  %v3180_v24 = vmul.u32 18, %v3179_v63 }
 0x218   : > { %v2446_v51 = vsel %vm2330_vm5, %v6122_v2, %v6264_v48  ;;  %v3205_v6 = vadd.s32 %v3203_v47, %v3201_v28  ;;  %v4520_v62 = vsel %vm465_vm2, %v4484_v33, 0.0  ;;  %v2808_v57 = vpop.f32.mrf.mxu0  ;;  %v1757_v54 = vrot.slane %v6289_v4, 2  ;;  %v6345_v47 = vld [vmem:[%s5222_s25 + $0x78] sm:$0xff] }
 0x219   : > { %v2658_v3 = vadd.f32 %v6099_v58, %v2289_v36  ;;  %v3217_v22 = vshrl.u32 %v6253_v7, 16  ;;  %v1929_v61 = vadd.f32 %v1842_v21, %v5575_v18  ;;  %v7314_v63 = vsel %vm6155_vm12, %v6153_v5, %v6120_v19  ;;  %4935 = vmatmul.msk.bf16.gmra.mxu1 %vm465_vm2, %v6087_v43 }
 0x21a   : > { %vm6299_vm11 = vcmp.lt.s32.totalorder %v7314_v63, 16  ;;  %v6304_v58 = vsub.s32 %v6104_v25, %v3180_v24  ;;  %v3206_v29 = vadd.s32 %v3205_v6, %v3195_v59  ;;  %v2118_v42 = vrot.slane %v6209_v15, 2  ;;  %5022 = vmatmul.msk.bf16.gmra.mxu2 %vm465_vm2, %v6092_v50 }
 0x21b   : > { %v2894_v12 = vadd.f32 %v2805_v40, %v2658_v3  ;;  %v2723_v18 = vrot.slane %v6209_v15, 3  ;;  %v3219_v19 = vmul.u32 14564, %v3216_v26  ;;  %v6312_v5 = vmul.u32 58254, %v3216_v26  ;;  %5060 = vmatmul.msk.bf16.gmra.mxu0 %vm465_vm2, %v6148_v41 }
 0x21c   : > { %vm4087_vm12 = vcmp.ne.s32.totalorder %v6304_v58, 0  ;;  %vm4123_vm13 = vcmp.lt.s32.totalorder %v6304_v58, 0  ;;  %v6319_v25 = vadd.s32 18, %v6304_v58  ;;  %v3207_v43 = vadd.s32 %v3206_v29, %v3197_v46 }
 0x21d   : > { %v2930_v13 = vpack.c.bf16 %v2894_v12, %v2894_v12  ;;  %v4372_v50 = vsel %vm6236_vm4, %v2894_v12, 0.0  ;;  %vm6323_vm14 = vmand %vm4123_vm13, %vm4087_vm12  ;;  %v7319_v41 = vrot.slane %v6168_v8, 2  ;;  %v6334_v20 = vmul.u32 14564, %v3217_v22  ;;  %v2203_v33 = vpop.f32.mrf.mxu2  ;;  %5043 = vmatmul.msk.bf16.gmra.mxu3 %vm465_vm2, %v2446_v51 }
 0x21e   : > { %v4408_v28 = vsel %vm465_vm2, %v4372_v50, 0.0  ;;  %v4485_v46 = vmul.f32 %v4372_v50, %v4372_v50  ;;  %v3208_v45 = vshrl.u32 %v3207_v43, 4  ;;  %v7320_v16 = vrot.slane %v6095_v27, 2  ;;  %v1844_v63 = vpop.f32.mrf.mxu1 }
 0x21f   : > { %v6332_v59 = vsel %vm1733_vm6, %v7319_v41, %v1757_v54  ;;  %2967 = vst.msk [vmem:[%s6258_s14 + $0x4] sm:$0xf] %vm2965_vm15, %v2930_v13  ;;  %v4409_v8 = vadd.f32 %v4408_v28, %v4407_v14  ;;  %v2290_v26 = vadd.f32 %v2203_v33, %v1929_v61  ;;  %v7321_v21 = vrot.slane %v6095_v27, 3  ;;  %v6369_v28 = vpop.f32.mrf.mxu3 }
 0x220   : > { %v6342_v36 = vsel %vm1733_vm6, %v7320_v16, %v2118_v42  ;;  %v3223_v6 = vshll.u32 %v6312_v5, 16  ;;  %v4521_v3 = vsel %vm465_vm2, %v4485_v46, 0.0  ;;  %v4231_v29 = vsel %vm6323_vm14, %v6319_v25, %v6304_v58  ;;  %v2810_v13 = vpop.f32.mrf.mxu0 }
 0x221   : > { %v6354_v24 = vsel %vm2699_vm7, %v7321_v21, %v2723_v18  ;;  %v3209_v12 = vmul.u32 18, %v3208_v45  ;;  %v3222_v14 = vmul.u32 58254, %v3217_v22  ;;  %v4522_v61 = vadd.f32 %v4521_v3, %v4520_v62 }
 0x222   : > { %v2659_v43 = vadd.f32 %v6141_v23, %v2290_v26  ;;  %v3224_v27 = vshrl.u32 %v6312_v5, 16  ;;  %v3225_v50 = vshll.u32 %v6334_v20, 16  ;;  %vm6365_vm0 = vcmp.lt.s32.totalorder %v4230_v1, 16 }
 0x223   : > { %v6372_v46 = vsub.s32 %v6126_v39, %v3209_v12  ;;  %vm3227_vm1 = vc.u32 %v3219_v19, %v3223_v6  ;;  %v3229_v58 = vadd.s32 %v3223_v6, %v3219_v19  ;;  %v2448_v62 = vshrl.u32 %v6345_v47, 16 }
 0x224   : > { %v2895_v22 = vadd.f32 %v2808_v57, %v2659_v43  ;;  %v1930_v23 = vadd.f32 %v1844_v63, %v5585_v30  ;;  %v3228_v5 = vsel %vm3227_vm1, 1, %v7276_v56  ;;  %v2451_v1 = vshll.u32 %v6345_v47, 16 }
 0x225   : > { %vm4088_vm3 = vcmp.ne.s32.totalorder %v6372_v46, 0  ;;  %vm4124_vm4 = vcmp.lt.s32.totalorder %v6372_v46, 0  ;;  %v3230_v39 = vadd.s32 %v3228_v5, %v3222_v14  ;;  %v6382_v25 = vadd.s32 56, %v5899_v52  ;;  %v2205_v33 = vpop.f32.mrf.mxu2 }
 0x226   : > { %v2931_v19 = vpack.c.bf16 %v2895_v22, %v2895_v22  ;;  %v4373_v57 = vsel %vm6299_vm11, %v2895_v22, 0.0  ;;  %v6387_v30 = vadd.s32 18, %v6372_v46  ;;  %vm3231_vm8 = vc.u32 %v3229_v58, %v3225_v50  ;;  %vm6390_vm9 = vmand %vm4124_vm4, %vm4088_vm3  ;;  %v1847_v12 = vpop.f32.mrf.mxu1 }
 0x227   : > { %v4410_v51 = vsel %vm465_vm2, %v4373_v57, 0.0  ;;  %v4486_v40 = vmul.f32 %v4373_v57, %v4373_v57  ;;  %v3232_v16 = vsel %vm3231_vm8, 1, %v7276_v56  ;;  %v2450_v26 = vrot.slane %v2448_v62, 2 }
 0x228   : > { %2968 = vst.msk [vmem:[%s6258_s14 + $0x8] sm:$0xf] %vm2965_vm15, %v2931_v19  ;;  %v4411_v21 = vadd.f32 %v4410_v51, %v4409_v8  ;;  %v2291_v2 = vadd.f32 %v2205_v33, %v1930_v23  ;;  %v3226_v6 = vshrl.u32 %v6334_v20, 16  ;;  %v3234_v3 = vadd.s32 %v3232_v16, %v3230_v39  ;;  %v2813_v5 = vpop.f32.mrf.mxu0 }
 0x229   : > { %v4523_v63 = vsel %vm465_vm2, %v4486_v40, 0.0  ;;  %v2453_v14 = vrot.slane %v2451_v1, 3  ;;  %v3245_v43 = vand.u32 65535, %v6382_v25  ;;  %v3246_v50 = vshrl.u32 %v6382_v25, 16  ;;  %4936 = vmatmul.msk.bf16.gmra.mxu1 %vm465_vm2, %v6204_v49  ;;  %v6431_v49 = vld [vmem:[%s5222_s25 + $0x70] sm:$0xff] }
 0x22a   : > { %v4524_v58 = vadd.f32 %v4523_v63, %v4522_v61  ;;  %v2660_v22 = vadd.f32 %v6213_v32, %v2291_v2  ;;  %v4232_v8 = vsel %vm6390_vm9, %v6387_v30, %v6372_v46  ;;  %v3235_v62 = vadd.s32 %v3234_v3, %v3224_v27  ;;  %5023 = vmatmul.msk.bf16.gmra.mxu2 %vm465_vm2, %v6230_v34  ;;  %v6423_v46 = vpop.f32.mrf.mxu3 }
 0x22b   : > { %vm6406_vm10 = vcmp.lt.s32.totalorder %v4231_v29, 16  ;;  %v6410_v23 = vor.u32 %v2453_v14, %v2450_v26  ;;  %v3248_v1 = vmul.u32 14564, %v3245_v43  ;;  %v6412_v39 = vmul.u32 58254, %v3245_v43  ;;  %5061 = vmatmul.msk.bf16.gmra.mxu0 %vm465_vm2, %v6248_v53 }
 0x22c   : > { %v6414_v61 = vmul.u32 14564, %v3246_v50  ;;  %v2896_v32 = vadd.f32 %v2810_v13, %v2660_v22  ;;  %v1931_v19 = vadd.f32 %v1847_v12, %v5591_v60  ;;  %v3236_v29 = vadd.s32 %v3235_v62, %v3226_v6 }
 0x22d   : > { %v3251_v27 = vmul.u32 58254, %v3246_v50  ;;  %v2455_v13 = vsel %vm2330_vm5, %v6264_v48, %v6410_v23  ;;  %v3252_v60 = vshll.u32 %v6412_v39, 16  ;;  %v1759_v34 = vrot.slane %v6431_v49, 2  ;;  %v2208_v16 = vpop.f32.mrf.mxu2 }
 0x22e   : > { %v3254_v57 = vshll.u32 %v6414_v61, 16  ;;  %v2932_v30 = vpack.c.bf16 %v2896_v32, %v2896_v32  ;;  %v4374_v51 = vsel %vm6365_vm0, %v2896_v32, 0.0  ;;  %v3237_v53 = vshrl.u32 %v3236_v29, 4  ;;  %v1849_v41 = vpop.f32.mrf.mxu1  ;;  %5044 = vmatmul.msk.bf16.gmra.mxu3 %vm465_vm2, %v2455_v13 }
 0x22f   : > { %v3253_v40 = vshrl.u32 %v6412_v39, 16  ;;  %v4412_v33 = vsel %vm465_vm2, %v4374_v51, 0.0  ;;  %v4487_v45 = vmul.f32 %v4374_v51, %v4374_v51  ;;  %vm3256_vm11 = vc.u32 %v3248_v1, %v3252_v60 }
 0x230   : > { %v3258_v48 = vadd.s32 %v3252_v60, %v3248_v1  ;;  %2969 = vst.msk [vmem:[%s6258_s14 + $0xc] sm:$0xf] %vm2965_vm15, %v2932_v30  ;;  %v4413_v26 = vadd.f32 %v4412_v33, %v4411_v21  ;;  %v2292_v2 = vadd.f32 %v2208_v16, %v1931_v19  ;;  %v3238_v6 = vmul.u32 18, %v3237_v53  ;;  %v2815_v22 = vpop.f32.mrf.mxu0 }
 0x231   : > { %v3257_v3 = vsel %vm3256_vm11, 1, %v7276_v56  ;;  %v4525_v63 = vsel %vm465_vm2, %v4487_v45, 0.0  ;;  %v3255_v12 = vshrl.u32 %v6414_v61, 16  ;;  %v6450_v21 = vsel %vm1733_vm6, %v1757_v54, %v1759_v34 }
 0x232   : > { %v3259_v14 = vadd.s32 %v3257_v3, %v3251_v27  ;;  %vm3260_vm12 = vc.u32 %v3258_v48, %v3254_v57  ;;  %v4526_v43 = vadd.f32 %v4525_v63, %v4524_v58  ;;  %v2661_v50 = vadd.f32 %v6281_v55, %v2292_v2  ;;  %v6489_v51 = vpop.f32.mrf.mxu3 }
 0x233   : > { %v3239_v62 = vsub.s32 %v6253_v7, %v3238_v6  ;;  %vm6452_vm13 = vcmp.lt.s32.totalorder %v4232_v8, 16  ;;  %v3261_v39 = vsel %vm3260_vm12, 1, %v7276_v56  ;;  %v2120_v58 = vrot.slane %v6345_v47, 2 }
 0x234   : > { %v2725_v55 = vrot.slane %v6345_v47, 3  ;;  %v6460_v61 = vadd.s32 64, %v5899_v52  ;;  %v2897_v7 = vadd.f32 %v2813_v5, %v2661_v50  ;;  %v1932_v54 = vadd.f32 %v1849_v41, %v5601_v37 }
 0x235   : > { %vm4089_vm14 = vcmp.ne.s32.totalorder %v3239_v62, 0  ;;  %vm4125_vm0 = vcmp.lt.s32.totalorder %v3239_v62, 0  ;;  %v4197_v4 = vadd.s32 18, %v3239_v62  ;;  %v3263_v32 = vadd.s32 %v3261_v39, %v3259_v14  ;;  %v2210_v57 = vpop.f32.mrf.mxu2 }
 0x236   : > { %vm6464_vm1 = vmand %vm4125_vm0, %vm4089_vm14  ;;  %v6473_v19 = vsel %vm1733_vm6, %v2118_v42, %v2120_v58  ;;  %v3274_v5 = vand.u32 65535, %v6460_v61  ;;  %v2933_v29 = vpack.c.bf16 %v2897_v7, %v2897_v7  ;;  %v4375_v27 = vsel %vm6406_vm10, %v2897_v7, 0.0  ;;  %v1852_v48 = vpop.f32.mrf.mxu1 }
 0x237   : > { %v6483_v37 = vsel %vm2699_vm7, %v2723_v18, %v2725_v55  ;;  %v3275_v13 = vshrl.u32 %v6460_v61, 16  ;;  %v4414_v60 = vsel %vm465_vm2, %v4375_v27, 0.0  ;;  %v4488_v42 = vmul.f32 %v4375_v27, %v4375_v27  ;;  %v6494_v18 = vld [vmem:[%s5222_s25 + $0x80] sm:$0xff] }
 0x238   : > { %v4233_v30 = vsel %vm6464_vm1, %v4197_v4, %v3239_v62  ;;  %v3264_v20 = vadd.s32 %v3263_v32, %v3253_v40  ;;  %2970 = vst.msk [vmem:[%s6258_s14 + $0x10] sm:$0xf] %vm2965_vm15, %v2933_v29  ;;  %v4415_v53 = vadd.f32 %v4414_v60, %v4413_v26  ;;  %v2293_v33 = vadd.f32 %v2210_v57, %v1932_v54  ;;  %v2818_v40 = vpop.f32.mrf.mxu0 }
 0x239   : > { %v3277_v15 = vmul.u32 14564, %v3274_v5  ;;  %v3278_v45 = vmul.u32 58254, %v3274_v5  ;;  %v4527_v16 = vsel %vm465_vm2, %v4488_v42, 0.0  ;;  %v3279_v6 = vmul.u32 14564, %v3275_v13  ;;  %4937 = vmatmul.msk.bf16.gmra.mxu1 %vm465_vm2, %v6332_v59 }
 0x23a   : > { %v3265_v2 = vadd.s32 %v3264_v20, %v3255_v12  ;;  %v3280_v3 = vmul.u32 58254, %v3275_v13  ;;  %v4528_v63 = vadd.f32 %v4527_v16, %v4526_v43  ;;  %v2662_v41 = vadd.f32 %v6369_v28, %v2293_v33  ;;  %5024 = vmatmul.msk.bf16.gmra.mxu2 %vm465_vm2, %v6342_v36 }
 0x23b   : > { %v1933_v14 = vadd.f32 %v1852_v48, %v5607_v10  ;;  %v3281_v50 = vshll.u32 %v3278_v45, 16  ;;  %vm6499_vm3 = vcmp.lt.s32.totalorder %v4233_v30, 16  ;;  %v3282_v39 = vshrl.u32 %v3278_v45, 16  ;;  %5062 = vmatmul.msk.bf16.gmra.mxu0 %vm465_vm2, %v6354_v24 }
 0x23c   : > { %v3266_v62 = vshrl.u32 %v3265_v2, 4  ;;  %v3283_v7 = vshll.u32 %v3279_v6, 16  ;;  %v3284_v4 = vshrl.u32 %v3279_v6, 16  ;;  %v2898_v54 = vadd.f32 %v2815_v22, %v2662_v41 }
 0x23d   : > { %vm3285_vm4 = vc.u32 %v3277_v15, %v3281_v50  ;;  %v3287_v28 = vadd.s32 %v3281_v50, %v3277_v15  ;;  %v2457_v10 = vshrl.u32 %v6494_v18, 16  ;;  %v2460_v8 = vshll.u32 %v6494_v18, 16  ;;  %v2213_v27 = vpop.f32.mrf.mxu2  ;;  %v6523_v15 = vpop.f32.mrf.mxu3 }
 0x23e   : > { %v3267_v12 = vmul.u32 18, %v3266_v62  ;;  %v3286_v43 = vsel %vm3285_vm4, 1, %v7276_v56  ;;  %v6513_v22 = vadd.s32 72, %v5899_v52  ;;  %v2934_v59 = vpack.c.bf16 %v2898_v54, %v2898_v54  ;;  %v1854_v1 = vpop.f32.mrf.mxu1 }
 0x23f   : > { %v4376_v36 = vsel %vm6452_vm13, %v2898_v54, 0.0  ;;  %v3288_v32 = vadd.s32 %v3286_v43, %v3280_v3  ;;  %vm3289_vm8 = vc.u32 %v3287_v28, %v3283_v7  ;;  %v2294_v42 = vadd.f32 %v2213_v27, %v1933_v14 }
 0x240   : > { %v4416_v5 = vsel %vm465_vm2, %v4376_v36, 0.0  ;;  %v4489_v29 = vmul.f32 %v4376_v36, %v4376_v36  ;;  %v3268_v24 = vsub.s32 %v6382_v25, %v3267_v12  ;;  %v3290_v13 = vsel %vm3289_vm8, 1, %v7276_v56  ;;  %2971 = vst.msk [vmem:[%s6258_s14 + $0x14] sm:$0xf] %vm2965_vm15, %v2934_v59  ;;  %v2820_v48 = vpop.f32.mrf.mxu0 }
 0x241   : > { %v4417_v60 = vadd.f32 %v4416_v5, %v4415_v53  ;;  %v3292_v57 = vadd.s32 %v3290_v13, %v3288_v32  ;;  %v2459_v30 = vrot.slane %v2457_v10, 2  ;;  %v2663_v25 = vadd.f32 %v6423_v46, %v2294_v42 }
 0x242   : > { %v4529_v20 = vsel %vm465_vm2, %v4489_v29, 0.0  ;;  %vm4090_vm9 = vcmp.ne.s32.totalorder %v3268_v24, 0  ;;  %vm4126_vm10 = vcmp.lt.s32.totalorder %v3268_v24, 0  ;;  %v4198_v33 = vadd.s32 18, %v3268_v24 }
 0x243   : > { %v4530_v45 = vadd.f32 %v4529_v20, %v4528_v63  ;;  %v1934_v16 = vadd.f32 %v1854_v1, %v5617_v0  ;;  %vm4162_vm11 = vmand %vm4126_vm10, %vm4090_vm9  ;;  %v3293_v53 = vadd.s32 %v3292_v57, %v3282_v39  ;;  %v2462_v6 = vrot.slane %v2460_v8, 3  ;;  %v6534_v63 = vld [vmem:[%s5222_s25 + $0x78] sm:$0xff] }
 0x244   : > { %v4234_v2 = vsel %vm4162_vm11, %v4198_v33, %v3268_v24  ;;  %v3303_v3 = vand.u32 65535, %v6513_v22  ;;  %v3304_v41 = vshrl.u32 %v6513_v22, 16  ;;  %v2899_v14 = vadd.f32 %v2818_v40, %v2663_v25 }
 0x245   : > { %vm6529_vm12 = vcmp.lt.s32.totalorder %v4234_v2, 16  ;;  %v3294_v62 = vadd.s32 %v3293_v53, %v3284_v4  ;;  %v1761_v0 = vrot.slane %v6534_v63, 2  ;;  %v6537_v46 = vor.u32 %v2462_v6, %v2459_v30  ;;  %v2215_v8 = vpop.f32.mrf.mxu2  ;;  %v6556_v1 = vpop.f32.mrf.mxu3 }
 0x246   : > { %v3306_v39 = vmul.u32 14564, %v3303_v3  ;;  %v3307_v7 = vmul.u32 58254, %v3303_v3  ;;  %v6539_v54 = vmul.u32 14564, %v3304_v41  ;;  %v2935_v28 = vpack.c.bf16 %v2899_v14, %v2899_v14  ;;  %v1857_v24 = vpop.f32.mrf.mxu1 }
 0x247   : > { %v4377_v40 = vsel %vm6499_vm3, %v2899_v14, 0.0  ;;  %v3295_v10 = vshrl.u32 %v3294_v62, 4  ;;  %v3309_v12 = vmul.u32 58254, %v3304_v41  ;;  %v2464_v59 = vsel %vm2330_vm5, %v6410_v23, %v6537_v46 }
 0x248   : > { %v4418_v43 = vsel %vm465_vm2, %v4377_v40, 0.0  ;;  %v4490_v4 = vmul.f32 %v4377_v40, %v4377_v40  ;;  %v3310_v36 = vshll.u32 %v3307_v7, 16  ;;  %2972 = vst.msk [vmem:[%s6258_s14 + $0x18] sm:$0xf] %vm2965_vm15, %v2935_v28  ;;  %v2295_v5 = vadd.f32 %v2215_v8, %v1934_v16  ;;  %5045 = vmatmul.msk.bf16.gmra.mxu3 %vm465_vm2, %v2464_v59  ;;  %v2823_v20 = vpop.f32.mrf.mxu0 }
 0x249   : > { %v4419_v32 = vadd.f32 %v4418_v43, %v4417_v60  ;;  %v3296_v29 = vmul.u32 18, %v3295_v10  ;;  %v3311_v26 = vshrl.u32 %v3307_v7, 16  ;;  %v3312_v13 = vshll.u32 %v6539_v54, 16  ;;  %4938 = vmatmul.msk.bf16.gmra.mxu1 %vm465_vm2, %v6450_v21 }
 0x24a   : > { %v4531_v27 = vsel %vm465_vm2, %v4490_v4, 0.0  ;;  %v3313_v42 = vshrl.u32 %v6539_v54, 16  ;;  %vm3314_vm13 = vc.u32 %v3306_v39, %v3310_v36  ;;  %v2664_v23 = vadd.f32 %v6489_v51, %v2295_v5  ;;  %5025 = vmatmul.msk.bf16.gmra.mxu2 %vm465_vm2, %v6473_v19 }
 0x24b   : > { %v4532_v57 = vadd.f32 %v4531_v27, %v4530_v45  ;;  %v1935_v30 = vadd.f32 %v1857_v24, %v5623_v11  ;;  %v3297_v60 = vsub.s32 %v6460_v61, %v3296_v29  ;;  %v3315_v33 = vsel %vm3314_vm13, 1, %v7276_v56  ;;  %5063 = vmatmul.msk.bf16.gmra.mxu0 %vm465_vm2, %v6483_v37  ;;  %v6582_v61 = vld [vmem:[%s5222_s25 + $0x88] sm:$0xff] }
 0x24c   : > { %v3316_v25 = vadd.s32 %v3310_v36, %v3306_v39  ;;  %v6564_v16 = vsel %vm1733_vm6, %v1759_v34, %v1761_v0  ;;  %v2122_v51 = vrot.slane %v6494_v18, 2  ;;  %v2900_v45 = vadd.f32 %v2820_v48, %v2664_v23 }
 0x24d   : > { %vm4091_vm14 = vcmp.ne.s32.totalorder %v3297_v60, 0  ;;  %vm4127_vm0 = vcmp.lt.s32.totalorder %v3297_v60, 0  ;;  %v4199_v11 = vadd.s32 18, %v3297_v60  ;;  %v3317_v49 = vadd.s32 %v3315_v33, %v3309_v12  ;;  %v2218_v3 = vpop.f32.mrf.mxu2 }
 0x24e   : > { %vm4163_vm1 = vmand %vm4127_vm0, %vm4091_vm14  ;;  %vm3318_vm3 = vc.u32 %v3316_v25, %v3312_v13  ;;  %v6578_v34 = vsel %vm1733_vm6, %v2120_v58, %v2122_v51  ;;  %v2727_v21 = vrot.slane %v6494_v18, 3  ;;  %v2936_v19 = vpack.c.bf16 %v2900_v45, %v2900_v45  ;;  %v1859_v54 = vpop.f32.mrf.mxu1  ;;  %v6612_v13 = vpop.f32.mrf.mxu3 }
 0x24f   : > { %v4378_v48 = vsel %vm6529_vm12, %v2900_v45, 0.0  ;;  %v4235_v37 = vsel %vm4163_vm1, %v4199_v11, %v3297_v60  ;;  %v3319_v53 = vsel %vm3318_vm3, 1, %v7276_v56  ;;  %v2296_v62 = vadd.f32 %v2218_v3, %v1935_v30 }
 0x250   : > { %v4420_v2 = vsel %vm465_vm2, %v4378_v48, 0.0  ;;  %v4491_v6 = vmul.f32 %v4378_v48, %v4378_v48  ;;  %vm6588_vm4 = vcmp.lt.s32.totalorder %v4235_v37, 16  ;;  %v3321_v58 = vadd.s32 %v3319_v53, %v3317_v49  ;;  %2973 = vst.msk [vmem:[%s6258_s14 + $0x1c] sm:$0xf] %vm2965_vm15, %v2936_v19  ;;  %v2825_v8 = vpop.f32.mrf.mxu0 }
 0x251   : > { %v4421_v14 = vadd.f32 %v4420_v2, %v4419_v32  ;;  %v2728_v50 = vsel %vm2699_vm7, %v2725_v55, %v2727_v21  ;;  %v6600_v39 = vadd.s32 80, %v5899_v52  ;;  %v2466_v40 = vshrl.u32 %v6582_v61, 16 }
 0x252   : > { %v4533_v7 = vsel %vm465_vm2, %v4491_v6, 0.0  ;;  %v3322_v28 = vadd.s32 %v3321_v58, %v3311_v26  ;;  %v2469_v10 = vshll.u32 %v6582_v61, 16  ;;  %v2665_v43 = vadd.f32 %v6523_v15, %v2296_v62 }
 0x253   : > { %v4534_v12 = vadd.f32 %v4533_v7, %v4532_v57  ;;  %v1936_v4 = vadd.f32 %v1859_v54, %v5633_v17  ;;  %v3332_v47 = vand.u32 65535, %v6600_v39  ;;  %v3333_v59 = vshrl.u32 %v6600_v39, 16 }
 0x254   : > { %v3323_v55 = vadd.s32 %v3322_v28, %v3313_v42  ;;  %v2468_v36 = vrot.slane %v2466_v40, 2  ;;  %v2471_v32 = vrot.slane %v2469_v10, 3  ;;  %v2901_v5 = vadd.f32 %v2823_v20, %v2665_v43 }
 0x255   : > { %v3335_v29 = vmul.u32 14564, %v3332_v47  ;;  %v3336_v26 = vmul.u32 58254, %v3332_v47  ;;  %v6610_v27 = vadd.s32 88, %v5899_v52  ;;  %v3337_v15 = vmul.u32 14564, %v3333_v59  ;;  %v2220_v25 = vpop.f32.mrf.mxu2 }
 0x256   : > { %v3324_v24 = vshrl.u32 %v3323_v55, 4  ;;  %v3338_v17 = vmul.u32 58254, %v3333_v59  ;;  %v6614_v57 = vor.u32 %v2471_v32, %v2468_v36  ;;  %v2937_v23 = vpack.c.bf16 %v2901_v5, %v2901_v5  ;;  %v1862_v2 = vpop.f32.mrf.mxu1  ;;  %v2594_v59 = vpop.f32.mrf.mxu3 }
 0x257   : > { %v4379_v42 = vsel %vm6588_vm4, %v2901_v5, 0.0  ;;  %v3339_v30 = vshll.u32 %v3336_v26, 16  ;;  %v3340_v60 = vshrl.u32 %v3336_v26, 16  ;;  %v3341_v11 = vshll.u32 %v3337_v15, 16 }
 0x258   : > { %v4422_v20 = vsel %vm465_vm2, %v4379_v42, 0.0  ;;  %v4492_v33 = vmul.f32 %v4379_v42, %v4379_v42  ;;  %v3325_v45 = vmul.u32 18, %v3324_v24  ;;  %2974 = vst.msk [vmem:[%s6258_s14 + $0x20] sm:$0xf] %vm2965_vm15, %v2937_v23  ;;  %v2297_v19 = vadd.f32 %v2220_v25, %v1936_v4  ;;  %v2828_v7 = vpop.f32.mrf.mxu0 }
 0x259   : > { %v4423_v49 = vadd.f32 %v4422_v20, %v4421_v14  ;;  %v3342_v48 = vshrl.u32 %v3337_v15, 16  ;;  %vm3343_vm8 = vc.u32 %v3335_v29, %v3339_v30  ;;  %v3345_v3 = vadd.s32 %v3339_v30, %v3335_v29  ;;  %4939 = vmatmul.msk.bf16.gmra.mxu1 %vm465_vm2, %v6564_v16 }
 0x25a   : > { %v4535_v37 = vsel %vm465_vm2, %v4492_v33, 0.0  ;;  %v3326_v53 = vsub.s32 %v6513_v22, %v3325_v45  ;;  %v3344_v6 = vsel %vm3343_vm8, 1, %v7276_v56  ;;  %v2666_v58 = vadd.f32 %v6556_v1, %v2297_v19  ;;  %5026 = vmatmul.msk.bf16.gmra.mxu2 %vm465_vm2, %v6578_v34 }
 0x25b   : > { %v4536_v41 = vadd.f32 %v4535_v37, %v4534_v12  ;;  %v1937_v62 = vadd.f32 %v1862_v2, %v5639_v38  ;;  %v3346_v54 = vadd.s32 %v3344_v6, %v3338_v17  ;;  %vm3347_vm11 = vc.u32 %v3345_v3, %v3341_v11  ;;  %5064 = vmatmul.msk.bf16.gmra.mxu0 %vm465_vm2, %v2728_v50  ;;  %v6639_v12 = vld [vmem:[%s5222_s25 + $0x80] sm:$0xff]  ;;  %v6653_v37 = vld [vmem:[%s5222_s25 + $0x90] sm:$0xff] }
 0x25c   : > { %vm4092_vm9 = vcmp.ne.s32.totalorder %v3326_v53, 0  ;;  %vm4128_vm10 = vcmp.lt.s32.totalorder %v3326_v53, 0  ;;  %v4200_v14 = vadd.s32 18, %v3326_v53  ;;  %v2902_v28 = vadd.f32 %v2825_v8, %v2666_v58 }
 0x25d   : > { %vm4164_vm12 = vmand %vm4128_vm10, %vm4092_vm9  ;;  %v3348_v22 = vsel %vm3347_vm11, 1, %v7276_v56  ;;  %v2473_v38 = vsel %vm2330_vm5, %v6537_v46, %v6614_v57  ;;  %v3361_v1 = vand.u32 65535, %v6610_v27  ;;  %v3362_v16 = vshrl.u32 %v6610_v27, 16  ;;  %v2223_v47 = vpop.f32.mrf.mxu2 }
 0x25e   : > { %v4236_v40 = vsel %vm4164_vm12, %v4200_v14, %v3326_v53  ;;  %v3350_v10 = vadd.s32 %v3348_v22, %v3346_v54  ;;  %5046 = vmatmul.msk.bf16.gmra.mxu3 %vm465_vm2, %v2473_v38  ;;  %v1763_v34 = vrot.slane %v6639_v12, 2  ;;  %v2938_v43 = vpack.c.bf16 %v2902_v28, %v2902_v28  ;;  %v1864_v17 = vpop.f32.mrf.mxu1 }
 0x25f   : > { %vm4272_vm13 = vcmp.lt.s32.totalorder %v4236_v40, 16  ;;  %v3364_v4 = vmul.u32 14564, %v3361_v1  ;;  %v3365_v8 = vmul.u32 58254, %v3361_v1  ;;  %v3366_v36 = vmul.u32 14564, %v3362_v16 }
 0x260   : > { %v4380_v46 = vsel %vm4272_vm13, %v2902_v28, 0.0  ;;  %v3351_v55 = vadd.s32 %v3350_v10, %v3340_v60  ;;  %v3367_v50 = vmul.u32 58254, %v3362_v16  ;;  %2975 = vst.msk [vmem:[%s6258_s14 + $0x24] sm:$0xf] %vm2965_vm15, %v2938_v43  ;;  %v2298_v29 = vadd.f32 %v2223_v47, %v1937_v62  ;;  %v2830_v33 = vpop.f32.mrf.mxu0  ;;  %v2597_v10 = vpop.f32.mrf.mxu3 }
 0x261   : > { %v4424_v32 = vsel %vm465_vm2, %v4380_v46, 0.0  ;;  %v4493_v5 = vmul.f32 %v4380_v46, %v4380_v46  ;;  %v3368_v26 = vshll.u32 %v3365_v8, 16  ;;  %v3369_v23 = vshrl.u32 %v3365_v8, 16 }
 0x262   : > { %v6645_v24 = vadd.f32 %v4424_v32, %v4423_v49  ;;  %v3352_v15 = vadd.s32 %v3351_v55, %v3342_v48  ;;  %v3370_v42 = vshll.u32 %v3366_v36, 16  ;;  %v2667_v60 = vadd.f32 %v6612_v13, %v2298_v29 }
 0x263   : > { %v4537_v30 = vsel %vm465_vm2, %v4493_v5, 0.0  ;;  %v1938_v20 = vadd.f32 %v1864_v17, %v5649_v31  ;;  %v3371_v25 = vshrl.u32 %v3366_v36, 16  ;;  %vm3372_vm14 = vc.u32 %v3364_v4, %v3368_v26 }
 0x264   : > { %v6650_v45 = vadd.f32 %v4537_v30, %v4536_v41  ;;  %v3353_v11 = vshrl.u32 %v3352_v15, 4  ;;  %v3374_v19 = vadd.s32 %v3368_v26, %v3364_v4  ;;  %v2903_v49 = vadd.f32 %v2828_v7, %v2667_v60 }
 0x265   : > { %v3373_v48 = vsel %vm3372_vm14, 1, %v7276_v56  ;;  %v1764_v13 = vsel %vm1733_vm6, %v1761_v0, %v1763_v34  ;;  %v2124_v31 = vrot.slane %v6582_v61, 2  ;;  %v2729_v6 = vrot.slane %v6582_v61, 3  ;;  %v2225_v62 = vpop.f32.mrf.mxu2 }
 0x266   : > { %v3354_v53 = vmul.u32 18, %v3353_v11  ;;  %v3375_v2 = vadd.s32 %v3373_v48, %v3367_v50  ;;  %vm3376_vm0 = vc.u32 %v3374_v19, %v3370_v42  ;;  %v2939_v3 = vpack.c.bf16 %v2903_v49, %v2903_v49  ;;  %v1867_v40 = vpop.f32.mrf.mxu1 }
 0x267   : > { %v3377_v41 = vsel %vm3376_vm0, 1, %v7276_v56  ;;  %v2125_v58 = vsel %vm1733_vm6, %v2122_v51, %v2124_v31  ;;  %v6670_v63 = vadd.s32 96, %v5899_v52  ;;  %v2730_v54 = vsel %vm2699_vm7, %v2727_v21, %v2729_v6 }
 0x268   : > { %v3355_v0 = vsub.s32 %v6600_v39, %v3354_v53  ;;  %v3379_v7 = vadd.s32 %v3377_v41, %v3375_v2  ;;  %v2475_v14 = vshrl.u32 %v6653_v37, 16  ;;  %2976 = vst.msk [vmem:[%s6258_s14 + $0x28] sm:$0xf] %vm2965_vm15, %v2939_v3  ;;  %v2299_v28 = vadd.f32 %v2225_v62, %v1938_v20  ;;  %v2833_v46 = vpop.f32.mrf.mxu0  ;;  %v7338_v3 = vld [vmem:[#allocation10_spill] sm:$0xff] }
 0x269   : > { %v3390_v51 = vand.u32 65535, %v6670_v63  ;;  %v3391_v22 = vshrl.u32 %v6670_v63, 16  ;;  %v2478_v38 = vshll.u32 %v6653_v37, 16  ;;  %v1939_v21 = vadd.f32 %v1867_v40, %v5658_v35  ;;  %4940 = vmatmul.msk.bf16.gmra.mxu1 %vm465_vm2, %v1764_v13 }
 0x26a   : > { %vm4093_vm1 = vcmp.ne.s32.totalorder %v3355_v0, 0  ;;  %vm4129_vm3 = vcmp.lt.s32.totalorder %v3355_v0, 0  ;;  %v4201_v39 = vadd.s32 18, %v3355_v0  ;;  %v3380_v1 = vadd.s32 %v3379_v7, %v3369_v23  ;;  %5027 = vmatmul.msk.bf16.gmra.mxu2 %vm465_vm2, %v2125_v58  ;;  %v2599_v7 = vpop.f32.mrf.mxu3 }
 0x26b   : > { %vm4165_vm4 = vmand %vm4129_vm3, %vm4093_vm1  ;;  %v2668_v18 = vadd.f32 %v2594_v59, %v2299_v28  ;;  %v3393_v16 = vmul.u32 14564, %v3390_v51  ;;  %v3394_v43 = vmul.u32 58254, %v3390_v51  ;;  %v3395_v47 = vmul.u32 14564, %v3391_v22  ;;  %5065 = vmatmul.msk.bf16.gmra.mxu0 %vm465_vm2, %v2730_v54 }
 0x26c   : > { %v4237_v4 = vsel %vm4165_vm4, %v4201_v39, %v3355_v0  ;;  %v3381_v8 = vadd.s32 %v3380_v1, %v3371_v25  ;;  %v3396_v55 = vmul.u32 58254, %v3391_v22  ;;  %v2477_v19 = vrot.slane %v2475_v14, 2 }
 0x26d   : > { %vm4273_vm8 = vcmp.lt.s32.totalorder %v4237_v4, 16  ;;  %v2904_v36 = vadd.f32 %v2830_v33, %v2668_v18  ;;  %v3397_v50 = vshll.u32 %v3394_v43, 16  ;;  %v3398_v32 = vshrl.u32 %v3394_v43, 16  ;;  %v2228_v30 = vpop.f32.mrf.mxu2 }
 0x26e   : > { %v4381_v5 = vsel %vm4273_vm8, %v2903_v49, 0.0  ;;  %v3382_v59 = vshrl.u32 %v3381_v8, 4  ;;  %v3399_v35 = vshll.u32 %v3395_v47, 16  ;;  %v3400_v29 = vshrl.u32 %v3395_v47, 16  ;;  %v1869_v13 = vpop.f32.mrf.mxu1 }
 0x26f   : > { %v4426_v26 = vsel %vm465_vm2, %v4381_v5, 0.0  ;;  %v4494_v15 = vmul.f32 %v4381_v5, %v4381_v5  ;;  %v2940_v17 = vpack.c.bf16 %v2904_v36, %v2904_v36  ;;  %vm3401_vm9 = vc.u32 %v3393_v16, %v3397_v50 }
 0x270   : > { %v4427_v23 = vadd.f32 %v4426_v26, %v6645_v24  ;;  %v3383_v42 = vmul.u32 18, %v3382_v59  ;;  %v3402_v60 = vsel %vm3401_vm9, 1, %v7276_v56  ;;  %v3403_v20 = vadd.s32 %v3397_v50, %v3393_v16  ;;  %v2835_v22 = vpop.f32.mrf.mxu0 }
 0x271   : > { %v4539_v33 = vsel %vm465_vm2, %v4494_v15, 0.0  ;;  %2977 = vst.msk [vmem:[%s6258_s14 + $0x2c] sm:$0xf] %vm2965_vm15, %v2940_v17  ;;  %v2300_v25 = vadd.f32 %v2228_v30, %v1939_v21  ;;  %v3404_v11 = vadd.s32 %v3402_v60, %v3396_v55  ;;  %v2480_v53 = vrot.slane %v2478_v38, 3  ;;  %v6708_v38 = vld [vmem:[%s5222_s25 + $0x88] sm:$0xff] }
 0x272   : > { %v4540_v49 = vadd.f32 %v4539_v33, %v6650_v45  ;;  %v3384_v48 = vsub.s32 %v6610_v27, %v3383_v42  ;;  %vm3405_vm10 = vc.u32 %v3403_v20, %v3399_v35  ;;  %v1940_v41 = vadd.f32 %v1869_v13, %v7338_v3  ;;  %v7339_v33 = vld [vmem:[#allocation11_spill] sm:$0xff]  ;;  %v6739_v13 = vld [vmem:[%s5222_s25 + $0x98] sm:$0xff] }
 0x273   : > { %v2669_v24 = vadd.f32 %v2597_v10, %v2300_v25  ;;  %v3406_v2 = vsel %vm3405_vm10, 1, %v7276_v56  ;;  %v6699_v58 = vadd.s32 104, %v5899_v52  ;;  %v6703_v27 = vor.u32 %v2480_v53, %v2477_v19 }
 0x274   : > { %vm4094_vm11 = vcmp.ne.s32.totalorder %v3384_v48, 0  ;;  %vm4130_vm12 = vcmp.lt.s32.totalorder %v3384_v48, 0  ;;  %v4202_v0 = vadd.s32 18, %v3384_v48  ;;  %v3408_v62 = vadd.s32 %v3406_v2, %v3404_v11 }
 0x275   : > { %vm4166_vm13 = vmand %vm4130_vm12, %vm4094_vm11  ;;  %v6701_v45 = vadd.f32 %v2833_v46, %v2669_v24  ;;  %v3419_v54 = vand.u32 65535, %v6699_v58  ;;  %v3420_v14 = vshrl.u32 %v6699_v58, 16  ;;  %v1765_v39 = vrot.slane %v6708_v38, 2  ;;  %v2230_v43 = vpop.f32.mrf.mxu2 }
 0x276   : > { %v4238_v28 = vsel %vm4166_vm13, %v4202_v0, %v3384_v48  ;;  %v3409_v51 = vadd.s32 %v3408_v62, %v3398_v32  ;;  %v2126_v1 = vrot.slane %v6653_v37, 2  ;;  %v2482_v10 = vsel %vm2330_vm5, %v6614_v57, %v6703_v27  ;;  %v1872_v57 = vpop.f32.mrf.mxu1 }
 0x277   : > { %vm4274_vm14 = vcmp.lt.s32.totalorder %v4238_v28, 16  ;;  %v2941_v40 = vpack.c.bf16 %v6701_v45, %v6701_v45  ;;  %v3422_v18 = vmul.u32 14564, %v3419_v54  ;;  %5047 = vmatmul.msk.bf16.gmra.mxu3 %vm465_vm2, %v2482_v10  ;;  %v3423_v4 = vmul.u32 58254, %v3419_v54 }
 0x278   : > { %v4382_v21 = vsel %vm4274_vm14, %v2904_v36, 0.0  ;;  %v3410_v16 = vadd.s32 %v3409_v51, %v3400_v29  ;;  %v3424_v8 = vmul.u32 14564, %v3420_v14  ;;  %v2301_v55 = vadd.f32 %v2230_v43, %v1940_v41  ;;  %v2838_v3 = vpop.f32.mrf.mxu0 }
 0x279   : > { %v4428_v46 = vsel %vm465_vm2, %v4382_v21, 0.0  ;;  %v4495_v47 = vmul.f32 %v4382_v21, %v4382_v21  ;;  %2978 = vst.msk [vmem:[%s6258_s14 + $0x30] sm:$0xf] %vm2965_vm15, %v2941_v40  ;;  %v3425_v50 = vmul.u32 58254, %v3420_v14  ;;  %v3426_v59 = vshll.u32 %v3423_v4, 16 }
 0x27a   : > { %v4429_v32 = vadd.f32 %v4428_v46, %v4427_v23  ;;  %v3411_v5 = vshrl.u32 %v3410_v16, 4  ;;  %v3427_v35 = vshrl.u32 %v3423_v4, 16  ;;  %v2670_v29 = vadd.f32 %v2599_v7, %v2301_v55 }
 0x27b   : > { %v4541_v36 = vsel %vm465_vm2, %v4495_v47, 0.0  ;;  %v3428_v26 = vshll.u32 %v3424_v8, 16  ;;  %v3429_v15 = vshrl.u32 %v3424_v8, 16  ;;  %vm3430_vm0 = vc.u32 %v3422_v18, %v3426_v59 }
 0x27c   : > { %v4542_v17 = vadd.f32 %v4541_v36, %v4540_v49  ;;  %v3412_v42 = vmul.u32 18, %v3411_v5  ;;  %v3432_v30 = vadd.s32 %v3426_v59, %v3422_v18  ;;  %v6722_v60 = vadd.f32 %v2835_v22, %v2670_v29  ;;  %v2602_v49 = vpop.f32.mrf.mxu3 }
 0x27d   : > { %v3431_v20 = vsel %vm3430_vm0, 1, %v7276_v56  ;;  %v1941_v23 = vadd.f32 %v1872_v57, %v7339_v33  ;;  %v1766_v25 = vsel %vm1733_vm6, %v1763_v34, %v1765_v39  ;;  %v2127_v48 = vsel %vm1733_vm6, %v2124_v31, %v2126_v1  ;;  %v2233_v31 = vpop.f32.mrf.mxu2 }
 0x27e   : > { %v3413_v11 = vsub.s32 %v6670_v63, %v3412_v42  ;;  %v3433_v19 = vadd.s32 %v3431_v20, %v3425_v50  ;;  %vm3434_vm1 = vc.u32 %v3432_v30, %v3428_v26  ;;  %4941 = vmatmul.msk.bf16.gmra.mxu1 %vm465_vm2, %v1766_v25  ;;  %v2942_v12 = vpack.c.bf16 %v6722_v60, %v6722_v60  ;;  %v1874_v28 = vpop.f32.mrf.mxu1 }
 0x27f   : > { %v3435_v34 = vsel %vm3434_vm1, 1, %v7276_v56  ;;  %5028 = vmatmul.msk.bf16.gmra.mxu2 %vm465_vm2, %v2127_v48  ;;  %v2731_v63 = vrot.slane %v6653_v37, 3  ;;  %v6747_v53 = vadd.s32 112, %v5899_v52  ;;  %v2302_v0 = vadd.f32 %v2233_v31, %v1941_v23 }
 0x280   : > { %vm4095_vm3 = vcmp.ne.s32.totalorder %v3413_v11, 0  ;;  %vm4131_vm4 = vcmp.lt.s32.totalorder %v3413_v11, 0  ;;  %v4203_v24 = vadd.s32 18, %v3413_v11  ;;  %v3437_v2 = vadd.s32 %v3435_v34, %v3433_v19  ;;  %2979 = vst.msk [vmem:[%s6258_s14 + $0x34] sm:$0xf] %vm2965_vm15, %v2942_v12  ;;  %v2840_v25 = vpop.f32.mrf.mxu0  ;;  %v6777_v19 = vld [vmem:[%s5222_s25 + $0x90] sm:$0xff] }
 0x281   : > { %vm4167_vm8 = vmand %vm4131_vm4, %vm4095_vm3  ;;  %v2732_v41 = vsel %vm2699_vm7, %v2729_v6, %v2731_v63  ;;  %v3448_v62 = vand.u32 65535, %v6747_v53  ;;  %v3449_v7 = vshrl.u32 %v6747_v53, 16  ;;  %v2484_v51 = vshrl.u32 %v6739_v13, 16 }
 0x282   : > { %v4239_v54 = vsel %vm4167_vm8, %v4203_v24, %v3413_v11  ;;  %v3438_v14 = vadd.s32 %v3437_v2, %v3427_v35  ;;  %5066 = vmatmul.msk.bf16.gmra.mxu0 %vm465_vm2, %v2732_v41  ;;  %v2487_v22 = vshll.u32 %v6739_v13, 16  ;;  %v2671_v40 = vadd.f32 %v2602_v49, %v2302_v0 }
 0x283   : > { %vm4275_vm9 = vcmp.lt.s32.totalorder %v4239_v54, 16  ;;  %v3451_v10 = vmul.u32 14564, %v3448_v62  ;;  %v3452_v61 = vmul.u32 58254, %v3448_v62  ;;  %v3453_v21 = vmul.u32 14564, %v3449_v7 }
 0x284   : > { %v4383_v6 = vsel %vm4275_vm9, %v6701_v45, 0.0  ;;  %v3439_v18 = vadd.s32 %v3438_v14, %v3429_v15  ;;  %v3454_v16 = vmul.u32 58254, %v3449_v7  ;;  %v6763_v8 = vadd.f32 %v2838_v3, %v2671_v40  ;;  %v2604_v15 = vpop.f32.mrf.mxu3 }
 0x285   : > { %v4430_v43 = vsel %vm465_vm2, %v4383_v6, 0.0  ;;  %v4496_v4 = vmul.f32 %v4383_v6, %v4383_v6  ;;  %v3455_v46 = vshll.u32 %v3452_v61, 16  ;;  %v3456_v50 = vshrl.u32 %v3452_v61, 16  ;;  %v2235_v42 = vpop.f32.mrf.mxu2 }
 0x286   : > { %v4431_v47 = vadd.f32 %v4430_v43, %v4429_v32  ;;  %v3440_v55 = vshrl.u32 %v3439_v18, 4  ;;  %v3457_v5 = vshll.u32 %v3453_v21, 16  ;;  %v2943_v35 = vpack.c.bf16 %v6763_v8, %v6763_v8  ;;  %v1877_v11 = vpop.f32.mrf.mxu1 }
 0x287   : > { %v4543_v59 = vsel %vm465_vm2, %v4496_v4, 0.0  ;;  %v3458_v45 = vshrl.u32 %v3453_v21, 16  ;;  %vm3459_vm10 = vc.u32 %v3451_v10, %v3455_v46  ;;  %v3461_v26 = vadd.s32 %v3455_v46, %v3451_v10 }
 0x288   : > { %v4544_v57 = vadd.f32 %v4543_v59, %v4542_v17  ;;  %v3441_v36 = vmul.u32 18, %v3440_v55  ;;  %v3460_v29 = vsel %vm3459_vm10, 1, %v7276_v56  ;;  %2980 = vst.msk [vmem:[%s6258_s14 + $0x38] sm:$0xf] %vm2965_vm15, %v2943_v35  ;;  %v1942_v30 = vadd.f32 %v1874_v28, %v5714_v44 }
 0x289   : > { %v3462_v32 = vadd.s32 %v3460_v29, %v3454_v16  ;;  %v2486_v20 = vrot.slane %v2484_v51, 2  ;;  %v2489_v33 = vrot.slane %v2487_v22, 3  ;;  %vm3463_vm11 = vc.u32 %v3461_v26, %v3457_v5 }
 0x28a   : > { %v3442_v23 = vsub.s32 %v6699_v58, %v3441_v36  ;;  %v6774_v17 = vadd.s32 120, %v5899_v52  ;;  %v1767_v49 = vrot.slane %v6777_v19, 2  ;;  %v3464_v48 = vsel %vm3463_vm11, 1, %v7276_v56  ;;  %v2324_v36 = vld [vmem:[%s5222_s25 + $0xa0] sm:$0x7] }
 0x28b   : > { %v6781_v12 = vor.u32 %v2489_v33, %v2486_v20  ;;  %v2303_v34 = vadd.f32 %v2235_v42, %v1942_v30  ;;  %v1943_v44 = vadd.f32 %v1877_v11, %v5728_v9  ;;  %v3466_v24 = vadd.s32 %v3464_v48, %v3462_v32  ;;  %v7340_v30 = vld [vmem:[#allocation13_spill] sm:$0xff] }
 0x28c   : > { %vm4096_vm12 = vcmp.ne.s32.totalorder %v3442_v23, 0  ;;  %vm4132_vm13 = vcmp.lt.s32.totalorder %v3442_v23, 0  ;;  %v4204_v58 = vadd.s32 18, %v3442_v23  ;;  %v3477_v31 = vand.u32 65535, %v6774_v17  ;;  %v2607_v4 = vpop.f32.mrf.mxu3 }
 0x28d   : > { %vm4168_vm14 = vmand %vm4132_vm13, %vm4096_vm12  ;;  %v2491_v2 = vsel %vm2330_vm5, %v6703_v27, %v6781_v12  ;;  %v2672_v3 = vadd.f32 %v2604_v15, %v2303_v34  ;;  %v3478_v41 = vshrl.u32 %v6774_v17, 16  ;;  %v3467_v62 = vadd.s32 %v3466_v24, %v3456_v50  ;;  %v2238_v10 = vpop.f32.mrf.mxu2 }
 0x28e   : > { %v4240_v0 = vsel %vm4168_vm14, %v4204_v58, %v3442_v23  ;;  %5048 = vmatmul.msk.bf16.gmra.mxu3 %vm465_vm2, %v2491_v2  ;;  %v1768_v9 = vsel %vm1733_vm6, %v1765_v39, %v1767_v49  ;;  %v2128_v7 = vrot.slane %v6739_v13, 2  ;;  %v3480_v27 = vmul.u32 14564, %v3477_v31  ;;  %v1879_v46 = vpop.f32.mrf.mxu1 }
 0x28f   : > { %vm4276_vm0 = vcmp.lt.s32.totalorder %v4240_v0, 16  ;;  %v6796_v54 = vadd.f32 %v2840_v25, %v2672_v3  ;;  %v3481_v14 = vmul.u32 58254, %v3477_v31  ;;  %4942 = vmatmul.msk.bf16.gmra.mxu1 %vm465_vm2, %v1768_v9  ;;  %v3468_v51 = vadd.s32 %v3467_v62, %v3458_v45  ;;  %v2843_v45 = vpop.f32.mrf.mxu0 }
 0x290   : > { %v4384_v28 = vsel %vm4276_vm0, %v6722_v60, 0.0  ;;  %v3482_v22 = vmul.u32 14564, %v3478_v41  ;;  %v3483_v40 = vmul.u32 58254, %v3478_v41  ;;  %v2733_v26 = vrot.slane %v6739_v13, 3 }
 0x291   : > { %v4432_v38 = vsel %vm465_vm2, %v4384_v28, 0.0  ;;  %v4497_v61 = vmul.f32 %v4384_v28, %v4384_v28  ;;  %v2944_v39 = vpack.c.bf16 %v6796_v54, %v6796_v54  ;;  %v3484_v6 = vshll.u32 %v3481_v14, 16 }
 0x292   : > { %v4433_v18 = vadd.f32 %v4432_v38, %v4431_v47  ;;  %v3469_v21 = vshrl.u32 %v3468_v51, 4  ;;  %v3485_v16 = vshrl.u32 %v3481_v14, 16  ;;  %v3486_v43 = vshll.u32 %v3482_v22, 16 }
 0x293   : > { %v4545_v60 = vsel %vm465_vm2, %v4497_v61, 0.0  ;;  %2981 = vst.msk [vmem:[%s6258_s14 + $0x3c] sm:$0xf] %vm2965_vm15, %v2944_v39  ;;  %v3487_v55 = vshrl.u32 %v3482_v22, 16  ;;  %vm3488_vm1 = vc.u32 %v3480_v27, %v3484_v6  ;;  %v3490_v50 = vadd.s32 %v3484_v6, %v3480_v27 }
 0x294   : > { %v4546_v5 = vadd.f32 %v4545_v60, %v4544_v57  ;;  %v3470_v59 = vmul.u32 18, %v3469_v21  ;;  %v3489_v35 = vsel %vm3488_vm1, 1, %v7276_v56  ;;  %v2129_v47 = vsel %vm1733_vm6, %v2126_v1, %v2128_v7  ;;  %v2609_v51 = vpop.f32.mrf.mxu3 }
 0x295   : > { %v3491_v29 = vadd.s32 %v3489_v35, %v3483_v40  ;;  %vm3492_vm3 = vc.u32 %v3490_v50, %v3486_v43  ;;  %5029 = vmatmul.msk.bf16.gmra.mxu2 %vm465_vm2, %v2129_v47  ;;  %v2304_v15 = vadd.f32 %v2238_v10, %v1943_v44  ;;  %v6818_v32 = vadd.s32 128, %v5899_v52  ;;  %v2240_v48 = vpop.f32.mrf.mxu2 }
 0x296   : > { %v3471_v57 = vsub.s32 %v6747_v53, %v3470_v59  ;;  %v3493_v42 = vsel %vm3492_vm3, 1, %v7276_v56  ;;  %v1944_v20 = vadd.f32 %v1879_v46, %v7340_v30  ;;  %v2734_v1 = vsel %vm2699_vm7, %v2731_v63, %v2733_v26  ;;  %v1882_v62 = vpop.f32.mrf.mxu1 }
 0x297   : > { %v3495_v33 = vadd.s32 %v3493_v42, %v3491_v29  ;;  %v2673_v23 = vadd.f32 %v2607_v4, %v2304_v15  ;;  %v2328_v25 = vunpack.c.l.b16 %v2324_v36  ;;  %5067 = vmatmul.msk.bf16.gmra.mxu0 %vm465_vm2, %v2734_v1  ;;  %v3506_v53 = vand.u32 65535, %v6818_v32  ;;  %v2845_v21 = vpop.f32.mrf.mxu0  ;;  %v7341_v15 = vld [vmem:[#allocation14_spill] sm:$0xff] }
 0x298   : > { %vm4097_vm4 = vcmp.ne.s32.totalorder %v3471_v57, 0  ;;  %vm4133_vm8 = vcmp.lt.s32.totalorder %v3471_v57, 0  ;;  %v4205_v11 = vadd.s32 18, %v3471_v57  ;;  %v3507_v58 = vshrl.u32 %v6818_v32, 16  ;;  %v1999_v42 = vld [vmem:[%s5222_s25 + $0xa0] sm:$0x3] }
 0x299   : > { %vm4169_vm9 = vmand %vm4133_vm8, %vm4097_vm4  ;;  %v3496_v34 = vadd.s32 %v3495_v33, %v3485_v16  ;;  %v6828_v44 = vadd.f32 %v2843_v45, %v2673_v23  ;;  %v6831_v24 = vpack.c.b16 %v2328_v25, %v2328_v25  ;;  %v3509_v63 = vmul.u32 14564, %v3506_v53 }
 0x29a   : > { %v4241_v37 = vsel %vm4169_vm9, %v4205_v11, %v3471_v57  ;;  %v3510_v2 = vmul.u32 58254, %v3506_v53  ;;  %v2305_v3 = vadd.f32 %v2240_v48, %v1944_v20  ;;  %v3511_v0 = vmul.u32 14564, %v3507_v58  ;;  %v7342_v11 = vld [vmem:[#allocation12_spill] sm:$0xff] }
 0x29b   : > { %vm4277_vm10 = vcmp.lt.s32.totalorder %v4241_v37, 16  ;;  %v3497_v31 = vadd.s32 %v3496_v34, %v3487_v55  ;;  %v2945_v41 = vpack.c.bf16 %v6828_v44, %v6828_v44  ;;  %v3512_v27 = vmul.u32 58254, %v3507_v58 }
 0x29c   : > { %v4385_v9 = vsel %vm4277_vm10, %v6763_v8, 0.0  ;;  %v3513_v14 = vshll.u32 %v3510_v2, 16  ;;  %v3514_v28 = vshrl.u32 %v3510_v2, 16  ;;  %v3515_v38 = vshll.u32 %v3511_v0, 16  ;;  %v2612_v2 = vpop.f32.mrf.mxu3 }
 0x29d   : > { %v4434_v22 = vsel %vm465_vm2, %v4385_v9, 0.0  ;;  %v4498_v40 = vmul.f32 %v4385_v9, %v4385_v9  ;;  %v3498_v10 = vshrl.u32 %v3497_v31, 4  ;;  %2982 = vst.msk [vmem:[%s6258_s14 + $0x40] sm:$0xf] %vm2965_vm15, %v2945_v41  ;;  %v3516_v39 = vshrl.u32 %v3511_v0, 16  ;;  %v2243_v45 = vpop.f32.mrf.mxu2 }
 0x29e   : > { %v4435_v61 = vadd.f32 %v4434_v22, %v4433_v18  ;;  %vm3517_vm11 = vc.u32 %v3509_v63, %v3513_v14  ;;  %v3519_v6 = vadd.s32 %v3513_v14, %v3509_v63  ;;  %v2493_v4 = vshrl.u32 %v6831_v24, 16  ;;  %v1884_v34 = vpop.f32.mrf.mxu1 }
 0x29f   : > { %v4547_v16 = vsel %vm465_vm2, %v4498_v40, 0.0  ;;  %v3499_v43 = vmul.u32 18, %v3498_v10  ;;  %v3518_v8 = vsel %vm3517_vm11, 1, %v7276_v56  ;;  %v2496_v55 = vshll.u32 %v6831_v24, 16  ;;  %v2848_v14 = vpop.f32.mrf.mxu0 }
 0x2a0   : > { %v4548_v46 = vadd.f32 %v4547_v16, %v4546_v5  ;;  %v3520_v60 = vadd.s32 %v3518_v8, %v3512_v27  ;;  %vm3521_vm12 = vc.u32 %v3519_v6, %v3515_v38  ;;  %v2495_v59 = vrot.slane %v2493_v4, 2 }
 0x2a1   : > { %v3500_v50 = vsub.s32 %v6774_v17, %v3499_v43  ;;  %v3522_v18 = vsel %vm3521_vm12, 1, %v7276_v56  ;;  %v2674_v35 = vadd.f32 %v2609_v51, %v2305_v3  ;;  %v2498_v36 = vrot.slane %v2496_v55, 3 }
 0x2a2   : > { %v3524_v47 = vadd.s32 %v3522_v18, %v3520_v60  ;;  %v6846_v29 = vadd.s32 136, %v5899_v52  ;;  %v1945_v57 = vadd.f32 %v1882_v62, %v7341_v15  ;;  %v1769_v53 = vrot.slane %v7342_v11, 2 }
 0x2a3   : > { %vm4098_vm13 = vcmp.ne.s32.totalorder %v3500_v50, 0  ;;  %vm4134_vm14 = vcmp.lt.s32.totalorder %v3500_v50, 0  ;;  %v4206_v5 = vadd.s32 18, %v3500_v50  ;;  %v6850_v30 = vadd.f32 %v2845_v21, %v2674_v35 }
 0x2a4   : > { %vm4170_vm0 = vmand %vm4134_vm14, %vm4098_vm13  ;;  %v3525_v17 = vadd.s32 %v3524_v47, %v3514_v28  ;;  %v2499_v20 = vor.u32 %v2498_v36, %v2495_v59  ;;  %v3535_v33 = vand.u32 65535, %v6846_v29  ;;  %v3536_v1 = vshrl.u32 %v6846_v29, 16  ;;  %v7343_v47 = vld [vmem:[#allocation15_spill] sm:$0xff]  ;;  %v2614_v15 = vpop.f32.mrf.mxu3 }
 0x2a5   : > { %v4242_v23 = vsel %vm4170_vm0, %v4206_v5, %v3500_v50  ;;  %v2946_v25 = vpack.c.bf16 %v6850_v30, %v6850_v30  ;;  %v2075_v48 = vunpack.c.l.b16 %v1999_v42  ;;  %v2735_v16 = vrot.slane %v6831_v24, 3  ;;  %v2245_v43 = vpop.f32.mrf.mxu2 }
 0x2a6   : > { %vm4278_vm1 = vcmp.lt.s32.totalorder %v4242_v23, 16  ;;  %v3526_v58 = vadd.s32 %v3525_v17, %v3516_v39  ;;  %v2500_v37 = vsel %vm2330_vm5, %v6781_v12, %v2499_v20  ;;  %v3538_v63 = vmul.u32 14564, %v3535_v33 }
 0x2a7   : > { %v4386_v3 = vsel %vm4278_vm1, %v6796_v54, 0.0  ;;  %5049 = vmatmul.msk.bf16.gmra.mxu3 %vm465_vm2, %v2500_v37  ;;  %2983 = vst.msk [vmem:[%s6258_s14 + $0x44] sm:$0xf] %vm2965_vm15, %v2946_v25  ;;  %v3539_v31 = vmul.u32 58254, %v3535_v33  ;;  %v3540_v41 = vmul.u32 14564, %v3536_v1  ;;  %v3541_v0 = vmul.u32 58254, %v3536_v1  ;;  %v2850_v1 = vpop.f32.mrf.mxu0 }
 0x2a8   : > { %v4436_v62 = vsel %vm465_vm2, %v4386_v3, 0.0  ;;  %v4499_v9 = vmul.f32 %v4386_v3, %v4386_v3  ;;  %v3527_v27 = vshrl.u32 %v3526_v58, 4  ;;  %v1770_v12 = vsel %vm1733_vm6, %v1767_v49, %v1769_v53 }
 0x2a9   : > { %v4437_v28 = vadd.f32 %v4436_v62, %v4435_v61  ;;  %v3542_v51 = vshll.u32 %v3539_v31, 16  ;;  %v3543_v22 = vshrl.u32 %v3539_v31, 16  ;;  %v3544_v54 = vshll.u32 %v3540_v41, 16  ;;  %4943 = vmatmul.msk.bf16.gmra.mxu1 %vm465_vm2, %v1770_v12 }
 0x2aa   : > { %v4549_v40 = vsel %vm465_vm2, %v4499_v9, 0.0  ;;  %v3528_v10 = vmul.u32 18, %v3527_v27  ;;  %v3545_v38 = vshrl.u32 %v3540_v41, 16  ;;  %v2094_v39 = vpack.c.b16 %v2075_v48, %v2075_v48 }
 0x2ab   : > { %v4550_v6 = vadd.f32 %v4549_v40, %v4548_v46  ;;  %vm3546_vm5 = vc.u32 %v3538_v63, %v3542_v51  ;;  %v3548_v21 = vadd.s32 %v3542_v51, %v3538_v63  ;;  %v2306_v8 = vadd.f32 %v2243_v45, %v1945_v57 }
 0x2ac   : > { %v3529_v19 = vsub.s32 %v6818_v32, %v3528_v10  ;;  %v3547_v49 = vsel %vm3546_vm5, 1, %v7276_v56  ;;  %v2130_v61 = vrot.slane %v2094_v39, 2  ;;  %v2736_v60 = vsel %vm2699_vm7, %v2733_v26, %v2735_v16  ;;  %v6884_v26 = vpop.f32.mrf.mxu1 }
 0x2ad   : > { %v3549_v4 = vadd.s32 %v3547_v49, %v3541_v0  ;;  %vm3550_vm3 = vc.u32 %v3548_v21, %v3544_v54  ;;  %v6876_v55 = vadd.s32 144, %v5899_v52  ;;  %5068 = vmatmul.msk.bf16.gmra.mxu0 %vm465_vm2, %v2736_v60  ;;  %v2675_v18 = vadd.f32 %v2612_v2, %v2306_v8  ;;  %v2248_v31 = vpop.f32.mrf.mxu2 }
 0x2ae   : > { %vm4099_vm4 = vcmp.ne.s32.totalorder %v3529_v19, 0  ;;  %vm4135_vm8 = vcmp.lt.s32.totalorder %v3529_v19, 0  ;;  %v4207_v46 = vadd.s32 18, %v3529_v19  ;;  %v3551_v24 = vsel %vm3550_vm3, 1, %v7276_v56 }
 0x2af   : > { %vm4171_vm9 = vmand %vm4135_vm8, %vm4099_vm4  ;;  %v3553_v32 = vadd.s32 %v3551_v24, %v3549_v4  ;;  %v2131_v50 = vsel %vm1733_vm6, %v2128_v7, %v2130_v61  ;;  %v3564_v59 = vand.u32 65535, %v6876_v55  ;;  %v3565_v45 = vshrl.u32 %v6876_v55, 16  ;;  %v2853_v60 = vpop.f32.mrf.mxu0 }
 0x2b0   : > { %v4243_v35 = vsel %vm4171_vm9, %v4207_v46, %v3529_v19  ;;  %5030 = vmatmul.msk.bf16.gmra.mxu2 %vm465_vm2, %v2131_v50  ;;  %v1946_v36 = vadd.f32 %v1884_v34, %v7343_v47  ;;  %v6890_v57 = vadd.s32 152, %v5899_v52  ;;  %v6892_v42 = vadd.f32 %v2848_v14, %v2675_v18  ;;  %v2617_v19 = vpop.f32.mrf.mxu3  ;;  %v7344_v50 = vld [vmem:[#allocation16_spill] sm:$0xff] }
 0x2b1   : > { %vm4279_vm7 = vcmp.lt.s32.totalorder %v4243_v35, 16  ;;  %v3554_v13 = vadd.s32 %v3553_v32, %v3543_v22  ;;  %v3567_v7 = vmul.u32 14564, %v3564_v59  ;;  %v3568_v17 = vmul.u32 58254, %v3564_v59 }
 0x2b2   : > { %v4387_v5 = vsel %vm4279_vm7, %v6828_v44, 0.0  ;;  %v3569_v20 = vmul.u32 14564, %v3565_v45  ;;  %v3570_v33 = vmul.u32 58254, %v3565_v45  ;;  %v2947_v53 = vpack.c.bf16 %v6892_v42, %v6892_v42 }
 0x2b3   : > { %v4438_v23 = vsel %vm465_vm2, %v4387_v5, 0.0  ;;  %v4500_v25 = vmul.f32 %v4387_v5, %v4387_v5  ;;  %v3555_v11 = vadd.s32 %v3554_v13, %v3545_v38  ;;  %v3571_v34 = vshll.u32 %v3568_v17, 16 }
 0x2b4   : > { %v4439_v48 = vadd.f32 %v4438_v23, %v4437_v28  ;;  %v3572_v58 = vshrl.u32 %v3568_v17, 16  ;;  %v3573_v37 = vshll.u32 %v3569_v20, 16  ;;  %2984 = vst.msk [vmem:[%s6258_s14 + $0x48] sm:$0xf] %vm2965_vm15, %v2947_v53  ;;  %v3574_v44 = vshrl.u32 %v3569_v20, 16  ;;  %v1889_v39 = vpop.f32.mrf.mxu1 }
 0x2b5   : > { %v4551_v63 = vsel %vm465_vm2, %v4500_v25, 0.0  ;;  %v3556_v2 = vshrl.u32 %v3555_v11, 4  ;;  %v2307_v3 = vadd.f32 %v2245_v43, %v1946_v36  ;;  %vm3575_vm6 = vc.u32 %v3567_v7, %v3571_v34 }
 0x2b6   : > { %v4552_v41 = vadd.f32 %v4551_v63, %v4550_v6  ;;  %v3577_v0 = vadd.s32 %v3571_v34, %v3567_v7  ;;  %v3593_v62 = vand.u32 65535, %v6890_v57  ;;  %v3576_v27 = vsel %vm3575_vm6, 1, %v7276_v56  ;;  %v2250_v7 = vpop.f32.mrf.mxu2 }
 0x2b7   : > { %v3557_v9 = vmul.u32 18, %v3556_v2  ;;  %v2676_v14 = vadd.f32 %v2614_v15, %v2307_v3  ;;  %v3594_v12 = vshrl.u32 %v6890_v57, 16  ;;  %v3578_v28 = vadd.s32 %v3576_v27, %v3570_v33  ;;  %v7345_v15 = vld [vmem:[#allocation17_spill] sm:$0xff] }
 0x2b8   : > { %vm3579_vm10 = vc.u32 %v3577_v0, %v3573_v37  ;;  %v3596_v51 = vmul.u32 14564, %v3593_v62  ;;  %v3597_v22 = vmul.u32 58254, %v3593_v62  ;;  %v1947_v18 = vadd.f32 %v6884_v26, %v7344_v50  ;;  %v2619_v62 = vpop.f32.mrf.mxu3 }
 0x2b9   : > { %v3558_v54 = vsub.s32 %v6846_v29, %v3557_v9  ;;  %v3580_v40 = vsel %vm3579_vm10, 1, %v7276_v56  ;;  %v6906_v10 = vadd.f32 %v2850_v1, %v2676_v14  ;;  %v3598_v38 = vmul.u32 14564, %v3594_v12 }
 0x2ba   : > { %v3582_v6 = vadd.s32 %v3580_v40, %v3578_v28  ;;  %v3599_v21 = vmul.u32 58254, %v3594_v12  ;;  %v3600_v16 = vshll.u32 %v3597_v22, 16  ;;  %v3601_v43 = vshrl.u32 %v3597_v22, 16 }
 0x2bb   : > { %vm4100_vm11 = vcmp.ne.s32.totalorder %v3558_v54, 0  ;;  %vm4136_vm12 = vcmp.lt.s32.totalorder %v3558_v54, 0  ;;  %v4208_v49 = vadd.s32 18, %v3558_v54  ;;  %v2948_v61 = vpack.c.bf16 %v6906_v10, %v6906_v10 }
 0x2bc   : > { %vm4172_vm13 = vmand %vm4136_vm12, %vm4100_vm11  ;;  %v3583_v29 = vadd.s32 %v3582_v6, %v3572_v58  ;;  %v3602_v8 = vshll.u32 %v3598_v38, 16  ;;  %v3603_v4 = vshrl.u32 %v3598_v38, 16  ;;  %vm3604_vm14 = vc.u32 %v3596_v51, %v3600_v16 }
 0x2bd   : > { %v4244_v46 = vsel %vm4172_vm13, %v4208_v49, %v3558_v54  ;;  %2985 = vst.msk [vmem:[%s6258_s14 + $0x4c] sm:$0xf] %vm2965_vm15, %v2948_v61  ;;  %v3605_v24 = vsel %vm3604_vm14, 1, %v7276_v56  ;;  %v3606_v32 = vadd.s32 %v3600_v16, %v3596_v51  ;;  %v6916_v45 = vadd.s32 160, %v5899_v52  ;;  %v2855_v51 = vpop.f32.mrf.mxu0 }
 0x2be   : > { %vm4280_vm0 = vcmp.lt.s32.totalorder %v4244_v46, 16  ;;  %v3584_v59 = vadd.s32 %v3583_v29, %v3574_v44  ;;  %v3607_v35 = vadd.s32 %v3605_v24, %v3599_v21  ;;  %v2308_v36 = vadd.f32 %v2248_v31, %v1947_v18  ;;  %v1892_v44 = vpop.f32.mrf.mxu1 }
 0x2bf   : > { %v4388_v47 = vsel %vm4280_vm0, %v6850_v30, 0.0  ;;  %vm3608_vm1 = vc.u32 %v3606_v32, %v3602_v8  ;;  %v1948_v13 = vadd.f32 %v1889_v39, %v7345_v15  ;;  %v3622_v25 = vand.u32 65535, %v6916_v45 }
 0x2c0   : > { %v4440_v5 = vsel %vm465_vm2, %v4388_v47, 0.0  ;;  %v4501_v17 = vmul.f32 %v4388_v47, %v4388_v47  ;;  %v3585_v20 = vshrl.u32 %v3584_v59, 4  ;;  %v3609_v33 = vsel %vm3608_vm1, 1, %v7276_v56 }
 0x2c1   : > { %v4441_v26 = vadd.f32 %v4440_v5, %v4439_v48  ;;  %v3611_v1 = vadd.s32 %v3609_v33, %v3607_v35  ;;  %v2677_v23 = vadd.f32 %v2617_v19, %v2308_v36  ;;  %v3623_v30 = vshrl.u32 %v6916_v45, 16  ;;  %v2253_v19 = vpop.f32.mrf.mxu2 }
 0x2c2   : > { %v4553_v11 = vsel %vm465_vm2, %v4501_v17, 0.0  ;;  %v3586_v53 = vmul.u32 18, %v3585_v20  ;;  %v2309_v34 = vadd.f32 %v2250_v7, %v1948_v13  ;;  %v3625_v2 = vmul.u32 14564, %v3622_v25  ;;  %v2622_v13 = vpop.f32.mrf.mxu3  ;;  %v7346_v17 = vld [vmem:[#allocation18_spill] sm:$0xff] }
 0x2c3   : > { %v4554_v58 = vadd.f32 %v4553_v11, %v4552_v41  ;;  %v3612_v37 = vadd.s32 %v3611_v1, %v3601_v43  ;;  %v6925_v63 = vadd.f32 %v2853_v60, %v2677_v23  ;;  %v3626_v48 = vmul.u32 58254, %v3622_v25 }
 0x2c4   : > { %v3587_v3 = vsub.s32 %v6876_v55, %v3586_v53  ;;  %v3627_v31 = vmul.u32 14564, %v3623_v30  ;;  %v3628_v0 = vmul.u32 58254, %v3623_v30  ;;  %v2678_v14 = vadd.f32 %v2619_v62, %v2309_v34 }
 0x2c5   : > { %v3613_v9 = vadd.s32 %v3612_v37, %v3603_v4  ;;  %v2949_v27 = vpack.c.bf16 %v6925_v63, %v6925_v63  ;;  %v6931_v12 = vadd.s32 168, %v5899_v52  ;;  %v3629_v28 = vshll.u32 %v3626_v48, 16  ;;  %v2858_v25 = vpop.f32.mrf.mxu0 }
 0x2c6   : > { %vm4101_vm5 = vcmp.ne.s32.totalorder %v3587_v3, 0  ;;  %vm4137_vm3 = vcmp.lt.s32.totalorder %v3587_v3, 0  ;;  %v4209_v41 = vadd.s32 18, %v3587_v3  ;;  %v3630_v22 = vshrl.u32 %v3626_v48, 16  ;;  %v1894_v35 = vpop.f32.mrf.mxu1 }
 0x2c7   : > { %vm4173_vm4 = vmand %vm4137_vm3, %vm4101_vm5  ;;  %v3614_v55 = vshrl.u32 %v3613_v9, 4  ;;  %2986 = vst.msk [vmem:[%s6258_s14 + $0x50] sm:$0xf] %vm2965_vm15, %v2949_v27  ;;  %v3631_v54 = vshll.u32 %v3627_v31, 16  ;;  %v3632_v40 = vshrl.u32 %v3627_v31, 16  ;;  %vm3633_vm8 = vc.u32 %v3625_v2, %v3629_v28 }
 0x2c8   : > { %v4245_v38 = vsel %vm4173_vm4, %v4209_v41, %v3587_v3  ;;  %v3635_v39 = vadd.s32 %v3629_v28, %v3625_v2  ;;  %v6935_v6 = vadd.f32 %v2855_v51, %v2678_v14  ;;  %v3634_v16 = vsel %vm3633_vm8, 1, %v7276_v56 }
 0x2c9   : > { %vm4281_vm9 = vcmp.lt.s32.totalorder %v4245_v38, 16  ;;  %v3615_v21 = vmul.u32 18, %v3614_v55  ;;  %v3651_v43 = vand.u32 65535, %v6931_v12  ;;  %v3636_v61 = vadd.s32 %v3634_v16, %v3628_v0  ;;  %v2255_v0 = vpop.f32.mrf.mxu2 }
 0x2ca   : > { %v4389_v49 = vsel %vm4281_vm9, %v6892_v42, 0.0  ;;  %vm3637_vm7 = vc.u32 %v3635_v39, %v3631_v54  ;;  %v2950_v29 = vpack.c.bf16 %v6935_v6, %v6935_v6  ;;  %v3652_v50 = vshrl.u32 %v6931_v12, 16 }
 0x2cb   : > { %v4442_v8 = vsel %vm465_vm2, %v4389_v49, 0.0  ;;  %v4502_v4 = vmul.f32 %v4389_v49, %v4389_v49  ;;  %v3616_v60 = vsub.s32 %v6890_v57, %v3615_v21  ;;  %v3638_v46 = vsel %vm3637_vm7, 1, %v7276_v56  ;;  %v2624_v49 = vpop.f32.mrf.mxu3 }
 0x2cc   : > { %v4443_v24 = vadd.f32 %v4442_v8, %v4441_v26  ;;  %v3640_v32 = vadd.s32 %v3638_v46, %v3636_v61  ;;  %2987 = vst.msk [vmem:[%s6258_s14 + $0x54] sm:$0xf] %vm2965_vm15, %v2950_v29  ;;  %v3654_v18 = vmul.u32 14564, %v3651_v43  ;;  %v3655_v15 = vmul.u32 58254, %v3651_v43  ;;  %v7347_v46 = vld [vmem:[#allocation19_spill] sm:$0xff] }
 0x2cd   : > { %v4555_v42 = vsel %vm465_vm2, %v4502_v4, 0.0  ;;  %vm4102_vm6 = vcmp.ne.s32.totalorder %v3616_v60, 0  ;;  %vm4138_vm10 = vcmp.lt.s32.totalorder %v3616_v60, 0  ;;  %v4210_v59 = vadd.s32 18, %v3616_v60 }
 0x2ce   : > { %v4556_v47 = vadd.f32 %v4555_v42, %v4554_v58  ;;  %vm4174_vm11 = vmand %vm4138_vm10, %vm4102_vm6  ;;  %v3641_v36 = vadd.s32 %v3640_v32, %v3630_v22  ;;  %v3656_v57 = vmul.u32 14564, %v3652_v50  ;;  %v3657_v5 = vmul.u32 58254, %v3652_v50  ;;  %v1897_v16 = vpop.f32.mrf.mxu1  ;;  %v2860_v32 = vpop.f32.mrf.mxu0 }
 0x2cf   : > { %v4246_v7 = vsel %vm4174_vm11, %v4210_v59, %v3616_v60  ;;  %v1949_v20 = vadd.f32 %v1892_v44, %v7346_v17  ;;  %v6951_v33 = vadd.s32 176, %v5899_v52  ;;  %v3658_v1 = vshll.u32 %v3655_v15, 16 }
 0x2d0   : > { %vm4282_vm12 = vcmp.lt.s32.totalorder %v4246_v7, 16  ;;  %v3642_v26 = vadd.s32 %v3641_v36, %v3632_v40  ;;  %v3659_v23 = vshrl.u32 %v3655_v15, 16  ;;  %v3660_v53 = vshll.u32 %v3656_v57, 16 }
 0x2d1   : > { %v4390_v11 = vsel %vm4282_vm12, %v6906_v10, 0.0  ;;  %v3661_v30 = vshrl.u32 %v3656_v57, 16  ;;  %v2310_v34 = vadd.f32 %v2253_v19, %v1949_v20  ;;  %vm3662_vm13 = vc.u32 %v3654_v18, %v3658_v1 }
 0x2d2   : > { %v4444_v58 = vsel %vm465_vm2, %v4390_v11, 0.0  ;;  %v4503_v37 = vmul.f32 %v4390_v11, %v4390_v11  ;;  %v3643_v2 = vshrl.u32 %v3642_v26, 4  ;;  %v3663_v44 = vsel %vm3662_vm13, 1, %v7276_v56 }
 0x2d3   : > { %v4445_v3 = vadd.f32 %v4444_v58, %v4443_v24  ;;  %v3664_v48 = vadd.s32 %v3658_v1, %v3654_v18  ;;  %v2679_v31 = vadd.f32 %v2622_v13, %v2310_v34  ;;  %v3665_v27 = vadd.s32 %v3663_v44, %v3657_v5 }
 0x2d4   : > { %v4557_v62 = vsel %vm465_vm2, %v4503_v37, 0.0  ;;  %v3644_v9 = vmul.u32 18, %v3643_v2  ;;  %v3680_v10 = vand.u32 65535, %v6951_v33  ;;  %v3681_v28 = vshrl.u32 %v6951_v33, 16 }
 0x2d5   : > { %v4558_v14 = vadd.f32 %v4557_v62, %v4556_v47  ;;  %vm3666_vm14 = vc.u32 %v3664_v48, %v3660_v53  ;;  %v6958_v41 = vadd.f32 %v2858_v25, %v2679_v31  ;;  %v1950_v24 = vadd.f32 %v1894_v35, %v7347_v46  ;;  %v2258_v35 = vpop.f32.mrf.mxu2  ;;  %v7348_v25 = vld [vmem:[#allocation20_spill] sm:$0xff]  ;;  %v2627_v62 = vpop.f32.mrf.mxu3 }
 0x2d6   : > { %v3645_v51 = vsub.s32 %v6916_v45, %v3644_v9  ;;  %v3667_v55 = vsel %vm3666_vm14, 1, %v7276_v56  ;;  %v3683_v22 = vmul.u32 14564, %v3680_v10  ;;  %v3684_v54 = vmul.u32 58254, %v3680_v10  ;;  %v1899_v48 = vpop.f32.mrf.mxu1 }
 0x2d7   : > { %v3669_v40 = vadd.s32 %v3667_v55, %v3665_v27  ;;  %v2951_v38 = vpack.c.bf16 %v6958_v41, %v6958_v41  ;;  %v3685_v39 = vmul.u32 14564, %v3681_v28  ;;  %v3686_v21 = vmul.u32 58254, %v3681_v28 }
 0x2d8   : > { %vm4103_vm0 = vcmp.ne.s32.totalorder %v3645_v51, 0  ;;  %vm4139_vm1 = vcmp.lt.s32.totalorder %v3645_v51, 0  ;;  %v4211_v43 = vadd.s32 18, %v3645_v51  ;;  %v3687_v19 = vshll.u32 %v3684_v54, 16 }
 0x2d9   : > { %vm4175_vm5 = vmand %vm4139_vm1, %vm4103_vm0  ;;  %v3670_v61 = vadd.s32 %v3669_v40, %v3659_v23  ;;  %2988 = vst.msk [vmem:[%s6258_s14 + $0x58] sm:$0xf] %vm2965_vm15, %v2951_v38  ;;  %v3688_v45 = vshrl.u32 %v3684_v54, 16  ;;  %v3689_v29 = vshll.u32 %v3685_v39, 16  ;;  %v3690_v8 = vshrl.u32 %v3685_v39, 16 }
 0x2da   : > { %v4247_v4 = vsel %vm4175_vm5, %v4211_v43, %v3645_v51  ;;  %vm3691_vm3 = vc.u32 %v3683_v22, %v3687_v19  ;;  %v3693_v60 = vadd.s32 %v3687_v19, %v3683_v22  ;;  %v6970_v42 = vadd.s32 184, %v5899_v52  ;;  %v2863_v22 = vpop.f32.mrf.mxu0 }
 0x2db   : > { %vm4283_vm4 = vcmp.lt.s32.totalorder %v4247_v4, 16  ;;  %v3671_v50 = vadd.s32 %v3670_v61, %v3661_v30  ;;  %v3692_v18 = vsel %vm3691_vm3, 1, %v7276_v56  ;;  %v2311_v36 = vadd.f32 %v2255_v0, %v1950_v24 }
 0x2dc   : > { %v4391_v59 = vsel %vm4283_vm4, %v6925_v63, 0.0  ;;  %v3694_v47 = vadd.s32 %v3692_v18, %v3686_v21  ;;  %vm3695_vm8 = vc.u32 %v3693_v60, %v3689_v29  ;;  %v3709_v26 = vand.u32 65535, %v6970_v42 }
 0x2dd   : > { %v4446_v15 = vsel %vm465_vm2, %v4391_v59, 0.0  ;;  %v4504_v57 = vmul.f32 %v4391_v59, %v4391_v59  ;;  %v3672_v13 = vshrl.u32 %v3671_v50, 4  ;;  %v3696_v7 = vsel %vm3695_vm8, 1, %v7276_v56  ;;  %v2260_v61 = vpop.f32.mrf.mxu2 }
 0x2de   : > { %v4447_v5 = vadd.f32 %v4446_v15, %v4445_v3  ;;  %v3698_v17 = vadd.s32 %v3696_v7, %v3694_v47  ;;  %v2680_v20 = vadd.f32 %v2624_v49, %v2311_v36  ;;  %v3710_v63 = vshrl.u32 %v6970_v42, 16  ;;  %v1902_v36 = vpop.f32.mrf.mxu1  ;;  %v7349_v7 = vld [vmem:[#allocation21_spill] sm:$0xff] }
 0x2df   : > { %v4559_v1 = vsel %vm465_vm2, %v4504_v57, 0.0  ;;  %v3673_v23 = vmul.u32 18, %v3672_v13  ;;  %v1951_v11 = vadd.f32 %v1897_v16, %v7348_v25  ;;  %v3712_v58 = vmul.u32 14564, %v3709_v26 }
 0x2e0   : > { %v4560_v53 = vadd.f32 %v4559_v1, %v4558_v14  ;;  %v3699_v30 = vadd.s32 %v3698_v17, %v3688_v45  ;;  %v6979_v34 = vadd.f32 %v2860_v32, %v2680_v20  ;;  %v3713_v2 = vmul.u32 58254, %v3709_v26 }
 0x2e1   : > { %v3674_v37 = vsub.s32 %v6931_v12, %v3673_v23  ;;  %v3714_v3 = vmul.u32 14564, %v3710_v63  ;;  %v3715_v44 = vmul.u32 58254, %v3710_v63  ;;  %v2312_v9 = vadd.f32 %v2258_v35, %v1951_v11 }
 0x2e2   : > { %v3700_v31 = vadd.s32 %v3699_v30, %v3690_v8  ;;  %v2952_v0 = vpack.c.bf16 %v6979_v34, %v6979_v34  ;;  %v6985_v27 = vadd.s32 192, %v5899_v52  ;;  %v3716_v14 = vshll.u32 %v3713_v2, 16  ;;  %v2865_v25 = vpop.f32.mrf.mxu0 }
 0x2e3   : > { %vm4104_vm9 = vcmp.ne.s32.totalorder %v3674_v37, 0  ;;  %vm4140_vm7 = vcmp.lt.s32.totalorder %v3674_v37, 0  ;;  %v4212_v10 = vadd.s32 18, %v3674_v37  ;;  %v3717_v28 = vshrl.u32 %v3713_v2, 16 }
 0x2e4   : > { %vm4176_vm6 = vmand %vm4140_vm7, %vm4104_vm9  ;;  %v3701_v12 = vshrl.u32 %v3700_v31, 4  ;;  %2989 = vst.msk [vmem:[%s6258_s14 + $0x5c] sm:$0xf] %vm2965_vm15, %v2952_v0  ;;  %v3718_v51 = vshll.u32 %v3714_v3, 16  ;;  %v3719_v55 = vshrl.u32 %v3714_v3, 16  ;;  %vm3720_vm10 = vc.u32 %v3712_v58, %v3716_v14 }
 0x2e5   : > { %v4248_v54 = vsel %vm4176_vm6, %v4212_v10, %v3674_v37  ;;  %v3722_v40 = vadd.s32 %v3716_v14, %v3712_v58  ;;  %v2681_v38 = vadd.f32 %v2627_v62, %v2312_v9  ;;  %v3721_v21 = vsel %vm3720_vm10, 1, %v7276_v56  ;;  %v2263_v62 = vpop.f32.mrf.mxu2  ;;  %v7350_v14 = vld [vmem:[#allocation8_spill] sm:$0xff] }
 0x2e6   : > { %vm4284_vm11 = vcmp.lt.s32.totalorder %v4248_v54, 16  ;;  %v3702_v39 = vmul.u32 18, %v3701_v12  ;;  %v3738_v16 = vand.u32 65535, %v6985_v27  ;;  %v3723_v19 = vadd.s32 %v3721_v21, %v3715_v44 }
 0x2e7   : > { %v4392_v43 = vsel %vm4284_vm11, %v6935_v6, 0.0  ;;  %vm3724_vm12 = vc.u32 %v3722_v40, %v3718_v51  ;;  %v6992_v49 = vadd.f32 %v2863_v22, %v2681_v38  ;;  %v3739_v6 = vshrl.u32 %v6985_v27, 16 }
 0x2e8   : > { %v4448_v45 = vsel %vm465_vm2, %v4392_v43, 0.0  ;;  %v4505_v29 = vmul.f32 %v4392_v43, %v4392_v43  ;;  %v3703_v8 = vsub.s32 %v6951_v33, %v3702_v39  ;;  %v3725_v4 = vsel %vm3724_vm12, 1, %v7276_v56  ;;  %v1904_v43 = vpop.f32.mrf.mxu1 }
 0x2e9   : > { %v4449_v60 = vadd.f32 %v4448_v45, %v4447_v5  ;;  %v3727_v46 = vadd.s32 %v3725_v4, %v3723_v19  ;;  %v2953_v24 = vpack.c.bf16 %v6992_v49, %v6992_v49  ;;  %v3741_v33 = vmul.u32 14564, %v3738_v16  ;;  %v2629_v5 = vpop.f32.mrf.mxu3 }
 0x2ea   : > { %v4561_v32 = vsel %vm465_vm2, %v4505_v29, 0.0  ;;  %vm4105_vm13 = vcmp.ne.s32.totalorder %v3703_v8, 0  ;;  %vm4141_vm14 = vcmp.lt.s32.totalorder %v3703_v8, 0  ;;  %v4213_v50 = vadd.s32 18, %v3703_v8 }
 0x2eb   : > { %v4562_v18 = vadd.f32 %v4561_v32, %v4560_v53  ;;  %vm4177_vm0 = vmand %vm4141_vm14, %vm4105_vm13  ;;  %v3728_v59 = vadd.s32 %v3727_v46, %v3717_v28  ;;  %2990 = vst.msk [vmem:[%s6258_s14 + $0x60] sm:$0xf] %vm2965_vm15, %v2953_v24  ;;  %v3742_v47 = vmul.u32 58254, %v3738_v16  ;;  %v3743_v57 = vmul.u32 14564, %v3739_v6 }
 0x2ec   : > { %v4249_v15 = vsel %vm4177_vm0, %v4213_v50, %v3703_v8  ;;  %v3744_v13 = vmul.u32 58254, %v3739_v6  ;;  %v1952_v35 = vadd.f32 %v1899_v48, %v7349_v7  ;;  %v1953_v12 = vadd.f32 %v1902_v36, %v7350_v14  ;;  %v2868_v50 = vpop.f32.mrf.mxu0 }
 0x2ed   : > { %vm4285_vm1 = vcmp.lt.s32.totalorder %v4249_v15, 16  ;;  %v3729_v17 = vadd.s32 %v3728_v59, %v3719_v55  ;;  %v3745_v20 = vshll.u32 %v3742_v47, 16  ;;  %v3746_v26 = vshrl.u32 %v3742_v47, 16 }
 0x2ee   : > { %v4393_v1 = vsel %vm4285_vm1, %v6958_v41, 0.0  ;;  %v3747_v23 = vshll.u32 %v3743_v57, 16  ;;  %v3748_v63 = vshrl.u32 %v3743_v57, 16  ;;  %v2313_v11 = vadd.f32 %v2260_v61, %v1952_v35 }
 0x2ef   : > { %v4450_v53 = vsel %vm465_vm2, %v4393_v1, 0.0  ;;  %v4506_v30 = vmul.f32 %v4393_v1, %v4393_v1  ;;  %v3730_v58 = vshrl.u32 %v3729_v17, 4  ;;  %vm3749_vm5 = vc.u32 %v3741_v33, %v3745_v20 }
 0x2f0   : > { %v4451_v37 = vadd.f32 %v4450_v53, %v4449_v60  ;;  %v3750_v2 = vsel %vm3749_vm5, 1, %v7276_v56  ;;  %v3751_v3 = vadd.s32 %v3745_v20, %v3741_v33  ;;  %v2682_v44 = vadd.f32 %v2629_v5, %v2313_v11 }
 0x2f1   : > { %v4563_v48 = vsel %vm465_vm2, %v4506_v30, 0.0  ;;  %v3731_v31 = vmul.u32 18, %v3730_v58  ;;  %v3752_v0 = vadd.s32 %v3750_v2, %v3744_v13  ;;  %v7009_v41 = vadd.s32 200, %v5899_v52  ;;  %v2632_v29 = vpop.f32.mrf.mxu3  ;;  %v7351_v58 = vld [vmem:[#allocation22_spill] sm:$0xff] }
 0x2f2   : > { %v4564_v9 = vadd.f32 %v4563_v48, %v4562_v18  ;;  %vm3753_vm3 = vc.u32 %v3751_v3, %v3747_v23  ;;  %v7011_v10 = vadd.f32 %v2865_v25, %v2682_v44  ;;  %v2314_v38 = vadd.f32 %v2263_v62, %v1953_v12  ;;  %v2265_v25 = vpop.f32.mrf.mxu2 }
 0x2f3   : > { %v3732_v28 = vsub.s32 %v6970_v42, %v3731_v31  ;;  %v3754_v51 = vsel %vm3753_vm3, 1, %v7276_v56  ;;  %v3767_v55 = vand.u32 65535, %v7009_v41  ;;  %v3768_v22 = vshrl.u32 %v7009_v41, 16  ;;  %v1907_v31 = vpop.f32.mrf.mxu1 }
 0x2f4   : > { %v3756_v54 = vadd.s32 %v3754_v51, %v3752_v0  ;;  %v2954_v40 = vpack.c.bf16 %v7011_v10, %v7011_v10  ;;  %v7021_v39 = vadd.s32 208, %v5899_v52  ;;  %v2683_v4 = vadd.f32 %v2632_v29, %v2314_v38 }
 0x2f5   : > { %vm4106_vm4 = vcmp.ne.s32.totalorder %v3732_v28, 0  ;;  %vm4142_vm8 = vcmp.lt.s32.totalorder %v3732_v28, 0  ;;  %v4214_v21 = vadd.s32 18, %v3732_v28  ;;  %v3770_v16 = vmul.u32 14564, %v3767_v55 }
 0x2f6   : > { %vm4178_vm9 = vmand %vm4142_vm8, %vm4106_vm4  ;;  %v3757_v42 = vadd.s32 %v3756_v54, %v3746_v26  ;;  %2991 = vst.msk [vmem:[%s6258_s14 + $0x64] sm:$0xf] %vm2965_vm15, %v2954_v40  ;;  %v3771_v19 = vmul.u32 58254, %v3767_v55  ;;  %v3772_v61 = vmul.u32 14564, %v3768_v22  ;;  %v3773_v45 = vmul.u32 58254, %v3768_v22  ;;  %v7352_v22 = vld [vmem:[#allocation3_spill] sm:$0xff] }
 0x2f7   : > { %v4250_v8 = vsel %vm4178_vm9, %v4214_v21, %v3732_v28  ;;  %v3796_v60 = vand.u32 65535, %v7021_v39  ;;  %v3797_v46 = vshrl.u32 %v7021_v39, 16  ;;  %v7028_v47 = vadd.f32 %v2868_v50, %v2683_v4  ;;  %v2870_v21 = vpop.f32.mrf.mxu0 }
 0x2f8   : > { %vm4286_vm7 = vcmp.lt.s32.totalorder %v4250_v8, 16  ;;  %v3758_v24 = vadd.s32 %v3757_v42, %v3748_v63  ;;  %v3774_v6 = vshll.u32 %v3771_v19, 16  ;;  %v3775_v32 = vshrl.u32 %v3771_v19, 16 }
 0x2f9   : > { %v4394_v18 = vsel %vm4286_vm7, %v6979_v34, 0.0  ;;  %v3776_v59 = vshll.u32 %v3772_v61, 16  ;;  %v3777_v33 = vshrl.u32 %v3772_v61, 16  ;;  %v2955_v5 = vpack.c.bf16 %v7028_v47, %v7028_v47  ;;  %v2634_v12 = vpop.f32.mrf.mxu3 }
 0x2fa   : > { %v4452_v36 = vsel %vm465_vm2, %v4394_v18, 0.0  ;;  %v4507_v15 = vmul.f32 %v4394_v18, %v4394_v18  ;;  %v3759_v57 = vshrl.u32 %v3758_v24, 4  ;;  %vm3778_vm6 = vc.u32 %v3770_v16, %v3774_v6  ;;  %v2268_v18 = vpop.f32.mrf.mxu2 }
 0x2fb   : > { %v4453_v13 = vadd.f32 %v4452_v36, %v4451_v37  ;;  %v3779_v7 = vsel %vm3778_vm6, 1, %v7276_v56  ;;  %v3780_v35 = vadd.s32 %v3774_v6, %v3770_v16  ;;  %v3799_v26 = vmul.u32 14564, %v3796_v60  ;;  %2992 = vst.msk [vmem:[%s6258_s14 + $0x68] sm:$0xf] %vm2965_vm15, %v2955_v5 }
 0x2fc   : > { %v4565_v17 = vsel %vm465_vm2, %v4507_v15, 0.0  ;;  %v3760_v34 = vmul.u32 18, %v3759_v57  ;;  %v3781_v20 = vadd.s32 %v3779_v7, %v3773_v45  ;;  %v3800_v23 = vmul.u32 58254, %v3796_v60 }
 0x2fd   : > { %v4566_v1 = vadd.f32 %v4565_v17, %v4564_v9  ;;  %vm3782_vm10 = vc.u32 %v3780_v35, %v3776_v59  ;;  %v3801_v63 = vmul.u32 14564, %v3797_v46  ;;  %v3802_v30 = vmul.u32 58254, %v3797_v46 }
 0x2fe   : > { %v3761_v11 = vsub.s32 %v6985_v27, %v3760_v34  ;;  %v3783_v53 = vsel %vm3782_vm10, 1, %v7276_v56  ;;  %v1954_v37 = vadd.f32 %v1904_v43, %v7351_v58  ;;  %v3803_v3 = vshll.u32 %v3800_v23, 16 }
 0x2ff   : > { %v3785_v2 = vadd.s32 %v3783_v53, %v3781_v20  ;;  %v3804_v44 = vshrl.u32 %v3800_v23, 16  ;;  %v3805_v48 = vshll.u32 %v3801_v63, 16  ;;  %v3806_v62 = vshrl.u32 %v3801_v63, 16  ;;  %v2873_v58 = vpop.f32.mrf.mxu0 }
 0x300   : > { %vm4107_vm11 = vcmp.ne.s32.totalorder %v3761_v11, 0  ;;  %vm4143_vm12 = vcmp.lt.s32.totalorder %v3761_v11, 0  ;;  %v4215_v0 = vadd.s32 18, %v3761_v11  ;;  %vm3807_vm14 = vc.u32 %v3799_v26, %v3803_v3 }
 0x301   : > { %vm4179_vm13 = vmand %vm4143_vm12, %vm4107_vm11  ;;  %v3786_v9 = vadd.s32 %v3785_v2, %v3775_v32  ;;  %v3809_v14 = vadd.s32 %v3803_v3, %v3799_v26  ;;  %v2315_v27 = vadd.f32 %v2265_v25, %v1954_v37  ;;  %v3808_v51 = vsel %vm3807_vm14, 1, %v7276_v56  ;;  %v2637_v23 = vpop.f32.mrf.mxu3 }
 0x302   : > { %v4251_v28 = vsel %vm4179_vm13, %v4215_v0, %v3761_v11  ;;  %v7042_v55 = vadd.s32 216, %v5899_v52  ;;  %v1955_v54 = vadd.f32 %v1907_v31, %v7352_v22  ;;  %v3810_v38 = vadd.s32 %v3808_v51, %v3802_v30  ;;  %v2270_v22 = vpop.f32.mrf.mxu2 }
 0x303   : > { %vm4287_vm0 = vcmp.lt.s32.totalorder %v4251_v28, 16  ;;  %v3787_v40 = vadd.s32 %v3786_v9, %v3777_v33  ;;  %vm3811_vm1 = vc.u32 %v3809_v14, %v3805_v48  ;;  %v2684_v42 = vadd.f32 %v2634_v12, %v2315_v27  ;;  %v1909_v27 = vpop.f32.mrf.mxu1 }
 0x304   : > { %v4395_v16 = vsel %vm4287_vm0, %v6992_v49, 0.0  ;;  %v3812_v43 = vsel %vm3811_vm1, 1, %v7276_v56  ;;  %v3825_v19 = vand.u32 65535, %v7042_v55  ;;  %v3826_v46 = vshrl.u32 %v7042_v55, 16 }
 0x305   : > { %v4454_v61 = vsel %vm465_vm2, %v4395_v16, 0.0  ;;  %v4508_v45 = vmul.f32 %v4395_v16, %v4395_v16  ;;  %v3788_v29 = vshrl.u32 %v3787_v40, 4  ;;  %v3814_v8 = vadd.s32 %v3812_v43, %v3810_v38  ;;  %v7353_v43 = vld [vmem:[#allocation5_spill] sm:$0xff] }
 0x306   : > { %v4455_v4 = vadd.f32 %v4454_v61, %v4453_v13  ;;  %v7049_v60 = vadd.f32 %v2870_v21, %v2684_v42  ;;  %v3828_v24 = vmul.u32 14564, %v3825_v19  ;;  %v3829_v50 = vmul.u32 58254, %v3825_v19 }
 0x307   : > { %v4567_v6 = vsel %vm465_vm2, %v4508_v45, 0.0  ;;  %v3789_v49 = vmul.u32 18, %v3788_v29  ;;  %v3815_v32 = vadd.s32 %v3814_v8, %v3804_v44  ;;  %v3830_v36 = vmul.u32 14564, %v3826_v46 }
 0x308   : > { %v4568_v59 = vadd.f32 %v4567_v6, %v4566_v1  ;;  %v2956_v33 = vpack.c.bf16 %v7049_v60, %v7049_v60  ;;  %v3831_v15 = vmul.u32 58254, %v3826_v46  ;;  %v3832_v7 = vshll.u32 %v3829_v50, 16 }
 0x309   : > { %v3790_v57 = vsub.s32 %v7009_v41, %v3789_v49  ;;  %v3816_v13 = vadd.s32 %v3815_v32, %v3806_v62  ;;  %v3833_v35 = vshrl.u32 %v3829_v50, 16  ;;  %v3834_v5 = vshll.u32 %v3830_v36, 16  ;;  %v2639_v46 = vpop.f32.mrf.mxu3 }
 0x30a   : > { %2993 = vst.msk [vmem:[%s6258_s14 + $0x6c] sm:$0xf] %vm2965_vm15, %v2956_v33  ;;  %v3835_v17 = vshrl.u32 %v3830_v36, 16  ;;  %v2316_v34 = vadd.f32 %v2268_v18, %v1955_v54  ;;  %v7059_v20 = vadd.s32 224, %v5899_v52  ;;  %vm3836_vm8 = vc.u32 %v3828_v24, %v3832_v7  ;;  %v2875_v33 = vpop.f32.mrf.mxu0 }
 0x30b   : > { %vm4108_vm5 = vcmp.ne.s32.totalorder %v3790_v57, 0  ;;  %vm4144_vm3 = vcmp.lt.s32.totalorder %v3790_v57, 0  ;;  %v4216_v26 = vadd.s32 18, %v3790_v57  ;;  %v3817_v1 = vshrl.u32 %v3816_v13, 4 }
 0x30c   : > { %vm4180_vm4 = vmand %vm4144_vm3, %vm4108_vm5  ;;  %v3838_v63 = vadd.s32 %v3832_v7, %v3828_v24  ;;  %v2685_v41 = vadd.f32 %v2637_v23, %v2316_v34  ;;  %v3854_v25 = vand.u32 65535, %v7059_v20  ;;  %v3837_v30 = vsel %vm3836_vm8, 1, %v7276_v56 }
 0x30d   : > { %v4252_v11 = vsel %vm4180_vm4, %v4216_v26, %v3790_v57  ;;  %v3818_v53 = vmul.u32 18, %v3817_v1  ;;  %v3855_v37 = vshrl.u32 %v7059_v20, 16  ;;  %v3839_v2 = vadd.s32 %v3837_v30, %v3831_v15  ;;  %v2273_v30 = vpop.f32.mrf.mxu2 }
 0x30e   : > { %vm4288_vm9 = vcmp.lt.s32.totalorder %v4252_v11, 16  ;;  %vm3840_vm7 = vc.u32 %v3838_v63, %v3834_v5  ;;  %v7064_v3 = vadd.f32 %v2873_v58, %v2685_v41  ;;  %v3857_v0 = vmul.u32 14564, %v3854_v25  ;;  %v7354_v5 = vld [vmem:[#allocation2_spill] sm:$0xff]  ;;  %v1912_v41 = vpop.f32.mrf.mxu1 }
 0x30f   : > { %v4396_v44 = vsel %vm4288_vm9, %v7011_v10, 0.0  ;;  %v3819_v48 = vsub.s32 %v7021_v39, %v3818_v53  ;;  %v3841_v31 = vsel %vm3840_vm7, 1, %v7276_v56  ;;  %v3858_v54 = vmul.u32 58254, %v3854_v25 }
 0x310   : > { %v4456_v62 = vsel %vm465_vm2, %v4396_v44, 0.0  ;;  %v4509_v9 = vmul.f32 %v4396_v44, %v4396_v44  ;;  %v3843_v14 = vadd.s32 %v3841_v31, %v3839_v2  ;;  %v2957_v12 = vpack.c.bf16 %v7064_v3, %v7064_v3 }
 0x311   : > { %v4457_v28 = vadd.f32 %v4456_v62, %v4455_v4  ;;  %vm4109_vm6 = vcmp.ne.s32.totalorder %v3819_v48, 0  ;;  %vm4145_vm10 = vcmp.lt.s32.totalorder %v3819_v48, 0  ;;  %v4217_v51 = vadd.s32 18, %v3819_v48 }
 0x312   : > { %v4569_v10 = vsel %vm465_vm2, %v4509_v9, 0.0  ;;  %vm4181_vm11 = vmand %vm4145_vm10, %vm4109_vm6  ;;  %v3844_v39 = vadd.s32 %v3843_v14, %v3833_v35  ;;  %2994 = vst.msk [vmem:[%s6258_s14 + $0x70] sm:$0xf] %vm2965_vm15, %v2957_v12  ;;  %v3859_v40 = vmul.u32 14564, %v3855_v37  ;;  %v3860_v16 = vmul.u32 58254, %v3855_v37 }
 0x313   : > { %v4570_v38 = vadd.f32 %v4569_v10, %v4568_v59  ;;  %v4253_v21 = vsel %vm4181_vm11, %v4217_v51, %v3819_v48  ;;  %v1956_v42 = vadd.f32 %v1909_v27, %v7353_v43  ;;  %v3861_v61 = vshll.u32 %v3858_v54, 16  ;;  %v2642_v51 = vpop.f32.mrf.mxu3 }
 0x314   : > { %vm4289_vm12 = vcmp.lt.s32.totalorder %v4253_v21, 16  ;;  %v3845_v19 = vadd.s32 %v3844_v39, %v3835_v17  ;;  %v3862_v45 = vshrl.u32 %v3858_v54, 16  ;;  %v3863_v8 = vshll.u32 %v3859_v40, 16  ;;  %v7355_v17 = vld [vmem:[#allocation9_spill] sm:$0xff] }
 0x315   : > { %v4397_v29 = vsel %vm4289_vm12, %v7028_v47, 0.0  ;;  %v3864_v4 = vshrl.u32 %v3859_v40, 16  ;;  %v2317_v24 = vadd.f32 %v2270_v22, %v1956_v42  ;;  %vm3865_vm13 = vc.u32 %v3857_v0, %v3861_v61 }
 0x316   : > { %v4458_v6 = vsel %vm465_vm2, %v4397_v29, 0.0  ;;  %v4510_v49 = vmul.f32 %v4397_v29, %v4397_v29  ;;  %v3846_v32 = vshrl.u32 %v3845_v19, 4  ;;  %v3866_v18 = vsel %vm3865_vm13, 1, %v7276_v56 }
 0x317   : > { %v4459_v50 = vadd.f32 %v4458_v6, %v4457_v28  ;;  %v3867_v59 = vadd.s32 %v3861_v61, %v3857_v0  ;;  %v2686_v36 = vadd.f32 %v2639_v46, %v2317_v24  ;;  %v3868_v13 = vadd.s32 %v3866_v18, %v3860_v16  ;;  %v2878_v16 = vpop.f32.mrf.mxu0  ;;  %v1914_v6 = vpop.f32.mrf.mxu1 }
 0x318   : > { %v4571_v15 = vsel %vm465_vm2, %v4510_v49, 0.0  ;;  %v3847_v57 = vmul.u32 18, %v3846_v32  ;;  %v7081_v47 = vadd.s32 232, %v5899_v52  ;;  %v1721_v34 = vadd.f32 %v7355_v17, %v7354_v5 }
 0x319   : > { %v4572_v7 = vadd.f32 %v4571_v15, %v4570_v38  ;;  %vm3869_vm14 = vc.u32 %v3867_v59, %v3863_v8  ;;  %v7083_v35 = vadd.f32 %v2875_v33, %v2686_v36  ;;  %v7094_v58 = vadd.s32 240, %v5899_v52  ;;  %v7356_v15 = vld [vmem:[#allocation24_spill] sm:$0xff] }
 0x31a   : > { %v3848_v26 = vsub.s32 %v7042_v55, %v3847_v57  ;;  %v3870_v1 = vsel %vm3869_vm14, 1, %v7276_v56  ;;  %v3883_v23 = vand.u32 65535, %v7081_v47  ;;  %v3884_v63 = vshrl.u32 %v7081_v47, 16  ;;  %v7357_v57 = vld [vmem:[#allocation23_spill] sm:$0xff] }
 0x31b   : > { %v3872_v25 = vadd.s32 %v3870_v1, %v3868_v13  ;;  %v2958_v11 = vpack.c.bf16 %v7083_v35, %v7083_v35  ;;  %v1957_v53 = vadd.f32 %v1912_v41, %v1721_v34  ;;  %v3912_v9 = vand.u32 65535, %v7094_v58 }
 0x31c   : > { %vm4110_vm0 = vcmp.ne.s32.totalorder %v3848_v26, 0  ;;  %vm4146_vm1 = vcmp.lt.s32.totalorder %v3848_v26, 0  ;;  %v4218_v55 = vadd.s32 18, %v3848_v26  ;;  %v3886_v37 = vmul.u32 14564, %v3883_v23 }
 0x31d   : > { %vm4182_vm5 = vmand %vm4146_vm1, %vm4110_vm0  ;;  %v3873_v2 = vadd.s32 %v3872_v25, %v3862_v45  ;;  %2995 = vst.msk [vmem:[%s6258_s14 + $0x74] sm:$0xf] %vm2965_vm15, %v2958_v11  ;;  %v3887_v44 = vmul.u32 58254, %v3883_v23  ;;  %v3888_v48 = vmul.u32 14564, %v3884_v63  ;;  %v3889_v31 = vmul.u32 58254, %v3884_v63 }
 0x31e   : > { %v4254_v0 = vsel %vm4182_vm5, %v4218_v55, %v3848_v26  ;;  %v2318_v62 = vadd.f32 %v2273_v30, %v1957_v53  ;;  %v3913_v14 = vshrl.u32 %v7094_v58, 16  ;;  %v3915_v8 = vmul.u32 14564, %v3912_v9  ;;  %v2275_v26 = vpop.f32.mrf.mxu2 }
 0x31f   : > { %vm4290_vm3 = vcmp.lt.s32.totalorder %v4254_v0, 16  ;;  %v3874_v12 = vadd.s32 %v3873_v2, %v3864_v4  ;;  %v3890_v27 = vshll.u32 %v3887_v44, 16  ;;  %v3891_v28 = vshrl.u32 %v3887_v44, 16  ;;  %v2644_v0 = vpop.f32.mrf.mxu3 }
 0x320   : > { %v4398_v22 = vsel %vm4290_vm3, %v7049_v60, 0.0  ;;  %v3892_v10 = vshll.u32 %v3888_v48, 16  ;;  %v3893_v39 = vshrl.u32 %v3888_v48, 16  ;;  %v2687_v54 = vadd.f32 %v2642_v51, %v2318_v62  ;;  %v2880_v51 = vpop.f32.mrf.mxu0 }
 0x321   : > { %v4460_v40 = vsel %vm465_vm2, %v4398_v22, 0.0  ;;  %v4511_v38 = vmul.f32 %v4398_v22, %v4398_v22  ;;  %v3875_v21 = vshrl.u32 %v3874_v12, 4  ;;  %vm3894_vm4 = vc.u32 %v3886_v37, %v3890_v27 }
 0x322   : > { %v4461_v43 = vadd.f32 %v4460_v40, %v4459_v50  ;;  %v3895_v42 = vsel %vm3894_vm4, 1, %v7276_v56  ;;  %v3896_v19 = vadd.s32 %v3890_v27, %v3886_v37  ;;  %v7103_v61 = vadd.f32 %v2878_v16, %v2687_v54 }
 0x323   : > { %v4573_v45 = vsel %vm465_vm2, %v4511_v38, 0.0  ;;  %v3876_v29 = vmul.u32 18, %v3875_v21  ;;  %v3897_v60 = vadd.s32 %v3895_v42, %v3889_v31  ;;  %v3916_v24 = vmul.u32 58254, %v3912_v9 }
 0x324   : > { %v4574_v4 = vadd.f32 %v4573_v45, %v4572_v7  ;;  %vm3898_vm8 = vc.u32 %v3896_v19, %v3892_v10  ;;  %v2959_v46 = vpack.c.bf16 %v7103_v61, %v7103_v61  ;;  %v3917_v50 = vmul.u32 14564, %v3913_v14  ;;  %v1917_v10 = vpop.f32.mrf.mxu1 }
 0x325   : > { %v3877_v49 = vsub.s32 %v7059_v20, %v3876_v29  ;;  %v3899_v32 = vsel %vm3898_vm8, 1, %v7276_v56  ;;  %v3918_v18 = vmul.u32 58254, %v3913_v14  ;;  %v3919_v33 = vshll.u32 %v3916_v24, 16 }
 0x326   : > { %v3901_v59 = vadd.s32 %v3899_v32, %v3897_v60  ;;  %2996 = vst.msk [vmem:[%s6258_s14 + $0x78] sm:$0xf] %vm2965_vm15, %v2959_v46  ;;  %v3920_v36 = vshrl.u32 %v3916_v24, 16  ;;  %v1722_v13 = vadd.f32 %v7357_v57, %v7356_v15  ;;  %v3921_v5 = vshll.u32 %v3917_v50, 16  ;;  %v7358_v60 = vld [vmem:[#allocation4_spill] sm:$0xff] }
 0x327   : > { %vm4111_vm9 = vcmp.ne.s32.totalorder %v3877_v49, 0  ;;  %vm4147_vm7 = vcmp.lt.s32.totalorder %v3877_v49, 0  ;;  %v4219_v7 = vadd.s32 18, %v3877_v49  ;;  %v3922_v34 = vshrl.u32 %v3917_v50, 16 }
 0x328   : > { %vm4183_vm6 = vmand %vm4147_vm7, %vm4111_vm9  ;;  %v3902_v17 = vadd.s32 %v3901_v59, %v3891_v28  ;;  %vm3923_vm10 = vc.u32 %v3915_v8, %v3919_v33  ;;  %v3925_v20 = vadd.s32 %v3919_v33, %v3915_v8  ;;  %v1958_v63 = vadd.f32 %v1914_v6, %v1722_v13  ;;  %v7359_v8 = vld [vmem:[#allocation25_spill] sm:$0xff]  ;;  %v2278_v6 = vpop.f32.mrf.mxu2  ;;  %v7360_v33 = vld [vmem:[#allocation27_spill] sm:$0xff] }
 0x329   : > { %v4255_v1 = vsel %vm4183_vm6, %v4219_v7, %v3877_v49  ;;  %v3924_v23 = vsel %vm3923_vm10, 1, %v7276_v56  ;;  %v7116_v41 = vadd.s32 248, %v5899_v52  ;;  %v1723_v46 = vadd.f32 %v7359_v8, %v7358_v60 }
 0x32a   : > { %vm4291_vm11 = vcmp.lt.s32.totalorder %v4255_v1, 16  ;;  %v3903_v25 = vadd.s32 %v3902_v17, %v3893_v39  ;;  %v3926_v11 = vadd.s32 %v3924_v23, %v3918_v18  ;;  %vm3927_vm12 = vc.u32 %v3925_v20, %v3921_v5 }
 0x32b   : > { %v4399_v53 = vsel %vm4291_vm11, %v7064_v3, 0.0  ;;  %v3928_v30 = vsel %vm3927_vm12, 1, %v7276_v56  ;;  %v2319_v55 = vadd.f32 %v2275_v26, %v1958_v63  ;;  %v3941_v37 = vand.u32 65535, %v7116_v41 }
 0x32c   : > { %v4462_v2 = vsel %vm465_vm2, %v4399_v53, 0.0  ;;  %v4512_v44 = vmul.f32 %v4399_v53, %v4399_v53  ;;  %v3904_v48 = vshrl.u32 %v3903_v25, 4  ;;  %v3930_v31 = vadd.s32 %v3928_v30, %v3926_v11  ;;  %v2883_v53 = vpop.f32.mrf.mxu0  ;;  %v1919_v30 = vpop.f32.mrf.mxu1 }
 0x32d   : > { %v4463_v62 = vadd.f32 %v4462_v2, %v4461_v43  ;;  %v2688_v9 = vadd.f32 %v2644_v0, %v2319_v55  ;;  %v3942_v14 = vshrl.u32 %v7116_v41, 16  ;;  %v3944_v12 = vmul.u32 14564, %v3941_v37 }
 0x32e   : > { %v4575_v27 = vsel %vm465_vm2, %v4512_v44, 0.0  ;;  %v3905_v28 = vmul.u32 18, %v3904_v48  ;;  %v3931_v3 = vadd.s32 %v3930_v31, %v3920_v36  ;;  %v3945_v22 = vmul.u32 58254, %v3941_v37  ;;  %v7361_v36 = vld [vmem:[#allocation26_spill] sm:$0xff] }
 0x32f   : > { %v4576_v39 = vadd.f32 %v4575_v27, %v4574_v4  ;;  %v7124_v54 = vadd.f32 %v2880_v51, %v2688_v9  ;;  %v3946_v40 = vmul.u32 14564, %v3942_v14  ;;  %v3947_v38 = vmul.u32 58254, %v3942_v14 }
 0x330   : > { %v3906_v21 = vsub.s32 %v7081_v47, %v3905_v28  ;;  %v3932_v16 = vadd.s32 %v3931_v3, %v3922_v34  ;;  %v3948_v43 = vshll.u32 %v3945_v22, 16  ;;  %v3949_v42 = vshrl.u32 %v3945_v22, 16  ;;  %v2647_v34 = vpop.f32.mrf.mxu3  ;;  %v2280_v3 = vpop.f32.mrf.mxu2 }
 0x331   : > { %v2960_v19 = vpack.c.bf16 %v7124_v54, %v7124_v54  ;;  %v3950_v45 = vshll.u32 %v3946_v40, 16  ;;  %v3951_v29 = vshrl.u32 %v3946_v40, 16  ;;  %v1959_v49 = vadd.f32 %v1917_v10, %v1723_v46 }
 0x332   : > { %vm4112_vm13 = vcmp.ne.s32.totalorder %v3906_v21, 0  ;;  %vm4148_vm14 = vcmp.lt.s32.totalorder %v3906_v21, 0  ;;  %v4220_v4 = vadd.s32 18, %v3906_v21  ;;  %v3933_v24 = vshrl.u32 %v3932_v16, 4 }
 0x333   : > { %vm4184_vm0 = vmand %vm4148_vm14, %vm4112_vm13  ;;  %2997 = vst.msk [vmem:[%s6258_s14 + $0x7c] sm:$0xf] %vm2965_vm15, %v2960_v19  ;;  %vm3952_vm1 = vc.u32 %v3944_v12, %v3948_v43  ;;  %v3954_v47 = vadd.s32 %v3948_v43, %v3944_v12  ;;  %v7134_v32 = vadd.s32 256, %v5899_v52  ;;  %v1724_v15 = vadd.f32 %v7361_v36, %v7360_v33 }
 0x334   : > { %v4256_v50 = vsel %vm4184_vm0, %v4220_v4, %v3906_v21  ;;  %v3934_v18 = vmul.u32 18, %v3933_v24  ;;  %v3953_v59 = vsel %vm3952_vm1, 1, %v7276_v56  ;;  %v2320_v13 = vadd.f32 %v2278_v6, %v1959_v49  ;;  %v7362_v24 = vld [vmem:[#allocation6_spill] sm:$0xff]  ;;  %v7363_v6 = vld [vmem:[#allocation28_spill] sm:$0xff]  ;;  %v1922_v33 = vpop.f32.mrf.mxu1 }
 0x335   : > { %vm4292_vm5 = vcmp.lt.s32.totalorder %v4256_v50, 16  ;;  %v3955_v57 = vadd.s32 %v3953_v59, %v3947_v38  ;;  %vm3956_vm3 = vc.u32 %v3954_v47, %v3950_v45  ;;  %v3970_v20 = vand.u32 65535, %v7134_v32  ;;  %v2885_v50 = vpop.f32.mrf.mxu0 }
 0x336   : > { %v4400_v7 = vsel %vm4292_vm5, %v7083_v35, 0.0  ;;  %v3935_v5 = vsub.s32 %v7094_v58, %v3934_v18  ;;  %v3957_v17 = vsel %vm3956_vm3, 1, %v7276_v56  ;;  %v2689_v63 = vadd.f32 %v2647_v34, %v2320_v13 }
 0x337   : > { %v4464_v26 = vsel %vm465_vm2, %v4400_v7, 0.0  ;;  %v4513_v1 = vmul.f32 %v4400_v7, %v4400_v7  ;;  %v3959_v23 = vadd.s32 %v3957_v17, %v3955_v57  ;;  %v3971_v37 = vshrl.u32 %v7134_v32, 16 }
 0x338   : > { %v4465_v25 = vadd.f32 %v4464_v26, %v4463_v62  ;;  %vm4113_vm4 = vcmp.ne.s32.totalorder %v3935_v5, 0  ;;  %vm4149_vm8 = vcmp.lt.s32.totalorder %v3935_v5, 0  ;;  %v4221_v11 = vadd.s32 18, %v3935_v5 }
 0x339   : > { %v4577_v35 = vsel %vm465_vm2, %v4513_v1, 0.0  ;;  %vm4185_vm9 = vmand %vm4149_vm8, %vm4113_vm4  ;;  %v3960_v58 = vadd.s32 %v3959_v23, %v3949_v42  ;;  %v7145_v55 = vadd.f32 %v2883_v53, %v2689_v63  ;;  %v3973_v48 = vmul.u32 14564, %v3970_v20 }
 0x33a   : > { %v4578_v2 = vadd.f32 %v4577_v35, %v4576_v39  ;;  %v4257_v44 = vsel %vm4185_vm9, %v4221_v11, %v3935_v5  ;;  %v3974_v31 = vmul.u32 58254, %v3970_v20  ;;  %v3975_v9 = vmul.u32 14564, %v3971_v37 }
 0x33b   : > { %vm4293_vm7 = vcmp.lt.s32.totalorder %v4257_v44, 16  ;;  %v3961_v0 = vadd.s32 %v3960_v58, %v3951_v29  ;;  %v2961_v62 = vpack.c.bf16 %v7145_v55, %v7145_v55  ;;  %v3976_v12 = vmul.u32 58254, %v3971_v37  ;;  %v2649_v29 = vpop.f32.mrf.mxu3 }
 0x33c   : > { %v4401_v14 = vsel %vm4293_vm7, %v7103_v61, 0.0  ;;  %v3977_v27 = vshll.u32 %v3974_v31, 16  ;;  %v3978_v28 = vshrl.u32 %v3974_v31, 16  ;;  %v3979_v39 = vshll.u32 %v3975_v9, 16 }
 0x33d   : > { %v4466_v51 = vsel %vm465_vm2, %v4401_v14, 0.0  ;;  %v4514_v22 = vmul.f32 %v4401_v14, %v4401_v14  ;;  %v3962_v10 = vshrl.u32 %v3961_v0, 4  ;;  %2998 = vst.msk [vmem:[%s6258_s14 + $0x80] sm:$0xf] %vm2965_vm15, %v2961_v62  ;;  %v3980_v38 = vshrl.u32 %v3975_v9, 16 }
 0x33e   : > { %v4467_v40 = vadd.f32 %v4466_v51, %v4465_v25  ;;  %vm3981_vm6 = vc.u32 %v3973_v48, %v3977_v27  ;;  %v3983_v21 = vadd.s32 %v3977_v27, %v3973_v48  ;;  %v1960_v42 = vadd.f32 %v1919_v30, %v1724_v15  ;;  %v2283_v25 = vpop.f32.mrf.mxu2 }
 0x33f   : > { %v4579_v16 = vsel %vm465_vm2, %v4514_v22, 0.0  ;;  %v3963_v43 = vmul.u32 18, %v3962_v10  ;;  %v3982_v61 = vsel %vm3981_vm6, 1, %v7276_v56  ;;  %v7157_v60 = vadd.s32 264, %v5899_v52  ;;  %v2888_v10 = vpop.f32.mrf.mxu0 }
 0x340   : > { %v4580_v19 = vadd.f32 %v4579_v16, %v4578_v2  ;;  %v3984_v45 = vadd.s32 %v3982_v61, %v3976_v12  ;;  %vm3985_vm10 = vc.u32 %v3983_v21, %v3979_v39  ;;  %v2321_v4 = vadd.f32 %v2280_v3, %v1960_v42 }
 0x341   : > { %v3964_v8 = vsub.s32 %v7116_v41, %v3963_v43  ;;  %v3986_v46 = vsel %vm3985_vm10, 1, %v7276_v56  ;;  %v1725_v47 = vadd.f32 %v7363_v6, %v7362_v24  ;;  %v3999_v18 = vand.u32 65535, %v7157_v60 }
 0x342   : > { %v3988_v49 = vadd.s32 %v3986_v46, %v3984_v45  ;;  %v4000_v59 = vshrl.u32 %v7157_v60, 16  ;;  %v7166_v36 = vadd.s32 272, %v5899_v52  ;;  %v2690_v41 = vadd.f32 %v2649_v29, %v2321_v4 }
 0x343   : > { %vm4114_vm11 = vcmp.ne.s32.totalorder %v3964_v8, 0  ;;  %vm4150_vm12 = vcmp.lt.s32.totalorder %v3964_v8, 0  ;;  %v4222_v15 = vadd.s32 18, %v3964_v8  ;;  %v4002_v13 = vmul.u32 14564, %v3999_v18  ;;  %v2652_v14 = vpop.f32.mrf.mxu3 }
 0x344   : > { %vm4186_vm13 = vmand %vm4150_vm12, %vm4114_vm11  ;;  %v3989_v57 = vadd.s32 %v3988_v49, %v3978_v28  ;;  %v4003_v7 = vmul.u32 58254, %v3999_v18  ;;  %v4004_v5 = vmul.u32 14564, %v4000_v59  ;;  %v7168_v34 = vadd.f32 %v2885_v50, %v2690_v41  ;;  %v7365_v49 = vld [vmem:[#allocation29_spill] sm:$0xff]  ;;  %v1924_v18 = vpop.f32.mrf.mxu1 }
 0x345   : > { %v4258_v17 = vsel %vm4186_vm13, %v4222_v15, %v3964_v8  ;;  %v4005_v20 = vmul.u32 58254, %v4000_v59  ;;  %v1961_v26 = vadd.f32 %v1922_v33, %v1725_v47  ;;  %v4028_v12 = vand.u32 65535, %v7166_v36  ;;  %v7364_v47 = vld [vmem:[#allocation7_spill] sm:$0xff] }
 0x346   : > { %vm4294_vm14 = vcmp.lt.s32.totalorder %v4258_v17, 16  ;;  %v3990_v1 = vadd.s32 %v3989_v57, %v3980_v38  ;;  %v4006_v23 = vshll.u32 %v4003_v7, 16  ;;  %v4007_v63 = vshrl.u32 %v4003_v7, 16 }
 0x347   : > { %v4402_v11 = vsel %vm4294_vm14, %v7124_v54, 0.0  ;;  %v2962_v53 = vpack.c.bf16 %v7168_v34, %v7168_v34  ;;  %v4008_v30 = vshll.u32 %v4004_v5, 16  ;;  %v4009_v35 = vshrl.u32 %v4004_v5, 16  ;;  %v2285_v5 = vpop.f32.mrf.mxu2 }
 0x348   : > { %v4468_v58 = vsel %vm465_vm2, %v4402_v11, 0.0  ;;  %v4515_v37 = vmul.f32 %v4402_v11, %v4402_v11  ;;  %v3991_v2 = vshrl.u32 %v3990_v1, 4  ;;  %vm4010_vm0 = vc.u32 %v4002_v13, %v4006_v23 }
 0x349   : > { %v4469_v44 = vadd.f32 %v4468_v58, %v4467_v40  ;;  %2999 = vst.msk [vmem:[%s6258_s14 + $0x84] sm:$0xf] %vm2965_vm15, %v2962_v53  ;;  %v4011_v48 = vsel %vm4010_vm0, 1, %v7276_v56  ;;  %v4012_v31 = vadd.s32 %v4006_v23, %v4002_v13  ;;  %v2322_v0 = vadd.f32 %v2283_v25, %v1961_v26 }
 0x34a   : > { %v4581_v62 = vsel %vm465_vm2, %v4515_v37, 0.0  ;;  %v3992_v54 = vmul.u32 18, %v3991_v2  ;;  %v4013_v9 = vadd.s32 %v4011_v48, %v4005_v20  ;;  %v4029_v3 = vshrl.u32 %v7166_v36, 16 }
 0x34b   : > { %v4582_v27 = vadd.f32 %v4581_v62, %v4580_v19  ;;  %vm4014_vm1 = vc.u32 %v4012_v31, %v4008_v30  ;;  %v2691_v28 = vadd.f32 %v2652_v14, %v2322_v0  ;;  %v4031_v39 = vmul.u32 14564, %v4028_v12  ;;  %v2654_v30 = vpop.f32.mrf.mxu3  ;;  %v2890_v0 = vpop.f32.mrf.mxu0 }
 0x34c   : > { %v3993_v51 = vsub.s32 %v7134_v32, %v3992_v54  ;;  %v4015_v22 = vsel %vm4014_vm1, 1, %v7276_v56  ;;  %v4032_v40 = vmul.u32 58254, %v4028_v12  ;;  %v4033_v16 = vmul.u32 14564, %v4029_v3 }
 0x34d   : > { %v4017_v38 = vadd.s32 %v4015_v22, %v4013_v9  ;;  %v7182_v21 = vadd.f32 %v2888_v10, %v2691_v28  ;;  %v4034_v43 = vmul.u32 58254, %v4029_v3  ;;  %v1726_v50 = vadd.f32 %v7365_v49, %v7364_v47 }
 0x34e   : > { %vm4115_vm5 = vcmp.ne.s32.totalorder %v3993_v51, 0  ;;  %vm4151_vm3 = vcmp.lt.s32.totalorder %v3993_v51, 0  ;;  %v4223_v61 = vadd.s32 18, %v3993_v51  ;;  %v4035_v42 = vshll.u32 %v4032_v40, 16 }
 0x34f   : > { %vm4187_vm4 = vmand %vm4151_vm3, %vm4115_vm5  ;;  %v4018_v19 = vadd.s32 %v4017_v38, %v4007_v63  ;;  %v2963_v32 = vpack.c.bf16 %v7182_v21, %v7182_v21  ;;  %v4036_v45 = vshrl.u32 %v4032_v40, 16  ;;  %v4037_v29 = vshll.u32 %v4033_v16, 16 }
 0x350   : > { %v4259_v8 = vsel %vm4187_vm4, %v4223_v61, %v3993_v51  ;;  %v4038_v46 = vshrl.u32 %v4033_v16, 16  ;;  %vm4039_vm8 = vc.u32 %v4031_v39, %v4035_v42  ;;  %v4041_v4 = vadd.s32 %v4035_v42, %v4031_v39 }
 0x351   : > { %vm4295_vm9 = vcmp.lt.s32.totalorder %v4259_v8, 16  ;;  %v4019_v24 = vadd.s32 %v4018_v19, %v4009_v35  ;;  %3000 = vst.msk [vmem:[%s6258_s14 + $0x88] sm:$0xf] %vm2965_vm15, %v2963_v32  ;;  %v4040_v6 = vsel %vm4039_vm8, 1, %v7276_v56  ;;  %v7193_v15 = vadd.s32 280, %v5899_v52 }
 0x352   : > { %v4403_v59 = vsel %vm4295_vm9, %v7145_v55, 0.0  ;;  %v4042_v33 = vadd.s32 %v4040_v6, %v4034_v43  ;;  %vm4043_vm7 = vc.u32 %v4041_v4, %v4037_v29  ;;  %v1962_v26 = vadd.f32 %v1924_v18, %v1726_v50 }
 0x353   : > { %v4470_v41 = vsel %vm465_vm2, %v4403_v59, 0.0  ;;  %v4516_v57 = vmul.f32 %v4403_v59, %v4403_v59  ;;  %v4020_v13 = vshrl.u32 %v4019_v24, 4  ;;  %v4044_v7 = vsel %vm4043_vm7, 1, %v7276_v56 }
 0x354   : > { %v4471_v17 = vadd.f32 %v4470_v41, %v4469_v44  ;;  %v4046_v20 = vadd.s32 %v4044_v7, %v4042_v33  ;;  %v4057_v1 = vand.u32 65535, %v7193_v15  ;;  %v4058_v63 = vshrl.u32 %v7193_v15, 16 }
 0x355   : > { %v4583_v23 = vsel %vm465_vm2, %v4516_v57, 0.0  ;;  %v4021_v55 = vmul.u32 18, %v4020_v13  ;;  %v2323_v11 = vadd.f32 %v2285_v5, %v1962_v26  ;;  %vm4597_vm7 = vcmask 1040384  }
 0x356   : > { %v4584_v25 = vadd.f32 %v4583_v23, %v4582_v27  ;;  %v4047_v52 = vadd.s32 %v4046_v20, %v4036_v45  ;;  %v4060_v35 = vmul.u32 14564, %v4057_v1  ;;  %v4061_v58 = vmul.u32 58254, %v4057_v1 }
 0x357   : > { %v4022_v53 = vsub.s32 %v7157_v60, %v4021_v55  ;;  %v4062_v37 = vmul.u32 14564, %v4058_v63  ;;  %v2692_v44 = vadd.f32 %v2654_v30, %v2323_v11  ;;  %v4063_v48 = vmul.u32 58254, %v4058_v63 }
 0x358   : > { %v4048_v2 = vadd.s32 %v4047_v52, %v4038_v46  ;;  %v4064_v62 = vshll.u32 %v4061_v58, 16  ;;  %v4065_v22 = vshrl.u32 %v4061_v58, 16 }
 0x359   : > { %vm4116_vm6 = vcmp.ne.s32.totalorder %v4022_v53, 0  ;;  %vm4152_vm10 = vcmp.lt.s32.totalorder %v4022_v53, 0  ;;  %v4224_v31 = vadd.s32 18, %v4022_v53  ;;  %v2928_v9 = vadd.f32 %v2890_v0, %v2692_v44 }
 0x35a   : > { %vm4188_vm11 = vmand %vm4152_vm10, %vm4116_vm6  ;;  %v4049_v54 = vshrl.u32 %v4048_v2, 4  ;;  %v4066_v14 = vshll.u32 %v4062_v37, 16  ;;  %vm4068_vm12 = vc.u32 %v4060_v35, %v4064_v62  ;;  %v4070_v60 = vadd.s32 %v4064_v62, %v4060_v35 }
 0x35b   : > { %v4260_v12 = vsel %vm4188_vm11, %v4224_v31, %v4022_v53  ;;  %v2964_v28 = vpack.c.bf16 %v2928_v9, %v2928_v9  ;;  %v4069_v3 = vsel %vm4068_vm12, 1, %v7276_v56  ;;  %v4067_v61 = vshrl.u32 %v4062_v37, 16 }
 0x35c   : > { %vm4296_vm13 = vcmp.lt.s32.totalorder %v4260_v12, 16  ;;  %v4050_v27 = vmul.u32 18, %v4049_v54  ;;  %v4071_v10 = vadd.s32 %v4069_v3, %v4063_v48  ;;  %vm4072_vm14 = vc.u32 %v4070_v60, %v4066_v14 }
 0x35d   : > { %v4404_v51 = vsel %vm4296_vm13, %v7168_v34, 0.0  ;;  %3001 = vst.msk [vmem:[%s6258_s14 + $0x8c] sm:$0xf] %vm2965_vm15, %v2964_v28  ;;  %v4073_v16 = vsel %vm4072_vm14, 1, %v7276_v56 }
 0x35e   : > { %v4472_v39 = vsel %vm465_vm2, %v4404_v51, 0.0  ;;  %v4517_v40 = vmul.f32 %v4404_v51, %v4404_v51  ;;  %v4051_v38 = vsub.s32 %v7166_v36, %v4050_v27  ;;  %v4075_v42 = vadd.s32 %v4073_v16, %v4071_v10 }
 0x35f   : > { %v4473_v43 = vadd.f32 %v4472_v39, %v4471_v17 }
 0x360   : > { %v4585_v19 = vsel %vm465_vm2, %v4517_v40, 0.0  ;;  %vm4117_vm0 = vcmp.ne.s32.totalorder %v4051_v38, 0  ;;  %vm4153_vm1 = vcmp.lt.s32.totalorder %v4051_v38, 0  ;;  %v4225_v34 = vadd.s32 18, %v4051_v38 }
 0x361   : > { %v4586_v32 = vadd.f32 %v4585_v19, %v4584_v25  ;;  %vm4189_vm5 = vmand %vm4153_vm1, %vm4117_vm0  ;;  %v4076_v45 = vadd.s32 %v4075_v42, %v4065_v22 }
 0x362   : > { %v4261_v29 = vsel %vm4189_vm5, %v4225_v34, %v4051_v38 }
 0x363   : > { %vm4297_vm3 = vcmp.lt.s32.totalorder %v4261_v29, 16  ;;  %v4077_v8 = vadd.s32 %v4076_v45, %v4067_v61 }
 0x364   : > { %v4405_v36 = vsel %vm4297_vm3, %v7182_v21, 0.0 }
 0x365   : > { %v4474_v46 = vsel %vm465_vm2, %v4405_v36, 0.0  ;;  %v4518_v4 = vmul.f32 %v4405_v36, %v4405_v36  ;;  %v4078_v56 = vshrl.u32 %v4077_v8, 4 }
 0x366   : > { %v4475_v24 = vadd.f32 %v4474_v46, %v4473_v43 }
 0x367   : > { %v4587_v6 = vsel %vm465_vm2, %v4518_v4, 0.0  ;;  %v4079_v47 = vmul.u32 18, %v4078_v56 }
 0x368   : > { %v4588_v49 = vadd.f32 %v4587_v6, %v4586_v32 }
 0x369   : > { %v4080_v50 = vsub.s32 %v7193_v15, %v4079_v47 }
 0x36b   : > { %vm4118_vm15 = vcmp.ne.s32.totalorder %v4080_v50, 0  ;;  %vm4154_vm4 = vcmp.lt.s32.totalorder %v4080_v50, 0  ;;  %v4226_v18 = vadd.s32 18, %v4080_v50 }
 0x36c   : > { %vm4190_vm8 = vmand %vm4154_vm4, %vm4118_vm15 }
 0x36d   : > { %v4262_v59 = vsel %vm4190_vm8, %v4226_v18, %v4080_v50 }
 0x36e   : > { %vm4298_vm9 = vcmp.lt.s32.totalorder %v4262_v59, 16 }
 0x36f   : > { %v4406_v33 = vsel %vm4298_vm9, %v2928_v9, 0.0 }
 0x370   : > { %v4476_v21 = vsel %vm465_vm2, %v4406_v33, 0.0  ;;  %v4519_v41 = vmul.f32 %v4406_v33, %v4406_v33 }
 0x371   : > { %v4477_v57 = vadd.f32 %v4476_v21, %v4475_v24 }
 0x372   : > { %v4589_v13 = vsel %vm465_vm2, %v4519_v41, 0.0  ;;  %vm4599_vm2 = vcmask 25600  }
 0x373   : > { %v4478_v7 = vrot.slane %v4477_v57, 4  ;;  %v4590_v5 = vadd.f32 %v4589_v13, %v4588_v49 }
 0x375   : > { %v4479_v17 = vadd.f32 %v4478_v7, %v4477_v57  ;;  %v4591_v20 = vrot.slane %v4590_v5, 4 }
 0x377   : > { %v4480_v26 = vrot.slane %v4479_v17, 2  ;;  %v4592_v15 = vadd.f32 %v4591_v20, %v4590_v5 }
 0x379   : > { %v4481_v1 = vadd.f32 %v4480_v26, %v4479_v17  ;;  %v4593_v23 = vrot.slane %v4592_v15, 2 }
 0x37b   : > { %v4482_v55 = vrot.slane %v4481_v1, 1  ;;  %v4594_v63 = vadd.f32 %v4593_v23, %v4592_v15 }
 0x37d   : > { %v4595_v25 = vrot.slane %v4594_v63, 1  ;;  %v4483_v52 = vadd.f32 %v4482_v55, %v4481_v1 }
 0x37f   : > { %v4596_v11 = vadd.f32 %v4595_v25, %v4594_v63 }
 0x381   : > { %v4598_v53 = vsel %vm4597_vm7, %v4483_v52, %v4596_v11 }
 0x382   : > { %4600 = vst.msk [vmem:[%s181_s18] sm:$0x3] %vm4599_vm2, %v4598_v53 }
 0x383 PF: > { %s14_s12 = sadd.s32 1, %s5169_s12  }
 0x384   : > { %p11_p4 = scmp.ge.s32.totalorder %s14_s12, 4  }
 0x386   :  { %13 = sbr.rel (!%p11_p4) target bundleno = 1 (0x1), region = 78 }

</bundles_post_ra>
